<compile_context>
chip_gen: v5e
topology: v5e:2x2
jax: 0.10.0
libtpu: 0.0.40
codegen_flags: <defaults>
</compile_context>

<pallas_src>
import math
import functools

import jax
import jax.numpy as jnp
from jax.experimental import pallas as pl
from jax.experimental.pallas import tpu as pltpu


# ---------------------------------------------------------------------------
# helpers
# ---------------------------------------------------------------------------
def _layernorm(x, gamma, beta, eps):
    # x, gamma, beta in f32
    mu = jnp.mean(x, axis=-1, keepdims=True)
    var = jnp.mean((x - mu) * (x - mu), axis=-1, keepdims=True)
    return (x - mu) * jax.lax.rsqrt(var + eps) * gamma + beta


def _gelu_tanh(x):
    # torch.nn.functional.gelu(x, approximate='tanh'), f32
    c = math.sqrt(2.0 / math.pi)
    return 0.5 * x * (1.0 + jnp.tanh(c * (x + 0.044715 * x * x * x)))


# ---------------------------------------------------------------------------
# Kernel
# ---------------------------------------------------------------------------
def transformer_block_kernel(
    # inputs
    x_full_ref,                 # (1, S, D)   bf16 -- full sequence (K/V source)
    x_tile_ref,                 # (1, TQ, D)  bf16 -- query tile
    ln1_g_ref, ln1_b_ref,       # (1, D)      f32
    wq_ref, wk_ref, wv_ref,     # (D, Hd)     bf16
    wo_ref, bo_ref,             # (Hd, D) bf16, (1, D) f32
    ln3_g_ref, ln3_b_ref,       # (1, D)      f32
    wg_ref, bg_ref,             # (D, 2F) bf16, (1, 2F) f32
    w2_ref, b2_ref,             # (F, D)  bf16, (1, D)  f32
    # output
    o_ref,                      # (1, TQ, D)  bf16
    # scratch (persists across grid steps)
    k_scratch,                  # (H, S, d)   bf16
    v_scratch,                  # (H, S, d)   bf16
    *,
    num_heads: int,
    head_dim: int,
    ff_inner: int,
    eps: float,
):
    qi = pl.program_id(1)

    ln1_g = ln1_g_ref[0].astype(jnp.float32)
    ln1_b = ln1_b_ref[0].astype(jnp.float32)

    # ---- K/V for the whole sequence: compute once per batch element --------
    @pl.when(qi == 0)
    def _compute_kv():
        x_full = x_full_ref[0].astype(jnp.float32)                 # (S, D)
        xn_full = _layernorm(x_full, ln1_g, ln1_b, eps).astype(jnp.bfloat16)
        k = jnp.dot(xn_full, wk_ref[...], preferred_element_type=jnp.float32)
        v = jnp.dot(xn_full, wv_ref[...], preferred_element_type=jnp.float32)
        s_len = x_full.shape[0]
        k_scratch[...] = jnp.transpose(
            k.reshape(s_len, num_heads, head_dim), (1, 0, 2)).astype(jnp.bfloat16)
        v_scratch[...] = jnp.transpose(
            v.reshape(s_len, num_heads, head_dim), (1, 0, 2)).astype(jnp.bfloat16)

    # ---- query-tile path ----------------------------------------------------
    x_t = x_tile_ref[0].astype(jnp.float32)                        # (TQ, D)
    xn_t = _layernorm(x_t, ln1_g, ln1_b, eps).astype(jnp.bfloat16)

    q = jnp.dot(xn_t, wq_ref[...], preferred_element_type=jnp.float32)  # (TQ, Hd)
    q = q * (1.0 / math.sqrt(head_dim))                   # fold scale into Q
    tq = q.shape[0]
    q_h = jnp.transpose(
        q.reshape(tq, num_heads, head_dim), (1, 0, 2)).astype(jnp.bfloat16)  # (H,TQ,d)

    k_h = k_scratch[...]                                           # (H, S, d) bf16
    v_h = v_scratch[...]

    # batched QK^T: contraction over last axis of both operands (no .T)
    s = jnp.einsum("htd,hsd->hts", q_h, k_h,
                   preferred_element_type=jnp.float32)             # (H, TQ, S) f32
    s = s - jnp.max(s, axis=-1, keepdims=True)
    p = jnp.exp(s)
    p = p * pl.reciprocal(jnp.sum(p, axis=-1, keepdims=True), approx=True)

    attn = jnp.einsum("hts,hsd->htd", p.astype(jnp.bfloat16), v_h,
                      preferred_element_type=jnp.float32)          # (H, TQ, d)
    attn = jnp.transpose(attn, (1, 0, 2)).reshape(tq, num_heads * head_dim)
    attn = (jnp.dot(attn.astype(jnp.bfloat16), wo_ref[...],
                    preferred_element_type=jnp.float32)
            + bo_ref[0].astype(jnp.float32))

    h1 = attn + x_t                                                # residual 1

    # ---- LayerNorm3 + GEGLU feed-forward ------------------------------------
    h1n = _layernorm(h1, ln3_g_ref[0].astype(jnp.float32),
                     ln3_b_ref[0].astype(jnp.float32), eps)
    proj = (jnp.dot(h1n.astype(jnp.bfloat16), wg_ref[...],
                    preferred_element_type=jnp.float32)
            + bg_ref[0].astype(jnp.float32))                       # (TQ, 2F)
    hidden = proj[:, :ff_inner]
    gate = proj[:, ff_inner:]
    g = hidden * _gelu_tanh(gate)
    ff = (jnp.dot(g.astype(jnp.bfloat16), w2_ref[...],
                  preferred_element_type=jnp.float32)
          + b2_ref[0].astype(jnp.float32))

    o_ref[0] = (ff + h1).astype(o_ref.dtype)                       # residual 2


# ---------------------------------------------------------------------------
# Wrapper
# ---------------------------------------------------------------------------
def basic_transformer_block(x, params, *, num_heads, head_dim, eps=1e-5, q_tile=64):
    B, S, D = x.shape
    Hd = num_heads * head_dim
    ff_inner = params["w_ff2"].shape[0]
    assert S % q_tile == 0
    num_q = S // q_tile

    def rep(shape):
        # full-array block replicated across the (b, qi) grid
        return pl.BlockSpec(shape, lambda b, qi: (0,) * len(shape))

    kernel = functools.partial(
        transformer_block_kernel,
        num_heads=num_heads, head_dim=head_dim, ff_inner=ff_inner, eps=eps)

    in_specs = [
        pl.BlockSpec((1, S, D), lambda b, qi: (b, 0, 0)),           # x (full, K/V)
        pl.BlockSpec((1, q_tile, D), lambda b, qi: (b, qi, 0)),     # x (query tile)
        rep((1, D)), rep((1, D)),                                   # ln1 gamma/beta
        rep((D, Hd)), rep((D, Hd)), rep((D, Hd)),                   # wq, wk, wv
        rep((Hd, D)), rep((1, D)),                                  # wo, bo
        rep((1, D)), rep((1, D)),                                   # ln3 gamma/beta
        rep((D, 2 * ff_inner)), rep((1, 2 * ff_inner)),             # geglu proj
        rep((ff_inner, D)), rep((1, D)),                            # ff out proj
    ]

    return pl.pallas_call(
        kernel,
        out_shape=jax.ShapeDtypeStruct((B, S, D), x.dtype),
        grid_spec=pltpu.PrefetchScalarGridSpec(
            num_scalar_prefetch=0,
            grid=(B, num_q),
            in_specs=in_specs,
            out_specs=pl.BlockSpec((1, q_tile, D), lambda b, qi: (b, qi, 0)),
            scratch_shapes=[
                pltpu.VMEM((num_heads, S, head_dim), jnp.bfloat16),  # K
                pltpu.VMEM((num_heads, S, head_dim), jnp.bfloat16),  # V
            ],
        ),
        compiler_params=pltpu.CompilerParams(
            dimension_semantics=("parallel", "arbitrary"),
            vmem_limit_bytes=64 * 1024 * 1024,
        ),
    )(
        x, x,
        params["ln1_g"], params["ln1_b"],
        params["wq"], params["wk"], params["wv"],
        params["wo"], params["bo"],
        params["ln3_g"], params["ln3_b"],
        params["w_geglu"], params["b_geglu"],
        params["w_ff2"], params["b_ff2"],
    )


# ---------------------------------------------------------------------------
# Pure-JAX reference (same bf16-matmul / f32-accumulate path)
# ---------------------------------------------------------------------------
def reference(x, p, *, num_heads, head_dim, eps=1e-5):
    f32, bf16 = jnp.float32, jnp.bfloat16

    def ln(v, g, b):
        mu = jnp.mean(v, -1, keepdims=True)
        var = jnp.mean((v - mu) ** 2, -1, keepdims=True)
        return (v - mu) * jax.lax.rsqrt(var + eps) * g[0].astype(f32) + b[0].astype(f32)

    B, S, D = x.shape
    xf = x.astype(f32)
    xn = ln(xf, p["ln1_g"], p["ln1_b"]).astype(bf16)
    q = jnp.einsum("bsd,df->bsf", xn, p["wq"], preferred_element_type=f32)
    k = jnp.einsum("bsd,df->bsf", xn, p["wk"], preferred_element_type=f32)
    v = jnp.einsum("bsd,df->bsf", xn, p["wv"], preferred_element_type=f32)
    q = q * (1.0 / math.sqrt(head_dim))
    q = q.reshape(B, S, num_heads, head_dim).transpose(0, 2, 1, 3).astype(bf16)
    k = k.reshape(B, S, num_heads, head_dim).transpose(0, 2, 1, 3).astype(bf16)
    v = v.reshape(B, S, num_heads, head_dim).transpose(0, 2, 1, 3).astype(bf16)
    s = jnp.einsum("bhqd,bhkd->bhqk", q, k, preferred_element_type=f32)
    s = s - jnp.max(s, -1, keepdims=True)
    pr = jnp.exp(s)
    pr = pr / jnp.sum(pr, -1, keepdims=True)
    o = jnp.einsum("bhqk,bhkd->bhqd", pr.astype(bf16), v, preferred_element_type=f32)
    o = o.transpose(0, 2, 1, 3).reshape(B, S, num_heads * head_dim)
    o = jnp.einsum("bsf,fd->bsd", o.astype(bf16), p["wo"],
                   preferred_element_type=f32) + p["bo"][0].astype(f32)
    h1 = o + xf
    h1n = ln(h1, p["ln3_g"], p["ln3_b"])
    proj = jnp.einsum("bsd,df->bsf", h1n.astype(bf16), p["w_geglu"],
                      preferred_element_type=f32) + p["b_geglu"][0].astype(f32)
    F = p["w_ff2"].shape[0]
    hid, gate = proj[..., :F], proj[..., F:]
    g = hid * _gelu_tanh(gate)
    ff = jnp.einsum("bsf,fd->bsd", g.astype(bf16), p["w_ff2"],
                    preferred_element_type=f32) + p["b_ff2"][0].astype(f32)
    return (ff + h1).astype(x.dtype)


# ---------------------------------------------------------------------------
# Main
# ---------------------------------------------------------------------------
if __name__ == "__main__":
    B, S, D = 2, 128, 128            # lane-dense dims (multiples of 128)
    num_heads, head_dim = 2, 64      # head_dim >= 64 for MXU contraction depth
    Hd = num_heads * head_dim        # 128
    ff_inner = 4 * D                 # 512 (mult=4)
    q_tile = 64

    key = jax.random.PRNGKey(0)
    keys = jax.random.split(key, 10)

    def init_bf16(k, shape, scale=0.05):
        return (jax.random.normal(k, shape, jnp.float32) * scale).astype(jnp.bfloat16)

    def init_f32(k, shape, scale=0.05):
        return jax.random.normal(k, shape, jnp.float32) * scale

    params = {
        "ln1_g": jnp.ones((1, D), jnp.float32),
        "ln1_b": jnp.zeros((1, D), jnp.float32),
        "wq": init_bf16(keys[0], (D, Hd)),
        "wk": init_bf16(keys[1], (D, Hd)),
        "wv": init_bf16(keys[2], (D, Hd)),
        "wo": init_bf16(keys[3], (Hd, D)),
        "bo": init_f32(keys[4], (1, D)),
        "ln3_g": jnp.ones((1, D), jnp.float32),
        "ln3_b": jnp.zeros((1, D), jnp.float32),
        "w_geglu": init_bf16(keys[5], (D, 2 * ff_inner)),
        "b_geglu": init_f32(keys[6], (1, 2 * ff_inner)),
        "w_ff2": init_bf16(keys[7], (ff_inner, D)),
        "b_ff2": init_f32(keys[8], (1, D)),
    }

    x = jax.random.normal(keys[9], (B, S, D), jnp.float32).astype(jnp.bfloat16)

    out = basic_transformer_block(x, params, num_heads=num_heads,
                                  head_dim=head_dim, q_tile=q_tile)
    out = jax.block_until_ready(out)

    ref = reference(x, params, num_heads=num_heads, head_dim=head_dim)
    assert out.shape == (B, S, D)
    err = jnp.max(jnp.abs(out.astype(jnp.float32) - ref.astype(jnp.float32)))
    # tolerance covers pl.reciprocal(approx=True) in the softmax denominator
    # and bf16 output rounding.
    assert err < 2e-2, f"mismatch vs reference: max abs err = {err}"

    print("KERNEL_OK")
</pallas_src>

<mosaic_0001>
module attributes {stable_mosaic.version = 11 : i64} {
  func.func @transformer_block_kernel(%arg0: i32, %arg1: i32, %arg2: memref<1x128x128xbf16, #tpu.memory_space<vmem>>, %arg3: memref<1x64x128xbf16, #tpu.memory_space<vmem>>, %arg4: memref<1x128xf32, #tpu.memory_space<vmem>>, %arg5: memref<1x128xf32, #tpu.memory_space<vmem>>, %arg6: memref<128x128xbf16, #tpu.memory_space<vmem>>, %arg7: memref<128x128xbf16, #tpu.memory_space<vmem>>, %arg8: memref<128x128xbf16, #tpu.memory_space<vmem>>, %arg9: memref<128x128xbf16, #tpu.memory_space<vmem>>, %arg10: memref<1x128xf32, #tpu.memory_space<vmem>>, %arg11: memref<1x128xf32, #tpu.memory_space<vmem>>, %arg12: memref<1x128xf32, #tpu.memory_space<vmem>>, %arg13: memref<128x1024xbf16, #tpu.memory_space<vmem>>, %arg14: memref<1x1024xf32, #tpu.memory_space<vmem>>, %arg15: memref<512x128xbf16, #tpu.memory_space<vmem>>, %arg16: memref<1x128xf32, #tpu.memory_space<vmem>>, %arg17: memref<1x64x128xbf16, #tpu.memory_space<vmem>>, %arg18: memref<2x128x64xbf16, #tpu.memory_space<vmem>>, %arg19: memref<2x128x64xbf16, #tpu.memory_space<vmem>>) attributes {dimension_semantics = [#tpu.dimension_semantics<parallel>, #tpu.dimension_semantics<arbitrary>], iteration_bounds = array<i64: 2, 2>, scalar_prefetch = 0 : i64, scratch_operands = 2 : i64, tpu.core_type = #tpu.core_type<tc>, window_params = [{transform_indices = @transform_0, window_bounds = array<i64: 1, 128, 128>}, {transform_indices = @transform_1, window_bounds = array<i64: 1, 64, 128>}, {pipeline_mode = #tpu.pipeline_mode<synchronous>, transform_indices = @transform_2, window_bounds = array<i64: 1, 128>}, {pipeline_mode = #tpu.pipeline_mode<synchronous>, transform_indices = @transform_3, window_bounds = array<i64: 1, 128>}, {pipeline_mode = #tpu.pipeline_mode<synchronous>, transform_indices = @transform_4, window_bounds = array<i64: 128, 128>}, {pipeline_mode = #tpu.pipeline_mode<synchronous>, transform_indices = @transform_5, window_bounds = array<i64: 128, 128>}, {pipeline_mode = #tpu.pipeline_mode<synchronous>, transform_indices = @transform_6, window_bounds = array<i64: 128, 128>}, {pipeline_mode = #tpu.pipeline_mode<synchronous>, transform_indices = @transform_7, window_bounds = array<i64: 128, 128>}, {pipeline_mode = #tpu.pipeline_mode<synchronous>, transform_indices = @transform_8, window_bounds = array<i64: 1, 128>}, {pipeline_mode = #tpu.pipeline_mode<synchronous>, transform_indices = @transform_9, window_bounds = array<i64: 1, 128>}, {pipeline_mode = #tpu.pipeline_mode<synchronous>, transform_indices = @transform_10, window_bounds = array<i64: 1, 128>}, {pipeline_mode = #tpu.pipeline_mode<synchronous>, transform_indices = @transform_11, window_bounds = array<i64: 128, 1024>}, {pipeline_mode = #tpu.pipeline_mode<synchronous>, transform_indices = @transform_12, window_bounds = array<i64: 1, 1024>}, {pipeline_mode = #tpu.pipeline_mode<synchronous>, transform_indices = @transform_13, window_bounds = array<i64: 512, 128>}, {pipeline_mode = #tpu.pipeline_mode<synchronous>, transform_indices = @transform_14, window_bounds = array<i64: 1, 128>}, {transform_indices = @transform_15, window_bounds = array<i64: 1, 64, 128>}]} {
    %c0 = arith.constant 0 : index
    %c0_0 = arith.constant 0 : index
    %0 = vector.load %arg4[%c0, %c0_0] : memref<1x128xf32, #tpu.memory_space<vmem>>, vector<1x128xf32>
    %1 = vector.shape_cast %0 : vector<1x128xf32> to vector<128xf32>
    %c0_1 = arith.constant 0 : index
    %c0_2 = arith.constant 0 : index
    %2 = vector.load %arg5[%c0_1, %c0_2] : memref<1x128xf32, #tpu.memory_space<vmem>>, vector<1x128xf32>
    %3 = vector.shape_cast %2 : vector<1x128xf32> to vector<128xf32>
    %c0_i32 = arith.constant 0 : i32
    %4 = arith.cmpi eq, %arg1, %c0_i32 : i32
    %5 = arith.extui %4 : i1 to i32
    %c0_i32_3 = arith.constant 0 : i32
    %6 = arith.cmpi ne, %5, %c0_i32_3 : i32
    scf.if %6 {
      %c0_56 = arith.constant 0 : index
      %c0_57 = arith.constant 0 : index
      %c0_58 = arith.constant 0 : index
      %137 = vector.load %arg2[%c0_56, %c0_57, %c0_58] : memref<1x128x128xbf16, #tpu.memory_space<vmem>>, vector<1x128x128xbf16>
      %138 = vector.shape_cast %137 : vector<1x128x128xbf16> to vector<128x128xbf16>
      %139 = arith.extf %138 : vector<128x128xbf16> to vector<128x128xf32>
      %cst_59 = arith.constant dense<0.000000e+00> : vector<128xf32>
      %140 = vector.multi_reduction <add>, %139, %cst_59 [1] : vector<128x128xf32> to vector<128xf32>
      %141 = vector.shape_cast %140 : vector<128xf32> to vector<128x1xf32>
      %cst_60 = arith.constant 1.280000e+02 : f32
      %142 = vector.broadcast %cst_60 : f32 to vector<128x1xf32>
      %143 = arith.divf %141, %142 : vector<128x1xf32>
      %144 = vector.broadcast %143 : vector<128x1xf32> to vector<128x128xf32>
      %145 = arith.subf %139, %144 : vector<128x128xf32>
      %146 = vector.broadcast %143 : vector<128x1xf32> to vector<128x128xf32>
      %147 = arith.subf %139, %146 : vector<128x128xf32>
      %148 = arith.mulf %145, %147 : vector<128x128xf32>
      %cst_61 = arith.constant dense<0.000000e+00> : vector<128xf32>
      %149 = vector.multi_reduction <add>, %148, %cst_61 [1] : vector<128x128xf32> to vector<128xf32>
      %150 = vector.shape_cast %149 : vector<128xf32> to vector<128x1xf32>
      %cst_62 = arith.constant 1.280000e+02 : f32
      %151 = vector.broadcast %cst_62 : f32 to vector<128x1xf32>
      %152 = arith.divf %150, %151 : vector<128x1xf32>
      %153 = vector.broadcast %143 : vector<128x1xf32> to vector<128x128xf32>
      %154 = arith.subf %139, %153 : vector<128x128xf32>
      %cst_63 = arith.constant 9.99999974E-6 : f32
      %155 = vector.broadcast %cst_63 : f32 to vector<128x1xf32>
      %156 = arith.addf %152, %155 : vector<128x1xf32>
      %157 = math.rsqrt %156 : vector<128x1xf32>
      %158 = vector.broadcast %157 : vector<128x1xf32> to vector<128x128xf32>
      %159 = arith.mulf %154, %158 : vector<128x128xf32>
      %160 = vector.shape_cast %1 : vector<128xf32> to vector<1x128xf32>
      %161 = vector.broadcast %160 : vector<1x128xf32> to vector<128x128xf32>
      %162 = arith.mulf %159, %161 : vector<128x128xf32>
      %163 = vector.shape_cast %3 : vector<128xf32> to vector<1x128xf32>
      %164 = vector.broadcast %163 : vector<1x128xf32> to vector<128x128xf32>
      %165 = arith.addf %162, %164 : vector<128x128xf32>
      %166 = arith.truncf %165 : vector<128x128xf32> to vector<128x128xbf16>
      %c0_64 = arith.constant 0 : index
      %c0_65 = arith.constant 0 : index
      %167 = vector.load %arg7[%c0_64, %c0_65] : memref<128x128xbf16, #tpu.memory_space<vmem>>, vector<128x128xbf16>
      %cst_66 = arith.constant dense<0.000000e+00> : vector<128x128xf32>
      %168 = tpu.matmul %166, %167, %cst_66 {dimension_numbers = #tpu.dot_dimension_numbers<[1], [0], [0], [1], [0, 0, 1, 1], [], []>} : vector<128x128xbf16>, vector<128x128xbf16>, vector<128x128xf32> -> vector<128x128xf32>
      %c0_67 = arith.constant 0 : index
      %c0_68 = arith.constant 0 : index
      %169 = vector.load %arg8[%c0_67, %c0_68] : memref<128x128xbf16, #tpu.memory_space<vmem>>, vector<128x128xbf16>
      %cst_69 = arith.constant dense<0.000000e+00> : vector<128x128xf32>
      %170 = tpu.matmul %166, %169, %cst_69 {dimension_numbers = #tpu.dot_dimension_numbers<[1], [0], [0], [1], [0, 0, 1, 1], [], []>} : vector<128x128xbf16>, vector<128x128xbf16>, vector<128x128xf32> -> vector<128x128xf32>
      %171 = vector.shape_cast %168 : vector<128x128xf32> to vector<128x2x64xf32>
      %172 = tpu.transpose %171, [1, 0, 2] : vector<128x2x64xf32> -> vector<2x128x64xf32>
      %173 = arith.truncf %172 : vector<2x128x64xf32> to vector<2x128x64xbf16>
      %c0_70 = arith.constant 0 : index
      %c0_71 = arith.constant 0 : index
      %c0_72 = arith.constant 0 : index
      %174 = vector.load %arg18[%c0_70, %c0_71, %c0_72] : memref<2x128x64xbf16, #tpu.memory_space<vmem>>, vector<2x128x64xbf16>
      tpu.vector_store %arg18[%c0_70, %c0_71, %c0_72], %173 {strides = array<i32>} : memref<2x128x64xbf16, #tpu.memory_space<vmem>>, vector<2x128x64xbf16>,
      %175 = vector.shape_cast %170 : vector<128x128xf32> to vector<128x2x64xf32>
      %176 = tpu.transpose %175, [1, 0, 2] : vector<128x2x64xf32> -> vector<2x128x64xf32>
      %177 = arith.truncf %176 : vector<2x128x64xf32> to vector<2x128x64xbf16>
      %c0_73 = arith.constant 0 : index
      %c0_74 = arith.constant 0 : index
      %c0_75 = arith.constant 0 : index
      %178 = vector.load %arg19[%c0_73, %c0_74, %c0_75] : memref<2x128x64xbf16, #tpu.memory_space<vmem>>, vector<2x128x64xbf16>
      tpu.vector_store %arg19[%c0_73, %c0_74, %c0_75], %177 {strides = array<i32>} : memref<2x128x64xbf16, #tpu.memory_space<vmem>>, vector<2x128x64xbf16>,
    } else {
    }
    %c0_4 = arith.constant 0 : index
    %c0_5 = arith.constant 0 : index
    %c0_6 = arith.constant 0 : index
    %7 = vector.load %arg3[%c0_4, %c0_5, %c0_6] : memref<1x64x128xbf16, #tpu.memory_space<vmem>>, vector<1x64x128xbf16>
    %8 = vector.shape_cast %7 : vector<1x64x128xbf16> to vector<64x128xbf16>
    %9 = arith.extf %8 : vector<64x128xbf16> to vector<64x128xf32>
    %cst = arith.constant dense<0.000000e+00> : vector<64xf32>
    %10 = vector.multi_reduction <add>, %9, %cst [1] : vector<64x128xf32> to vector<64xf32>
    %11 = vector.shape_cast %10 : vector<64xf32> to vector<64x1xf32>
    %cst_7 = arith.constant 1.280000e+02 : f32
    %12 = vector.broadcast %cst_7 : f32 to vector<64x1xf32>
    %13 = arith.divf %11, %12 : vector<64x1xf32>
    %14 = vector.broadcast %13 : vector<64x1xf32> to vector<64x128xf32>
    %15 = arith.subf %9, %14 : vector<64x128xf32>
    %16 = vector.broadcast %13 : vector<64x1xf32> to vector<64x128xf32>
    %17 = arith.subf %9, %16 : vector<64x128xf32>
    %18 = arith.mulf %15, %17 : vector<64x128xf32>
    %cst_8 = arith.constant dense<0.000000e+00> : vector<64xf32>
    %19 = vector.multi_reduction <add>, %18, %cst_8 [1] : vector<64x128xf32> to vector<64xf32>
    %20 = vector.shape_cast %19 : vector<64xf32> to vector<64x1xf32>
    %cst_9 = arith.constant 1.280000e+02 : f32
    %21 = vector.broadcast %cst_9 : f32 to vector<64x1xf32>
    %22 = arith.divf %20, %21 : vector<64x1xf32>
    %23 = vector.broadcast %13 : vector<64x1xf32> to vector<64x128xf32>
    %24 = arith.subf %9, %23 : vector<64x128xf32>
    %cst_10 = arith.constant 9.99999974E-6 : f32
    %25 = vector.broadcast %cst_10 : f32 to vector<64x1xf32>
    %26 = arith.addf %22, %25 : vector<64x1xf32>
    %27 = math.rsqrt %26 : vector<64x1xf32>
    %28 = vector.broadcast %27 : vector<64x1xf32> to vector<64x128xf32>
    %29 = arith.mulf %24, %28 : vector<64x128xf32>
    %30 = vector.shape_cast %1 : vector<128xf32> to vector<1x128xf32>
    %31 = vector.broadcast %30 : vector<1x128xf32> to vector<64x128xf32>
    %32 = arith.mulf %29, %31 : vector<64x128xf32>
    %33 = vector.shape_cast %3 : vector<128xf32> to vector<1x128xf32>
    %34 = vector.broadcast %33 : vector<1x128xf32> to vector<64x128xf32>
    %35 = arith.addf %32, %34 : vector<64x128xf32>
    %36 = arith.truncf %35 : vector<64x128xf32> to vector<64x128xbf16>
    %c0_11 = arith.constant 0 : index
    %c0_12 = arith.constant 0 : index
    %37 = vector.load %arg6[%c0_11, %c0_12] : memref<128x128xbf16, #tpu.memory_space<vmem>>, vector<128x128xbf16>
    %cst_13 = arith.constant dense<0.000000e+00> : vector<64x128xf32>
    %38 = tpu.matmul %36, %37, %cst_13 {dimension_numbers = #tpu.dot_dimension_numbers<[1], [0], [0], [1], [0, 0, 1, 1], [], []>} : vector<64x128xbf16>, vector<128x128xbf16>, vector<64x128xf32> -> vector<64x128xf32>
    %cst_14 = arith.constant 1.250000e-01 : f32
    %39 = vector.broadcast %cst_14 : f32 to vector<64x128xf32>
    %40 = arith.mulf %38, %39 : vector<64x128xf32>
    %41 = vector.shape_cast %40 : vector<64x128xf32> to vector<64x2x64xf32>
    %42 = tpu.transpose %41, [1, 0, 2] : vector<64x2x64xf32> -> vector<2x64x64xf32>
    %43 = arith.truncf %42 : vector<2x64x64xf32> to vector<2x64x64xbf16>
    %c0_15 = arith.constant 0 : index
    %c0_16 = arith.constant 0 : index
    %c0_17 = arith.constant 0 : index
    %44 = vector.load %arg18[%c0_15, %c0_16, %c0_17] : memref<2x128x64xbf16, #tpu.memory_space<vmem>>, vector<2x128x64xbf16>
    %c0_18 = arith.constant 0 : index
    %c0_19 = arith.constant 0 : index
    %c0_20 = arith.constant 0 : index
    %45 = vector.load %arg19[%c0_18, %c0_19, %c0_20] : memref<2x128x64xbf16, #tpu.memory_space<vmem>>, vector<2x128x64xbf16>
    "tpu.trace_start"() <{level = 10 : i32, message = "htd,hsd->hts"}> : () -> ()
    %cst_21 = arith.constant dense<0.000000e+00> : vector<2x64x128xf32>
    %46 = tpu.matmul %43, %44, %cst_21 {dimension_numbers = #tpu.dot_dimension_numbers<[2], [2], [1], [1], [0, 0, 0, 1, 1, 1], [0], [0]>} : vector<2x64x64xbf16>, vector<2x128x64xbf16>, vector<2x64x128xf32> -> vector<2x64x128xf32>
    "tpu.trace_stop"() : () -> ()
    %cst_22 = arith.constant dense<0xFF800000> : vector<2x64xf32>
    %47 = vector.multi_reduction <maximumf>, %46, %cst_22 [2] : vector<2x64x128xf32> to vector<2x64xf32>
    %48 = vector.shape_cast %47 : vector<2x64xf32> to vector<2x64x1xf32>
    %49 = vector.broadcast %48 : vector<2x64x1xf32> to vector<2x64x128xf32>
    %50 = arith.subf %46, %49 : vector<2x64x128xf32>
    %51 = math.exp %50 : vector<2x64x128xf32>
    %cst_23 = arith.constant dense<0.000000e+00> : vector<2x64xf32>
    %52 = vector.multi_reduction <add>, %51, %cst_23 [2] : vector<2x64x128xf32> to vector<2x64xf32>
    %53 = vector.shape_cast %52 : vector<2x64xf32> to vector<2x64x1xf32>
    %54 = tpu.reciprocal %53 {approx = true} : vector<2x64x1xf32> -> vector<2x64x1xf32>
    %55 = vector.broadcast %54 : vector<2x64x1xf32> to vector<2x64x128xf32>
    %56 = arith.mulf %51, %55 : vector<2x64x128xf32>
    %57 = arith.truncf %56 : vector<2x64x128xf32> to vector<2x64x128xbf16>
    "tpu.trace_start"() <{level = 10 : i32, message = "hts,hsd->htd"}> : () -> ()
    %cst_24 = arith.constant dense<0.000000e+00> : vector<2x64x64xf32>
    %58 = tpu.matmul %57, %45, %cst_24 {dimension_numbers = #tpu.dot_dimension_numbers<[2], [1], [1], [2], [0, 0, 0, 1, 1, 2], [0], [0]>} : vector<2x64x128xbf16>, vector<2x128x64xbf16>, vector<2x64x64xf32> -> vector<2x64x64xf32>
    "tpu.trace_stop"() : () -> ()
    %59 = tpu.transpose %58, [1, 0, 2] : vector<2x64x64xf32> -> vector<64x2x64xf32>
    %60 = vector.shape_cast %59 : vector<64x2x64xf32> to vector<64x128xf32>
    %61 = arith.truncf %60 : vector<64x128xf32> to vector<64x128xbf16>
    %c0_25 = arith.constant 0 : index
    %c0_26 = arith.constant 0 : index
    %62 = vector.load %arg9[%c0_25, %c0_26] : memref<128x128xbf16, #tpu.memory_space<vmem>>, vector<128x128xbf16>
    %cst_27 = arith.constant dense<0.000000e+00> : vector<64x128xf32>
    %63 = tpu.matmul %61, %62, %cst_27 {dimension_numbers = #tpu.dot_dimension_numbers<[1], [0], [0], [1], [0, 0, 1, 1], [], []>} : vector<64x128xbf16>, vector<128x128xbf16>, vector<64x128xf32> -> vector<64x128xf32>
    %c0_28 = arith.constant 0 : index
    %c0_29 = arith.constant 0 : index
    %64 = vector.load %arg10[%c0_28, %c0_29] : memref<1x128xf32, #tpu.memory_space<vmem>>, vector<1x128xf32>
    %65 = vector.shape_cast %64 : vector<1x128xf32> to vector<128xf32>
    %66 = vector.shape_cast %65 : vector<128xf32> to vector<1x128xf32>
    %67 = vector.broadcast %66 : vector<1x128xf32> to vector<64x128xf32>
    %68 = arith.addf %63, %67 : vector<64x128xf32>
    %69 = arith.addf %68, %9 : vector<64x128xf32>
    %c0_30 = arith.constant 0 : index
    %c0_31 = arith.constant 0 : index
    %70 = vector.load %arg11[%c0_30, %c0_31] : memref<1x128xf32, #tpu.memory_space<vmem>>, vector<1x128xf32>
    %71 = vector.shape_cast %70 : vector<1x128xf32> to vector<128xf32>
    %c0_32 = arith.constant 0 : index
    %c0_33 = arith.constant 0 : index
    %72 = vector.load %arg12[%c0_32, %c0_33] : memref<1x128xf32, #tpu.memory_space<vmem>>, vector<1x128xf32>
    %73 = vector.shape_cast %72 : vector<1x128xf32> to vector<128xf32>
    %cst_34 = arith.constant dense<0.000000e+00> : vector<64xf32>
    %74 = vector.multi_reduction <add>, %69, %cst_34 [1] : vector<64x128xf32> to vector<64xf32>
    %75 = vector.shape_cast %74 : vector<64xf32> to vector<64x1xf32>
    %cst_35 = arith.constant 1.280000e+02 : f32
    %76 = vector.broadcast %cst_35 : f32 to vector<64x1xf32>
    %77 = arith.divf %75, %76 : vector<64x1xf32>
    %78 = vector.broadcast %77 : vector<64x1xf32> to vector<64x128xf32>
    %79 = arith.subf %69, %78 : vector<64x128xf32>
    %80 = vector.broadcast %77 : vector<64x1xf32> to vector<64x128xf32>
    %81 = arith.subf %69, %80 : vector<64x128xf32>
    %82 = arith.mulf %79, %81 : vector<64x128xf32>
    %cst_36 = arith.constant dense<0.000000e+00> : vector<64xf32>
    %83 = vector.multi_reduction <add>, %82, %cst_36 [1] : vector<64x128xf32> to vector<64xf32>
    %84 = vector.shape_cast %83 : vector<64xf32> to vector<64x1xf32>
    %cst_37 = arith.constant 1.280000e+02 : f32
    %85 = vector.broadcast %cst_37 : f32 to vector<64x1xf32>
    %86 = arith.divf %84, %85 : vector<64x1xf32>
    %87 = vector.broadcast %77 : vector<64x1xf32> to vector<64x128xf32>
    %88 = arith.subf %69, %87 : vector<64x128xf32>
    %cst_38 = arith.constant 9.99999974E-6 : f32
    %89 = vector.broadcast %cst_38 : f32 to vector<64x1xf32>
    %90 = arith.addf %86, %89 : vector<64x1xf32>
    %91 = math.rsqrt %90 : vector<64x1xf32>
    %92 = vector.broadcast %91 : vector<64x1xf32> to vector<64x128xf32>
    %93 = arith.mulf %88, %92 : vector<64x128xf32>
    %94 = vector.shape_cast %71 : vector<128xf32> to vector<1x128xf32>
    %95 = vector.broadcast %94 : vector<1x128xf32> to vector<64x128xf32>
    %96 = arith.mulf %93, %95 : vector<64x128xf32>
    %97 = vector.shape_cast %73 : vector<128xf32> to vector<1x128xf32>
    %98 = vector.broadcast %97 : vector<1x128xf32> to vector<64x128xf32>
    %99 = arith.addf %96, %98 : vector<64x128xf32>
    %100 = arith.truncf %99 : vector<64x128xf32> to vector<64x128xbf16>
    %c0_39 = arith.constant 0 : index
    %c0_40 = arith.constant 0 : index
    %101 = vector.load %arg13[%c0_39, %c0_40] : memref<128x1024xbf16, #tpu.memory_space<vmem>>, vector<128x1024xbf16>
    %cst_41 = arith.constant dense<0.000000e+00> : vector<64x1024xf32>
    %102 = tpu.matmul %100, %101, %cst_41 {dimension_numbers = #tpu.dot_dimension_numbers<[1], [0], [0], [1], [0, 0, 1, 1], [], []>} : vector<64x128xbf16>, vector<128x1024xbf16>, vector<64x1024xf32> -> vector<64x1024xf32>
    %c0_42 = arith.constant 0 : index
    %c0_43 = arith.constant 0 : index
    %103 = vector.load %arg14[%c0_42, %c0_43] : memref<1x1024xf32, #tpu.memory_space<vmem>>, vector<1x1024xf32>
    %104 = vector.shape_cast %103 : vector<1x1024xf32> to vector<1024xf32>
    %105 = vector.shape_cast %104 : vector<1024xf32> to vector<1x1024xf32>
    %106 = vector.broadcast %105 : vector<1x1024xf32> to vector<64x1024xf32>
    %107 = arith.addf %102, %106 : vector<64x1024xf32>
    %108 = vector.extract_strided_slice %107 {offsets = [0, 0], sizes = [64, 512], strides = [1, 1]} : vector<64x1024xf32> to vector<64x512xf32>
    %109 = vector.extract_strided_slice %107 {offsets = [0, 512], sizes = [64, 512], strides = [1, 1]} : vector<64x1024xf32> to vector<64x512xf32>
    %cst_44 = arith.constant 5.000000e-01 : f32
    %110 = vector.broadcast %cst_44 : f32 to vector<64x512xf32>
    %111 = arith.mulf %110, %109 : vector<64x512xf32>
    %cst_45 = arith.constant 4.471500e-02 : f32
    %112 = vector.broadcast %cst_45 : f32 to vector<64x512xf32>
    %113 = arith.mulf %112, %109 : vector<64x512xf32>
    %114 = arith.mulf %113, %109 : vector<64x512xf32>
    %115 = arith.mulf %114, %109 : vector<64x512xf32>
    %116 = arith.addf %109, %115 : vector<64x512xf32>
    %cst_46 = arith.constant 0.797884583 : f32
    %117 = vector.broadcast %cst_46 : f32 to vector<64x512xf32>
    %118 = arith.mulf %117, %116 : vector<64x512xf32>
    %119 = math.tanh %118 : vector<64x512xf32>
    %cst_47 = arith.constant 1.000000e+00 : f32
    %120 = vector.broadcast %cst_47 : f32 to vector<64x512xf32>
    %121 = arith.addf %120, %119 : vector<64x512xf32>
    %122 = arith.mulf %111, %121 : vector<64x512xf32>
    %123 = arith.mulf %108, %122 : vector<64x512xf32>
    %124 = arith.truncf %123 : vector<64x512xf32> to vector<64x512xbf16>
    %c0_48 = arith.constant 0 : index
    %c0_49 = arith.constant 0 : index
    %125 = vector.load %arg15[%c0_48, %c0_49] : memref<512x128xbf16, #tpu.memory_space<vmem>>, vector<512x128xbf16>
    %cst_50 = arith.constant dense<0.000000e+00> : vector<64x128xf32>
    %126 = tpu.matmul %124, %125, %cst_50 {dimension_numbers = #tpu.dot_dimension_numbers<[1], [0], [0], [1], [0, 0, 1, 1], [], []>} : vector<64x512xbf16>, vector<512x128xbf16>, vector<64x128xf32> -> vector<64x128xf32>
    %c0_51 = arith.constant 0 : index
    %c0_52 = arith.constant 0 : index
    %127 = vector.load %arg16[%c0_51, %c0_52] : memref<1x128xf32, #tpu.memory_space<vmem>>, vector<1x128xf32>
    %128 = vector.shape_cast %127 : vector<1x128xf32> to vector<128xf32>
    %129 = vector.shape_cast %128 : vector<128xf32> to vector<1x128xf32>
    %130 = vector.broadcast %129 : vector<1x128xf32> to vector<64x128xf32>
    %131 = arith.addf %126, %130 : vector<64x128xf32>
    %132 = arith.addf %131, %69 : vector<64x128xf32>
    %133 = arith.truncf %132 : vector<64x128xf32> to vector<64x128xbf16>
    %c0_53 = arith.constant 0 : index
    %c0_54 = arith.constant 0 : index
    %c0_55 = arith.constant 0 : index
    %134 = vector.load %arg17[%c0_53, %c0_54, %c0_55] : memref<1x64x128xbf16, #tpu.memory_space<vmem>>, vector<1x64x128xbf16>
    %135 = vector.shape_cast %134 : vector<1x64x128xbf16> to vector<64x128xbf16>
    %136 = vector.shape_cast %133 : vector<64x128xbf16> to vector<1x64x128xbf16>
    tpu.vector_store %arg17[%c0_53, %c0_54, %c0_55], %136 {strides = array<i32>} : memref<1x64x128xbf16, #tpu.memory_space<vmem>>, vector<1x64x128xbf16>,
    return
  }
  func.func @transform_0(%arg0: i32, %arg1: i32) -> (i32, i32, i32) {
    %c0_i32 = arith.constant 0 : i32
    %c0_i32_0 = arith.constant 0 : i32
    %c0_i32_1 = arith.constant 0 : i32
    return %arg0, %c0_i32, %c0_i32_0 : i32, i32, i32
  }
  func.func @transform_1(%arg0: i32, %arg1: i32) -> (i32, i32, i32) {
    %c0_i32 = arith.constant 0 : i32
    %c0_i32_0 = arith.constant 0 : i32
    return %arg0, %arg1, %c0_i32 : i32, i32, i32
  }
  func.func @transform_2(%arg0: i32, %arg1: i32) -> (i32, i32) {
    %c0_i32 = arith.constant 0 : i32
    %c0_i32_0 = arith.constant 0 : i32
    %c0_i32_1 = arith.constant 0 : i32
    return %c0_i32, %c0_i32_0 : i32, i32
  }
  func.func @transform_3(%arg0: i32, %arg1: i32) -> (i32, i32) {
    %c0_i32 = arith.constant 0 : i32
    %c0_i32_0 = arith.constant 0 : i32
    %c0_i32_1 = arith.constant 0 : i32
    return %c0_i32, %c0_i32_0 : i32, i32
  }
  func.func @transform_4(%arg0: i32, %arg1: i32) -> (i32, i32) {
    %c0_i32 = arith.constant 0 : i32
    %c0_i32_0 = arith.constant 0 : i32
    %c0_i32_1 = arith.constant 0 : i32
    return %c0_i32, %c0_i32_0 : i32, i32
  }
  func.func @transform_5(%arg0: i32, %arg1: i32) -> (i32, i32) {
    %c0_i32 = arith.constant 0 : i32
    %c0_i32_0 = arith.constant 0 : i32
    %c0_i32_1 = arith.constant 0 : i32
    return %c0_i32, %c0_i32_0 : i32, i32
  }
  func.func @transform_6(%arg0: i32, %arg1: i32) -> (i32, i32) {
    %c0_i32 = arith.constant 0 : i32
    %c0_i32_0 = arith.constant 0 : i32
    %c0_i32_1 = arith.constant 0 : i32
    return %c0_i32, %c0_i32_0 : i32, i32
  }
  func.func @transform_7(%arg0: i32, %arg1: i32) -> (i32, i32) {
    %c0_i32 = arith.constant 0 : i32
    %c0_i32_0 = arith.constant 0 : i32
    %c0_i32_1 = arith.constant 0 : i32
    return %c0_i32, %c0_i32_0 : i32, i32
  }
  func.func @transform_8(%arg0: i32, %arg1: i32) -> (i32, i32) {
    %c0_i32 = arith.constant 0 : i32
    %c0_i32_0 = arith.constant 0 : i32
    %c0_i32_1 = arith.constant 0 : i32
    return %c0_i32, %c0_i32_0 : i32, i32
  }
  func.func @transform_9(%arg0: i32, %arg1: i32) -> (i32, i32) {
    %c0_i32 = arith.constant 0 : i32
    %c0_i32_0 = arith.constant 0 : i32
    %c0_i32_1 = arith.constant 0 : i32
    return %c0_i32, %c0_i32_0 : i32, i32
  }
  func.func @transform_10(%arg0: i32, %arg1: i32) -> (i32, i32) {
    %c0_i32 = arith.constant 0 : i32
    %c0_i32_0 = arith.constant 0 : i32
    %c0_i32_1 = arith.constant 0 : i32
    return %c0_i32, %c0_i32_0 : i32, i32
  }
  func.func @transform_11(%arg0: i32, %arg1: i32) -> (i32, i32) {
    %c0_i32 = arith.constant 0 : i32
    %c0_i32_0 = arith.constant 0 : i32
    %c0_i32_1 = arith.constant 0 : i32
    return %c0_i32, %c0_i32_0 : i32, i32
  }
  func.func @transform_12(%arg0: i32, %arg1: i32) -> (i32, i32) {
    %c0_i32 = arith.constant 0 : i32
    %c0_i32_0 = arith.constant 0 : i32
    %c0_i32_1 = arith.constant 0 : i32
    return %c0_i32, %c0_i32_0 : i32, i32
  }
  func.func @transform_13(%arg0: i32, %arg1: i32) -> (i32, i32) {
    %c0_i32 = arith.constant 0 : i32
    %c0_i32_0 = arith.constant 0 : i32
    %c0_i32_1 = arith.constant 0 : i32
    return %c0_i32, %c0_i32_0 : i32, i32
  }
  func.func @transform_14(%arg0: i32, %arg1: i32) -> (i32, i32) {
    %c0_i32 = arith.constant 0 : i32
    %c0_i32_0 = arith.constant 0 : i32
    %c0_i32_1 = arith.constant 0 : i32
    return %c0_i32, %c0_i32_0 : i32, i32
  }
  func.func @transform_15(%arg0: i32, %arg1: i32) -> (i32, i32, i32) {
    %c0_i32 = arith.constant 0 : i32
    %c0_i32_0 = arith.constant 0 : i32
    return %arg0, %arg1, %c0_i32 : i32, i32, i32
  }
}

</mosaic_0001>

<bundles_post_ra>
// kernel: tpu_custom_call.1
= control target key start
LH: loop header
LB: loop body
LE: loop exit
PB: predicated region body
PF: predicated region fallthrough
CT: control target
= control target key end

     0   :  { %s15243_s0 = inlined_call_operand.hbm [shape: bf16[2,128,128], index: 0, kind: input, shape index: {}]   ;;  %s15244_s1 = inlined_call_operand.hbm [shape: bf16[2,128,128], index: 1, kind: input, shape index: {}]   ;;  %s15245_s2 = inlined_call_operand.vmem [shape: f32[1,128], index: 2, kind: input, shape index: {}]   ;;  %s15246_s3 = inlined_call_operand.vmem [shape: f32[1,128], index: 3, kind: input, shape index: {}]   ;;  %s15247_s4 = inlined_call_operand.hbm [shape: bf16[128,128], index: 4, kind: input, shape index: {}]   ;;  %s15248_s5 = inlined_call_operand.hbm [shape: bf16[128,128], index: 5, kind: input, shape index: {}]   ;;  %s15249_s6 = inlined_call_operand.hbm [shape: bf16[128,128], index: 6, kind: input, shape index: {}]   ;;  %s15250_s7 = inlined_call_operand.hbm [shape: bf16[128,128], index: 7, kind: input, shape index: {}]   ;;  %s15251_s8 = inlined_call_operand.vmem [shape: f32[1,128], index: 8, kind: input, shape index: {}]   ;;  %s15252_s9 = inlined_call_operand.hbm [shape: f32[1,128], index: 9, kind: input, shape index: {}]   ;;  %s15253_s10 = inlined_call_operand.hbm [shape: f32[1,128], index: 10, kind: input, shape index: {}]   ;;  %s15254_s11 = inlined_call_operand.hbm [shape: bf16[128,1024], index: 11, kind: input, shape index: {}]   ;;  %s15255_s12 = inlined_call_operand.vmem [shape: f32[1,1024], index: 12, kind: input, shape index: {}]   ;;  %s15256_s13 = inlined_call_operand.hbm [shape: bf16[512,128], index: 13, kind: input, shape index: {}]   ;;  %s15257_s14 = inlined_call_operand.vmem [shape: f32[1,128], index: 14, kind: input, shape index: {}]   ;;  %s15258_s15 = inlined_call_operand.hbm [shape: bf16[2,128,128], index: 15, kind: output, shape index: {}]  }
   0x1   :  { %15323 = sst [smem:[#allocation84_spill]] %s15243_s0 }
   0x2   :  { %15324 = sst [smem:[#allocation85_spill]] %s15244_s1 }
   0x3   :  { %15325 = sst [smem:[#allocation86_spill]] %s15245_s2 }
   0x4   :  { %15326 = sst [smem:[#allocation87_spill]] %s15246_s3 }
   0x5   :  { %15327 = sst [smem:[#allocation88_spill]] %s15247_s4 }
   0x6   :  { %15328 = sst [smem:[#allocation89_spill]] %s15248_s5 }
   0x7   :  { %15329 = sst [smem:[#allocation90_spill]] %s15249_s6 }
   0x8   :  { %15330 = sst [smem:[#allocation91_spill]] %s15250_s7 }
   0x9   :  { %15331 = sst [smem:[#allocation92_spill]] %s15251_s8 }
   0xa   :  { %15332 = sst [smem:[#allocation93_spill]] %s15252_s9 }
   0xb   :  { %15333 = sst [smem:[#allocation94_spill]] %s15253_s10 }
   0xc   :  { %15334 = sst [smem:[#allocation95_spill]] %s15254_s11 }
   0xd   :  { %15335 = sst [smem:[#allocation96_spill]] %s15255_s12 }
   0xe   :  { %15336 = sst [smem:[#allocation97_spill]] %s15256_s13 }
   0xf   :  { %15337 = sst [smem:[#allocation98_spill]] %s15257_s14 }
  0x10   :  { %15338 = sst [smem:[#allocation99_spill]] %s15258_s15 }
  0x11   :  { %20 = vsyncpa [#allocation5], 0 }
  0x12   :  { %22 = vsyncpa [#allocation5 + $0x1], 0 }
  0x13   :  { %23 = vsyncpa [#allocation8], 0 }
  0x14   :  { %25 = vsyncpa [#allocation8 + $0x1], 0 }
  0x15   :  { %26 = vsyncpa [#allocation11], 0 }
  0x16   :  { %27 = vsyncpa [#allocation14], 0 }
  0x17   :  { %28 = vsyncpa [#allocation17], 0 }
  0x18   :  { %29 = vsyncpa [#allocation20], 0 }
  0x19   :  { %30 = vsyncpa [#allocation6], 0 }
  0x1a   :  { %32 = vsyncpa [#allocation6 + $0x1], 0  ;;  %s10900_s18 = smov 0   ;;  %s10902_s19 = smov 0  }
  0x1b   :  { %s10904_s20 = smov 0   ;;  %s10906_s21 = smov 0  }
  0x1c   :  { %s10908_s22 = smov 0   ;;  %s10910_s23 = smov 0  }
  0x1d   :  { %s10912_s24 = smov 0   ;;  %s10914_s25 = smov 0  }
  0x1e   :  { %s10916_s26 = smov 0   ;;  %s10918_s27 = smov 0  }
  0x1f   :  { %s10920_s28 = smov 0  }
  0x20 LB: > { %15339 = sst [smem:[#allocation30_spill]] %s10757_s18  ;;  %s10956_s29 = sadd.s32 4294967295, %s10797_s28   ;;  %s10797_s28 = sphi %s10920_s28, %s38_s28   ;;  %s10793_s27 = sphi %s10918_s27, %s15574_s27   ;;  %s10789_s26 = sphi %s10916_s26, %s15573_s26   ;;  %s10785_s25 = sphi %s10914_s25, %s15572_s25   ;;  %s10781_s24 = sphi %s10912_s24, %s15571_s24   ;;  %s10777_s23 = sphi %s10910_s23, %s15570_s23   ;;  %s10773_s22 = sphi %s10908_s22, %s15569_s22   ;;  %s10769_s21 = sphi %s10906_s21, %s15568_s21   ;;  %s10765_s20 = sphi %s10904_s20, %s15567_s20   ;;  %s10761_s19 = sphi %s10902_s19, %s15566_s19   ;;  %s10757_s18 = sphi %s10900_s18, %s15565_s18  }
  0x21   : > { %15340 = sst [smem:[#allocation31_spill]] %s10781_s24  ;;  %p8872_p0 = scmp.ge.s32.totalorder %s10797_s28, 1 }
  0x22   : > { %15341 = sst [smem:[#allocation32_spill]] %s10785_s25  ;;  %p15261_p1 = scmp.eq.s32.totalorder %s10956_s29, 0 }
  0x23   : > { %p410_p2 = scmp.lt.s32.totalorder %s10797_s28, 5  ;;  %s15342_s4 = sld [smem:[#allocation88_spill]] }
  0x24   : > { %s10799_s25 = smov [#allocation9]   ;;  %s15346_s5 = sld [smem:[#allocation89_spill]] }
  0x25   : > { %p10964_p3 = pnand %p8872_p0, %p410_p2  ;;  %s429_s14 = sshll.u32 %s10799_s25, 4  ;;  %s430_s14 = int_to_ptr.vmem [resolvable:$true] %s429_s14 }
  0x26   : > { %s15262_s16 = smov 64   ;;  %s10802_s25 = smov [#allocation10]  }
  0x27   : > { %s15343_s15 = scalar_select %p10964_p3, 1, 0 }
  0x28   : > { %p9868_p4 = pneg %p10964_p3  ;;  %s443_s3 = sshll.u32 %s10802_s25, 4  ;;  %s444_s3 = int_to_ptr.vmem [resolvable:$true] %s443_s3 }
  0x29   : > { %s427_s17 = sshll.u32 %s15342_s4, 4  ;;  %15344 = sst [smem:[#allocation33_spill]] %s15343_s15  ;;  %s428_s17 = int_to_ptr.hbm [resolvable:$true] %s427_s17 }
  0x2a   : > { %p10972_p5 = pnand %p9868_p4, %p15261_p1  ;;  %s441_s30 = sshll.u32 %s15346_s5, 4  ;;  %s442_s30 = int_to_ptr.hbm [resolvable:$true] %s441_s30 }
  0x2b   : > { %s15263_s4 = smov 4   ;;  %s15347_s7 = sld [smem:[#allocation91_spill]] }
  0x2c   : > { %9871 = dma.hbm_to_vmem [thread:$0]  (!%p10972_p5), %s428_s17, 1024, %s430_s14, [#allocation8], %s15262_s16, %s15262_s16, %s15263_s4  }
  0x2d   : > { %9874 = dma.hbm_to_vmem [thread:$0]  (!%p10972_p5), %s442_s30, 1024, %s444_s3, [#allocation11], %s15262_s16, %s15262_s16, %s15263_s4  }
  0x2e   : > { %s15348_s10 = sld [smem:[#allocation94_spill]]  ;;  %s10803_s0 = smov [#allocation13]  }
  0x2f   : > { %s471_s14 = sshll.u32 %s10803_s0, 4  ;;  %s10804_s2 = smov [#allocation16]   ;;  %s472_s14 = int_to_ptr.vmem [resolvable:$true] %s471_s14 }
  0x30   : > { %s501_s15 = sshll.u32 %s10804_s2, 4  ;;  %s15349_s6 = sld [smem:[#allocation90_spill]]  ;;  %s502_s15 = int_to_ptr.vmem [resolvable:$true] %s501_s15 }
  0x31   : > { %s469_s1 = sshll.u32 %s15347_s7, 4  ;;  %s15350_s9 = sld [smem:[#allocation93_spill]]  ;;  %s470_s1 = int_to_ptr.hbm [resolvable:$true] %s469_s1 }
  0x32   : > { %9880 = dma.hbm_to_vmem [thread:$0]  (!%p10972_p5), %s470_s1, 1024, %s472_s14, [#allocation14], %s15262_s16, %s15262_s16, %s15263_s4  }
  0x33   : > { %s10805_s24 = smov [#allocation12]   ;;  %s10806_s1 = smov [#allocation15]  }
  0x34   : > { %s499_s5 = sshll.u32 %s15348_s10, 4  ;;  %s457_s7 = sshll.u32 %s10805_s24, 4  ;;  %s500_s5 = int_to_ptr.hbm [resolvable:$true] %s499_s5  ;;  %s458_s7 = int_to_ptr.vmem [resolvable:$true] %s457_s7 }
  0x35   : > { %9886 = dma.hbm_to_vmem [thread:$0]  (!%p10972_p5), %s500_s5, 16, %s502_s15, [#allocation17]  }
  0x36   : > { %s455_s3 = sshll.u32 %s15349_s6, 4  ;;  %s489_s14 = sshll.u32 %s10806_s1, 4  ;;  %s456_s3 = int_to_ptr.hbm [resolvable:$true] %s455_s3  ;;  %s490_s14 = int_to_ptr.vmem [resolvable:$true] %s489_s14 }
  0x37   : > { %s487_s8 = sshll.u32 %s15350_s9, 4  ;;  %s15351_s11 = sld [smem:[#allocation95_spill]]  ;;  %s488_s8 = int_to_ptr.hbm [resolvable:$true] %s487_s8 }
  0x38   : > { %9877 = dma.hbm_to_vmem [thread:$0]  (!%p10972_p5), %s456_s3, 1024, %s458_s7, [#allocation11], %s15262_s16, %s15262_s16, %s15263_s4  }
  0x39   : > { %9883 = dma.hbm_to_vmem [thread:$0]  (!%p10972_p5), %s488_s8, 16, %s490_s14, [#allocation14]  }
  0x3a   : > { %s10807_s15 = smov [#allocation18]   ;;  %s15352_s13 = sld [smem:[#allocation97_spill]] }
  0x3b   : > { %s512_s7 = sshll.u32 %s10807_s15, 4  ;;  %s10808_s0 = smov 512   ;;  %s513_s7 = int_to_ptr.vmem [resolvable:$true] %s512_s7 }
  0x3c   : > { %s10809_s24 = smov 32   ;;  %s10810_s8 = smov [#allocation19]  }
  0x3d   : > { %s510_s5 = sshll.u32 %s15351_s11, 4  ;;  %s529_s1 = sshll.u32 %s10810_s8, 4  ;;  %s511_s5 = int_to_ptr.hbm [resolvable:$true] %s510_s5  ;;  %s530_s1 = int_to_ptr.vmem [resolvable:$true] %s529_s1 }
  0x3e   : > { %9889 = dma.hbm_to_vmem [thread:$0]  (!%p10972_p5), %s511_s5, 8192, %s513_s7, [#allocation17], %s10808_s0, %s10808_s0, %s10809_s24  }
  0x3f   : > { %s50_s14 = sadd.s32 1, %s10793_s27  ;;  %s57_s2 = sadd.s32 1, %s10777_s23 }
  0x40   : > { %s527_s30 = sshll.u32 %s15352_s13, 4  ;;  %p64_p6 = scmp.ne.s32.totalorder %s10777_s23, %s10773_s22  ;;  %s528_s30 = int_to_ptr.hbm [resolvable:$true] %s527_s30 }
  0x41   : > { %9892 = dma.hbm_to_vmem [thread:$0]  (!%p10972_p5), %s528_s30, 4096, %s530_s1, [#allocation20], %s15262_s16, %s15262_s16, %s15263_s4  }
  0x42   : > { %p65_p7 = scmp.eq.s32.totalorder %s10797_s28, 0  ;;  %p70_p8 = scmp.ne.s32.totalorder %s10773_s22, %s10769_s21 }
  0x43   : > { %p9912_p9 = scmp.lt.s32.totalorder %s10797_s28, 4  ;;  %s546_s17 = sand.u32 1, %s10777_s23  }
  0x44   : > { %p66_p10 = por %p65_p7, %p64_p6  ;;  %p11041_p11 = por %p15261_p1, %p70_p8 }
  0x45   : > { %s8882_s5 = sshll.u32 %s546_s17, 6  ;;  %s9556_s15 = sshll.u32 %s10793_s27, 6 }
  0x46   : > { %s15354_s25 = sld [smem:[#allocation84_spill]]  ;;  %s550_s0 = scalar_lea.vmem [#allocation4], %s8882_s5 }
  0x47   : > { %s558_s24 = sshll.u32 %s550_s0, 4  ;;  %p9894_p12 = pnand %p9912_p9, %p66_p10  ;;  %s559_s24 = int_to_ptr.vmem [resolvable:$true] %s558_s24 }
  0x48   : > { %s547_s8 = scalar_lea.sflag [#allocation5], %s546_s17  ;;  %s8871_s1 = sadd.s32 4294967294, %s10797_s28  }
  0x49   : > { %s47_s7 = sadd.s32 1, %s10789_s26  ;;  %p92_p0 = scmp.ne.s32.totalorder %s10765_s20, %s10761_s19 }
  0x4a   : > { %p48_p13 = scmp.ge.s32.totalorder %s47_s7, 2  ;;  %p98_p2 = scmp.ne.s32.totalorder %s10761_s19, %s10757_s18 }
  0x4b   : > { %p11068_p4 = por %p92_p0, %p65_p7  ;;  %p397_p8 = scmp.eq.s32.totalorder %s10956_s29, 3 }
  0x4c   : > { %s555_s3 = scalar_lea.hbm %s15354_s25, %s9556_s15  ;;  %s85_s15 = sadd.s32 1, %s10765_s20 }
  0x4d   : > { %s556_s30 = sshll.u32 %s555_s3, 4  ;;  %s15576_s7 = smov (%p48_p13, %s47_s7), 0  ;;  %s557_s30 = int_to_ptr.hbm [resolvable:$true] %s556_s30 }
  0x4e   : > { %9896 = dma.hbm_to_vmem [thread:$0]  (!%p9894_p12), %s557_s30, 1024, %s559_s24, %s547_s8, %s15262_s16, %s15262_s16, %s15263_s4  }
  0x4f   : > { %15355 = sst [smem:[#allocation34_spill]] %s15576_s7  ;;  %s15578_s14 = smov (!%p48_p13, %s50_s14), %s10793_s27 }
  0x50   : > { %s81_s17 = ssub.s32 %s10789_s26, %s15576_s7  ;;  %p52_p5 = scmp.ge.s32.totalorder %s15578_s14, 2 }
  0x51   : > { %p11074_p6 = por %p98_p2, %p15261_p1  ;;  %p403_p10 = scmp.eq.s32.totalorder %s8871_s1, 3 }
  0x52   : > { %s15580_s14 = smov (%p52_p5, %s15578_s14), 0  ;;  %p11081_p12 = por %p397_p8, %p92_p0 }
  0x53   : > { %15358 = sst [smem:[#allocation35_spill]] %s15580_s14  ;;  %p11085_p7 = por %p403_p10, %p98_p2 }
  0x54   : > { %s15359_s25 = scalar_select %p11081_p12, 1, 0 }
  0x55   : > { %s15361_s3 = scalar_select %p11085_p7, 1, 0 }
  0x56   : > { %15360 = sst [smem:[#allocation36_spill]] %s15359_s25  ;;  %s54_s30 = ssub.s32 %s10793_s27, %s15580_s14 }
  0x57   : > { %15362 = sst [smem:[#allocation37_spill]] %s15361_s3  ;;  %s568_s0 = sand.u32 1, %s10797_s28  }
  0x58   : > { %p55_p13 = scmp.eq.s32.totalorder %s54_s30, 0  ;;  %s82_s24 = sor.u32 %s81_s17, %s54_s30 }
  0x59   : > { %p83_p1 = scmp.eq.s32.totalorder %s82_s24, 0  ;;  %s570_s16 = sand.u32 1, %s10765_s20  }
  0x5a   : > { %s11095_s8 = scalar_select %p55_p13, %s10777_s23, %s57_s2  }
  0x5b   : > { %s11098_s1 = scalar_select %p83_p1, %s10765_s20, %s85_s15  }
  0x5c   : > { %s8886_s4 = sshll.u32 %s10789_s26, 3  ;;  %s8885_s6 = sshll.u32 %s570_s16, 5 }
  0x5d   : > { %s8887_s9 = sshll.u32 %s10793_s27, 4  ;;  %s572_s13 = scalar_lea.vmem [#allocation7], %s8885_s6 }
  0x5e   : > { %s577_s10 = sadd.s32 %s8887_s9, %s8886_s4  ;;  %s582_s7 = sshll.u32 %s572_s13, 4  ;;  %s583_s7 = int_to_ptr.vmem [resolvable:$true] %s582_s7 }
  0x5f   : > { %s8888_s11 = sshll.u32 %s577_s10, 2  ;;  %s15363_s18 = sld [smem:[#allocation85_spill]] }
  0x60   : > { %p9897_p0 = pnand %p9912_p9, %p11068_p4  ;;  %s569_s2 = scalar_lea.sflag [#allocation8], %s568_s0 }
  0x61   : > { %s15364_s15 = smov 4   ;;  %s15365_s30 = smov 64  }
  0x63   : > { %594 = sbr.rel (%p10964_p3) target bundleno = 3273 (0xcc9), region = 80 }
  0x65   : > { %s579_s25 = scalar_lea.hbm %s15363_s18, %s8888_s11 }
  0x66   : > { %s580_s17 = sshll.u32 %s579_s25, 4  ;;  %s581_s17 = int_to_ptr.hbm [resolvable:$true] %s580_s17 }
  0x67   : > { %9899 = dma.hbm_to_vmem [thread:$0]  (!%p9897_p0), %s581_s17, 512, %s583_s7, %s569_s2, %s15365_s30, %s15365_s30, %s15364_s15  }
  0x68   : > { %s596_s4 = sand.u32 1, %s10773_s22  }
  0x69   : > { %s8890_s6 = sshll.u32 %s596_s4, 6  ;;  %s597_s9 = scalar_lea.sflag [#allocation5], %s596_s4 }
  0x6a   : > { %s11116_s10 = scalar_lea.vmem [#allocation4], %s8890_s6 }
  0x6b   : > { %10724 = dma.done.wait (%p11041_p11), %s597_s9, 1024  }
  0x6c   : > { %10726 = vsyncadd (%p11041_p11), %s597_s9, 4294966272  ;;  %s606_s11 = sand.u32 1, %s10956_s29   ;;  %s608_s13 = sand.u32 1, %s10761_s19  }
  0x6d   : > { %s8891_s18 = sshll.u32 %s608_s13, 5  ;;  %s607_s14 = scalar_lea.sflag [#allocation8], %s606_s11 }
  0x6e   : > { %s11126_s7 = scalar_lea.vmem [#allocation7], %s8891_s18 }
  0x6f   : > { %10728 = dma.done.wait (%p11074_p6), %s607_s14, 512  }
  0x70   : > { %10730 = vsyncadd (%p11074_p6), %s607_s14, 4294966784  ;;  %p15367_p1 = scmp.eq.s32.totalorder %s10956_s29, 0 }
  0x72   : > { %10732 = dma.done.wait (%p15367_p1), [#allocation8], 1024   ;;  %p15368_p3 = pmov %p15367_p1 }
  0x73   : > { %p15369_p9 = pmov %p15367_p1 }
  0x74   : > { %10734 = vsyncadd (%p15368_p3), [#allocation8], 4294966272 }
  0x75   : > { %10736 = dma.done.wait (%p15369_p9), [#allocation11], 2048   ;;  %p15370_p11 = pmov %p15367_p1 }
  0x76   : > { %p15371_p2 = pmov %p15367_p1 }
  0x77   : > { %10738 = vsyncadd (%p15370_p11), [#allocation11], 4294965248 }
  0x78   : > { %10740 = dma.done.wait (%p15371_p2), [#allocation14], 1040   ;;  %p15372_p4 = pmov %p15367_p1 }
  0x79   : > { %p15373_p5 = pmov %p15367_p1 }
  0x7a   : > { %10742 = vsyncadd (%p15372_p4), [#allocation14], 4294966256 }
  0x7b   : > { %10744 = dma.done.wait (%p15373_p5), [#allocation17], 8208   ;;  %p15374_p6 = pmov %p15367_p1 }
  0x7c   : > { %p15375_p8 = pmov %p15367_p1 }
  0x7d   : > { %10746 = vsyncadd (%p15374_p6), [#allocation17], 4294959088 }
  0x7e   : > { %10748 = dma.done.wait (%p15375_p8), [#allocation20], 4096   ;;  %p15376_p10 = pmov %p15367_p1 }
  0x7f   : > { %s15377_s21 = sld [smem:[#allocation86_spill]]  ;;  %s11162_s24 = scalar_lea.vmem [#allocation21], %s8891_s18 }
  0x80   : > { %10750 = vsyncadd (%p15376_p10), [#allocation20], 4294963200  ;;  %s15379_s0 = sld [smem:[#allocation87_spill]] }
  0x81   : > { %s15381_s17 = sld [smem:[#allocation31_spill]] }
  0x85   : > { %v11155_v0 = vld [vmem:[%s15377_s21] sm:$0x1] }
  0x86   : > { %15378 = vst [vmem:[#allocation38_spill] sm:$0xff] %v11155_v0  ;;  %v11160_v1 = vld [vmem:[%s15379_s0] sm:$0x1] }
  0x87   : > { %15380 = vst [vmem:[#allocation39_spill] sm:$0xff] %v11160_v1  ;;  %p8901_p13 = scmp.ne.s32.totalorder %s15381_s17, 0 }
  0x89   : > { %710 = sbr.rel (%p8901_p13) target bundleno = 1051 (0x41b), region = 124 }
  0x8e   : > { %v9788_v2 = vld [vmem:[%s11116_s10 + $0x20] sm:$0xff]   ;;  %v11170_v4 = vld [vmem:[%s11116_s10 + $0x28] sm:$0xff]   ;;  %v11182_v12 = vld [vmem:[%s11116_s10 + $0x30] sm:$0xff]   ;;  %v10811_v23 = vmov 128.0   ;;  %s10812_s29 = smov 64  }
  0x8f   : > { %v11167_v3 = vld [vmem:[%s11116_s10] sm:$0xff]   ;;  %v9735_v5 = vunpack.c.l.bf16 %v9788_v2  ;;  %v9739_v7 = vunpack.c.l.bf16 %v11170_v4  ;;  %v9736_v8 = vunpack.c.h.bf16 %v9788_v2  ;;  %v9740_v10 = vunpack.c.h.bf16 %v11170_v4  ;;  %v11179_v11 = vld [vmem:[%s11116_s10 + $0x8] sm:$0xff]   ;;  %v11192_v16 = vld [vmem:[%s11116_s10 + $0x10] sm:$0xff]  }
  0x90   : > { %v9719_v6 = vunpack.c.l.bf16 %v11167_v3  ;;  %v9720_v9 = vunpack.c.h.bf16 %v11167_v3  ;;  %v9723_v13 = vunpack.c.l.bf16 %v11179_v11  ;;  %v9724_v14 = vunpack.c.h.bf16 %v11179_v11  ;;  %v11204_v20 = vld [vmem:[%s11116_s10 + $0x38] sm:$0xff]  }
  0x91   : > { %759 = vadd.xlane.f32.xlu0 %v9735_v5  ;;  %763 = vadd.xlane.f32.xlu2 %v9739_v7  ;;  %v9743_v15 = vunpack.c.l.bf16 %v11182_v12  ;;  %v9744_v17 = vunpack.c.h.bf16 %v11182_v12  ;;  %v9727_v18 = vunpack.c.l.bf16 %v11192_v16  ;;  %v9728_v19 = vunpack.c.h.bf16 %v11192_v16  ;;  %v11220_v36 = vld [vmem:[%s11116_s10 + $0x18] sm:$0xff]  }
  0x92   : > { %743 = vadd.xlane.f32.xlu1 %v9719_v6  ;;  %v9748_v21 = vunpack.c.h.bf16 %v11204_v20  ;;  %v9747_v22 = vunpack.c.l.bf16 %v11204_v20  ;;  %10111 = vrcp.f32 %v10811_v23  ;;  %v9731_v42 = vunpack.c.l.bf16 %v11220_v36  ;;  %v9562_v20 = vld [vmem:[#allocation10 + $0x28] sm:$0xff] }
  0x98   : > { %v10112_v24 = vpop.eup %10111 }
  0x99   : > { %761 = vadd.xlane.f32.xlu0 %v9736_v8  ;;  %765 = vadd.xlane.f32.xlu2 %v9740_v10  ;;  %v776_v25 = vmul.f32 128.0, %v10112_v24  ;;  %vm780_vm0 = vweird.f32 %v10112_v24 }
  0x9a   : > { %745 = vadd.xlane.f32.xlu1 %v9720_v9 }
  0x9b   : > { %v777_v26 = vsub.f32 1.0, %v776_v25 }
  0x9d   : > { %v778_v27 = vmul.f32 %v10112_v24, %v777_v26 }
  0x9f   : > { %v779_v28 = vadd.f32 %v10112_v24, %v778_v27 }
  0xa1   : > { %747 = vadd.xlane.f32.xlu0 %v9723_v13  ;;  %767 = vadd.xlane.f32.xlu2 %v9743_v15  ;;  %v11212_v29 = vsel %vm780_vm0, %v10112_v24, %v779_v28 }
  0xa2   : > { %749 = vadd.xlane.f32.xlu1 %v9724_v14 }
  0xa9   : > { %769 = vadd.xlane.f32.xlu0 %v9744_v17  ;;  %753 = vadd.xlane.f32.xlu2 %v9728_v19 }
  0xaa   : > { %751 = vadd.xlane.f32.xlu1 %v9727_v18 }
  0xb1   : > { %773 = vadd.xlane.f32.xlu0 %v9748_v21  ;;  %771 = vadd.xlane.f32.xlu2 %v9747_v22 }
 0x104   : > { %v760_v30 = vpop.xlane.xlu0 %759  ;;  %v764_v33 = vpop.xlane.xlu2 %763 }
 0x105   : > { %v744_v31 = vpop.xlane.xlu1 %743  ;;  %v790_v32 = vmul.f32 %v11212_v29, %v760_v30  ;;  %v792_v47 = vmul.f32 %v11212_v29, %v764_v33  ;;  %v9571_v33 = vld [vmem:[#allocation12 + $0x30] sm:$0xff] }
 0x106   : > { %v782_v43 = vmul.f32 %v11212_v29, %v744_v31  ;;  %v9572_v31 = vld [vmem:[#allocation12 + $0x38] sm:$0xff] }
 0x107   : > { %v11215_v34 = vsub.f32 %v9735_v5, %v790_v32  ;;  %v11244_v52 = vsub.f32 %v9739_v7, %v792_v47  ;;  %9806 = vmatpush.bf16.msra.mxu3 %v9572_v31  ;;  %1293 = vmatpush.bf16.msra.mxu1 %v9572_v31  ;;  %v9563_v32 = vld [vmem:[#allocation10 + $0x30] sm:$0xff]  ;;  %v9566_v47 = vld [vmem:[#allocation12 + $0x8] sm:$0xff] }
 0x108   : > { %v11236_v50 = vsub.f32 %v9719_v6, %v782_v43  ;;  %v9732_v6 = vunpack.c.h.bf16 %v11220_v36 }
 0x109   : > { %v822_v35 = vmul.f32 %v11215_v34, %v11215_v34  ;;  %v824_v59 = vmul.f32 %v11244_v52, %v11244_v52 }
 0x10a   : > { %v814_v57 = vmul.f32 %v11236_v50, %v11236_v50 }
 0x10b   : > { %846 = vadd.xlane.f32.xlu0 %v822_v35  ;;  %9807 = vmatpush.bf16.msra.mxu3 %v9571_v33  ;;  %v9561_v35 = vld [vmem:[#allocation10 + $0x20] sm:$0xff] }
 0x10c   : > { %v762_v37 = vpop.xlane.xlu0 %761  ;;  %v766_v41 = vpop.xlane.xlu2 %765  ;;  %1294 = vmatpush.bf16.msra.mxu1 %v9571_v33 }
 0x10d   : > { %v746_v38 = vpop.xlane.xlu1 %745  ;;  %v791_v39 = vmul.f32 %v11212_v29, %v762_v37  ;;  %v793_v46 = vmul.f32 %v11212_v29, %v766_v41  ;;  %v9569_v37 = vld [vmem:[#allocation12 + $0x20] sm:$0xff]  ;;  %v9567_v41 = vld [vmem:[#allocation12 + $0x10] sm:$0xff] }
 0x10e   : > { %v783_v40 = vmul.f32 %v11212_v29, %v746_v38  ;;  %v9560_v38 = vld [vmem:[#allocation10 + $0x18] sm:$0xff] }
 0x10f   : > { %v11226_v44 = vsub.f32 %v9736_v8, %v791_v39  ;;  %v11240_v51 = vsub.f32 %v9740_v10, %v793_v46  ;;  %v9568_v39 = vld [vmem:[#allocation12 + $0x18] sm:$0xff]  ;;  %v9558_v46 = vld [vmem:[#allocation10 + $0x8] sm:$0xff] }
 0x110   : > { %v11228_v45 = vsub.f32 %v9720_v9, %v783_v40  ;;  %v9559_v40 = vld [vmem:[#allocation10 + $0x10] sm:$0xff] }
 0x111   : > { %v823_v48 = vmul.f32 %v11226_v44, %v11226_v44  ;;  %v825_v56 = vmul.f32 %v11240_v51, %v11240_v51 }
 0x112   : > { %v815_v49 = vmul.f32 %v11228_v45, %v11228_v45 }
 0x113   : > { %755 = vadd.xlane.f32.xlu0 %v9731_v42  ;;  %848 = vadd.xlane.f32.xlu1 %v823_v48 }
 0x114   : > { %832 = vadd.xlane.f32.xlu2 %v815_v49  ;;  %v748_v53 = vpop.xlane.xlu0 %747  ;;  %v768_v55 = vpop.xlane.xlu2 %767 }
 0x115   : > { %v750_v54 = vpop.xlane.xlu1 %749  ;;  %v794_v58 = vmul.f32 %v11212_v29, %v768_v55  ;;  %v784_v4 = vmul.f32 %v11212_v29, %v748_v53  ;;  %v9557_v53 = vld [vmem:[#allocation10] sm:$0xff] }
 0x116   : > { %v785_v60 = vmul.f32 %v11212_v29, %v750_v54  ;;  %v9565_v54 = vld [vmem:[#allocation12] sm:$0xff] }
 0x117   : > { %v11254_v61 = vsub.f32 %v9743_v15, %v794_v58  ;;  %v11270_v10 = vsub.f32 %v9723_v13, %v784_v4 }
 0x118   : > { %v11258_v62 = vsub.f32 %v9724_v14, %v785_v60 }
 0x119   : > { %v826_v5 = vmul.f32 %v11254_v61, %v11254_v61  ;;  %v816_v13 = vmul.f32 %v11270_v10, %v11270_v10 }
 0x11a   : > { %v817_v8 = vmul.f32 %v11258_v62, %v11258_v62 }
 0x11b   : > { %852 = vadd.xlane.f32.xlu0 %v825_v56  ;;  %830 = vadd.xlane.f32.xlu1 %v814_v57 }
 0x11c   : > { %850 = vadd.xlane.f32.xlu2 %v824_v59  ;;  %v770_v63 = vpop.xlane.xlu0 %769  ;;  %v754_v2 = vpop.xlane.xlu2 %753 }
 0x11d   : > { %v752_v3 = vpop.xlane.xlu1 %751  ;;  %v787_v7 = vmul.f32 %v11212_v29, %v754_v2  ;;  %v795_v24 = vmul.f32 %v11212_v29, %v770_v63 }
 0x11e   : > { %v786_v9 = vmul.f32 %v11212_v29, %v752_v3 }
 0x11f   : > { %v11276_v14 = vsub.f32 %v9728_v19, %v787_v7  ;;  %v11292_v26 = vsub.f32 %v9744_v17, %v795_v24 }
 0x120   : > { %v11280_v15 = vsub.f32 %v9727_v18, %v786_v9 }
 0x121   : > { %v819_v11 = vmul.f32 %v11276_v14, %v11276_v14  ;;  %v827_v27 = vmul.f32 %v11292_v26, %v11292_v26 }
 0x122   : > { %v818_v25 = vmul.f32 %v11280_v15, %v11280_v15 }
 0x123   : > { %854 = vadd.xlane.f32.xlu0 %v826_v5  ;;  %757 = vadd.xlane.f32.xlu1 %v9732_v6 }
 0x124   : > { %836 = vadd.xlane.f32.xlu2 %v817_v8  ;;  %v774_v23 = vpop.xlane.xlu0 %773  ;;  %v772_v18 = vpop.xlane.xlu2 %771 }
 0x125   : > { %v797_v19 = vmul.f32 %v11212_v29, %v774_v23  ;;  %v796_v28 = vmul.f32 %v11212_v29, %v772_v18 }
 0x127   : > { %v11296_v16 = vsub.f32 %v9748_v21, %v797_v19  ;;  %v11305_v12 = vsub.f32 %v9747_v22, %v796_v28  ;;  %v9564_v21 = vld [vmem:[#allocation10 + $0x38] sm:$0xff]  ;;  %v9570_v22 = vld [vmem:[#allocation12 + $0x28] sm:$0xff] }
 0x128   : > { %9798 = vmatpush.bf16.msra.mxu2 %v9564_v21  ;;  %1180 = vmatpush.bf16.msra.mxu0 %v9564_v21 }
 0x129   : > { %v829_v30 = vmul.f32 %v11296_v16, %v11296_v16  ;;  %v828_v17 = vmul.f32 %v11305_v12, %v11305_v12  ;;  %9808 = vmatpush.bf16.msra.mxu3 %v9570_v22  ;;  %1295 = vmatpush.bf16.msra.mxu1 %v9570_v22 }
 0x12b   : > { %840 = vadd.xlane.f32.xlu0 %v819_v11  ;;  %834 = vadd.xlane.f32.xlu1 %v816_v13 }
 0x12c   : > { %838 = vadd.xlane.f32.xlu2 %v818_v25  ;;  %9799 = vmatpush.bf16.msra.mxu2 %v9563_v32 }
 0x12d   : > { %1181 = vmatpush.bf16.msra.mxu0 %v9563_v32  ;;  %9809 = vmatpush.bf16.msra.mxu3 %v9569_v37 }
 0x12e   : > { %1296 = vmatpush.bf16.msra.mxu1 %v9569_v37 }
 0x130   : > { %9800 = vmatpush.bf16.msra.mxu2 %v9562_v20 }
 0x131   : > { %1182 = vmatpush.bf16.msra.mxu0 %v9562_v20  ;;  %9810 = vmatpush.bf16.msra.mxu3 %v9568_v39 }
 0x132   : > { %1297 = vmatpush.bf16.msra.mxu1 %v9568_v39 }
 0x133   : > { %856 = vadd.xlane.f32.xlu1 %v827_v27 }
 0x134   : > { %860 = vadd.xlane.f32.xlu2 %v829_v30  ;;  %9801 = vmatpush.bf16.msra.mxu2 %v9561_v35 }
 0x135   : > { %1183 = vmatpush.bf16.msra.mxu0 %v9561_v35  ;;  %9811 = vmatpush.bf16.msra.mxu3 %v9567_v41 }
 0x136   : > { %1298 = vmatpush.bf16.msra.mxu1 %v9567_v41  ;;  %v11352_v41 = vperm.slane %v11155_v0, 0 }
 0x138   : > { %9802 = vmatpush.bf16.msra.mxu2 %v9560_v38 }
 0x139   : > { %1184 = vmatpush.bf16.msra.mxu0 %v9560_v38  ;;  %9812 = vmatpush.bf16.msra.mxu3 %v9566_v47 }
 0x13a   : > { %1299 = vmatpush.bf16.msra.mxu1 %v9566_v47 }
 0x13b   : > { %858 = vadd.xlane.f32.xlu1 %v828_v17 }
 0x13c   : > { %9803 = vmatpush.bf16.msra.mxu2 %v9559_v40 }
 0x13d   : > { %1185 = vmatpush.bf16.msra.mxu0 %v9559_v40  ;;  %9813 = vmatpush.bf16.msra.mxu3 %v9565_v54 }
 0x13e   : > { %1300 = vmatpush.bf16.msra.mxu1 %v9565_v54 }
 0x140   : > { %9804 = vmatpush.bf16.msra.mxu2 %v9558_v46 }
 0x141   : > { %1186 = vmatpush.bf16.msra.mxu0 %v9558_v46 }
 0x144   : > { %9805 = vmatpush.bf16.msra.mxu2 %v9557_v53 }
 0x145   : > { %1187 = vmatpush.bf16.msra.mxu0 %v9557_v53 }
 0x17e   : > { %v847_v43 = vpop.xlane.xlu0 %846 }
 0x17f   : > { %v870_v48 = vmul.f32 %v847_v43, %v11212_v29 }
 0x181   : > { %v886_v49 = vadd.f32 1e-05, %v870_v48 }
 0x183   : > { %10113 = vrsqrt.f32 %v886_v49  ;;  %vm980_vm2 = vweird.f32 %v886_v49 }
 0x186   : > { %v756_v55 = vpop.xlane.xlu0 %755  ;;  %v849_v56 = vpop.xlane.xlu1 %848 }
 0x187   : > { %v788_v57 = vmul.f32 %v11212_v29, %v756_v55  ;;  %v833_v58 = vpop.xlane.xlu2 %832  ;;  %v871_v59 = vmul.f32 %v849_v56, %v11212_v29 }
 0x188   : > { %v863_v60 = vmul.f32 %v833_v58, %v11212_v29 }
 0x189   : > { %v11313_v63 = vpop.eup %10113  ;;  %v11317_v2 = vsub.f32 %v9731_v42, %v788_v57  ;;  %v887_v3 = vadd.f32 1e-05, %v871_v59 }
 0x18a   : > { %v975_v4 = vmul.f32 %v11313_v63, %v886_v49  ;;  %v11320_v5 = vadd.f32 1e-05, %v863_v60  ;;  %vm981_vm1 = vweird.f32 %v11313_v63  ;;  %v11369_v49 = vperm.slane %v11160_v1, 0 }
 0x18b   : > { %10115 = vrsqrt.f32 %v887_v3  ;;  %v820_v7 = vmul.f32 %v11317_v2, %v11317_v2  ;;  %vm11357_vm3 = vmor %vm980_vm2, %vm981_vm1  ;;  %vm990_vm6 = vweird.f32 %v887_v3 }
 0x18c   : > { %v976_v8 = vmul.f32 %v11313_v63, %v975_v4  ;;  %10117 = vrsqrt.f32 %v11320_v5  ;;  %vm910_vm5 = vweird.f32 %v11320_v5 }
 0x18d   : > { %842 = vadd.xlane.f32.xlu0 %v820_v7 }
 0x18e   : > { %v977_v9 = vmul.f32 0.5, %v976_v8  ;;  %v853_v23 = vpop.xlane.xlu0 %852  ;;  %v831_v24 = vpop.xlane.xlu1 %830 }
 0x18f   : > { %v873_v42 = vmul.f32 %v853_v23, %v11212_v29  ;;  %v851_v11 = vpop.xlane.xlu2 %850  ;;  %v862_v13 = vmul.f32 %v831_v24, %v11212_v29 }
 0x190   : > { %v872_v25 = vmul.f32 %v851_v11, %v11212_v29  ;;  %v978_v30 = vsub.f32 1.5, %v977_v9 }
 0x191   : > { %v11329_v19 = vpop.eup %10115  ;;  %v11331_v18 = vadd.f32 1e-05, %v873_v42  ;;  %v11333_v27 = vadd.f32 1e-05, %v862_v13 }
 0x192   : > { %v11335_v28 = vpop.eup %10117  ;;  %v985_v17 = vmul.f32 %v11329_v19, %v887_v3  ;;  %v11338_v21 = vadd.f32 1e-05, %v872_v25  ;;  %v979_v20 = vmul.f32 %v11313_v63, %v978_v30  ;;  %vm991_vm4 = vweird.f32 %v11329_v19 }
 0x193   : > { %v905_v31 = vmul.f32 %v11335_v28, %v11320_v5  ;;  %10119 = vrsqrt.f32 %v11331_v18  ;;  %vm911_vm7 = vweird.f32 %v11335_v28  ;;  %vm11393_vm8 = vmor %vm990_vm6, %vm991_vm4  ;;  %vm1010_vm9 = vweird.f32 %v11331_v18 }
 0x194   : > { %v986_v32 = vmul.f32 %v11329_v19, %v985_v17  ;;  %10121 = vrsqrt.f32 %v11338_v21  ;;  %v983_v60 = vsel %vm11357_vm3, %v11313_v63, %v979_v20  ;;  %vm1000_vm10 = vweird.f32 %v11338_v21  ;;  %vm11420_vm12 = vmor %vm910_vm5, %vm911_vm7 }
 0x195   : > { %v906_v33 = vmul.f32 %v11335_v28, %v905_v31  ;;  %10123 = vrsqrt.f32 %v11333_v27  ;;  %v1062_v23 = vmul.f32 %v983_v60, %v11215_v34  ;;  %vm900_vm11 = vweird.f32 %v11333_v27 }
 0x196   : > { %v987_v22 = vmul.f32 0.5, %v986_v32  ;;  %v855_v35 = vpop.xlane.xlu0 %854  ;;  %v758_v37 = vpop.xlane.xlu1 %757 }
 0x197   : > { %v874_v38 = vmul.f32 %v855_v35, %v11212_v29  ;;  %v837_v39 = vpop.xlane.xlu2 %836  ;;  %v789_v40 = vmul.f32 %v11212_v29, %v758_v37  ;;  %v907_v43 = vmul.f32 0.5, %v906_v33 }
 0x198   : > { %v988_v46 = vsub.f32 1.5, %v987_v22  ;;  %v865_v47 = vmul.f32 %v837_v39, %v11212_v29 }
 0x199   : > { %v11355_v48 = vpop.eup %10119  ;;  %v11362_v54 = vadd.f32 1e-05, %v874_v38  ;;  %v11366_v55 = vsub.f32 %v9732_v6, %v789_v40  ;;  %v908_v6 = vsub.f32 1.5, %v907_v43 }
 0x19a   : > { %v11371_v56 = vpop.eup %10121  ;;  %v989_v57 = vmul.f32 %v11329_v19, %v988_v46  ;;  %v1005_v58 = vmul.f32 %v11355_v48, %v11331_v18  ;;  %v11376_v59 = vadd.f32 1e-05, %v865_v47  ;;  %vm1011_vm14 = vweird.f32 %v11355_v48 }
 0x19b   : > { %v11381_v4 = vpop.eup %10123  ;;  %v995_v36 = vmul.f32 %v11371_v56, %v11338_v21  ;;  %10125 = vrsqrt.f32 %v11362_v54  ;;  %v821_v9 = vmul.f32 %v11366_v55, %v11366_v55  ;;  %v909_v32 = vmul.f32 %v11335_v28, %v908_v6  ;;  %vm11475_vm2 = vmor %vm1010_vm9, %vm1011_vm14 }
 0x19c   : > { %v1006_v7 = vmul.f32 %v11355_v48, %v1005_v58  ;;  %v895_v8 = vmul.f32 %v11381_v4, %v11333_v27  ;;  %10127 = vrsqrt.f32 %v11376_v59  ;;  %v993_v13 = vsel %vm11393_vm8, %v11329_v19, %v989_v57 }
 0x19d   : > { %v996_v3 = vmul.f32 %v11371_v56, %v995_v36  ;;  %844 = vadd.xlane.f32.xlu1 %v821_v9  ;;  %v1063_v31 = vmul.f32 %v993_v13, %v11226_v44  ;;  %v1081_v44 = vmul.f32 %v11352_v41, %v1062_v23  ;;  %vm901_vm13 = vweird.f32 %v11381_v4 }
 0x19e   : > { %v896_v24 = vmul.f32 %v11381_v4, %v895_v8  ;;  %v841_v42 = vpop.xlane.xlu0 %840  ;;  %v835_v11 = vpop.xlane.xlu1 %834  ;;  %v1007_v33 = vmul.f32 0.5, %v1006_v7  ;;  %vm1001_vm15 = vweird.f32 %v11371_v56  ;;  %v913_v60 = vsel %vm11420_vm12, %v11335_v28, %v909_v32  ;;  %vm902_vm0 = vmor %vm900_vm11, %vm901_vm13 }
 0x19f   : > { %v997_v25 = vmul.f32 0.5, %v996_v3  ;;  %v867_v30 = vmul.f32 %v841_v42, %v11212_v29  ;;  %v839_v17 = vpop.xlane.xlu2 %838  ;;  %v864_v34 = vmul.f32 %v835_v11, %v11212_v29  ;;  %v1082_v39 = vmul.f32 %v11352_v41, %v1063_v31  ;;  %vm11464_vm1 = vmor %vm1000_vm10, %vm1001_vm15 }
 0x1a0   : > { %v897_v20 = vmul.f32 0.5, %v896_v24  ;;  %v866_v22 = vmul.f32 %v839_v17, %v11212_v29  ;;  %v1008_v53 = vsub.f32 1.5, %v1007_v33  ;;  %v1100_v6 = vadd.f32 %v11369_v49, %v1081_v44 }
 0x1a1   : > { %v11414_v35 = vpop.eup %10125  ;;  %v998_v37 = vsub.f32 1.5, %v997_v25  ;;  %v11424_v38 = vadd.f32 1e-05, %v867_v30  ;;  %v11431_v46 = vadd.f32 1e-05, %v864_v34  ;;  %v1101_v7 = vadd.f32 %v11369_v49, %v1082_v39 }
 0x1a2   : > { %v898_v40 = vsub.f32 1.5, %v897_v20  ;;  %v1015_v43 = vmul.f32 %v11414_v35, %v11362_v54  ;;  %v11433_v5 = vpop.eup %10127  ;;  %v11438_v47 = vadd.f32 1e-05, %v866_v22  ;;  %v1055_v42 = vmul.f32 %v913_v60, %v11228_v45 }
 0x1a3   : > { %10129 = vrsqrt.f32 %v11424_v38  ;;  %v925_v58 = vmul.f32 %v11433_v5, %v11376_v59  ;;  %v999_v36 = vmul.f32 %v11371_v56, %v998_v37  ;;  %v1112_v9 = vpack.c.bf16 %v1101_v7, %v1100_v6 }
 0x1a4   : > { %v899_v57 = vmul.f32 %v11381_v4, %v898_v40  ;;  %10131 = vrsqrt.f32 %v11438_v47  ;;  %v1016_v8 = vmul.f32 %v11414_v35, %v1015_v43  ;;  %v1009_v11 = vmul.f32 %v11355_v48, %v1008_v53 }
 0x1a5   : > { %v926_v63 = vmul.f32 %v11433_v5, %v925_v58  ;;  %10133 = vrsqrt.f32 %v11431_v46  ;;  %1208 = vmatmul.bf16.vlgmr.msra.gmra.mxu2 %v1112_v9  ;;  %1321 = vmatmul.bf16.vlgmr.msra.gmra.mxu3 %v1112_v9  ;;  %vm930_vm3 = vweird.f32 %v11376_v59  ;;  %v1074_v34 = vmul.f32 %v11352_v41, %v1055_v42 }
 0x1a6   : > { %v857_v3 = vpop.xlane.xlu1 %856  ;;  %v903_v28 = vsel %vm902_vm0, %v11381_v4, %v899_v57  ;;  %v1017_v32 = vmul.f32 0.5, %v1016_v8  ;;  %v1003_v18 = vsel %vm11464_vm1, %v11371_v56, %v999_v36  ;;  %vm931_vm4 = vweird.f32 %v11433_v5 }
 0x1a7   : > { %v861_v23 = vpop.xlane.xlu2 %860  ;;  %v875_v27 = vmul.f32 %v857_v3, %v11212_v29  ;;  %v1054_v24 = vmul.f32 %v903_v28, %v11236_v50  ;;  %v927_v25 = vmul.f32 0.5, %v926_v63  ;;  %v1013_v37 = vsel %vm11475_vm2, %v11355_v48, %v1009_v11  ;;  %vm11509_vm6 = vmor %vm930_vm3, %vm931_vm4 }
 0x1a8   : > { %v877_v4 = vmul.f32 %v861_v23, %v11212_v29  ;;  %vm920_vm5 = vweird.f32 %v11431_v46  ;;  %v1093_v40 = vadd.f32 %v11369_v49, %v1074_v34  ;;  %v1064_v53 = vmul.f32 %v1003_v18, %v11244_v52 }
 0x1a9   : > { %v11469_v30 = vpop.eup %10129  ;;  %v11479_v50 = vadd.f32 1e-05, %v875_v27  ;;  %v1073_v21 = vmul.f32 %v11352_v41, %v1054_v24  ;;  %v928_v17 = vsub.f32 1.5, %v927_v25  ;;  %v1018_v57 = vsub.f32 1.5, %v1017_v32 }
 0x1aa   : > { %v11484_v31 = vpop.eup %10131  ;;  %v11486_v33 = vadd.f32 1e-05, %v877_v4  ;;  %v945_v22 = vmul.f32 %v11469_v30, %v11424_v38  ;;  %v1065_v36 = vmul.f32 %v1013_v37, %v11240_v51  ;;  %v1083_v8 = vmul.f32 %v11352_v41, %v1064_v53 }
 0x1ab   : > { %10135 = vrsqrt.f32 %v11479_v50  ;;  %v10134_v20 = vpop.eup %10133  ;;  %v1092_v19 = vadd.f32 %v11369_v49, %v1073_v21  ;;  %v935_v44 = vmul.f32 %v11484_v31, %v11438_v47  ;;  %v929_v56 = vmul.f32 %v11433_v5, %v928_v17 }
 0x1ac   : > { %v915_v39 = vmul.f32 %v10134_v20, %v11431_v46  ;;  %10137 = vrsqrt.f32 %v11486_v33  ;;  %v946_v6 = vmul.f32 %v11469_v30, %v945_v22  ;;  %vm921_vm7 = vweird.f32 %v10134_v20 }
 0x1ad   : > { %v1108_v7 = vpack.c.bf16 %v1093_v40, %v1092_v19  ;;  %v936_v52 = vmul.f32 %v11484_v31, %v935_v44  ;;  %v1084_v28 = vmul.f32 %v11352_v41, %v1065_v36  ;;  %vm1020_vm8 = vweird.f32 %v11362_v54  ;;  %vm922_vm10 = vmor %vm920_vm5, %vm921_vm7 }
 0x1ae   : > { %v859_v43 = vpop.xlane.xlu1 %858  ;;  %v916_v58 = vmul.f32 %v10134_v20, %v915_v39  ;;  %vm1021_vm9 = vweird.f32 %v11414_v35  ;;  %v933_v9 = vsel %vm11509_vm6, %v11433_v5, %v929_v56  ;;  %v1102_v24 = vadd.f32 %v11369_v49, %v1083_v8 }
 0x1af   : > { %v876_v60 = vmul.f32 %v859_v43, %v11212_v29  ;;  %1188 = vmatmul.bf16.vlgmr.msra.gmra.mxu0 %v1108_v7  ;;  %1301 = vmatmul.bf16.vlgmr.msra.gmra.mxu1 %v1108_v7  ;;  %v1019_v42 = vmul.f32 %v11414_v35, %v1018_v57  ;;  %v947_v54 = vmul.f32 0.5, %v946_v6  ;;  %vm11535_vm11 = vmor %vm1020_vm8, %vm1021_vm9  ;;  %v937_v5 = vmul.f32 0.5, %v936_v52 }
 0x1b0   : > { %v917_v3 = vmul.f32 0.5, %v916_v58  ;;  %v1103_v4 = vadd.f32 %v11369_v49, %v1084_v28  ;;  %v1057_v45 = vmul.f32 %v933_v9, %v11258_v62  ;;  %vm1030_vm12 = vweird.f32 %v11479_v50 }
 0x1b1   : > { %v10136_v63 = vpop.eup %10135  ;;  %v11518_v59 = vadd.f32 1e-05, %v876_v60  ;;  %v948_v32 = vsub.f32 1.5, %v947_v54  ;;  %v1023_v19 = vsel %vm11535_vm11, %v11414_v35, %v1019_v42  ;;  %vm950_vm14 = vweird.f32 %v11424_v38 }
 0x1b2   : > { %v1025_v51 = vmul.f32 %v10136_v63, %v11479_v50  ;;  %v11527_v23 = vpop.eup %10137  ;;  %v918_v27 = vsub.f32 1.5, %v917_v3  ;;  %vm1031_vm13 = vweird.f32 %v10136_v63  ;;  %v1113_v46 = vpack.c.bf16 %v1103_v4, %v1102_v24 }
 0x1b3   : > { %10139 = vrsqrt.f32 %v11518_v59  ;;  %v1045_v21 = vmul.f32 %v11527_v23, %v11486_v33  ;;  %v938_v62 = vsub.f32 1.5, %v937_v5  ;;  %vm11549_vm15 = vmor %vm1030_vm12, %vm1031_vm13  ;;  %v1076_v50 = vmul.f32 %v11352_v41, %v1057_v45 }
 0x1b4   : > { %v1026_v11 = vmul.f32 %v10136_v63, %v1025_v51  ;;  %v919_v25 = vmul.f32 %v10134_v20, %v918_v27  ;;  %vm951_vm0 = vweird.f32 %v11469_v30  ;;  %vm940_vm1 = vweird.f32 %v11438_v47 }
 0x1b5   : > { %1213 = vmatmul.bf16.gmra.mxu2 %v1113_v46  ;;  %1326 = vmatmul.bf16.gmra.mxu3 %v1113_v46  ;;  %vm941_vm2 = vweird.f32 %v11484_v31  ;;  %v1066_v56 = vmul.f32 %v1023_v19, %v11254_v61  ;;  %v949_v40 = vmul.f32 %v11469_v30, %v948_v32  ;;  %vm11566_vm3 = vmor %vm950_vm14, %vm951_vm0  ;;  %v939_v47 = vmul.f32 %v11484_v31, %v938_v62 }
 0x1b6   : > { %v1027_v17 = vmul.f32 0.5, %v1026_v11  ;;  %v923_v34 = vsel %vm922_vm10, %v10134_v20, %v919_v25  ;;  %v1095_v58 = vadd.f32 %v11369_v49, %v1076_v50  ;;  %vm11574_vm4 = vmor %vm940_vm1, %vm941_vm2  ;;  %vm1040_vm5 = vweird.f32 %v11518_v59 }
 0x1b7   : > { %v1056_v22 = vmul.f32 %v923_v34, %v11270_v10  ;;  %v1046_v10 = vmul.f32 %v11527_v23, %v1045_v21  ;;  %v1085_v38 = vmul.f32 %v11352_v41, %v1066_v56  ;;  %v943_v3 = vsel %vm11574_vm4, %v11484_v31, %v939_v47 }
 0x1b8   : > { %v1028_v18 = vsub.f32 1.5, %v1027_v17  ;;  %vm1050_vm7 = vweird.f32 %v11486_v33  ;;  %vm1051_vm8 = vweird.f32 %v11527_v23  ;;  %v1058_v27 = vmul.f32 %v943_v3, %v11280_v15 }
 0x1b9   : > { %v10140_v37 = vpop.eup %10139  ;;  %v1075_v35 = vmul.f32 %v11352_v41, %v1056_v22  ;;  %v1047_v36 = vmul.f32 0.5, %v1046_v10  ;;  %v1104_v51 = vadd.f32 %v11369_v49, %v1085_v38  ;;  %vm1052_vm10 = vmor %vm1050_vm7, %vm1051_vm8  ;;  %vm1407_vm1 = vcmask 1047556  }
 0x1ba   : > { %v1029_v20 = vmul.f32 %v10136_v63, %v1028_v18  ;;  %v1035_v39 = vmul.f32 %v10140_v37, %v11518_v59  ;;  %vm1041_vm6 = vweird.f32 %v10140_v37  ;;  %v1077_v59 = vmul.f32 %v11352_v41, %v1058_v27 }
 0x1bb   : > { %v1094_v48 = vadd.f32 %v11369_v49, %v1075_v35  ;;  %v1048_v28 = vsub.f32 1.5, %v1047_v36  ;;  %vm1042_vm9 = vmor %vm1040_vm5, %vm1041_vm6  ;;  %vm2879_vm2 = vcmask 519168  }
 0x1bc   : > { %v1036_v43 = vmul.f32 %v10140_v37, %v1035_v39  ;;  %v1033_v53 = vsel %vm11549_vm15, %v10136_v63, %v1029_v20  ;;  %v1096_v15 = vadd.f32 %v11369_v49, %v1077_v59 }
 0x1bd   : > { %v1067_v61 = vmul.f32 %v1033_v53, %v11292_v26  ;;  %v1109_v7 = vpack.c.bf16 %v1095_v58, %v1094_v48  ;;  %v953_v26 = vsel %vm11566_vm3, %v11469_v30, %v949_v40  ;;  %v1049_v30 = vmul.f32 %v11527_v23, %v1048_v28 }
 0x1be   : > { %v1037_v6 = vmul.f32 0.5, %v1036_v43  ;;  %v1059_v31 = vmul.f32 %v953_v26, %v11276_v14 }
 0x1bf   : > { %v1086_v8 = vmul.f32 %v11352_v41, %v1067_v61  ;;  %1193 = vmatmul.bf16.gmra.mxu0 %v1109_v7  ;;  %1306 = vmatmul.bf16.gmra.mxu1 %v1109_v7  ;;  %v1053_v33 = vsel %vm1052_vm10, %v11527_v23, %v1049_v30 }
 0x1c0   : > { %v1038_v63 = vsub.f32 1.5, %v1037_v6  ;;  %v1078_v42 = vmul.f32 %v11352_v41, %v1059_v31  ;;  %v1069_v13 = vmul.f32 %v1053_v33, %v11296_v16 }
 0x1c1   : > { %v1105_v52 = vadd.f32 %v11369_v49, %v1086_v8 }
 0x1c2   : > { %v1039_v9 = vmul.f32 %v10140_v37, %v1038_v63  ;;  %v1097_v14 = vadd.f32 %v11369_v49, %v1078_v42  ;;  %v1088_v4 = vmul.f32 %v11352_v41, %v1069_v13 }
 0x1c3   : > { %v1114_v24 = vpack.c.bf16 %v1105_v52, %v1104_v51 }
 0x1c4   : > { %v1043_v54 = vsel %vm1042_vm9, %v10140_v37, %v1039_v9  ;;  %v1110_v25 = vpack.c.bf16 %v1097_v14, %v1096_v15  ;;  %v1107_v21 = vadd.f32 %v11369_v49, %v1088_v4 }
 0x1c5   : > { %1218 = vmatmul.bf16.gmra.mxu2 %v1114_v24  ;;  %1331 = vmatmul.bf16.gmra.mxu3 %v1114_v24  ;;  %v1068_v11 = vmul.f32 %v1043_v54, %v11305_v12 }
 0x1c7   : > { %v1087_v5 = vmul.f32 %v11352_v41, %v1068_v11 }
 0x1c9   : > { %v1106_v45 = vadd.f32 %v11369_v49, %v1087_v5 }
 0x1cb   : > { %v1115_v23 = vpack.c.bf16 %v1107_v21, %v1106_v45 }
 0x1cf   : > { %1198 = vmatmul.bf16.gmra.mxu0 %v1110_v25  ;;  %1311 = vmatmul.bf16.gmra.mxu1 %v1110_v25 }
 0x1d5   : > { %1223 = vmatmul.bf16.gmra.mxu2 %v1115_v23  ;;  %1336 = vmatmul.bf16.gmra.mxu3 %v1115_v23 }
 0x200   : > { %v843_v12 = vpop.xlane.xlu0 %842 }
 0x201   : > { %v868_v17 = vmul.f32 %v843_v12, %v11212_v29 }
 0x203   : > { %v884_v46 = vadd.f32 1e-05, %v868_v17 }
 0x205   : > { %10141 = vrsqrt.f32 %v884_v46  ;;  %vm960_vm11 = vweird.f32 %v884_v46 }
 0x20b   : > { %v10142_v16 = vpop.eup %10141 }
 0x20c   : > { %v955_v34 = vmul.f32 %v10142_v16, %v884_v46  ;;  %vm961_vm12 = vweird.f32 %v10142_v16 }
 0x20d   : > { %vm962_vm13 = vmor %vm960_vm11, %vm961_vm12 }
 0x20e   : > { %v956_v22 = vmul.f32 %v10142_v16, %v955_v34 }
 0x210   : > { %v845_v32 = vpop.xlane.xlu1 %844  ;;  %v957_v37 = vmul.f32 0.5, %v956_v22 }
 0x211   : > { %v869_v18 = vmul.f32 %v845_v32, %v11212_v29  ;;  %v10813_v32 = vmov 1983009808  }
 0x212   : > { %v958_v62 = vsub.f32 1.5, %v957_v37 }
 0x213   : > { %v885_v19 = vadd.f32 1e-05, %v869_v18  ;;  %v1410_v18 = vunpack.c.l.s4 %v10813_v32 }
 0x214   : > { %v959_v10 = vmul.f32 %v10142_v16, %v958_v62 }
 0x215   : > { %10143 = vrsqrt.f32 %v885_v19  ;;  %vm970_vm15 = vweird.f32 %v885_v19  ;;  %v11708_v62 = vunpack.c.0.s8 %v1410_v18 }
 0x216   : > { %v963_v56 = vsel %vm962_vm13, %v10142_v16, %v959_v10 }
 0x217   : > { %v1060_v29 = vmul.f32 %v963_v56, %v11317_v2 }
 0x219   : > { %v1079_v57 = vmul.f32 %v11352_v41, %v1060_v29 }
 0x21b   : > { %v10144_v44 = vpop.eup %10143  ;;  %v1098_v6 = vadd.f32 %v11369_v49, %v1079_v57 }
 0x21c   : > { %v965_v50 = vmul.f32 %v10144_v44, %v885_v19  ;;  %vm971_vm14 = vweird.f32 %v10144_v44 }
 0x21d   : > { %vm972_vm0 = vmor %vm970_vm15, %vm971_vm14 }
 0x21e   : > { %v966_v20 = vmul.f32 %v10144_v44, %v965_v50 }
 0x220   : > { %v967_v39 = vmul.f32 0.5, %v966_v20 }
 0x222   : > { %v968_v35 = vsub.f32 1.5, %v967_v39 }
 0x224   : > { %v969_v40 = vmul.f32 %v10144_v44, %v968_v35 }
 0x226   : > { %v973_v43 = vsel %vm972_vm0, %v10144_v44, %v969_v40 }
 0x227   : > { %v1061_v53 = vmul.f32 %v973_v43, %v11366_v55 }
 0x228   : > { %v11611_v48 = vpop.f32.mrf.mxu2  ;;  %v11613_v58 = vpop.f32.mrf.mxu3 }
 0x229   : > { %v1080_v47 = vmul.f32 %v11352_v41, %v1061_v53  ;;  %v1823_v22 = vrot.slane %v11611_v48, 4  ;;  %v3392_v37 = vrot.slane %v11613_v58, 4  ;;  %v11720_v56 = vperm.slane %v11611_v48, %v11708_v62 }
 0x22a   : > { %v11724_v40 = vperm.slane %v11613_v58, %v11708_v62 }
 0x22b   : > { %v1099_v61 = vadd.f32 %v11369_v49, %v1080_v47  ;;  %v1824_v10 = vsel %vm1407_vm1, 0.0, %v1823_v22  ;;  %v3393_v20 = vsel %vm1407_vm1, 0.0, %v3392_v37 }
 0x22c   : > { %v11616_v60 = vpop.f32.mrf.mxu0  ;;  %v11618_v36 = vpop.f32.mrf.mxu1  ;;  %v11727_v29 = vperm.slane %v1824_v10, %v11708_v62  ;;  %v11734_v47 = vperm.slane %v3393_v20, %v11708_v62 }
 0x22d   : > { %v1111_v2 = vpack.c.bf16 %v1099_v61, %v1098_v6  ;;  %v1406_v44 = vrot.slane %v11616_v60, 4  ;;  %v2976_v50 = vrot.slane %v11618_v36, 4  ;;  %v11743_v61 = vperm.slane %v11618_v36, %v11708_v62 }
 0x22f   : > { %1203 = vmatmul.bf16.gmra.mxu0 %v1111_v2  ;;  %1316 = vmatmul.bf16.gmra.mxu1 %v1111_v2  ;;  %v1408_v43 = vsel %vm1407_vm1, 0.0, %v1406_v44  ;;  %v2977_v53 = vsel %vm1407_vm1, 0.0, %v2976_v50 }
 0x230   : > { %v11621_v55 = vpop.f32.mrf.mxu2  ;;  %v11623_v7 = vpop.f32.mrf.mxu3 }
 0x231   : > { %v10041_v41 = vpack.i.bf16 %v11621_v55, %v11611_v48  ;;  %v10046_v38 = vpack.i.bf16 %v11623_v7, %v11613_v58  ;;  %v1875_v39 = vrot.slane %v11621_v55, 4  ;;  %v3444_v57 = vrot.slane %v11623_v7, 4 }
 0x232   : > { %v11739_v58 = vperm.slane %v11616_v60, %v11708_v62 }
 0x233   : > { %10042 = vrot.lane.b32.xlu0 %v10041_v41, %s10812_s29  ;;  %10047 = vrot.lane.b32.xlu1 %v10046_v38, %s10812_s29  ;;  %v1876_v6 = vsel %vm1407_vm1, 0.0, %v1875_v39  ;;  %v11748_v41 = vperm.slane %v1408_v43, %v11708_v62  ;;  %v11751_v38 = vperm.slane %v2977_v53, %v11708_v62 }
 0x234   : > { %v11629_v8 = vpop.f32.mrf.mxu0  ;;  %v11631_v63 = vpop.f32.mrf.mxu1 }
 0x235   : > { %v10031_v49 = vpack.i.bf16 %v11629_v8, %v11616_v60  ;;  %v10036_v51 = vpack.i.bf16 %v11631_v63, %v11618_v36  ;;  %v1459_v48 = vrot.slane %v11629_v8, 4  ;;  %v11758_v36 = vperm.slane %v11621_v55, %v11708_v62 }
 0x236   : > { %v11783_v44 = vperm.slane %v11629_v8, %v11708_v62  ;;  %v11790_v10 = vperm.slane %v11631_v63, %v11708_v62  ;;  %v10814_v60 = vmov 1934713408  }
 0x237   : > { %10032 = vrot.lane.b32.xlu2 %v10031_v49, %s10812_s29  ;;  %v3028_v49 = vrot.slane %v11631_v63, 4 }
 0x238   : > { %v11638_v52 = vpop.f32.mrf.mxu2  ;;  %v11640_v3 = vpop.f32.mrf.mxu3 }
 0x239   : > { %v1927_v55 = vrot.slane %v11638_v52, 4  ;;  %v3496_v32 = vrot.slane %v11640_v3, 4 }
 0x23b   : > { %v1928_v8 = vsel %vm1407_vm1, 0.0, %v1927_v55 }
 0x23c   : > { %v11642_v26 = vpop.f32.mrf.mxu0  ;;  %v11644_v28 = vpop.f32.mrf.mxu1  ;;  %v11817_v5 = vperm.slane %v1928_v8, %v11708_v62 }
 0x23d   : > { %v3080_v43 = vrot.slane %v11644_v28, 4  ;;  %v11827_v63 = vperm.slane %v11642_v26, %v11708_v62 }
 0x23f   : > { %10037 = vrot.lane.b32.xlu2 %v10036_v51, %s10812_s29 }
 0x240   : > { %v11649_v9 = vpop.f32.mrf.mxu2  ;;  %v11651_v27 = vpop.f32.mrf.mxu3 }
 0x241   : > { %v10061_v30 = vpack.i.bf16 %v11649_v9, %v11638_v52  ;;  %v10096_v35 = vpack.i.bf16 %v11651_v27, %v11640_v3 }
 0x244   : > { %v11653_v31 = vpop.f32.mrf.mxu0  ;;  %v11655_v24 = vpop.f32.mrf.mxu1 }
 0x245   : > { %v10051_v59 = vpack.i.bf16 %v11653_v31, %v11642_v26  ;;  %v10056_v42 = vpack.i.bf16 %v11655_v24, %v11644_v28  ;;  %v3132_v51 = vrot.slane %v11655_v24, 4  ;;  %v11867_v37 = vperm.slane %v11653_v31, %v11708_v62 }
 0x247   : > { %10062 = vrot.lane.b32.xlu2 %v10061_v30, %s10812_s29  ;;  %10052 = vrot.lane.b32.xlu0 %v10051_v59, %s10812_s29  ;;  %v3445_v30 = vsel %vm1407_vm1, 0.0, %v3444_v57  ;;  %v3497_v57 = vsel %vm1407_vm1, 0.0, %v3496_v32 }
 0x248   : > { %10057 = vrot.lane.b32.xlu1 %v10056_v42, %s10812_s29  ;;  %v11666_v54 = vpop.f32.mrf.mxu2  ;;  %v11668_v33 = vpop.f32.mrf.mxu3  ;;  %v11763_v42 = vperm.slane %v1876_v6, %v11708_v62  ;;  %v11805_v6 = vperm.slane %v11638_v52, %v11708_v62  ;;  %v11820_v52 = vperm.slane %v3497_v57, %v11708_v62  ;;  %v11835_v57 = vperm.slane %v11644_v28, %v11708_v62 }
 0x249   : > { %v3600_v8 = vrot.slane %v11668_v33, 4 }
 0x24a   : > { %15403 = vst [vmem:[#allocation41_spill] sm:$0xff] %v11820_v52 }
 0x24c   : > { %v11670_v11 = vpop.f32.mrf.mxu0  ;;  %v11672_v15 = vpop.f32.mrf.mxu1 }
 0x250   : > { %v11674_v14 = vpop.f32.mrf.mxu2  ;;  %v11676_v13 = vpop.f32.mrf.mxu3 }
 0x251   : > { %v10076_v17 = vpack.i.bf16 %v11674_v14, %v11666_v54 }
 0x254   : > { %v11680_v25 = vpop.f32.mrf.mxu0  ;;  %v11682_v4 = vpop.f32.mrf.mxu1 }
 0x255   : > { %v10066_v45 = vpack.i.bf16 %v11680_v25, %v11670_v11  ;;  %v10071_v21 = vpack.i.bf16 %v11682_v4, %v11672_v15  ;;  %v3236_v18 = vrot.slane %v11682_v4, 4 }
 0x257   : > { %10067 = vrot.lane.b32.xlu1 %v10066_v45, %s10812_s29  ;;  %10072 = vrot.lane.b32.xlu0 %v10071_v21, %s10812_s29  ;;  %v11767_v45 = vperm.slane %v11623_v7, %v11708_v62  ;;  %v1460_v21 = vsel %vm1407_vm1, 0.0, %v1459_v48  ;;  %v3029_v7 = vsel %vm1407_vm1, 0.0, %v3028_v49  ;;  %v1979_v48 = vrot.slane %v11649_v9, 4 }
 0x258   : > { %v11690_v23 = vpop.f32.mrf.mxu2  ;;  %v11692_v12 = vpop.f32.mrf.mxu3  ;;  %v11786_v50 = vperm.slane %v1460_v21, %v11708_v62  ;;  %v11797_v53 = vperm.slane %v3029_v7, %v11708_v62  ;;  %v11809_v49 = vperm.slane %v11640_v3, %v11708_v62  ;;  %v1563_v7 = vrot.slane %v11653_v31, 4 }
 0x259   : > { %v3081_v3 = vsel %vm1407_vm1, 0.0, %v3080_v43  ;;  %v1980_v39 = vsel %vm1407_vm1, 0.0, %v1979_v48  ;;  %v11846_v48 = vperm.slane %v11649_v9, %v11708_v62  ;;  %v3133_v9 = vsel %vm1407_vm1, 0.0, %v3132_v51 }
 0x25a   : > { %15402 = vst [vmem:[#allocation40_spill] sm:$0xff] %v11809_v49  ;;  %v1564_v20 = vsel %vm1407_vm1, 0.0, %v1563_v7  ;;  %v11852_v28 = vperm.slane %v1980_v39, %v11708_v62  ;;  %v2031_v7 = vrot.slane %v11666_v54, 4  ;;  %v11883_v22 = vperm.slane %v3133_v9, %v11708_v62 }
 0x25b   : > { %v11870_v39 = vperm.slane %v1564_v20, %v11708_v62  ;;  %v11887_v20 = vperm.slane %v11666_v54, %v11708_v62  ;;  %v3184_v51 = vrot.slane %v11672_v15, 4  ;;  %v11898_v9 = vperm.slane %v11668_v33, %v11708_v62 }
 0x25c   : > { %v3601_v54 = vsel %vm1407_vm1, 0.0, %v3600_v8  ;;  %v11910_v31 = vperm.slane %v11670_v11, %v11708_v62  ;;  %v1667_v8 = vrot.slane %v11680_v25, 4  ;;  %v3704_v1 = vrot.slane %v11692_v12, 4 }
 0x25d   : > { %15406 = vst [vmem:[#allocation44_spill] sm:$0xff] %v11887_v20  ;;  %v3185_v55 = vsel %vm1407_vm1, 0.0, %v3184_v51  ;;  %v11917_v21 = vperm.slane %v3601_v54, %v11708_v62  ;;  %v2135_v51 = vrot.slane %v11690_v23, 4  ;;  %v3237_v0 = vsel %vm1407_vm1, 0.0, %v3236_v18 }
 0x25e   : > { %15407 = vst [vmem:[#allocation45_spill] sm:$0xff] %v11898_v9 }
 0x25f   : > { %10077 = vrot.lane.b32.xlu1 %v10076_v17, %s10812_s29  ;;  %15409 = vst [vmem:[#allocation47_spill] sm:$0xff] %v11917_v21  ;;  %v11961_v21 = vperm.slane %v11682_v4, %v11708_v62  ;;  %v2136_v18 = vsel %vm1407_vm1, 0.0, %v2135_v51 }
 0x260   : > { %v11697_v46 = vpop.f32.mrf.mxu2  ;;  %v11701_v34 = vpop.f32.mrf.mxu3 }
 0x261   : > { %v10091_v16 = vpack.i.bf16 %v11697_v46, %v11690_v23  ;;  %v10106_v19 = vpack.i.bf16 %v11701_v34, %v11692_v12  ;;  %v2187_v4 = vrot.slane %v11697_v46, 4  ;;  %v3756_v51 = vrot.slane %v11701_v34, 4 }
 0x262   : > { %v11999_v49 = vperm.slane %v11697_v46, %v11708_v62 }
 0x263   : > { %10092 = vrot.lane.b32.xlu0 %v10091_v16, %s10812_s29  ;;  %v11922_v16 = vperm.slane %v11672_v15, %v11708_v62  ;;  %v11934_v15 = vperm.slane %v3185_v55, %v11708_v62  ;;  %v2188_v52 = vsel %vm1407_vm1, 0.0, %v2187_v4 }
 0x264   : > { %15419 = vst [vmem:[#allocation57_spill] sm:$0xff] %v11999_v49  ;;  %v12014_v4 = vperm.slane %v2188_v52, %v11708_v62  ;;  %v15422_v52 = vrot.slane %v11739_v58, 4 }
 0x266   : > { %15421 = vst [vmem:[#allocation59_spill] sm:$0xff] %v12014_v4 }
 0x267   : > { %10107 = vrot.lane.b32.xlu1 %v10106_v19, %s10812_s29  ;;  %v11777_v19 = vperm.slane %v3445_v30, %v11708_v62  ;;  %v3548_v30 = vrot.slane %v11651_v27, 4 }
 0x26b   : > { %10097 = vrot.lane.b32.xlu0 %v10096_v35, %s10812_s29  ;;  %v1511_v35 = vrot.slane %v11642_v26, 4  ;;  %v11842_v26 = vperm.slane %v3081_v3, %v11708_v62 }
 0x26d   : > { %v1512_v59 = vsel %vm1407_vm1, 0.0, %v1511_v35  ;;  %v3549_v35 = vsel %vm1407_vm1, 0.0, %v3548_v30  ;;  %v1615_v30 = vrot.slane %v11670_v11, 4  ;;  %v1432_v11 = vunpack.c.l.s4 %v10814_v60 }
 0x26e   : > { %v11839_v43 = vperm.slane %v1512_v59, %v11708_v62  ;;  %v11856_v59 = vperm.slane %v11651_v27, %v11708_v62  ;;  %v11860_v3 = vperm.slane %v3549_v35, %v11708_v62  ;;  %v11874_v27 = vperm.slane %v11655_v24, %v11708_v62 }
 0x26f   : > { %v2032_v35 = vsel %vm1407_vm1, 0.0, %v2031_v7  ;;  %v2083_v24 = vrot.slane %v11674_v14, 4  ;;  %v3652_v7 = vrot.slane %v11676_v13, 4  ;;  %v1616_v2 = vsel %vm1407_vm1, 0.0, %v1615_v30 }
 0x270   : > { %15404 = vst [vmem:[#allocation42_spill] sm:$0xff] %v11856_v59  ;;  %v11905_v32 = vperm.slane %v2032_v35, %v11708_v62  ;;  %v11930_v54 = vperm.slane %v1616_v2, %v11708_v62  ;;  %v11938_v60 = vperm.slane %v11674_v14, %v11708_v62  ;;  %v11953_v35 = vunpack.c.0.s8 %v1432_v11 }
 0x271   : > { %15405 = vst [vmem:[#allocation43_spill] sm:$0xff] %v11860_v3  ;;  %v2084_v17 = vsel %vm1407_vm1, 0.0, %v2083_v24  ;;  %v3653_v30 = vsel %vm1407_vm1, 0.0, %v3652_v7  ;;  %v11942_v24 = vperm.slane %v11676_v13, %v11708_v62  ;;  %v1668_v7 = vsel %vm1407_vm1, 0.0, %v1667_v8 }
 0x272   : > { %15408 = vst [vmem:[#allocation46_spill] sm:$0xff] %v11905_v32  ;;  %v11948_v9 = vperm.slane %v2084_v17, %v11708_v62  ;;  %v11951_v55 = vperm.slane %v3653_v30, %v11708_v62  ;;  %v11957_v14 = vperm.slane %v11680_v25, %v11708_v62  ;;  %v3705_v8 = vsel %vm1407_vm1, 0.0, %v3704_v1 }
 0x273   : > { %15410 = vst [vmem:[#allocation48_spill] sm:$0xff] %v11930_v54  ;;  %v11968_v30 = vperm.slane %v1668_v7, %v11708_v62  ;;  %v11971_v11 = vperm.slane %v3237_v0, %v11708_v62  ;;  %v11979_v1 = vperm.slane %v11690_v23, %v11708_v62  ;;  %v11982_v17 = vperm.slane %v2136_v18, %v11708_v62 }
 0x274   : > { %15411 = vst [vmem:[#allocation49_spill] sm:$0xff] %v11938_v60  ;;  %v11986_v7 = vperm.slane %v11692_v12, %v11708_v62  ;;  %v11989_v0 = vperm.slane %v3705_v8, %v11708_v62  ;;  %v12003_v12 = vperm.slane %v11701_v34, %v11708_v62  ;;  %v3757_v25 = vsel %vm1407_vm1, 0.0, %v3756_v51 }
 0x275   : > { %15412 = vst [vmem:[#allocation50_spill] sm:$0xff] %v11942_v24  ;;  %v15423_v51 = vrot.slane %v11783_v44, 4 }
 0x276   : > { %15413 = vst [vmem:[#allocation51_spill] sm:$0xff] %v11948_v9 }
 0x277   : > { %15414 = vst [vmem:[#allocation52_spill] sm:$0xff] %v11951_v55 }
 0x278   : > { %15415 = vst [vmem:[#allocation53_spill] sm:$0xff] %v11979_v1 }
 0x279   : > { %15416 = vst [vmem:[#allocation54_spill] sm:$0xff] %v11982_v17 }
 0x27a   : > { %15417 = vst [vmem:[#allocation55_spill] sm:$0xff] %v11986_v7 }
 0x27b   : > { %15418 = vst [vmem:[#allocation56_spill] sm:$0xff] %v11989_v0 }
 0x27c   : > { %15420 = vst [vmem:[#allocation58_spill] sm:$0xff] %v12003_v12 }
 0x291   : > { %v10033_v8 = vpop.permute.xlu2 %10032 }
 0x292   : > { %v10035_v2 = vunpack.i.h.bf16 %v10033_v8  ;;  %v10034_v55 = vunpack.i.l.bf16 %v10033_v8  ;;  %v12018_v8 = vperm.slane %v3757_v25, %v11708_v62 }
 0x294   : > { %v1469_v3 = vrot.slane %v10035_v2, 4  ;;  %v1474_v59 = vperm.slane %v10035_v2, %v11708_v62  ;;  %v1417_v34 = vrot.slane %v10034_v55, 4  ;;  %v1422_v32 = vperm.slane %v10034_v55, %v11708_v62 }
 0x296   : > { %v1470_v18 = vsel %vm1407_vm1, 0.0, %v1469_v3  ;;  %v1479_v24 = vrot.slane %v1474_v59, 4  ;;  %v1418_v46 = vsel %vm1407_vm1, 0.0, %v1417_v34  ;;  %v1427_v0 = vrot.slane %v1422_v32, 4 }
 0x297   : > { %v1478_v2 = vperm.slane %v1470_v18, %v11708_v62  ;;  %v1426_v55 = vperm.slane %v1418_v46, %v11708_v62  ;;  %v1430_v7 = vsel %vm1407_vm1, %v1422_v32, %v15422_v52  ;;  %v1482_v25 = vsel %vm1407_vm1, %v1474_v59, %v15423_v51 }
 0x298   : > { %v1428_v23 = vsel %vm1407_vm1, %v1427_v0, %v11739_v58  ;;  %v1438_v3 = vperm.slane %v1430_v7, %v11953_v35  ;;  %v1480_v34 = vsel %vm1407_vm1, %v1479_v24, %v11783_v44  ;;  %v1490_v18 = vperm.slane %v1482_v25, %v11953_v35 }
 0x299   : > { %v1491_v12 = vrot.slane %v1478_v2, 4  ;;  %v1434_v46 = vperm.slane %v1428_v23, %v11953_v35  ;;  %v1439_v17 = vrot.slane %v1426_v55, 4  ;;  %v15424_v32 = vrot.slane %v11748_v41, 4 }
 0x29a   : > { %v1453_v51 = vrot.slane %v1438_v3, 4  ;;  %v1486_v58 = vperm.slane %v1480_v34, %v11953_v35  ;;  %v15425_v7 = vrot.slane %v11786_v50, 4 }
 0x29b   : > { %v1442_v52 = vsel %vm1407_vm1, %v1426_v55, %v15424_v32  ;;  %v1440_v44 = vsel %vm1407_vm1, %v1439_v17, %v11748_v41  ;;  %v1451_v24 = vrot.slane %v1434_v46, 4  ;;  %v1492_v23 = vsel %vm1407_vm1, %v1491_v12, %v11786_v50 }
 0x29c   : > { %v1450_v59 = vperm.slane %v1442_v52, %v11953_v35  ;;  %v1494_v0 = vsel %vm1407_vm1, %v1478_v2, %v15425_v7  ;;  %v1446_v32 = vperm.slane %v1440_v44, %v11953_v35  ;;  %v1498_v34 = vperm.slane %v1492_v23, %v11953_v35 }
 0x29d   : > { %v1502_v25 = vperm.slane %v1494_v0, %v11953_v35  ;;  %v1454_v52 = vsel %vm1407_vm1, 0.0, %v1453_v51  ;;  %v1503_v1 = vrot.slane %v1486_v58, 4  ;;  %v1505_v2 = vrot.slane %v1490_v18, 4 }
 0x29e   : > { %v1457_v3 = vrot.slane %v1450_v59, 4  ;;  %v1455_v49 = vrot.slane %v1446_v32, 4  ;;  %v1507_v17 = vrot.slane %v1498_v34, 4  ;;  %v2239_v50 = vsel %vm1407_vm1, %v1453_v51, %v1434_v46 }
 0x29f   : > { %v1509_v7 = vrot.slane %v1502_v25, 4  ;;  %v1452_v12 = vsel %vm1407_vm1, 0.0, %v1451_v24  ;;  %v1504_v0 = vsel %vm1407_vm1, 0.0, %v1503_v1  ;;  %v1506_v44 = vsel %vm1407_vm1, 0.0, %v1505_v2  ;;  %v10038_v24 = vpop.permute.xlu2 %10037 }
 0x2a0   : > { %v1458_v41 = vsel %vm1407_vm1, 0.0, %v1457_v3  ;;  %v1456_v23 = vsel %vm1407_vm1, 0.0, %v1455_v49  ;;  %v2243_v55 = vperm.slane %v2239_v50, %v11708_v62  ;;  %v2244_v18 = vrot.slane %v1454_v52, 4 }
 0x2a1   : > { %v1510_v59 = vsel %vm1407_vm1, 0.0, %v1509_v7  ;;  %v2250_v25 = vsel %vm1407_vm1, %v1457_v3, %v1446_v32  ;;  %v1508_v4 = vsel %vm1407_vm1, 0.0, %v1507_v17  ;;  %v2255_v20 = vrot.slane %v1458_v41, 4 }
 0x2a2   : > { %v2277_v46 = vsel %vm1407_vm1, %v1505_v2, %v1486_v58  ;;  %v2282_v51 = vrot.slane %v1506_v44, 4  ;;  %v2245_v1 = vsel %vm1407_vm1, %v2244_v18, %v1452_v12  ;;  %v2254_v9 = vperm.slane %v2250_v25, %v11708_v62 }
 0x2a3   : > { %v2288_v60 = vsel %vm1407_vm1, %v1509_v7, %v1498_v34  ;;  %v2293_v54 = vrot.slane %v1510_v59, 4  ;;  %v2249_v49 = vperm.slane %v2245_v1, %v11708_v62  ;;  %v2256_v52 = vsel %vm1407_vm1, %v2255_v20, %v1456_v23 }
 0x2a4   : > { %v2281_v32 = vperm.slane %v2277_v46, %v11708_v62  ;;  %v2283_v3 = vsel %vm1407_vm1, %v2282_v51, %v1504_v0  ;;  %v2260_v58 = vperm.slane %v2256_v52, %v11708_v62  ;;  %v10040_v17 = vunpack.i.h.bf16 %v10038_v24 }
 0x2a5   : > { %v2287_v2 = vperm.slane %v2283_v3, %v11708_v62  ;;  %v2294_v41 = vsel %vm1407_vm1, %v2293_v54, %v1508_v4  ;;  %v2261_v50 = vrot.slane %v2249_v49, 4  ;;  %v2292_v34 = vperm.slane %v2288_v60, %v11708_v62 }
 0x2a6   : > { %v2298_v7 = vperm.slane %v2294_v41, %v11708_v62  ;;  %v10039_v12 = vunpack.i.l.bf16 %v10038_v24  ;;  %v2267_v44 = vrot.slane %v2260_v58, 4  ;;  %v3038_v59 = vrot.slane %v10040_v17, 4 }
 0x2a7   : > { %v2299_v20 = vrot.slane %v2287_v2, 4  ;;  %v3043_v23 = vperm.slane %v10040_v17, %v11708_v62  ;;  %v2262_v0 = vsel %vm1407_vm1, %v2261_v50, %v2243_v55  ;;  %v15426_v2 = vrot.slane %v11790_v10, 4 }
 0x2a8   : > { %v2305_v18 = vrot.slane %v2298_v7, 4  ;;  %v2986_v25 = vrot.slane %v10039_v12, 4  ;;  %v2991_v46 = vperm.slane %v10039_v12, %v11708_v62  ;;  %v2266_v54 = vperm.slane %v2262_v0, %v11953_v35 }
 0x2a9   : > { %v2268_v4 = vsel %vm1407_vm1, %v2267_v44, %v2254_v9  ;;  %v2300_v60 = vsel %vm1407_vm1, %v2299_v20, %v2281_v32  ;;  %v3039_v51 = vsel %vm1407_vm1, 0.0, %v3038_v59  ;;  %v3048_v58 = vrot.slane %v3043_v23, 4 }
 0x2aa   : > { %v2272_v24 = vperm.slane %v2268_v4, %v11953_v35  ;;  %v2304_v1 = vperm.slane %v2300_v60, %v11953_v35  ;;  %v2306_v49 = vsel %vm1407_vm1, %v2305_v18, %v2292_v34  ;;  %v3047_v55 = vperm.slane %v3039_v51, %v11708_v62 }
 0x2ab   : > { %v2275_v52 = vrot.slane %v2266_v54, 4  ;;  %v2310_v3 = vperm.slane %v2306_v49, %v11953_v35  ;;  %v3051_v9 = vsel %vm1407_vm1, %v3043_v23, %v15426_v2  ;;  %v3049_v34 = vsel %vm1407_vm1, %v3048_v58, %v11790_v10 }
 0x2ac   : > { %v2273_v41 = vrot.slane %v2272_v24, 4  ;;  %v2313_v32 = vrot.slane %v2304_v1, 4  ;;  %v3059_v17 = vperm.slane %v3051_v9, %v11953_v35  ;;  %v3060_v50 = vrot.slane %v3047_v55, 4  ;;  %v12114_v9 = vpop.permute.xlu2 %10062 }
 0x2ad   : > { %v2276_v7 = vsel %vm1407_vm1, %v2272_v24, %v2275_v52  ;;  %v2311_v12 = vrot.slane %v2310_v3, 4  ;;  %v15427_v44 = vrot.slane %v11797_v53, 4  ;;  %v3055_v18 = vperm.slane %v3049_v34, %v11953_v35 }
 0x2ae   : > { %v2274_v59 = vsel %vm1407_vm1, %v2273_v41, %v2266_v54  ;;  %v2314_v0 = vsel %vm1407_vm1, %v2310_v3, %v2313_v32  ;;  %v2863_v23 = vpack.c.bf16 %v2276_v7, %v2276_v7  ;;  %v3061_v24 = vsel %vm1407_vm1, %v3060_v50, %v11797_v53 }
 0x2af   : > { %v3063_v20 = vsel %vm1407_vm1, %v3047_v55, %v15427_v44  ;;  %v2312_v4 = vsel %vm1407_vm1, %v2311_v12, %v2304_v1  ;;  %v2847_v60 = vpack.c.bf16 %v2274_v59, %v2274_v59  ;;  %v2864_v51 = vpack.c.bf16 %v2314_v0, %v2314_v0 }
 0x2b0   : > { %v2848_v49 = vpack.c.bf16 %v2312_v4, %v2312_v4  ;;  %2896 = vst.msk [vmem:[#allocation2 + $0x40] sm:$0xf] %vm2879_vm2, %v2863_v23  ;;  %v3067_v10 = vperm.slane %v3061_v24, %v11953_v35  ;;  %v3071_v55 = vperm.slane %v3063_v20, %v11953_v35  ;;  %v3072_v54 = vrot.slane %v3055_v18, 4 }
 0x2b1   : > { %2880 = vst.msk [vmem:[#allocation2] sm:$0xf] %vm2879_vm2, %v2847_v60  ;;  %v3074_v52 = vrot.slane %v3059_v17, 4  ;;  %v2987_v3 = vsel %vm1407_vm1, 0.0, %v2986_v25  ;;  %v2996_v58 = vrot.slane %v2991_v46, 4  ;;  %v15428_v1 = vrot.slane %v11743_v61, 4 }
 0x2b2   : > { %2881 = vst.msk [vmem:[#allocation2 + $0x4] sm:$0xf] %vm2879_vm2, %v2848_v49  ;;  %v3073_v53 = vsel %vm1407_vm1, 0.0, %v3072_v54  ;;  %v3076_v41 = vrot.slane %v3067_v10, 4  ;;  %v3078_v32 = vrot.slane %v3071_v55, 4  ;;  %v2995_v50 = vperm.slane %v2987_v3, %v11708_v62 }
 0x2b3   : > { %v2999_v2 = vsel %vm1407_vm1, %v2991_v46, %v15428_v1  ;;  %2897 = vst.msk [vmem:[#allocation2 + $0x44] sm:$0xf] %vm2879_vm2, %v2864_v51  ;;  %v3075_v17 = vsel %vm1407_vm1, 0.0, %v3074_v52  ;;  %v3846_v25 = vsel %vm1407_vm1, %v3074_v52, %v3055_v18  ;;  %v2997_v7 = vsel %vm1407_vm1, %v2996_v58, %v11743_v61 }
 0x2b4   : > { %v3007_v46 = vperm.slane %v2999_v2, %v11953_v35  ;;  %v3077_v12 = vsel %vm1407_vm1, 0.0, %v3076_v41  ;;  %v3079_v34 = vsel %vm1407_vm1, 0.0, %v3078_v32  ;;  %v3851_v44 = vrot.slane %v3075_v17, 4 }
 0x2b5   : > { %v10065_v20 = vunpack.i.h.bf16 %v12114_v9  ;;  %v3850_v59 = vperm.slane %v3846_v25, %v11708_v62  ;;  %v3862_v0 = vrot.slane %v3079_v34, 4  ;;  %v3003_v23 = vperm.slane %v2997_v7, %v11953_v35 }
 0x2b6   : > { %v3008_v4 = vrot.slane %v2995_v50, 4  ;;  %v3852_v18 = vsel %vm1407_vm1, %v3851_v44, %v3073_v53  ;;  %v3857_v60 = vsel %vm1407_vm1, %v3078_v32, %v3067_v10  ;;  %v15429_v61 = vrot.slane %v11751_v38, 4 }
 0x2b7   : > { %v3022_v24 = vrot.slane %v3007_v46, 4  ;;  %v3856_v49 = vperm.slane %v3852_v18, %v11708_v62  ;;  %v3863_v55 = vsel %vm1407_vm1, %v3862_v0, %v3077_v12  ;;  %v3020_v1 = vrot.slane %v3003_v23, 4 }
 0x2b8   : > { %v3011_v51 = vsel %vm1407_vm1, %v2995_v50, %v15429_v61  ;;  %v3009_v54 = vsel %vm1407_vm1, %v3008_v4, %v11751_v38  ;;  %v3867_v3 = vperm.slane %v3863_v55, %v11708_v62  ;;  %v3861_v2 = vperm.slane %v3857_v60, %v11708_v62 }
 0x2b9   : > { %v3019_v52 = vperm.slane %v3011_v51, %v11953_v35  ;;  %v3015_v58 = vperm.slane %v3009_v54, %v11953_v35  ;;  %v3023_v10 = vsel %vm1407_vm1, 0.0, %v3022_v24  ;;  %v3868_v53 = vrot.slane %v3856_v49, 4 }
 0x2ba   : > { %v3813_v32 = vrot.slane %v3023_v10, 4  ;;  %v3874_v50 = vrot.slane %v3867_v3, 4  ;;  %v3021_v17 = vsel %vm1407_vm1, 0.0, %v3020_v1  ;;  %v3808_v38 = vsel %vm1407_vm1, %v3022_v24, %v3003_v23 }
 0x2bb   : > { %v3026_v41 = vrot.slane %v3019_v52, 4  ;;  %v3024_v25 = vrot.slane %v3015_v58, 4  ;;  %v3869_v7 = vsel %vm1407_vm1, %v3868_v53, %v3850_v59  ;;  %v3812_v23 = vperm.slane %v3808_v38, %v11708_v62 }
 0x2bc   : > { %v3814_v12 = vsel %vm1407_vm1, %v3813_v32, %v3021_v17  ;;  %v3873_v44 = vperm.slane %v3869_v7, %v11953_v35  ;;  %v3875_v0 = vsel %vm1407_vm1, %v3874_v50, %v3861_v2  ;;  %v1989_v59 = vrot.slane %v10065_v20, 4 }
 0x2bd   : > { %v3027_v46 = vsel %vm1407_vm1, 0.0, %v3026_v41  ;;  %v3819_v34 = vsel %vm1407_vm1, %v3026_v41, %v3015_v58  ;;  %v3025_v4 = vsel %vm1407_vm1, 0.0, %v3024_v25  ;;  %v3818_v18 = vperm.slane %v3814_v12, %v11708_v62 }
 0x2be   : > { %v3879_v60 = vperm.slane %v3875_v0, %v11953_v35  ;;  %v3824_v61 = vrot.slane %v3027_v46, 4  ;;  %v3882_v51 = vrot.slane %v3873_v44, 4  ;;  %v3823_v24 = vperm.slane %v3819_v34, %v11708_v62  ;;  %v12170_v46 = vpop.permute.xlu0 %10042 }
 0x2bf   : > { %v3830_v49 = vrot.slane %v3818_v18, 4  ;;  %v1994_v55 = vperm.slane %v10065_v20, %v11708_v62  ;;  %v1990_v3 = vsel %vm1407_vm1, 0.0, %v1989_v59  ;;  %v10064_v58 = vunpack.i.l.bf16 %v12114_v9 }
 0x2c0   : > { %v3880_v54 = vrot.slane %v3879_v60, 4  ;;  %v3825_v52 = vsel %vm1407_vm1, %v3824_v61, %v3025_v4  ;;  %v3883_v1 = vsel %vm1407_vm1, %v3879_v60, %v3882_v51  ;;  %v1998_v53 = vperm.slane %v1990_v3, %v11708_v62 }
 0x2c1   : > { %v3829_v10 = vperm.slane %v3825_v52, %v11708_v62  ;;  %v3831_v2 = vsel %vm1407_vm1, %v3830_v49, %v3812_v23  ;;  %v4433_v32 = vpack.c.bf16 %v3883_v1, %v3883_v1  ;;  %v1999_v50 = vrot.slane %v1994_v55, 4 }
 0x2c2   : > { %v3881_v41 = vsel %vm1407_vm1, %v3880_v54, %v3873_v44  ;;  %v3835_v20 = vperm.slane %v3831_v2, %v11953_v35  ;;  %v15430_v38 = vrot.slane %v11846_v48, 4  ;;  %v2011_v7 = vrot.slane %v1998_v53, 4 }
 0x2c3   : > { %v4417_v17 = vpack.c.bf16 %v3881_v41, %v3881_v41  ;;  %v3836_v25 = vrot.slane %v3829_v10, 4  ;;  %4465 = vst.msk [vmem:[#allocation3 + $0x44] sm:$0xf] %vm2879_vm2, %v4433_v32  ;;  %v2000_v34 = vsel %vm1407_vm1, %v1999_v50, %v11846_v48  ;;  %v15431_v0 = vrot.slane %v11852_v28, 4 }
 0x2c4   : > { %v2002_v9 = vsel %vm1407_vm1, %v1994_v55, %v15430_v38  ;;  %v3844_v12 = vrot.slane %v3835_v20, 4  ;;  %v2006_v60 = vperm.slane %v2000_v34, %v11953_v35  ;;  %v2012_v23 = vsel %vm1407_vm1, %v2011_v7, %v11852_v28 }
 0x2c5   : > { %v2010_v44 = vperm.slane %v2002_v9, %v11953_v35  ;;  %v2014_v4 = vsel %vm1407_vm1, %v1998_v53, %v15431_v0  ;;  %4449 = vst.msk [vmem:[#allocation3 + $0x4] sm:$0xf] %vm2879_vm2, %v4417_v17  ;;  %v3837_v18 = vsel %vm1407_vm1, %v3836_v25, %v3823_v24  ;;  %v2018_v48 = vperm.slane %v2012_v23, %v11953_v35 }
 0x2c6   : > { %v2022_v61 = vperm.slane %v2014_v4, %v11953_v35  ;;  %v3841_v59 = vperm.slane %v3837_v18, %v11953_v35  ;;  %v10045_v49 = vunpack.i.h.bf16 %v12170_v46  ;;  %v2023_v55 = vrot.slane %v2006_v60, 4 }
 0x2c7   : > { %v2025_v51 = vrot.slane %v2010_v44, 4  ;;  %v1937_v52 = vrot.slane %v10064_v58, 4  ;;  %v1942_v3 = vperm.slane %v10064_v58, %v11708_v62  ;;  %v2027_v28 = vrot.slane %v2018_v48, 4 }
 0x2c8   : > { %v2029_v54 = vrot.slane %v2022_v61, 4  ;;  %v3842_v24 = vrot.slane %v3841_v59, 4  ;;  %v3845_v1 = vsel %vm1407_vm1, %v3841_v59, %v3844_v12  ;;  %v2024_v53 = vsel %vm1407_vm1, 0.0, %v2023_v55 }
 0x2c9   : > { %v2026_v10 = vsel %vm1407_vm1, 0.0, %v2025_v51  ;;  %v4432_v2 = vpack.c.bf16 %v3845_v1, %v3845_v1  ;;  %v2657_v32 = vsel %vm1407_vm1, %v2025_v51, %v2006_v60  ;;  %v2028_v17 = vsel %vm1407_vm1, 0.0, %v2027_v28 }
 0x2ca   : > { %v2030_v41 = vsel %vm1407_vm1, 0.0, %v2029_v54  ;;  %v3843_v50 = vsel %vm1407_vm1, %v3842_v24, %v3835_v20  ;;  %v2662_v25 = vrot.slane %v2026_v10, 4  ;;  %v1885_v38 = vrot.slane %v10045_v49, 4 }
 0x2cb   : > { %v4416_v58 = vpack.c.bf16 %v3843_v50, %v3843_v50  ;;  %4464 = vst.msk [vmem:[#allocation3 + $0x40] sm:$0xf] %vm2879_vm2, %v4432_v2  ;;  %v2668_v9 = vsel %vm1407_vm1, %v2029_v54, %v2018_v48  ;;  %v2673_v7 = vrot.slane %v2030_v41, 4  ;;  %v1938_v12 = vsel %vm1407_vm1, 0.0, %v1937_v52 }
 0x2cc   : > { %v2661_v34 = vperm.slane %v2657_v32, %v11708_v62  ;;  %v2663_v44 = vsel %vm1407_vm1, %v2662_v25, %v2024_v53  ;;  %v1946_v0 = vperm.slane %v1938_v12, %v11708_v62  ;;  %v1947_v4 = vrot.slane %v1942_v3, 4 }
 0x2cd   : > { %4448 = vst.msk [vmem:[#allocation3] sm:$0xf] %vm2879_vm2, %v4416_v58  ;;  %v2667_v20 = vperm.slane %v2663_v44, %v11708_v62  ;;  %v2672_v18 = vperm.slane %v2668_v9, %v11708_v62  ;;  %v2674_v60 = vsel %vm1407_vm1, %v2673_v7, %v2028_v17  ;;  %v15432_v23 = vrot.slane %v11805_v6, 4 }
 0x2ce   : > { %v2678_v59 = vperm.slane %v2674_v60, %v11708_v62  ;;  %v1948_v48 = vsel %vm1407_vm1, %v1947_v4, %v11805_v6  ;;  %v1959_v55 = vrot.slane %v1946_v0, 4  ;;  %v15433_v24 = vrot.slane %v11817_v5, 4 }
 0x2cf   : > { %v1950_v61 = vsel %vm1407_vm1, %v1942_v3, %v15432_v23  ;;  %v2679_v54 = vrot.slane %v2667_v20, 4  ;;  %v1954_v52 = vperm.slane %v1948_v48, %v11953_v35  ;;  %v1886_v10 = vsel %vm1407_vm1, 0.0, %v1885_v38 }
 0x2d0   : > { %v1958_v51 = vperm.slane %v1950_v61, %v11953_v35  ;;  %v1962_v1 = vsel %vm1407_vm1, %v1946_v0, %v15433_v24  ;;  %v2685_v28 = vrot.slane %v2678_v59, 4  ;;  %v1960_v3 = vsel %vm1407_vm1, %v1959_v55, %v11817_v5 }
 0x2d1   : > { %v1970_v2 = vperm.slane %v1962_v1, %v11953_v35  ;;  %v2680_v6 = vsel %vm1407_vm1, %v2679_v54, %v2661_v34  ;;  %v1966_v41 = vperm.slane %v1960_v3, %v11953_v35  ;;  %v1971_v32 = vrot.slane %v1954_v52, 4 }
 0x2d2   : > { %v1973_v53 = vrot.slane %v1958_v51, 4  ;;  %v1890_v50 = vperm.slane %v10045_v49, %v11708_v62  ;;  %v2684_v17 = vperm.slane %v2680_v6, %v11953_v35  ;;  %v2686_v25 = vsel %vm1407_vm1, %v2685_v28, %v2672_v18 }
 0x2d3   : > { %v1977_v58 = vrot.slane %v1970_v2, 4  ;;  %v2690_v9 = vperm.slane %v2686_v25, %v11953_v35  ;;  %v1972_v5 = vsel %vm1407_vm1, 0.0, %v1971_v32  ;;  %v1975_v7 = vrot.slane %v1966_v41, 4 }
 0x2d4   : > { %v1974_v38 = vsel %vm1407_vm1, 0.0, %v1973_v53  ;;  %v2619_v12 = vsel %vm1407_vm1, %v1973_v53, %v1954_v52  ;;  %v2693_v34 = vrot.slane %v2684_v17, 4  ;;  %v1894_v49 = vperm.slane %v1886_v10, %v11708_v62 }
 0x2d5   : > { %v1978_v44 = vsel %vm1407_vm1, 0.0, %v1977_v58  ;;  %v2624_v0 = vrot.slane %v1974_v38, 4  ;;  %v2691_v4 = vrot.slane %v2690_v9, 4  ;;  %v1976_v20 = vsel %vm1407_vm1, 0.0, %v1975_v7 }
 0x2d6   : > { %v2623_v18 = vperm.slane %v2619_v12, %v11708_v62  ;;  %v2635_v60 = vrot.slane %v1978_v44, 4  ;;  %v2694_v23 = vsel %vm1407_vm1, %v2690_v9, %v2693_v34  ;;  %v2630_v59 = vsel %vm1407_vm1, %v1977_v58, %v1966_v41 }
 0x2d7   : > { %v2625_v61 = vsel %vm1407_vm1, %v2624_v0, %v1972_v5  ;;  %v1895_v48 = vrot.slane %v1890_v50, 4  ;;  %v2692_v51 = vsel %vm1407_vm1, %v2691_v4, %v2684_v17  ;;  %v2874_v55 = vpack.c.bf16 %v2694_v23, %v2694_v23 }
 0x2d8   : > { %v2629_v54 = vperm.slane %v2625_v61, %v11708_v62  ;;  %v2636_v52 = vsel %vm1407_vm1, %v2635_v60, %v1976_v20  ;;  %v2858_v24 = vpack.c.bf16 %v2692_v51, %v2692_v51  ;;  %v1907_v10 = vrot.slane %v1894_v49, 4 }
 0x2d9   : > { %v2640_v1 = vperm.slane %v2636_v52, %v11708_v62  ;;  %v10044_v28 = vunpack.i.l.bf16 %v12170_v46  ;;  %2907 = vst.msk [vmem:[#allocation2 + $0x6c] sm:$0xf] %vm2879_vm2, %v2874_v55  ;;  %v2634_v3 = vperm.slane %v2630_v59, %v11708_v62  ;;  %v1896_v53 = vsel %vm1407_vm1, %v1895_v48, %v11758_v36 }
 0x2da   : > { %v2641_v2 = vrot.slane %v2629_v54, 4  ;;  %v15434_v6 = vrot.slane %v11758_v36, 4  ;;  %2891 = vst.msk [vmem:[#allocation2 + $0x2c] sm:$0xf] %vm2879_vm2, %v2858_v24  ;;  %v15435_v46 = vrot.slane %v11763_v42, 4  ;;  %v1902_v9 = vperm.slane %v1896_v53, %v11953_v35 }
 0x2db   : > { %v2647_v32 = vrot.slane %v2640_v1, 4  ;;  %v1833_v17 = vrot.slane %v10044_v28, 4  ;;  %v1838_v25 = vperm.slane %v10044_v28, %v11708_v62  ;;  %v1908_v36 = vsel %vm1407_vm1, %v1907_v10, %v11763_v42 }
 0x2dc   : > { %v1898_v41 = vsel %vm1407_vm1, %v1890_v50, %v15434_v6  ;;  %v1910_v38 = vsel %vm1407_vm1, %v1894_v49, %v15435_v46  ;;  %v2642_v58 = vsel %vm1407_vm1, %v2641_v2, %v2623_v18  ;;  %v15436_v49 = vrot.slane %v11720_v56, 4 }
 0x2dd   : > { %v1906_v5 = vperm.slane %v1898_v41, %v11953_v35  ;;  %v2646_v50 = vperm.slane %v2642_v58, %v11953_v35  ;;  %v2648_v7 = vsel %vm1407_vm1, %v2647_v32, %v2634_v3  ;;  %v1834_v12 = vsel %vm1407_vm1, 0.0, %v1833_v17 }
 0x2de   : > { %v1843_v34 = vrot.slane %v1838_v25, 4  ;;  %v2652_v44 = vperm.slane %v2648_v7, %v11953_v35  ;;  %v1842_v0 = vperm.slane %v1834_v12, %v11708_v62  ;;  %v1846_v4 = vsel %vm1407_vm1, %v1838_v25, %v15436_v49 }
 0x2df   : > { %v1918_v20 = vperm.slane %v1910_v38, %v11953_v35  ;;  %v2655_v18 = vrot.slane %v2646_v50, 4  ;;  %v1854_v60 = vperm.slane %v1846_v4, %v11953_v35  ;;  %v1914_v23 = vperm.slane %v1908_v36, %v11953_v35 }
 0x2e0   : > { %v1844_v42 = vsel %vm1407_vm1, %v1843_v34, %v11720_v56  ;;  %v2653_v61 = vrot.slane %v2652_v44, 4  ;;  %v1855_v48 = vrot.slane %v1842_v0, 4  ;;  %v15437_v51 = vrot.slane %v11727_v29, 4 }
 0x2e1   : > { %v1850_v59 = vperm.slane %v1844_v42, %v11953_v35  ;;  %v2656_v54 = vsel %vm1407_vm1, %v2652_v44, %v2655_v18  ;;  %v1869_v24 = vrot.slane %v1854_v60, 4  ;;  %v1919_v1 = vrot.slane %v1902_v9, 4  ;;  %v10048_v60 = vpop.permute.xlu1 %10047 }
 0x2e2   : > { %v1858_v55 = vsel %vm1407_vm1, %v1842_v0, %v15437_v51  ;;  %v2654_v56 = vsel %vm1407_vm1, %v2653_v61, %v2646_v50  ;;  %v2873_v10 = vpack.c.bf16 %v2656_v54, %v2656_v54  ;;  %v1856_v28 = vsel %vm1407_vm1, %v1855_v48, %v11727_v29 }
 0x2e3   : > { %v1866_v52 = vperm.slane %v1858_v55, %v11953_v35  ;;  %v1867_v3 = vrot.slane %v1850_v59, 4  ;;  %v2857_v2 = vpack.c.bf16 %v2654_v56, %v2654_v56  ;;  %v1862_v53 = vperm.slane %v1856_v28, %v11953_v35 }
 0x2e4   : > { %v1870_v6 = vsel %vm1407_vm1, 0.0, %v1869_v24  ;;  %2906 = vst.msk [vmem:[#allocation2 + $0x68] sm:$0xf] %vm2879_vm2, %v2873_v10  ;;  %v1921_v17 = vrot.slane %v1906_v5, 4  ;;  %v1923_v25 = vrot.slane %v1914_v23, 4  ;;  %v1925_v46 = vrot.slane %v1918_v20, 4 }
 0x2e5   : > { %v1873_v41 = vrot.slane %v1866_v52, 4  ;;  %v1868_v32 = vsel %vm1407_vm1, 0.0, %v1867_v3  ;;  %2890 = vst.msk [vmem:[#allocation2 + $0x28] sm:$0xf] %vm2879_vm2, %v2857_v2  ;;  %v1871_v38 = vrot.slane %v1862_v53, 4  ;;  %v2543_v29 = vsel %vm1407_vm1, %v1869_v24, %v1850_v59 }
 0x2e6   : > { %v2548_v36 = vrot.slane %v1870_v6, 4  ;;  %v1920_v50 = vsel %vm1407_vm1, 0.0, %v1919_v1  ;;  %v1922_v7 = vsel %vm1407_vm1, 0.0, %v1921_v17  ;;  %v1924_v12 = vsel %vm1407_vm1, 0.0, %v1923_v25 }
 0x2e7   : > { %v1874_v58 = vsel %vm1407_vm1, 0.0, %v1873_v41  ;;  %v1926_v34 = vsel %vm1407_vm1, 0.0, %v1925_v46  ;;  %v1872_v5 = vsel %vm1407_vm1, 0.0, %v1871_v38  ;;  %v2554_v0 = vsel %vm1407_vm1, %v1873_v41, %v1862_v53 }
 0x2e8   : > { %v2549_v44 = vsel %vm1407_vm1, %v2548_v36, %v1868_v32  ;;  %v2559_v49 = vrot.slane %v1874_v58, 4  ;;  %v2547_v4 = vperm.slane %v2543_v29, %v11708_v62  ;;  %v2581_v18 = vsel %vm1407_vm1, %v1921_v17, %v1902_v9 }
 0x2e9   : > { %v2553_v20 = vperm.slane %v2549_v44, %v11708_v62  ;;  %v2586_v42 = vrot.slane %v1922_v7, 4  ;;  %v2558_v61 = vperm.slane %v2554_v0, %v11708_v62  ;;  %v2592_v48 = vsel %vm1407_vm1, %v1925_v46, %v1914_v23 }
 0x2ea   : > { %v2560_v59 = vsel %vm1407_vm1, %v2559_v49, %v1872_v5  ;;  %v2597_v51 = vrot.slane %v1926_v34, 4  ;;  %v2585_v52 = vperm.slane %v2581_v18, %v11708_v62  ;;  %v10050_v56 = vunpack.i.h.bf16 %v10048_v60 }
 0x2eb   : > { %v2564_v55 = vperm.slane %v2560_v59, %v11708_v62  ;;  %v2565_v54 = vrot.slane %v2553_v20, 4  ;;  %v2587_v24 = vsel %vm1407_vm1, %v2586_v42, %v1920_v50  ;;  %v10049_v10 = vunpack.i.l.bf16 %v10048_v60 }
 0x2ec   : > { %v2591_v1 = vperm.slane %v2587_v24, %v11708_v62  ;;  %v2598_v9 = vsel %vm1407_vm1, %v2597_v51, %v1924_v12  ;;  %v2596_v2 = vperm.slane %v2592_v48, %v11708_v62  ;;  %v3454_v41 = vrot.slane %v10050_v56, 4 }
 0x2ed   : > { %v2566_v28 = vsel %vm1407_vm1, %v2565_v54, %v2547_v4  ;;  %v2571_v3 = vrot.slane %v2564_v55, 4  ;;  %v2602_v23 = vperm.slane %v2598_v9, %v11708_v62  ;;  %v3459_v32 = vperm.slane %v10050_v56, %v11708_v62 }
 0x2ee   : > { %v2570_v53 = vperm.slane %v2566_v28, %v11953_v35  ;;  %v2603_v6 = vrot.slane %v2591_v1, 4  ;;  %v3402_v46 = vrot.slane %v10049_v10, 4  ;;  %v3407_v38 = vperm.slane %v10049_v10, %v11708_v62 }
 0x2ef   : > { %v2572_v17 = vsel %vm1407_vm1, %v2571_v3, %v2558_v61  ;;  %v2609_v25 = vrot.slane %v2602_v23, 4  ;;  %v3455_v50 = vsel %vm1407_vm1, 0.0, %v3454_v41  ;;  %v3464_v5 = vrot.slane %v3459_v32, 4  ;;  %v12338_v3 = vpop.f32.mrf.mxu0 }
 0x2f0   : > { %v2576_v58 = vperm.slane %v2572_v17, %v11953_v35  ;;  %v2579_v29 = vrot.slane %v2570_v53, 4  ;;  %v2604_v36 = vsel %vm1407_vm1, %v2603_v6, %v2585_v52  ;;  %v3463_v34 = vperm.slane %v3455_v50, %v11708_v62 }
 0x2f1   : > { %v2608_v7 = vperm.slane %v2604_v36, %v11953_v35  ;;  %v2610_v12 = vsel %vm1407_vm1, %v2609_v25, %v2596_v2  ;;  %v15438_v4 = vrot.slane %v11767_v45, 4  ;;  %v3465_v60 = vsel %vm1407_vm1, %v3464_v5, %v11767_v45 }
 0x2f2   : > { %v2577_v44 = vrot.slane %v2576_v58, 4  ;;  %v2580_v0 = vsel %vm1407_vm1, %v2576_v58, %v2579_v29  ;;  %v2614_v49 = vperm.slane %v2610_v12, %v11953_v35  ;;  %v3471_v51 = vperm.slane %v3465_v60, %v11953_v35 }
 0x2f3   : > { %v3467_v20 = vsel %vm1407_vm1, %v3459_v32, %v15438_v4  ;;  %v2617_v18 = vrot.slane %v2608_v7, 4  ;;  %v2871_v42 = vpack.c.bf16 %v2580_v0, %v2580_v0  ;;  %v3476_v55 = vrot.slane %v3463_v34, 4 }
 0x2f4   : > { %v3475_v61 = vperm.slane %v3467_v20, %v11953_v35  ;;  %v2578_v59 = vsel %vm1407_vm1, %v2577_v44, %v2570_v53  ;;  %v2615_v48 = vrot.slane %v2614_v49, 4  ;;  %v15439_v24 = vrot.slane %v11777_v19, 4 }
 0x2f5   : > { %v2618_v54 = vsel %vm1407_vm1, %v2614_v49, %v2617_v18  ;;  %v2855_v52 = vpack.c.bf16 %v2578_v59, %v2578_v59  ;;  %2904 = vst.msk [vmem:[#allocation2 + $0x60] sm:$0xf] %vm2879_vm2, %v2871_v42  ;;  %v3477_v10 = vsel %vm1407_vm1, %v3476_v55, %v11777_v19  ;;  %v3488_v53 = vrot.slane %v3471_v51, 4  ;;  %v12367_v55 = vpop.f32.mrf.mxu1 }
 0x2f6   : > { %v3479_v1 = vsel %vm1407_vm1, %v3463_v34, %v15439_v24  ;;  %v3490_v9 = vrot.slane %v3475_v61, 4  ;;  %v2616_v45 = vsel %vm1407_vm1, %v2615_v48, %v2608_v7  ;;  %v2872_v56 = vpack.c.bf16 %v2618_v54, %v2618_v54 }
 0x2f7   : > { %v3487_v28 = vperm.slane %v3479_v1, %v11953_v35  ;;  %v2856_v2 = vpack.c.bf16 %v2616_v45, %v2616_v45  ;;  %2888 = vst.msk [vmem:[#allocation2 + $0x20] sm:$0xf] %vm2879_vm2, %v2855_v52  ;;  %v3483_v23 = vperm.slane %v3477_v10, %v11953_v35  ;;  %v3403_v19 = vsel %vm1407_vm1, 0.0, %v3402_v46 }
 0x2f8   : > { %v3491_v6 = vsel %vm1407_vm1, 0.0, %v3490_v9  ;;  %2905 = vst.msk [vmem:[#allocation2 + $0x64] sm:$0xf] %vm2879_vm2, %v2872_v56  ;;  %v4150_v32 = vsel %vm1407_vm1, %v3490_v9, %v3471_v51  ;;  %v3489_v25 = vsel %vm1407_vm1, 0.0, %v3488_v53  ;;  %v3411_v29 = vperm.slane %v3403_v19, %v11708_v62 }
 0x2f9   : > { %v3494_v41 = vrot.slane %v3487_v28, 4  ;;  %v4155_v17 = vrot.slane %v3491_v6, 4  ;;  %2889 = vst.msk [vmem:[#allocation2 + $0x24] sm:$0xf] %vm2879_vm2, %v2856_v2  ;;  %v3492_v58 = vrot.slane %v3483_v23, 4  ;;  %v1719_v36 = vrot.slane %v12338_v3, 4 }
 0x2fa   : > { %v4154_v7 = vperm.slane %v4150_v32, %v11708_v62  ;;  %v3412_v34 = vrot.slane %v3407_v38, 4  ;;  %v15440_v4 = vrot.slane %v11724_v40, 4  ;;  %v3424_v18 = vrot.slane %v3411_v29, 4 }
 0x2fb   : > { %v3495_v50 = vsel %vm1407_vm1, 0.0, %v3494_v41  ;;  %v4156_v12 = vsel %vm1407_vm1, %v4155_v17, %v3489_v25  ;;  %v3493_v5 = vsel %vm1407_vm1, 0.0, %v3492_v58  ;;  %v4161_v44 = vsel %vm1407_vm1, %v3494_v41, %v3483_v23 }
 0x2fc   : > { %v4160_v46 = vperm.slane %v4156_v12, %v11708_v62  ;;  %v4166_v0 = vrot.slane %v3495_v50, 4  ;;  %v3413_v49 = vsel %vm1407_vm1, %v3412_v34, %v11724_v40  ;;  %v3415_v20 = vsel %vm1407_vm1, %v3407_v38, %v15440_v4 }
 0x2fd   : > { %v15441_v42 = vrot.slane %v11734_v47, 4  ;;  %v3419_v48 = vperm.slane %v3413_v49, %v11953_v35  ;;  %v3423_v51 = vperm.slane %v3415_v20, %v11953_v35  ;;  %v3790_v54 = vrot.slane %v12018_v8, 4  ;;  %v1206_v49 = vpop.f32.mrf.mxu0 }
 0x2fe   : > { %v4167_v61 = vsel %vm1407_vm1, %v4166_v0, %v3493_v5  ;;  %v4172_v59 = vrot.slane %v4160_v46, 4  ;;  %v3425_v38 = vsel %vm1407_vm1, %v3424_v18, %v11734_v47  ;;  %v4165_v56 = vperm.slane %v4161_v44, %v11708_v62 }
 0x2ff   : > { %v3427_v60 = vsel %vm1407_vm1, %v3411_v29, %v15441_v42  ;;  %v4171_v40 = vperm.slane %v4167_v61, %v11708_v62  ;;  %v3431_v1 = vperm.slane %v3425_v38, %v11953_v35  ;;  %v3436_v9 = vrot.slane %v3419_v48, 4 }
 0x300   : > { %v3435_v52 = vperm.slane %v3427_v60, %v11953_v35  ;;  %v4173_v24 = vsel %vm1407_vm1, %v4172_v59, %v4154_v7  ;;  %v3438_v45 = vrot.slane %v3423_v51, 4  ;;  %v1720_v47 = vsel %vm1407_vm1, 0.0, %v1719_v36  ;;  %v1319_v51 = vpop.f32.mrf.mxu1 }
 0x301   : > { %v4177_v10 = vperm.slane %v4173_v24, %v11953_v35  ;;  %v4178_v28 = vrot.slane %v4171_v40, 4  ;;  %v3440_v53 = vrot.slane %v3431_v1, 4  ;;  %v3437_v17 = vsel %vm1407_vm1, 0.0, %v3436_v9 }
 0x302   : > { %v3442_v2 = vrot.slane %v3435_v52, 4  ;;  %v3439_v23 = vsel %vm1407_vm1, 0.0, %v3438_v45  ;;  %v4112_v6 = vsel %vm1407_vm1, %v3438_v45, %v3419_v48  ;;  %v12391_v36 = vperm.slane %v12338_v3, %v11708_v62 }
 0x303   : > { %v4179_v41 = vsel %vm1407_vm1, %v4178_v28, %v4165_v56  ;;  %v4186_v32 = vrot.slane %v4177_v10, 4  ;;  %v3441_v58 = vsel %vm1407_vm1, 0.0, %v3440_v53  ;;  %v4117_v29 = vrot.slane %v3439_v23, 4  ;;  %v10053_v53 = vpop.permute.xlu0 %10052 }
 0x304   : > { %v3443_v19 = vsel %vm1407_vm1, 0.0, %v3442_v2  ;;  %v4183_v25 = vperm.slane %v4179_v41, %v11953_v35  ;;  %v4123_v50 = vsel %vm1407_vm1, %v3442_v2, %v3431_v1  ;;  %v4116_v7 = vperm.slane %v4112_v6, %v11708_v62 }
 0x305   : > { %v4127_v12 = vperm.slane %v4123_v50, %v11708_v62  ;;  %v4128_v34 = vrot.slane %v3443_v19, 4  ;;  %v4118_v44 = vsel %vm1407_vm1, %v4117_v29, %v3437_v17  ;;  %v3288_v0 = vrot.slane %v12367_v55, 4 }
 0x306   : > { %v4184_v5 = vrot.slane %v4183_v25, 4  ;;  %v4187_v46 = vsel %vm1407_vm1, %v4183_v25, %v4186_v32  ;;  %v4122_v20 = vperm.slane %v4118_v44, %v11708_v62  ;;  %v12399_v42 = vperm.slane %v1720_v47, %v11708_v62 }
 0x307   : > { %v4441_v4 = vpack.c.bf16 %v4187_v46, %v4187_v46  ;;  %v4129_v18 = vsel %vm1407_vm1, %v4128_v34, %v3441_v58  ;;  %v3289_v59 = vsel %vm1407_vm1, 0.0, %v3288_v0  ;;  %v12406_v48 = vperm.slane %v12367_v55, %v11708_v62  ;;  %v12432_v58 = vpop.permute.xlu1 %10057 }
 0x308   : > { %v4185_v60 = vsel %vm1407_vm1, %v4184_v5, %v4177_v10  ;;  %v4133_v61 = vperm.slane %v4129_v18, %v11708_v62  ;;  %v4134_v38 = vrot.slane %v4122_v20, 4  ;;  %v12410_v52 = vperm.slane %v3289_v59, %v11708_v62 }
 0x309   : > { %v4425_v40 = vpack.c.bf16 %v4185_v60, %v4185_v60  ;;  %4473 = vst.msk [vmem:[#allocation3 + $0x64] sm:$0xf] %vm2879_vm2, %v4441_v4  ;;  %v10081_v24 = vpack.i.bf16 %v1206_v49, %v12338_v3  ;;  %v1741_v9 = vrot.slane %v12391_v36, 4  ;;  %v1771_v45 = vrot.slane %v1206_v49, 4 }
 0x30a   : > { %v4140_v1 = vrot.slane %v4133_v61, 4  ;;  %v12415_v56 = vperm.slane %v1206_v49, %v11708_v62  ;;  %v4135_v10 = vsel %vm1407_vm1, %v4134_v38, %v4116_v7  ;;  %v1753_v28 = vrot.slane %v12399_v42, 4 }
 0x30b   : > { %4457 = vst.msk [vmem:[#allocation3 + $0x24] sm:$0xf] %vm2879_vm2, %v4425_v40  ;;  %v3310_v2 = vrot.slane %v12406_v48, 4  ;;  %v3340_v23 = vrot.slane %v1319_v51, 4  ;;  %10082 = vrot.lane.b32.xlu2 %v10081_v24, %s10812_s29  ;;  %v4139_v3 = vperm.slane %v4135_v10, %v11953_v35  ;;  %v3322_v47 = vrot.slane %v12410_v52, 4 }
 0x30c   : > { %v4141_v6 = vsel %vm1407_vm1, %v4140_v1, %v4127_v12  ;;  %v1772_v41 = vsel %vm1407_vm1, 0.0, %v1771_v45  ;;  %v10086_v19 = vpack.i.bf16 %v1319_v51, %v12367_v55  ;;  %v1793_v50 = vrot.slane %v12415_v56, 4 }
 0x30d   : > { %v4145_v32 = vperm.slane %v4141_v6, %v11953_v35  ;;  %v12428_v17 = vperm.slane %v1772_v41, %v11708_v62  ;;  %v3341_v25 = vsel %vm1407_vm1, 0.0, %v3340_v23  ;;  %v4148_v29 = vrot.slane %v4139_v3, 4 }
 0x30e   : > { %v10055_v7 = vunpack.i.h.bf16 %v10053_v53  ;;  %v10054_v12 = vunpack.i.l.bf16 %v10053_v53  ;;  %v12437_v46 = vperm.slane %v1319_v51, %v11708_v62  ;;  %v12440_v44 = vperm.slane %v3341_v25, %v11708_v62 }
 0x30f   : > { %v4146_v34 = vrot.slane %v4145_v32, 4  ;;  %v1805_v5 = vrot.slane %v12428_v17, 4  ;;  %v4149_v55 = vsel %vm1407_vm1, %v4145_v32, %v4148_v29  ;;  %v10060_v4 = vunpack.i.h.bf16 %v12432_v58 }
 0x310   : > { %v1573_v0 = vrot.slane %v10055_v7, 4  ;;  %v1578_v49 = vperm.slane %v10055_v7, %v11708_v62  ;;  %v4440_v18 = vpack.c.bf16 %v4149_v55, %v4149_v55  ;;  %v1521_v60 = vrot.slane %v10054_v12, 4 }
 0x311   : > { %v4147_v20 = vsel %vm1407_vm1, %v4146_v34, %v4139_v3  ;;  %v1526_v61 = vperm.slane %v10054_v12, %v11708_v62  ;;  %v15442_v38 = vrot.slane %v11867_v37, 4  ;;  %v15443_v23 = vrot.slane %v11827_v63, 4 }
 0x312   : > { %v4424_v59 = vpack.c.bf16 %v4147_v20, %v4147_v20  ;;  %v1574_v51 = vsel %vm1407_vm1, 0.0, %v1573_v0  ;;  %v1583_v40 = vrot.slane %v1578_v49, 4  ;;  %4472 = vst.msk [vmem:[#allocation3 + $0x60] sm:$0xf] %vm2879_vm2, %v4440_v18  ;;  %v1522_v45 = vsel %vm1407_vm1, 0.0, %v1521_v60 }
 0x313   : > { %v1586_v24 = vsel %vm1407_vm1, %v1578_v49, %v15442_v38  ;;  %v1582_v1 = vperm.slane %v1574_v51, %v11708_v62  ;;  %v1531_v10 = vrot.slane %v1526_v61, 4  ;;  %v1534_v53 = vsel %vm1407_vm1, %v1526_v61, %v15443_v23  ;;  %10087 = vrot.lane.b32.xlu2 %v10086_v19, %s10812_s29 }
 0x314   : > { %4456 = vst.msk [vmem:[#allocation3 + $0x20] sm:$0xf] %vm2879_vm2, %v4424_v59  ;;  %v1530_v3 = vperm.slane %v1522_v45, %v11708_v62  ;;  %v1542_v6 = vperm.slane %v1534_v53, %v11953_v35  ;;  %v1584_v41 = vsel %vm1407_vm1, %v1583_v40, %v11867_v37  ;;  %v1594_v32 = vperm.slane %v1586_v24, %v11953_v35 }
 0x315   : > { %v1595_v25 = vrot.slane %v1582_v1, 4  ;;  %v1532_v29 = vsel %vm1407_vm1, %v1531_v10, %v11827_v63  ;;  %v1590_v7 = vperm.slane %v1584_v41, %v11953_v35  ;;  %v15444_v12 = vrot.slane %v11870_v39, 4 }
 0x316   : > { %v1538_v34 = vperm.slane %v1532_v29, %v11953_v35  ;;  %v1543_v55 = vrot.slane %v1530_v3, 4  ;;  %v15445_v0 = vrot.slane %v11839_v43, 4  ;;  %v1557_v37 = vrot.slane %v1542_v6, 4 }
 0x317   : > { %v1598_v19 = vsel %vm1407_vm1, %v1582_v1, %v15444_v12  ;;  %v1596_v18 = vsel %vm1407_vm1, %v1595_v25, %v11870_v39  ;;  %v1607_v60 = vrot.slane %v1590_v7, 4  ;;  %v1609_v45 = vrot.slane %v1594_v32, 4 }
 0x318   : > { %v1546_v49 = vsel %vm1407_vm1, %v1530_v3, %v15445_v0  ;;  %v1606_v63 = vperm.slane %v1598_v19, %v11953_v35  ;;  %v1544_v61 = vsel %vm1407_vm1, %v1543_v55, %v11839_v43  ;;  %v1555_v59 = vrot.slane %v1538_v34, 4 }
 0x319   : > { %v1554_v20 = vperm.slane %v1546_v49, %v11953_v35  ;;  %v1558_v51 = vsel %vm1407_vm1, 0.0, %v1557_v37  ;;  %v1602_v40 = vperm.slane %v1596_v18, %v11953_v35  ;;  %v1550_v38 = vperm.slane %v1544_v61, %v11953_v35 }
 0x31a   : > { %v1608_v1 = vsel %vm1407_vm1, 0.0, %v1607_v60  ;;  %v1556_v10 = vsel %vm1407_vm1, 0.0, %v1555_v59  ;;  %v1613_v23 = vrot.slane %v1606_v63, 4  ;;  %v2315_v53 = vsel %vm1407_vm1, %v1557_v37, %v1538_v34 }
 0x31b   : > { %v1561_v24 = vrot.slane %v1554_v20, 4  ;;  %v1611_v39 = vrot.slane %v1602_v40, 4  ;;  %v1559_v3 = vrot.slane %v1550_v38, 4  ;;  %v1610_v6 = vsel %vm1407_vm1, 0.0, %v1609_v45 }
 0x31c   : > { %v2319_v41 = vperm.slane %v2315_v53, %v11708_v62  ;;  %v15446_v25 = vpack.i.bf16 %v11676_v13, %v11668_v33  ;;  %v1614_v29 = vsel %vm1407_vm1, 0.0, %v1613_v23  ;;  %v2320_v12 = vrot.slane %v1558_v51, 4 }
 0x31d   : > { %v1562_v43 = vsel %vm1407_vm1, 0.0, %v1561_v24  ;;  %v1612_v32 = vsel %vm1407_vm1, 0.0, %v1611_v39  ;;  %v2326_v19 = vsel %vm1407_vm1, %v1561_v24, %v1550_v38  ;;  %v1560_v34 = vsel %vm1407_vm1, 0.0, %v1559_v3 }
 0x31e   : > { %10102 = vrot.lane.b32.xlu2 %v15446_v25, %s10812_s29  ;;  %v2330_v55 = vperm.slane %v2326_v19, %v11708_v62  ;;  %v2331_v0 = vrot.slane %v1562_v43, 4  ;;  %v2353_v49 = vsel %vm1407_vm1, %v1609_v45, %v1590_v7  ;;  %v2321_v37 = vsel %vm1407_vm1, %v2320_v12, %v1556_v10 }
 0x31f   : > { %v2357_v20 = vperm.slane %v2353_v49, %v11708_v62  ;;  %v2358_v33 = vrot.slane %v1610_v6, 4  ;;  %v2364_v13 = vsel %vm1407_vm1, %v1613_v23, %v1602_v40  ;;  %v2325_v18 = vperm.slane %v2321_v37, %v11708_v62 }
 0x320   : > { %v2332_v63 = vsel %vm1407_vm1, %v2331_v0, %v1560_v34  ;;  %v2368_v60 = vperm.slane %v2364_v13, %v11708_v62  ;;  %v2369_v61 = vrot.slane %v1614_v29, 4  ;;  %v3142_v7 = vrot.slane %v10060_v4, 4 }
 0x321   : > { %v2336_v59 = vperm.slane %v2332_v63, %v11708_v62  ;;  %v2359_v51 = vsel %vm1407_vm1, %v2358_v33, %v1608_v1  ;;  %v3147_v38 = vperm.slane %v10060_v4, %v11708_v62  ;;  %v2337_v24 = vrot.slane %v2325_v18, 4 }
 0x322   : > { %v2363_v40 = vperm.slane %v2359_v51, %v11708_v62  ;;  %v2370_v45 = vsel %vm1407_vm1, %v2369_v61, %v1612_v32  ;;  %v10059_v10 = vunpack.i.l.bf16 %v12432_v58  ;;  %v3143_v53 = vsel %vm1407_vm1, 0.0, %v3142_v7 }
 0x323   : > { %v2343_v39 = vrot.slane %v2336_v59, 4  ;;  %v2374_v23 = vperm.slane %v2370_v45, %v11708_v62  ;;  %v3152_v1 = vrot.slane %v3147_v38, 4  ;;  %v2338_v3 = vsel %vm1407_vm1, %v2337_v24, %v2319_v41 }
 0x324   : > { %v2375_v43 = vrot.slane %v2363_v40, 4  ;;  %v3151_v6 = vperm.slane %v3143_v53, %v11708_v62  ;;  %v15447_v4 = vrot.slane %v11874_v27, 4  ;;  %v2342_v29 = vperm.slane %v2338_v3, %v11953_v35 }
 0x325   : > { %v2344_v32 = vsel %vm1407_vm1, %v2343_v39, %v2330_v55  ;;  %v2381_v58 = vrot.slane %v2374_v23, 4  ;;  %v3153_v12 = vsel %vm1407_vm1, %v3152_v1, %v11874_v27  ;;  %v15448_v63 = vrot.slane %v11883_v22, 4 }
 0x326   : > { %v3155_v25 = vsel %vm1407_vm1, %v3147_v38, %v15447_v4  ;;  %v2348_v19 = vperm.slane %v2344_v32, %v11953_v35  ;;  %v2376_v34 = vsel %vm1407_vm1, %v2375_v43, %v2357_v20  ;;  %v3159_v41 = vperm.slane %v3153_v12, %v11953_v35  ;;  %v12549_v32 = vpop.permute.xlu0 %10072 }
 0x327   : > { %v3163_v0 = vperm.slane %v3155_v25, %v11953_v35  ;;  %v2351_v49 = vrot.slane %v2342_v29, 4  ;;  %v2380_v37 = vperm.slane %v2376_v34, %v11953_v35  ;;  %v2382_v33 = vsel %vm1407_vm1, %v2381_v58, %v2368_v60 }
 0x328   : > { %v3164_v13 = vrot.slane %v3151_v6, 4  ;;  %v2349_v18 = vrot.slane %v2348_v19, 4  ;;  %v2386_v55 = vperm.slane %v2382_v33, %v11953_v35  ;;  %v3167_v27 = vsel %vm1407_vm1, %v3151_v6, %v15448_v63 }
 0x329   : > { %v3176_v61 = vrot.slane %v3159_v41, 4  ;;  %v2352_v20 = vsel %vm1407_vm1, %v2348_v19, %v2351_v49  ;;  %v2389_v59 = vrot.slane %v2380_v37, 4  ;;  %v3175_v7 = vperm.slane %v3167_v27, %v11953_v35 }
 0x32a   : > { %v3165_v51 = vsel %vm1407_vm1, %v3164_v13, %v11883_v22  ;;  %v2350_v38 = vsel %vm1407_vm1, %v2349_v18, %v2342_v29  ;;  %v2387_v60 = vrot.slane %v2386_v55, 4  ;;  %v2865_v24 = vpack.c.bf16 %v2352_v20, %v2352_v20 }
 0x32b   : > { %v3171_v40 = vperm.slane %v3165_v51, %v11953_v35  ;;  %v2390_v45 = vsel %vm1407_vm1, %v2386_v55, %v2389_v59  ;;  %v2849_v39 = vpack.c.bf16 %v2350_v38, %v2350_v38  ;;  %v3177_v23 = vsel %vm1407_vm1, 0.0, %v3176_v61 }
 0x32c   : > { %v3178_v53 = vrot.slane %v3163_v0, 4  ;;  %v2388_v1 = vsel %vm1407_vm1, %v2387_v60, %v2380_v37  ;;  %v2866_v3 = vpack.c.bf16 %v2390_v45, %v2390_v45  ;;  %2898 = vst.msk [vmem:[#allocation2 + $0x48] sm:$0xf] %vm2879_vm2, %v2865_v24  ;;  %v3182_v43 = vrot.slane %v3175_v7, 4 }
 0x32d   : > { %v3180_v22 = vrot.slane %v3171_v40, 4  ;;  %v2850_v6 = vpack.c.bf16 %v2388_v1, %v2388_v1  ;;  %2882 = vst.msk [vmem:[#allocation2 + $0x8] sm:$0xf] %vm2879_vm2, %v2849_v39  ;;  %v3090_v29 = vrot.slane %v10059_v10, 4  ;;  %v10075_v55 = vunpack.i.h.bf16 %v12549_v32 }
 0x32e   : > { %v3179_v4 = vsel %vm1407_vm1, 0.0, %v3178_v53  ;;  %v3922_v25 = vsel %vm1407_vm1, %v3178_v53, %v3159_v41  ;;  %2899 = vst.msk [vmem:[#allocation2 + $0x4c] sm:$0xf] %vm2879_vm2, %v2866_v3  ;;  %v3183_v12 = vsel %vm1407_vm1, 0.0, %v3182_v43  ;;  %v3933_v0 = vsel %vm1407_vm1, %v3182_v43, %v3171_v40 }
 0x32f   : > { %v3181_v58 = vsel %vm1407_vm1, 0.0, %v3180_v22  ;;  %v3926_v19 = vperm.slane %v3922_v25, %v11708_v62  ;;  %v3927_v34 = vrot.slane %v3179_v4, 4  ;;  %2883 = vst.msk [vmem:[#allocation2 + $0xc] sm:$0xf] %vm2879_vm2, %v2850_v6  ;;  %v3938_v49 = vrot.slane %v3183_v12, 4 }
 0x330   : > { %v3091_v37 = vsel %vm1407_vm1, 0.0, %v3090_v29  ;;  %v3095_v41 = vperm.slane %v10059_v10, %v11708_v62  ;;  %v3937_v13 = vperm.slane %v3933_v0, %v11708_v62  ;;  %v15449_v20 = vrot.slane %v11835_v57, 4 }
 0x331   : > { %v3928_v33 = vsel %vm1407_vm1, %v3927_v34, %v3177_v23  ;;  %v3099_v18 = vperm.slane %v3091_v37, %v11708_v62  ;;  %v3939_v27 = vsel %vm1407_vm1, %v3938_v49, %v3181_v58  ;;  %v15450_v38 = vrot.slane %v11842_v26, 4 }
 0x332   : > { %v3932_v63 = vperm.slane %v3928_v33, %v11708_v62  ;;  %v3100_v61 = vrot.slane %v3095_v41, 4  ;;  %v3103_v59 = vsel %vm1407_vm1, %v3095_v41, %v15449_v20  ;;  %v3943_v51 = vperm.slane %v3939_v27, %v11708_v62 }
 0x333   : > { %v3111_v10 = vperm.slane %v3103_v59, %v11953_v35  ;;  %v3112_v7 = vrot.slane %v3099_v18, 4  ;;  %v3115_v60 = vsel %vm1407_vm1, %v3099_v18, %v15450_v38  ;;  %v3246_v39 = vrot.slane %v10075_v55, 4 }
 0x334   : > { %v3944_v24 = vrot.slane %v3932_v63, 4  ;;  %v3101_v40 = vsel %vm1407_vm1, %v3100_v61, %v11835_v57  ;;  %v3123_v45 = vperm.slane %v3115_v60, %v11953_v35  ;;  %v3950_v23 = vrot.slane %v3943_v51, 4  ;;  %v12596_v51 = vpop.permute.xlu1 %10067 }
 0x335   : > { %v3107_v53 = vperm.slane %v3101_v40, %v11953_v35  ;;  %v3113_v1 = vsel %vm1407_vm1, %v3112_v7, %v11842_v26  ;;  %v3126_v3 = vrot.slane %v3111_v10, 4  ;;  %v3247_v4 = vsel %vm1407_vm1, 0.0, %v3246_v39 }
 0x336   : > { %v3945_v22 = vsel %vm1407_vm1, %v3944_v24, %v3926_v19  ;;  %v3119_v43 = vperm.slane %v3113_v1, %v11953_v35  ;;  %v3130_v6 = vrot.slane %v3123_v45, 4  ;;  %v3951_v57 = vsel %vm1407_vm1, %v3950_v23, %v3937_v13 }
 0x337   : > { %v3949_v25 = vperm.slane %v3945_v22, %v11953_v35  ;;  %v3124_v29 = vrot.slane %v3107_v53, 4  ;;  %v3127_v58 = vsel %vm1407_vm1, 0.0, %v3126_v3  ;;  %v3955_v12 = vperm.slane %v3951_v57, %v11953_v35 }
 0x338   : > { %v3128_v34 = vrot.slane %v3119_v43, 4  ;;  %v3131_v26 = vsel %vm1407_vm1, 0.0, %v3130_v6  ;;  %v3884_v0 = vsel %vm1407_vm1, %v3126_v3, %v3107_v53  ;;  %v3889_v41 = vrot.slane %v3127_v58, 4 }
 0x339   : > { %v3958_v19 = vrot.slane %v3949_v25, 4  ;;  %v3125_v49 = vsel %vm1407_vm1, 0.0, %v3124_v29  ;;  %v3888_v37 = vperm.slane %v3884_v0, %v11708_v62  ;;  %v3956_v33 = vrot.slane %v3955_v12, 4 }
 0x33a   : > { %v3129_v18 = vsel %vm1407_vm1, 0.0, %v3128_v34  ;;  %v3895_v13 = vsel %vm1407_vm1, %v3130_v6, %v3119_v43  ;;  %v3900_v63 = vrot.slane %v3131_v26, 4  ;;  %v3890_v61 = vsel %vm1407_vm1, %v3889_v41, %v3125_v49 }
 0x33b   : > { %v3959_v27 = vsel %vm1407_vm1, %v3955_v12, %v3958_v19  ;;  %v3899_v20 = vperm.slane %v3895_v13, %v11708_v62  ;;  %v3251_v59 = vperm.slane %v10075_v55, %v11708_v62  ;;  %v3957_v10 = vsel %vm1407_vm1, %v3956_v33, %v3949_v25 }
 0x33c   : > { %v4435_v7 = vpack.c.bf16 %v3959_v27, %v3959_v27  ;;  %v3894_v38 = vperm.slane %v3890_v61, %v11708_v62  ;;  %v3901_v60 = vsel %vm1407_vm1, %v3900_v63, %v3129_v18  ;;  %v4419_v24 = vpack.c.bf16 %v3957_v10, %v3957_v10 }
 0x33d   : > { %v3905_v40 = vperm.slane %v3901_v60, %v11708_v62  ;;  %v3255_v45 = vperm.slane %v3247_v4, %v11708_v62  ;;  %v3256_v39 = vrot.slane %v3251_v59, 4  ;;  %v15451_v55 = vrot.slane %v11961_v21, 4 }
 0x33e   : > { %4467 = vst.msk [vmem:[#allocation3 + $0x4c] sm:$0xf] %vm2879_vm2, %v4435_v7  ;;  %v3906_v23 = vrot.slane %v3894_v38, 4  ;;  %v10074_v1 = vunpack.i.l.bf16 %v12549_v32  ;;  %v10070_v3 = vunpack.i.h.bf16 %v12596_v51  ;;  %v15452_v29 = vrot.slane %v11971_v11, 4 }
 0x33f   : > { %v3259_v53 = vsel %vm1407_vm1, %v3251_v59, %v15451_v55  ;;  %4451 = vst.msk [vmem:[#allocation3 + $0xc] sm:$0xf] %vm2879_vm2, %v4419_v24  ;;  %v3912_v22 = vrot.slane %v3905_v40, 4  ;;  %v3257_v43 = vsel %vm1407_vm1, %v3256_v39, %v11961_v21  ;;  %v3268_v4 = vrot.slane %v3255_v45, 4 }
 0x340   : > { %v3267_v6 = vperm.slane %v3259_v53, %v11953_v35  ;;  %v3907_v25 = vsel %vm1407_vm1, %v3906_v23, %v3888_v37  ;;  %v3263_v57 = vperm.slane %v3257_v43, %v11953_v35  ;;  %v3271_v58 = vsel %vm1407_vm1, %v3255_v45, %v15452_v29 }
 0x341   : > { %v3194_v32 = vrot.slane %v10074_v1, 4  ;;  %v3911_v12 = vperm.slane %v3907_v25, %v11953_v35  ;;  %v3913_v34 = vsel %vm1407_vm1, %v3912_v22, %v3899_v20  ;;  %v3269_v26 = vsel %vm1407_vm1, %v3268_v4, %v11971_v11 }
 0x342   : > { %v3279_v21 = vperm.slane %v3271_v58, %v11953_v35  ;;  %v3917_v0 = vperm.slane %v3913_v34, %v11953_v35  ;;  %v3275_v19 = vperm.slane %v3269_v26, %v11953_v35  ;;  %v3280_v49 = vrot.slane %v3263_v57, 4 }
 0x343   : > { %v3282_v37 = vrot.slane %v3267_v6, 4  ;;  %v3920_v41 = vrot.slane %v3911_v12, 4  ;;  %v3195_v18 = vsel %vm1407_vm1, 0.0, %v3194_v32  ;;  %v3199_v13 = vperm.slane %v10074_v1, %v11708_v62 }
 0x344   : > { %v3286_v33 = vrot.slane %v3279_v21, 4  ;;  %v3918_v63 = vrot.slane %v3917_v0, 4  ;;  %v3281_v27 = vsel %vm1407_vm1, 0.0, %v3280_v49  ;;  %v3284_v11 = vrot.slane %v3275_v19, 4 }
 0x345   : > { %v3283_v61 = vsel %vm1407_vm1, 0.0, %v3282_v37  ;;  %v3921_v20 = vsel %vm1407_vm1, %v3917_v0, %v3920_v41  ;;  %v3998_v10 = vsel %vm1407_vm1, %v3282_v37, %v3263_v57  ;;  %v3203_v22 = vperm.slane %v3195_v18, %v11708_v62 }
 0x346   : > { %v3287_v59 = vsel %vm1407_vm1, 0.0, %v3286_v33  ;;  %v4003_v7 = vrot.slane %v3283_v61, 4  ;;  %v3919_v38 = vsel %vm1407_vm1, %v3918_v63, %v3911_v12  ;;  %v4434_v60 = vpack.c.bf16 %v3921_v20, %v3921_v20 }
 0x347   : > { %v3285_v24 = vsel %vm1407_vm1, 0.0, %v3284_v11  ;;  %v4002_v40 = vperm.slane %v3998_v10, %v11708_v62  ;;  %v4418_v45 = vpack.c.bf16 %v3919_v38, %v3919_v38  ;;  %v4009_v23 = vsel %vm1407_vm1, %v3286_v33, %v3275_v19 }
 0x348   : > { %v4004_v39 = vsel %vm1407_vm1, %v4003_v7, %v3281_v27  ;;  %v4014_v55 = vrot.slane %v3287_v59, 4  ;;  %4466 = vst.msk [vmem:[#allocation3 + $0x48] sm:$0xf] %vm2879_vm2, %v4434_v60  ;;  %v4013_v1 = vperm.slane %v4009_v23, %v11708_v62  ;;  %v3204_v43 = vrot.slane %v3199_v13, 4 }
 0x349   : > { %v4008_v53 = vperm.slane %v4004_v39, %v11708_v62  ;;  %4450 = vst.msk [vmem:[#allocation3 + $0x8] sm:$0xf] %vm2879_vm2, %v4418_v45  ;;  %v15453_v4 = vrot.slane %v11922_v16, 4  ;;  %v1677_v57 = vrot.slane %v10070_v3, 4  ;;  %v1682_v29 = vperm.slane %v10070_v3, %v11708_v62 }
 0x34a   : > { %v4015_v6 = vsel %vm1407_vm1, %v4014_v55, %v3285_v24  ;;  %v3205_v12 = vsel %vm1407_vm1, %v3204_v43, %v11922_v16  ;;  %v3216_v21 = vrot.slane %v3203_v22, 4  ;;  %v15454_v0 = vrot.slane %v11934_v15, 4 }
 0x34b   : > { %v3207_v25 = vsel %vm1407_vm1, %v3199_v13, %v15453_v4  ;;  %v4019_v58 = vperm.slane %v4015_v6, %v11708_v62  ;;  %v4020_v32 = vrot.slane %v4008_v53, 4  ;;  %v3211_v26 = vperm.slane %v3205_v12, %v11953_v35 }
 0x34c   : > { %v3215_v34 = vperm.slane %v3207_v25, %v11953_v35  ;;  %v3219_v19 = vsel %vm1407_vm1, %v3203_v22, %v15454_v0  ;;  %v1678_v49 = vsel %vm1407_vm1, 0.0, %v1677_v57  ;;  %v3217_v16 = vsel %vm1407_vm1, %v3216_v21, %v11934_v15 }
 0x34d   : > { %v4021_v37 = vsel %vm1407_vm1, %v4020_v32, %v4002_v40  ;;  %v4026_v3 = vrot.slane %v4019_v58, 4  ;;  %v3227_v41 = vperm.slane %v3219_v19, %v11953_v35  ;;  %v3228_v13 = vrot.slane %v3211_v26, 4 }
 0x34e   : > { %v3230_v33 = vrot.slane %v3215_v34, 4  ;;  %v4025_v18 = vperm.slane %v4021_v37, %v11953_v35  ;;  %v1686_v63 = vperm.slane %v1678_v49, %v11708_v62  ;;  %v3223_v61 = vperm.slane %v3217_v16, %v11953_v35 }
 0x34f   : > { %v4027_v27 = vsel %vm1407_vm1, %v4026_v3, %v4013_v1  ;;  %v3234_v20 = vrot.slane %v3227_v41, 4  ;;  %v3229_v7 = vsel %vm1407_vm1, 0.0, %v3228_v13  ;;  %v1687_v57 = vrot.slane %v1682_v29, 4 }
 0x350   : > { %v3231_v11 = vsel %vm1407_vm1, 0.0, %v3230_v33  ;;  %v4031_v59 = vperm.slane %v4027_v27, %v11953_v35  ;;  %v4034_v10 = vrot.slane %v4025_v18, 4  ;;  %v3960_v38 = vsel %vm1407_vm1, %v3230_v33, %v3211_v26 }
 0x351   : > { %v3232_v60 = vrot.slane %v3223_v61, 4  ;;  %v3235_v15 = vsel %vm1407_vm1, 0.0, %v3234_v20  ;;  %v3964_v24 = vperm.slane %v3960_v38, %v11708_v62  ;;  %v3965_v40 = vrot.slane %v3231_v11, 4 }
 0x352   : > { %v4032_v45 = vrot.slane %v4031_v59, 4  ;;  %v4035_v39 = vsel %vm1407_vm1, %v4031_v59, %v4034_v10  ;;  %v3971_v23 = vsel %vm1407_vm1, %v3234_v20, %v3223_v61  ;;  %v3976_v55 = vrot.slane %v3235_v15, 4 }
 0x353   : > { %v4437_v53 = vpack.c.bf16 %v4035_v39, %v4035_v39  ;;  %v3233_v1 = vsel %vm1407_vm1, 0.0, %v3232_v60  ;;  %v3966_v22 = vsel %vm1407_vm1, %v3965_v40, %v3229_v7  ;;  %v3975_v43 = vperm.slane %v3971_v23, %v11708_v62 }
 0x354   : > { %v4033_v6 = vsel %vm1407_vm1, %v4032_v45, %v4025_v18  ;;  %v3970_v4 = vperm.slane %v3966_v22, %v11708_v62  ;;  %v3977_v25 = vsel %vm1407_vm1, %v3976_v55, %v3233_v1  ;;  %v15455_v12 = vrot.slane %v11957_v14, 4 }
 0x355   : > { %v4421_v58 = vpack.c.bf16 %v4033_v6, %v4033_v6  ;;  %4469 = vst.msk [vmem:[#allocation3 + $0x54] sm:$0xf] %vm2879_vm2, %v4437_v53  ;;  %v3981_v32 = vperm.slane %v3977_v25, %v11708_v62  ;;  %v1699_v26 = vrot.slane %v1686_v63, 4  ;;  %v1688_v0 = vsel %vm1407_vm1, %v1687_v57, %v11957_v14 }
 0x356   : > { %v1690_v34 = vsel %vm1407_vm1, %v1682_v29, %v15455_v12  ;;  %v3982_v21 = vrot.slane %v3970_v4, 4  ;;  %v15456_v49 = vrot.slane %v11968_v30, 4  ;;  %v1694_v41 = vperm.slane %v1688_v0, %v11953_v35  ;;  %v10078_v4 = vpop.permute.xlu1 %10077 }
 0x357   : > { %v1698_v19 = vperm.slane %v1690_v34, %v11953_v35  ;;  %4453 = vst.msk [vmem:[#allocation3 + $0x14] sm:$0xf] %vm2879_vm2, %v4421_v58  ;;  %v3988_v3 = vrot.slane %v3981_v32, 4  ;;  %v1700_v33 = vsel %vm1407_vm1, %v1699_v26, %v11968_v30  ;;  %v10069_v13 = vunpack.i.l.bf16 %v12596_v51 }
 0x358   : > { %v1702_v37 = vsel %vm1407_vm1, %v1686_v63, %v15456_v49  ;;  %v3983_v18 = vsel %vm1407_vm1, %v3982_v21, %v3964_v24  ;;  %v1706_v14 = vperm.slane %v1700_v33, %v11953_v35  ;;  %v1711_v61 = vrot.slane %v1694_v41, 4 }
 0x359   : > { %v1710_v29 = vperm.slane %v1702_v37, %v11953_v35  ;;  %v1713_v16 = vrot.slane %v1698_v19, 4  ;;  %v3987_v27 = vperm.slane %v3983_v18, %v11953_v35  ;;  %v3989_v63 = vsel %vm1407_vm1, %v3988_v3, %v3975_v43  ;;  %v15458_v18 = vld [vmem:[#allocation48_spill] sm:$0xff] }
 0x35a   : > { %v3993_v20 = vperm.slane %v3989_v63, %v11953_v35  ;;  %v1715_v30 = vrot.slane %v1706_v14, 4  ;;  %v1712_v38 = vsel %vm1407_vm1, 0.0, %v1711_v61  ;;  %v1625_v53 = vrot.slane %v10069_v13, 4 }
 0x35b   : > { %v1717_v11 = vrot.slane %v1710_v29, 4  ;;  %v1714_v59 = vsel %vm1407_vm1, 0.0, %v1713_v16  ;;  %v2429_v10 = vsel %vm1407_vm1, %v1713_v16, %v1694_v41  ;;  %v3996_v7 = vrot.slane %v3987_v27, 4 }
 0x35c   : > { %v2433_v51 = vperm.slane %v2429_v10, %v11708_v62  ;;  %v3994_v15 = vrot.slane %v3993_v20, 4  ;;  %v1716_v24 = vsel %vm1407_vm1, 0.0, %v1715_v30  ;;  %v2434_v40 = vrot.slane %v1714_v59, 4 }
 0x35d   : > { %v1718_v60 = vsel %vm1407_vm1, 0.0, %v1717_v11  ;;  %v2440_v45 = vsel %vm1407_vm1, %v1717_v11, %v1706_v14  ;;  %v3997_v39 = vsel %vm1407_vm1, %v3993_v20, %v3996_v7  ;;  %v1630_v6 = vperm.slane %v10069_v13, %v11708_v62 }
 0x35e   : > { %v2444_v23 = vperm.slane %v2440_v45, %v11708_v62  ;;  %v2445_v55 = vrot.slane %v1718_v60, 4  ;;  %v3995_v1 = vsel %vm1407_vm1, %v3994_v15, %v3987_v27  ;;  %v4436_v22 = vpack.c.bf16 %v3997_v39, %v3997_v39 }
 0x35f   : > { %v2435_v43 = vsel %vm1407_vm1, %v2434_v40, %v1712_v38  ;;  %v4420_v25 = vpack.c.bf16 %v3995_v1, %v3995_v1  ;;  %v1626_v32 = vsel %vm1407_vm1, 0.0, %v1625_v53  ;;  %v1635_v26 = vrot.slane %v1630_v6, 4 }
 0x360   : > { %v2439_v57 = vperm.slane %v2435_v43, %v11708_v62  ;;  %v2446_v58 = vsel %vm1407_vm1, %v2445_v55, %v1716_v24  ;;  %4468 = vst.msk [vmem:[#allocation3 + $0x50] sm:$0xf] %vm2879_vm2, %v4436_v22  ;;  %v1634_v34 = vperm.slane %v1626_v32, %v11708_v62  ;;  %v15457_v21 = vrot.slane %v11910_v31, 4 }
 0x361   : > { %v2450_v12 = vperm.slane %v2446_v58, %v11708_v62  ;;  %4452 = vst.msk [vmem:[#allocation3 + $0x10] sm:$0xf] %vm2879_vm2, %v4420_v25  ;;  %v10080_v37 = vunpack.i.h.bf16 %v10078_v4  ;;  %v10079_v3 = vunpack.i.l.bf16 %v10078_v4  ;;  %v1636_v33 = vsel %vm1407_vm1, %v1635_v26, %v11910_v31 }
 0x362   : > { %v1638_v0 = vsel %vm1407_vm1, %v1630_v6, %v15457_v21  ;;  %v2451_v19 = vrot.slane %v2439_v57, 4  ;;  %v1647_v29 = vrot.slane %v1634_v34, 4  ;;  %v15459_v14 = vrot.slane %v15458_v18, 4  ;;  %v12748_v57 = vpop.permute.xlu0 %10092 }
 0x363   : > { %v1646_v49 = vperm.slane %v1638_v0, %v11953_v35  ;;  %v2457_v41 = vrot.slane %v2450_v12, 4  ;;  %v1642_v27 = vperm.slane %v1636_v33, %v11953_v35  ;;  %v2093_v31 = vrot.slane %v10080_v37, 4 }
 0x364   : > { %v1650_v16 = vsel %vm1407_vm1, %v1634_v34, %v15459_v14  ;;  %v2452_v13 = vsel %vm1407_vm1, %v2451_v19, %v2433_v51  ;;  %v1648_v59 = vsel %vm1407_vm1, %v1647_v29, %v15458_v18  ;;  %v2098_v21 = vperm.slane %v10080_v37, %v11708_v62 }
 0x365   : > { %v1658_v63 = vperm.slane %v1650_v16, %v11953_v35  ;;  %v1661_v61 = vrot.slane %v1646_v49, 4  ;;  %v2456_v11 = vperm.slane %v2452_v13, %v11953_v35  ;;  %v2458_v20 = vsel %vm1407_vm1, %v2457_v41, %v2444_v23  ;;  %v15460_v13 = vld [vmem:[#allocation49_spill] sm:$0xff] }
 0x366   : > { %v2462_v30 = vperm.slane %v2458_v20, %v11953_v35  ;;  %v1654_v10 = vperm.slane %v1648_v59, %v11953_v35  ;;  %v1659_v7 = vrot.slane %v1642_v27, 4  ;;  %v2094_v34 = vsel %vm1407_vm1, 0.0, %v2093_v31  ;;  %v15462_v20 = vld [vmem:[#allocation51_spill] sm:$0xff] }
 0x367   : > { %v1662_v38 = vsel %vm1407_vm1, 0.0, %v1661_v61  ;;  %v2465_v60 = vrot.slane %v2456_v11, 4  ;;  %v1665_v51 = vrot.slane %v1658_v63, 4  ;;  %v2391_v15 = vsel %vm1407_vm1, %v1661_v61, %v1642_v27 }
 0x368   : > { %v2396_v24 = vrot.slane %v1662_v38, 4  ;;  %v2463_v40 = vrot.slane %v2462_v30, 4  ;;  %v1660_v45 = vsel %vm1407_vm1, 0.0, %v1659_v7  ;;  %v1663_v39 = vrot.slane %v1654_v10, 4 }
 0x369   : > { %v2395_v23 = vperm.slane %v2391_v15, %v11708_v62  ;;  %v2466_v55 = vsel %vm1407_vm1, %v2462_v30, %v2465_v60  ;;  %v1666_v53 = vsel %vm1407_vm1, 0.0, %v1665_v51  ;;  %v2402_v22 = vsel %vm1407_vm1, %v1665_v51, %v1654_v10 }
 0x36a   : > { %v2397_v1 = vsel %vm1407_vm1, %v2396_v24, %v1660_v45  ;;  %v2464_v43 = vsel %vm1407_vm1, %v2463_v40, %v2456_v11  ;;  %v2868_v6 = vpack.c.bf16 %v2466_v55, %v2466_v55  ;;  %v1664_v4 = vsel %vm1407_vm1, 0.0, %v1663_v39 }
 0x36b   : > { %v2401_v25 = vperm.slane %v2397_v1, %v11708_v62  ;;  %v2852_v58 = vpack.c.bf16 %v2464_v43, %v2464_v43  ;;  %v2406_v32 = vperm.slane %v2402_v22, %v11708_v62  ;;  %v2407_v12 = vrot.slane %v1666_v53, 4 }
 0x36c   : > { %2901 = vst.msk [vmem:[#allocation2 + $0x54] sm:$0xf] %vm2879_vm2, %v2868_v6  ;;  %v2102_v0 = vperm.slane %v2094_v34, %v11708_v62  ;;  %v2041_v19 = vrot.slane %v10079_v3, 4  ;;  %v2046_v41 = vperm.slane %v10079_v3, %v11708_v62  ;;  %v10095_v33 = vunpack.i.h.bf16 %v12748_v57 }
 0x36d   : > { %v2413_v26 = vrot.slane %v2401_v25, 4  ;;  %2885 = vst.msk [vmem:[#allocation2 + $0x14] sm:$0xf] %vm2879_vm2, %v2852_v58  ;;  %v2408_v49 = vsel %vm1407_vm1, %v2407_v12, %v1664_v4  ;;  %v10094_v29 = vunpack.i.l.bf16 %v12748_v57  ;;  %v2103_v16 = vrot.slane %v2098_v21, 4 }
 0x36e   : > { %v2412_v18 = vperm.slane %v2408_v49, %v11708_v62  ;;  %v15461_v37 = vrot.slane %v15460_v13, 4  ;;  %v2115_v11 = vrot.slane %v2102_v0, 4  ;;  %v15463_v3 = vrot.slane %v15462_v20, 4 }
 0x36f   : > { %v2414_v14 = vsel %vm1407_vm1, %v2413_v26, %v2395_v23  ;;  %v2104_v30 = vsel %vm1407_vm1, %v2103_v16, %v15460_v13  ;;  %v2042_v7 = vsel %vm1407_vm1, 0.0, %v2041_v19  ;;  %v15464_v13 = vld [vmem:[#allocation44_spill] sm:$0xff] }
 0x370   : > { %v2106_v27 = vsel %vm1407_vm1, %v2098_v21, %v15461_v37  ;;  %v2418_v63 = vperm.slane %v2414_v14, %v11953_v35  ;;  %v2118_v59 = vsel %vm1407_vm1, %v2102_v0, %v15463_v3  ;;  %v2419_v31 = vrot.slane %v2412_v18, 4 }
 0x371   : > { %v2114_v61 = vperm.slane %v2106_v27, %v11953_v35  ;;  %v2126_v10 = vperm.slane %v2118_v59, %v11953_v35  ;;  %v2110_v60 = vperm.slane %v2104_v30, %v11953_v35  ;;  %v2116_v51 = vsel %vm1407_vm1, %v2115_v11, %v15462_v20  ;;  %v15466_v11 = vld [vmem:[#allocation46_spill] sm:$0xff] }
 0x372   : > { %v2427_v38 = vrot.slane %v2418_v63, 4  ;;  %v2420_v24 = vsel %vm1407_vm1, %v2419_v31, %v2406_v32  ;;  %v2122_v40 = vperm.slane %v2116_v51, %v11953_v35  ;;  %v2050_v39 = vperm.slane %v2042_v7, %v11708_v62 }
 0x373   : > { %v2129_v15 = vrot.slane %v2114_v61, 4  ;;  %v2133_v45 = vrot.slane %v2126_v10, 4  ;;  %v2424_v23 = vperm.slane %v2420_v24, %v11953_v35  ;;  %v2127_v55 = vrot.slane %v2110_v60, 4 }
 0x374   : > { %v2131_v22 = vrot.slane %v2122_v40, 4  ;;  %v2051_v14 = vrot.slane %v2046_v41, 4  ;;  %v15465_v37 = vrot.slane %v15464_v13, 4  ;;  %v2063_v61 = vrot.slane %v2050_v39, 4 }
 0x375   : > { %v2130_v53 = vsel %vm1407_vm1, 0.0, %v2129_v15  ;;  %v2733_v1 = vsel %vm1407_vm1, %v2129_v15, %v2110_v60  ;;  %v2134_v43 = vsel %vm1407_vm1, 0.0, %v2133_v45  ;;  %v2425_v25 = vrot.slane %v2424_v23, 4 }
 0x376   : > { %v2737_v6 = vperm.slane %v2733_v1, %v11708_v62  ;;  %v2738_v4 = vrot.slane %v2130_v53, 4  ;;  %v2428_v58 = vsel %vm1407_vm1, %v2424_v23, %v2427_v38  ;;  %v2128_v32 = vsel %vm1407_vm1, 0.0, %v2127_v55 }
 0x377   : > { %v2744_v12 = vsel %vm1407_vm1, %v2133_v45, %v2122_v40  ;;  %v2867_v34 = vpack.c.bf16 %v2428_v58, %v2428_v58  ;;  %v2132_v26 = vsel %vm1407_vm1, 0.0, %v2131_v22  ;;  %v2426_v19 = vsel %vm1407_vm1, %v2425_v25, %v2418_v63 }
 0x378   : > { %v2739_v21 = vsel %vm1407_vm1, %v2738_v4, %v2128_v32  ;;  %v2748_v0 = vperm.slane %v2744_v12, %v11708_v62  ;;  %v2749_v18 = vrot.slane %v2134_v43, 4  ;;  %v2851_v16 = vpack.c.bf16 %v2426_v19, %v2426_v19 }
 0x379   : > { %v2743_v49 = vperm.slane %v2739_v21, %v11708_v62  ;;  %2900 = vst.msk [vmem:[#allocation2 + $0x50] sm:$0xf] %vm2879_vm2, %v2867_v34  ;;  %v2054_v27 = vsel %vm1407_vm1, %v2046_v41, %v15465_v37  ;;  %v15467_v20 = vrot.slane %v15466_v11, 4  ;;  %v2052_v63 = vsel %vm1407_vm1, %v2051_v14, %v15464_v13 }
 0x37a   : > { %v2750_v59 = vsel %vm1407_vm1, %v2749_v18, %v2132_v26  ;;  %v2062_v30 = vperm.slane %v2054_v27, %v11953_v35  ;;  %2884 = vst.msk [vmem:[#allocation2 + $0x10] sm:$0xf] %vm2879_vm2, %v2851_v16  ;;  %v2058_v7 = vperm.slane %v2052_v63, %v11953_v35  ;;  %v2064_v41 = vsel %vm1407_vm1, %v2063_v61, %v15466_v11 }
 0x37b   : > { %v2066_v3 = vsel %vm1407_vm1, %v2050_v39, %v15467_v20  ;;  %v2755_v31 = vrot.slane %v2743_v49, 4  ;;  %v2754_v10 = vperm.slane %v2750_v59, %v11708_v62  ;;  %v2070_v51 = vperm.slane %v2064_v41, %v11953_v35 }
 0x37c   : > { %v2074_v38 = vperm.slane %v2066_v3, %v11953_v35  ;;  %v2077_v15 = vrot.slane %v2062_v30, 4  ;;  %v2197_v24 = vrot.slane %v10095_v33, 4  ;;  %v2075_v39 = vrot.slane %v2058_v7, 4  ;;  %v15468_v30 = vld [vmem:[#allocation57_spill] sm:$0xff] }
 0x37d   : > { %v2756_v60 = vsel %vm1407_vm1, %v2755_v31, %v2737_v6  ;;  %v2761_v45 = vrot.slane %v2754_v10, 4  ;;  %v2079_v53 = vrot.slane %v2070_v51, 4  ;;  %v2202_v19 = vperm.slane %v10095_v33, %v11708_v62 }
 0x37e   : > { %v2760_v40 = vperm.slane %v2756_v60, %v11953_v35  ;;  %v2081_v23 = vrot.slane %v2074_v38, 4  ;;  %v2078_v55 = vsel %vm1407_vm1, 0.0, %v2077_v15  ;;  %v2695_v1 = vsel %vm1407_vm1, %v2077_v15, %v2058_v7 }
 0x37f   : > { %v2198_v22 = vsel %vm1407_vm1, 0.0, %v2197_v24  ;;  %v2762_v43 = vsel %vm1407_vm1, %v2761_v45, %v2748_v0  ;;  %v2076_v4 = vsel %vm1407_vm1, 0.0, %v2075_v39  ;;  %v2080_v32 = vsel %vm1407_vm1, 0.0, %v2079_v53 }
 0x380   : > { %v2769_v6 = vrot.slane %v2760_v40, 4  ;;  %v2082_v25 = vsel %vm1407_vm1, 0.0, %v2081_v23  ;;  %v2766_v58 = vperm.slane %v2762_v43, %v11953_v35  ;;  %v2699_v12 = vperm.slane %v2695_v1, %v11708_v62 }
 0x381   : > { %v2700_v34 = vrot.slane %v2078_v55, 4  ;;  %v2706_v26 = vsel %vm1407_vm1, %v2081_v23, %v2070_v51  ;;  %v2711_v21 = vrot.slane %v2082_v25, 4  ;;  %v2206_v0 = vperm.slane %v2198_v22, %v11708_v62 }
 0x382   : > { %v2767_v49 = vrot.slane %v2766_v58, 4  ;;  %v2770_v18 = vsel %vm1407_vm1, %v2766_v58, %v2769_v6  ;;  %v2710_v16 = vperm.slane %v2706_v26, %v11708_v62  ;;  %v2207_v61 = vrot.slane %v2202_v19, 4  ;;  %v15472_v6 = vld [vmem:[#allocation54_spill] sm:$0xff] }
 0x383   : > { %v2701_v14 = vsel %vm1407_vm1, %v2700_v34, %v2076_v4  ;;  %v2876_v13 = vpack.c.bf16 %v2770_v18, %v2770_v18  ;;  %v2712_v27 = vsel %vm1407_vm1, %v2711_v21, %v2080_v32  ;;  %v2219_v33 = vrot.slane %v2206_v0, 4 }
 0x384   : > { %v2705_v37 = vperm.slane %v2701_v14, %v11708_v62  ;;  %v2768_v11 = vsel %vm1407_vm1, %v2767_v49, %v2760_v40  ;;  %v2716_v20 = vperm.slane %v2712_v27, %v11708_v62  ;;  %v2145_v3 = vrot.slane %v10094_v29, 4 }
 0x385   : > { %v2860_v59 = vpack.c.bf16 %v2768_v11, %v2768_v11  ;;  %2909 = vst.msk [vmem:[#allocation2 + $0x74] sm:$0xf] %vm2879_vm2, %v2876_v13  ;;  %v2150_v63 = vperm.slane %v10094_v29, %v11708_v62  ;;  %v2208_v10 = vsel %vm1407_vm1, %v2207_v61, %v15468_v30  ;;  %v15469_v38 = vrot.slane %v15468_v30, 4  ;;  %v15470_v29 = vld [vmem:[#allocation53_spill] sm:$0xff] }
 0x386   : > { %v2717_v31 = vrot.slane %v2705_v37, 4  ;;  %v2723_v7 = vrot.slane %v2716_v20, 4  ;;  %v2146_v41 = vsel %vm1407_vm1, 0.0, %v2145_v3  ;;  %v2214_v51 = vperm.slane %v2208_v10, %v11953_v35 }
 0x387   : > { %v2210_v60 = vsel %vm1407_vm1, %v2202_v19, %v15469_v38  ;;  %2893 = vst.msk [vmem:[#allocation2 + $0x34] sm:$0xf] %vm2879_vm2, %v2860_v59  ;;  %v2154_v24 = vperm.slane %v2146_v41, %v11708_v62  ;;  %v2155_v57 = vrot.slane %v2150_v63, 4  ;;  %v15471_v40 = vrot.slane %v15470_v29, 4  ;;  %v15474_v19 = vld [vmem:[#allocation59_spill] sm:$0xff] }
 0x388   : > { %v2718_v15 = vsel %vm1407_vm1, %v2717_v31, %v2699_v12  ;;  %v2724_v23 = vsel %vm1407_vm1, %v2723_v7, %v2710_v16  ;;  %v2218_v53 = vperm.slane %v2210_v60, %v11953_v35  ;;  %v15473_v4 = vrot.slane %v15472_v6, 4 }
 0x389   : > { %v2158_v45 = vsel %vm1407_vm1, %v2150_v63, %v15471_v40  ;;  %v2722_v39 = vperm.slane %v2718_v15, %v11953_v35  ;;  %v2728_v1 = vperm.slane %v2724_v23, %v11953_v35  ;;  %v2156_v22 = vsel %vm1407_vm1, %v2155_v57, %v15470_v29 }
 0x38a   : > { %v2166_v55 = vperm.slane %v2158_v45, %v11953_v35  ;;  %v2167_v43 = vrot.slane %v2154_v24, 4  ;;  %v2170_v25 = vsel %vm1407_vm1, %v2154_v24, %v15473_v4  ;;  %v2162_v32 = vperm.slane %v2156_v22, %v11953_v35 }
 0x38b   : > { %v2731_v58 = vrot.slane %v2722_v39, 4  ;;  %v2178_v12 = vperm.slane %v2170_v25, %v11953_v35  ;;  %v2729_v26 = vrot.slane %v2728_v1, 4  ;;  %v2220_v49 = vsel %vm1407_vm1, %v2219_v33, %v15474_v19 }
 0x38c   : > { %v2181_v34 = vrot.slane %v2166_v55, 4  ;;  %v2168_v21 = vsel %vm1407_vm1, %v2167_v43, %v15472_v6  ;;  %v15475_v18 = vrot.slane %v15474_v19, 4  ;;  %v2179_v37 = vrot.slane %v2162_v32, 4  ;;  %v10108_v6 = vpop.permute.xlu1 %10107 }
 0x38d   : > { %v2732_v16 = vsel %vm1407_vm1, %v2728_v1, %v2731_v58  ;;  %v2174_v13 = vperm.slane %v2168_v21, %v11953_v35  ;;  %v2730_v61 = vsel %vm1407_vm1, %v2729_v26, %v2722_v39  ;;  %v2185_v20 = vrot.slane %v2178_v12, 4  ;;  %v12899_v12 = vpop.permute.xlu0 %10097 }
 0x38e   : > { %v2222_v14 = vsel %vm1407_vm1, %v2206_v0, %v15475_v18  ;;  %v2182_v27 = vsel %vm1407_vm1, 0.0, %v2181_v34  ;;  %v2875_v11 = vpack.c.bf16 %v2732_v16, %v2732_v16  ;;  %v2226_v3 = vperm.slane %v2220_v49, %v11953_v35 }
 0x38f   : > { %v2859_v59 = vpack.c.bf16 %v2730_v61, %v2730_v61  ;;  %v2180_v33 = vsel %vm1407_vm1, 0.0, %v2179_v37  ;;  %v2183_v31 = vrot.slane %v2174_v13, 4  ;;  %v2230_v63 = vperm.slane %v2222_v14, %v11953_v35 }
 0x390   : > { %2908 = vst.msk [vmem:[#allocation2 + $0x70] sm:$0xf] %vm2879_vm2, %v2875_v11  ;;  %v2186_v0 = vsel %vm1407_vm1, 0.0, %v2185_v20  ;;  %v2231_v30 = vrot.slane %v2214_v51, 4  ;;  %v2233_v10 = vrot.slane %v2218_v53, 4  ;;  %v2235_v7 = vrot.slane %v2226_v3, 4 }
 0x391   : > { %2892 = vst.msk [vmem:[#allocation2 + $0x30] sm:$0xf] %vm2879_vm2, %v2859_v59  ;;  %v2184_v41 = vsel %vm1407_vm1, 0.0, %v2183_v31  ;;  %v2237_v38 = vrot.slane %v2230_v63, 4  ;;  %v2771_v60 = vsel %vm1407_vm1, %v2181_v34, %v2162_v32  ;;  %v2776_v15 = vrot.slane %v2182_v27, 4 }
 0x392   : > { %v2232_v24 = vsel %vm1407_vm1, 0.0, %v2231_v30  ;;  %v2234_v57 = vsel %vm1407_vm1, 0.0, %v2233_v10  ;;  %v2236_v29 = vsel %vm1407_vm1, 0.0, %v2235_v7  ;;  %v2775_v40 = vperm.slane %v2771_v60, %v11708_v62 }
 0x393   : > { %v2238_v45 = vsel %vm1407_vm1, 0.0, %v2237_v38  ;;  %v2777_v39 = vsel %vm1407_vm1, %v2776_v15, %v2180_v33  ;;  %v2782_v23 = vsel %vm1407_vm1, %v2185_v20, %v2174_v13  ;;  %v2787_v55 = vrot.slane %v2186_v0, 4 }
 0x394   : > { %v2781_v53 = vperm.slane %v2777_v39, %v11708_v62  ;;  %v2786_v1 = vperm.slane %v2782_v23, %v11708_v62  ;;  %v2809_v22 = vsel %vm1407_vm1, %v2233_v10, %v2214_v51  ;;  %v2814_v43 = vrot.slane %v2234_v57, 4 }
 0x395   : > { %v2788_v4 = vsel %vm1407_vm1, %v2787_v55, %v2184_v41  ;;  %v2813_v25 = vperm.slane %v2809_v22, %v11708_v62  ;;  %v2820_v58 = vsel %vm1407_vm1, %v2237_v38, %v2226_v3  ;;  %v2825_v32 = vrot.slane %v2238_v45, 4 }
 0x396   : > { %v2792_v34 = vperm.slane %v2788_v4, %v11708_v62  ;;  %v2793_v26 = vrot.slane %v2781_v53, 4  ;;  %v2815_v21 = vsel %vm1407_vm1, %v2814_v43, %v2232_v24  ;;  %v2824_v19 = vperm.slane %v2820_v58, %v11708_v62 }
 0x397   : > { %v2819_v51 = vperm.slane %v2815_v21, %v11708_v62  ;;  %v2826_v49 = vsel %vm1407_vm1, %v2825_v32, %v2236_v29  ;;  %v10110_v18 = vunpack.i.h.bf16 %v10108_v6  ;;  %v10109_v14 = vunpack.i.l.bf16 %v10108_v6 }
 0x398   : > { %v2794_v16 = vsel %vm1407_vm1, %v2793_v26, %v2775_v40  ;;  %v2799_v13 = vrot.slane %v2792_v34, 4  ;;  %v2830_v37 = vperm.slane %v2826_v49, %v11708_v62  ;;  %v10100_v27 = vunpack.i.h.bf16 %v12899_v12  ;;  %v15476_v40 = vld [vmem:[#allocation58_spill] sm:$0xff] }
 0x399   : > { %v2798_v61 = vperm.slane %v2794_v16, %v11953_v35  ;;  %v2831_v11 = vrot.slane %v2819_v51, 4  ;;  %v3766_v20 = vrot.slane %v10110_v18, 4  ;;  %v3771_v3 = vperm.slane %v10110_v18, %v11708_v62 }
 0x39a   : > { %v2800_v59 = vsel %vm1407_vm1, %v2799_v13, %v2786_v1  ;;  %v2837_v33 = vrot.slane %v2830_v37, 4  ;;  %v3714_v31 = vrot.slane %v10109_v14, 4  ;;  %v3719_v63 = vperm.slane %v10109_v14, %v11708_v62 }
 0x39b   : > { %v2804_v0 = vperm.slane %v2800_v59, %v11953_v35  ;;  %v2807_v30 = vrot.slane %v2798_v61, 4  ;;  %v2832_v10 = vsel %vm1407_vm1, %v2831_v11, %v2813_v25  ;;  %v3767_v7 = vsel %vm1407_vm1, 0.0, %v3766_v20 }
 0x39c   : > { %v2836_v41 = vperm.slane %v2832_v10, %v11953_v35  ;;  %v2838_v38 = vsel %vm1407_vm1, %v2837_v33, %v2824_v19  ;;  %v3775_v60 = vperm.slane %v3767_v7, %v11708_v62  ;;  %v3776_v15 = vrot.slane %v3771_v3, 4 }
 0x39d   : > { %v2805_v24 = vrot.slane %v2804_v0, 4  ;;  %v2808_v57 = vsel %vm1407_vm1, %v2804_v0, %v2807_v30  ;;  %v2842_v29 = vperm.slane %v2838_v38, %v11953_v35  ;;  %v15477_v45 = vrot.slane %v15476_v40, 4  ;;  %v15478_v38 = vld [vmem:[#allocation55_spill] sm:$0xff] }
 0x39e   : > { %v2845_v23 = vrot.slane %v2836_v41, 4  ;;  %v2877_v55 = vpack.c.bf16 %v2808_v57, %v2808_v57  ;;  %v3777_v53 = vsel %vm1407_vm1, %v3776_v15, %v15476_v40  ;;  %v3788_v4 = vrot.slane %v3775_v60, 4 }
 0x39f   : > { %v3779_v39 = vsel %vm1407_vm1, %v3771_v3, %v15477_v45  ;;  %v2806_v22 = vsel %vm1407_vm1, %v2805_v24, %v2798_v61  ;;  %v2843_v43 = vrot.slane %v2842_v29, 4  ;;  %v3783_v6 = vperm.slane %v3777_v53, %v11953_v35 }
 0x3a0   : > { %v3787_v1 = vperm.slane %v3779_v39, %v11953_v35  ;;  %v2846_v25 = vsel %vm1407_vm1, %v2842_v29, %v2845_v23  ;;  %v2861_v58 = vpack.c.bf16 %v2806_v22, %v2806_v22  ;;  %2910 = vst.msk [vmem:[#allocation2 + $0x78] sm:$0xf] %vm2879_vm2, %v2877_v55  ;;  %v3791_v32 = vsel %vm1407_vm1, %v3775_v60, %v3790_v54  ;;  %v15480_v29 = vld [vmem:[#allocation56_spill] sm:$0xff] }
 0x3a1   : > { %v2844_v26 = vsel %vm1407_vm1, %v2843_v43, %v2836_v41  ;;  %v2878_v21 = vpack.c.bf16 %v2846_v25, %v2846_v25  ;;  %v3789_v19 = vsel %vm1407_vm1, %v3788_v4, %v12018_v8  ;;  %v3799_v51 = vperm.slane %v3791_v32, %v11953_v35 }
 0x3a2   : > { %v3802_v34 = vrot.slane %v3787_v1, 4  ;;  %v2862_v49 = vpack.c.bf16 %v2844_v26, %v2844_v26  ;;  %2894 = vst.msk [vmem:[#allocation2 + $0x38] sm:$0xf] %vm2879_vm2, %v2861_v58  ;;  %v3795_v18 = vperm.slane %v3789_v19, %v11953_v35  ;;  %v3800_v14 = vrot.slane %v3783_v6, 4 }
 0x3a3   : > { %2911 = vst.msk [vmem:[#allocation2 + $0x7c] sm:$0xf] %vm2879_vm2, %v2878_v21  ;;  %v3806_v54 = vrot.slane %v3799_v51, 4  ;;  %v3715_v61 = vsel %vm1407_vm1, 0.0, %v3714_v31  ;;  %v3724_v30 = vrot.slane %v3719_v63, 4  ;;  %v15479_v15 = vrot.slane %v15478_v38, 4 }
 0x3a4   : > { %v3803_v16 = vsel %vm1407_vm1, 0.0, %v3802_v34  ;;  %v4378_v13 = vsel %vm1407_vm1, %v3802_v34, %v3783_v6  ;;  %2895 = vst.msk [vmem:[#allocation2 + $0x3c] sm:$0xf] %vm2879_vm2, %v2862_v49  ;;  %v3801_v8 = vsel %vm1407_vm1, 0.0, %v3800_v14  ;;  %v3804_v11 = vrot.slane %v3795_v18, 4 }
 0x3a5   : > { %v4383_v37 = vrot.slane %v3803_v16, 4  ;;  %v4382_v20 = vperm.slane %v4378_v13, %v11708_v62  ;;  %v3723_v3 = vperm.slane %v3715_v61, %v11708_v62  ;;  %v3807_v59 = vsel %vm1407_vm1, 0.0, %v3806_v54 }
 0x3a6   : > { %v4389_v0 = vsel %vm1407_vm1, %v3806_v54, %v3795_v18  ;;  %v3805_v10 = vsel %vm1407_vm1, 0.0, %v3804_v11  ;;  %v4394_v41 = vrot.slane %v3807_v59, 4  ;;  %v3725_v60 = vsel %vm1407_vm1, %v3724_v30, %v15478_v38 }
 0x3a7   : > { %v4384_v33 = vsel %vm1407_vm1, %v4383_v37, %v3801_v8  ;;  %v4393_v7 = vperm.slane %v4389_v0, %v11708_v62  ;;  %v3727_v24 = vsel %vm1407_vm1, %v3719_v63, %v15479_v15  ;;  %v3736_v57 = vrot.slane %v3723_v3, 4 }
 0x3a8   : > { %v4388_v31 = vperm.slane %v4384_v33, %v11708_v62  ;;  %v15481_v40 = vrot.slane %v15480_v29, 4  ;;  %v4395_v39 = vsel %vm1407_vm1, %v4394_v41, %v3805_v10  ;;  %v3731_v55 = vperm.slane %v3725_v60, %v11953_v35 }
 0x3a9   : > { %v3735_v53 = vperm.slane %v3727_v24, %v11953_v35  ;;  %v4399_v1 = vperm.slane %v4395_v39, %v11708_v62  ;;  %v3737_v22 = vsel %vm1407_vm1, %v3736_v57, %v15480_v29  ;;  %v3558_v63 = vrot.slane %v10100_v27, 4 }
 0x3aa   : > { %v3739_v45 = vsel %vm1407_vm1, %v3723_v3, %v15481_v40  ;;  %v4400_v23 = vrot.slane %v4388_v31, 4  ;;  %v3743_v4 = vperm.slane %v3737_v22, %v11953_v35  ;;  %v3748_v25 = vrot.slane %v3731_v55, 4 }
 0x3ab   : > { %v3747_v43 = vperm.slane %v3739_v45, %v11953_v35  ;;  %v3750_v58 = vrot.slane %v3735_v53, 4  ;;  %v4406_v34 = vrot.slane %v4399_v1, 4  ;;  %v3559_v21 = vsel %vm1407_vm1, 0.0, %v3558_v63  ;;  %v15484_v1 = vld [vmem:[#allocation43_spill] sm:$0xff] }
 0x3ac   : > { %v4401_v6 = vsel %vm1407_vm1, %v4400_v23, %v4382_v20  ;;  %v3749_v19 = vsel %vm1407_vm1, 0.0, %v3748_v25  ;;  %v3752_v49 = vrot.slane %v3743_v4, 4  ;;  %v3563_v59 = vperm.slane %v10100_v27, %v11708_v62  ;;  %v15482_v27 = vld [vmem:[#allocation42_spill] sm:$0xff] }
 0x3ad   : > { %v4405_v32 = vperm.slane %v4401_v6, %v11953_v35  ;;  %v3754_v26 = vrot.slane %v3747_v43, 4  ;;  %v3751_v51 = vsel %vm1407_vm1, 0.0, %v3750_v58  ;;  %v4340_v18 = vsel %vm1407_vm1, %v3750_v58, %v3731_v55 }
 0x3ae   : > { %v4407_v14 = vsel %vm1407_vm1, %v4406_v34, %v4393_v7  ;;  %v4344_v13 = vperm.slane %v4340_v18, %v11708_v62  ;;  %v3753_v61 = vsel %vm1407_vm1, 0.0, %v3752_v49  ;;  %v4345_v8 = vrot.slane %v3751_v51, 4 }
 0x3af   : > { %v4414_v16 = vrot.slane %v4405_v32, 4  ;;  %v3755_v54 = vsel %vm1407_vm1, 0.0, %v3754_v26  ;;  %v4411_v37 = vperm.slane %v4407_v14, %v11953_v35  ;;  %v4351_v11 = vsel %vm1407_vm1, %v3754_v26, %v3743_v4 }
 0x3b0   : > { %v4355_v20 = vperm.slane %v4351_v11, %v11708_v62  ;;  %v4356_v3 = vrot.slane %v3755_v54, 4  ;;  %v3567_v33 = vperm.slane %v3559_v21, %v11708_v62  ;;  %v4346_v10 = vsel %vm1407_vm1, %v4345_v8, %v3749_v19 }
 0x3b1   : > { %v4412_v0 = vrot.slane %v4411_v37, 4  ;;  %v4415_v30 = vsel %vm1407_vm1, %v4411_v37, %v4414_v16  ;;  %v10099_v31 = vunpack.i.l.bf16 %v12899_v12  ;;  %v4350_v41 = vperm.slane %v4346_v10, %v11708_v62 }
 0x3b2   : > { %v4447_v7 = vpack.c.bf16 %v4415_v30, %v4415_v30  ;;  %v4357_v38 = vsel %vm1407_vm1, %v4356_v3, %v3753_v61  ;;  %v3568_v60 = vrot.slane %v3563_v59, 4  ;;  %v15483_v57 = vrot.slane %v15482_v27, 4 }
 0x3b3   : > { %v4413_v15 = vsel %vm1407_vm1, %v4412_v0, %v4405_v32  ;;  %v4361_v24 = vperm.slane %v4357_v38, %v11708_v62  ;;  %v3580_v40 = vrot.slane %v3567_v33, 4  ;;  %v4362_v39 = vrot.slane %v4350_v41, 4  ;;  %v13025_v0 = vpop.permute.xlu2 %10082 }
 0x3b4   : > { %v3571_v29 = vsel %vm1407_vm1, %v3563_v59, %v15483_v57  ;;  %v4431_v45 = vpack.c.bf16 %v4413_v15, %v4413_v15  ;;  %4479 = vst.msk [vmem:[#allocation3 + $0x7c] sm:$0xf] %vm2879_vm2, %v4447_v7  ;;  %v3569_v12 = vsel %vm1407_vm1, %v3568_v60, %v15482_v27  ;;  %v15485_v43 = vrot.slane %v15484_v1, 4 }
 0x3b5   : > { %v3579_v23 = vperm.slane %v3571_v29, %v11953_v35  ;;  %v4368_v55 = vrot.slane %v4361_v24, 4  ;;  %v3575_v53 = vperm.slane %v3569_v12, %v11953_v35  ;;  %v3581_v22 = vsel %vm1407_vm1, %v3580_v40, %v15484_v1  ;;  %v15486_v12 = vld [vmem:[#allocation40_spill] sm:$0xff] }
 0x3b6   : > { %v3583_v63 = vsel %vm1407_vm1, %v3567_v33, %v15485_v43  ;;  %4463 = vst.msk [vmem:[#allocation3 + $0x3c] sm:$0xf] %vm2879_vm2, %v4431_v45  ;;  %v4363_v6 = vsel %vm1407_vm1, %v4362_v39, %v4344_v13  ;;  %v3587_v4 = vperm.slane %v3581_v22, %v11953_v35  ;;  %v3506_v21 = vrot.slane %v10099_v31, 4 }
 0x3b7   : > { %v3591_v25 = vperm.slane %v3583_v63, %v11953_v35  ;;  %v3594_v58 = vrot.slane %v3579_v23, 4  ;;  %v4367_v32 = vperm.slane %v4363_v6, %v11953_v35  ;;  %v4369_v34 = vsel %vm1407_vm1, %v4368_v55, %v4355_v20 }
 0x3b8   : > { %v3592_v26 = vrot.slane %v3575_v53, 4  ;;  %v4373_v19 = vperm.slane %v4369_v34, %v11953_v35  ;;  %v3596_v49 = vrot.slane %v3587_v4, 4  ;;  %v3362_v37 = vrot.slane %v12437_v46, 4 }
 0x3b9   : > { %v3595_v51 = vsel %vm1407_vm1, 0.0, %v3594_v58  ;;  %v3598_v18 = vrot.slane %v3591_v25, 4  ;;  %v4376_v14 = vrot.slane %v4367_v32, 4  ;;  %v4226_v54 = vsel %vm1407_vm1, %v3594_v58, %v3575_v53 }
 0x3ba   : > { %v3593_v16 = vsel %vm1407_vm1, 0.0, %v3592_v26  ;;  %v4231_v13 = vrot.slane %v3595_v51, 4  ;;  %v4374_v61 = vrot.slane %v4373_v19, 4  ;;  %v3597_v8 = vsel %vm1407_vm1, 0.0, %v3596_v49 }
 0x3bb   : > { %v3599_v11 = vsel %vm1407_vm1, 0.0, %v3598_v18  ;;  %v4377_v20 = vsel %vm1407_vm1, %v4373_v19, %v4376_v14  ;;  %v4230_v3 = vperm.slane %v4226_v54, %v11708_v62  ;;  %v4237_v41 = vsel %vm1407_vm1, %v3598_v18, %v3587_v4  ;;  %v15488_v4 = vld [vmem:[#allocation41_spill] sm:$0xff] }
 0x3bc   : > { %v4232_v59 = vsel %vm1407_vm1, %v4231_v13, %v3593_v16  ;;  %v4242_v33 = vrot.slane %v3599_v11, 4  ;;  %v4375_v30 = vsel %vm1407_vm1, %v4374_v61, %v4367_v32  ;;  %v4446_v10 = vpack.c.bf16 %v4377_v20, %v4377_v20 }
 0x3bd   : > { %v4236_v7 = vperm.slane %v4232_v59, %v11708_v62  ;;  %v4430_v38 = vpack.c.bf16 %v4375_v30, %v4375_v30  ;;  %v3507_v15 = vsel %vm1407_vm1, 0.0, %v3506_v21  ;;  %v3511_v24 = vperm.slane %v10099_v31, %v11708_v62 }
 0x3be   : > { %v4243_v60 = vsel %vm1407_vm1, %v4242_v33, %v3597_v8  ;;  %4478 = vst.msk [vmem:[#allocation3 + $0x78] sm:$0xf] %vm2879_vm2, %v4446_v10  ;;  %v3515_v29 = vperm.slane %v3507_v15, %v11708_v62  ;;  %v10085_v40 = vunpack.i.h.bf16 %v13025_v0  ;;  %v4241_v45 = vperm.slane %v4237_v41, %v11708_v62 }
 0x3bf   : > { %v4247_v27 = vperm.slane %v4243_v60, %v11708_v62  ;;  %v4248_v57 = vrot.slane %v4236_v7, 4  ;;  %4462 = vst.msk [vmem:[#allocation3 + $0x38] sm:$0xf] %vm2879_vm2, %v4430_v38  ;;  %v3516_v39 = vrot.slane %v3511_v24, 4  ;;  %v15487_v23 = vrot.slane %v15486_v12, 4 }
 0x3c0   : > { %v10084_v31 = vunpack.i.l.bf16 %v13025_v0  ;;  %v3528_v43 = vrot.slane %v3515_v29, 4  ;;  %v15489_v25 = vrot.slane %v15488_v4, 4  ;;  %v1781_v32 = vrot.slane %v10085_v40, 4 }
 0x3c1   : > { %v3519_v55 = vsel %vm1407_vm1, %v3511_v24, %v15487_v23  ;;  %v4249_v53 = vsel %vm1407_vm1, %v4248_v57, %v4230_v3  ;;  %v4254_v1 = vrot.slane %v4247_v27, 4  ;;  %v3517_v6 = vsel %vm1407_vm1, %v3516_v39, %v15486_v12 }
 0x3c2   : > { %v3527_v22 = vperm.slane %v3519_v55, %v11953_v35  ;;  %v4253_v63 = vperm.slane %v4249_v53, %v11953_v35  ;;  %v3531_v58 = vsel %vm1407_vm1, %v3515_v29, %v15489_v25  ;;  %v3523_v26 = vperm.slane %v3517_v6, %v11953_v35 }
 0x3c3   : > { %v4255_v34 = vsel %vm1407_vm1, %v4254_v1, %v4241_v45  ;;  %v3529_v21 = vsel %vm1407_vm1, %v3528_v43, %v15488_v4  ;;  %v3539_v19 = vperm.slane %v3531_v58, %v11953_v35  ;;  %v1782_v13 = vsel %vm1407_vm1, 0.0, %v1781_v32 }
 0x3c4   : > { %v4259_v51 = vperm.slane %v4255_v34, %v11953_v35  ;;  %v4262_v49 = vrot.slane %v4253_v63, 4  ;;  %v3535_v18 = vperm.slane %v3529_v21, %v11953_v35  ;;  %v3542_v14 = vrot.slane %v3527_v22, 4 }
 0x3c5   : > { %v3540_v16 = vrot.slane %v3523_v26, 4  ;;  %v3546_v54 = vrot.slane %v3539_v19, 4  ;;  %v1786_v61 = vperm.slane %v10085_v40, %v11708_v62  ;;  %v1790_v27 = vperm.slane %v1782_v13, %v11708_v62 }
 0x3c6   : > { %v4260_v8 = vrot.slane %v4259_v51, 4  ;;  %v4263_v11 = vsel %vm1407_vm1, %v4259_v51, %v4262_v49  ;;  %v3543_v20 = vsel %vm1407_vm1, 0.0, %v3542_v14  ;;  %v3544_v3 = vrot.slane %v3535_v18, 4 }
 0x3c7   : > { %v4443_v59 = vpack.c.bf16 %v4263_v11, %v4263_v11  ;;  %v3541_v33 = vsel %vm1407_vm1, 0.0, %v3540_v16  ;;  %v3547_v0 = vsel %vm1407_vm1, 0.0, %v3546_v54  ;;  %v4188_v30 = vsel %vm1407_vm1, %v3542_v14, %v3523_v26 }
 0x3c8   : > { %v4261_v10 = vsel %vm1407_vm1, %v4260_v8, %v4253_v63  ;;  %v3545_v7 = vsel %vm1407_vm1, 0.0, %v3544_v3  ;;  %v4192_v41 = vperm.slane %v4188_v30, %v11708_v62  ;;  %v4193_v38 = vrot.slane %v3543_v20, 4 }
 0x3c9   : > { %v4427_v60 = vpack.c.bf16 %v4261_v10, %v4261_v10  ;;  %4475 = vst.msk [vmem:[#allocation3 + $0x6c] sm:$0xf] %vm2879_vm2, %v4443_v59  ;;  %v4199_v15 = vsel %vm1407_vm1, %v3546_v54, %v3535_v18  ;;  %v4204_v24 = vrot.slane %v3547_v0, 4  ;;  %v1791_v40 = vrot.slane %v1786_v61, 4 }
 0x3ca   : > { %v4194_v57 = vsel %vm1407_vm1, %v4193_v38, %v3541_v33  ;;  %v4203_v29 = vperm.slane %v4199_v15, %v11708_v62  ;;  %v1729_v45 = vrot.slane %v10084_v31, 4  ;;  %v1803_v23 = vrot.slane %v1790_v27, 4 }
 0x3cb   : > { %4459 = vst.msk [vmem:[#allocation3 + $0x2c] sm:$0xf] %vm2879_vm2, %v4427_v60  ;;  %v4198_v39 = vperm.slane %v4194_v57, %v11708_v62  ;;  %v4205_v12 = vsel %vm1407_vm1, %v4204_v24, %v3545_v7  ;;  %v1734_v55 = vperm.slane %v10084_v31, %v11708_v62  ;;  %v1792_v22 = vsel %vm1407_vm1, %v1791_v40, %v12415_v56 }
 0x3cc   : > { %v4209_v53 = vperm.slane %v4205_v12, %v11708_v62  ;;  %v1730_v1 = vsel %vm1407_vm1, 0.0, %v1729_v45  ;;  %v1794_v43 = vsel %vm1407_vm1, %v1786_v61, %v1793_v50  ;;  %v1798_v32 = vperm.slane %v1792_v22, %v11953_v35 }
 0x3cd   : > { %v4210_v63 = vrot.slane %v4198_v39, 4  ;;  %v1738_v6 = vperm.slane %v1730_v1, %v11708_v62  ;;  %v1739_v4 = vrot.slane %v1734_v55, 4  ;;  %v1742_v25 = vsel %vm1407_vm1, %v1734_v55, %v1741_v9  ;;  %v10088_v1 = vpop.permute.xlu2 %10087 }
 0x3ce   : > { %v4216_v31 = vrot.slane %v4209_v53, 4  ;;  %v1750_v58 = vperm.slane %v1742_v25, %v11953_v35  ;;  %v1802_v34 = vperm.slane %v1794_v43, %v11953_v35  ;;  %v3374_v8 = vrot.slane %v12440_v44, 4 }
 0x3cf   : > { %v4211_v26 = vsel %vm1407_vm1, %v4210_v63, %v4192_v41  ;;  %v1740_v56 = vsel %vm1407_vm1, %v1739_v4, %v12391_v36  ;;  %v1751_v50 = vrot.slane %v1738_v6, 4  ;;  %v1754_v21 = vsel %vm1407_vm1, %v1738_v6, %v1753_v28 }
 0x3d0   : > { %v4215_v19 = vperm.slane %v4211_v26, %v11953_v35  ;;  %v4217_v9 = vsel %vm1407_vm1, %v4216_v31, %v4203_v29  ;;  %v1746_v51 = vperm.slane %v1740_v56, %v11953_v35  ;;  %v1762_v49 = vperm.slane %v1754_v21, %v11953_v35 }
 0x3d1   : > { %v4221_v18 = vperm.slane %v4217_v9, %v11953_v35  ;;  %v1752_v14 = vsel %vm1407_vm1, %v1751_v50, %v12399_v42  ;;  %v1765_v16 = vrot.slane %v1750_v58, 4  ;;  %v1804_v36 = vsel %vm1407_vm1, %v1803_v23, %v12428_v17 }
 0x3d2   : > { %v4224_v54 = vrot.slane %v4215_v19, 4  ;;  %v1758_v28 = vperm.slane %v1752_v14, %v11953_v35  ;;  %v1763_v13 = vrot.slane %v1746_v51, 4  ;;  %v1769_v61 = vrot.slane %v1762_v49, 4 }
 0x3d3   : > { %v4222_v11 = vrot.slane %v4221_v18, 4  ;;  %v1806_v20 = vsel %vm1407_vm1, %v1790_v27, %v1805_v5  ;;  %v1810_v3 = vperm.slane %v1804_v36, %v11953_v35  ;;  %v1766_v33 = vsel %vm1407_vm1, 0.0, %v1765_v16 }
 0x3d4   : > { %v4225_v42 = vsel %vm1407_vm1, %v4221_v18, %v4224_v54  ;;  %v1764_v59 = vsel %vm1407_vm1, 0.0, %v1763_v13  ;;  %v1767_v0 = vrot.slane %v1758_v28, 4  ;;  %v1814_v7 = vperm.slane %v1806_v20, %v11953_v35 }
 0x3d5   : > { %v4223_v30 = vsel %vm1407_vm1, %v4222_v11, %v4215_v19  ;;  %v4442_v10 = vpack.c.bf16 %v4225_v42, %v4225_v42  ;;  %v1815_v41 = vrot.slane %v1798_v32, 4  ;;  %v1770_v17 = vsel %vm1407_vm1, 0.0, %v1769_v61 }
 0x3d6   : > { %v4426_v38 = vpack.c.bf16 %v4223_v30, %v4223_v30  ;;  %v1817_v60 = vrot.slane %v1802_v34, 4  ;;  %v1819_v5 = vrot.slane %v1810_v3, 4  ;;  %v1768_v15 = vsel %vm1407_vm1, 0.0, %v1767_v0 }
 0x3d7   : > { %4474 = vst.msk [vmem:[#allocation3 + $0x68] sm:$0xf] %vm2879_vm2, %v4442_v10  ;;  %v1821_v24 = vrot.slane %v1814_v7, 4  ;;  %v2467_v27 = vsel %vm1407_vm1, %v1765_v16, %v1746_v51  ;;  %v2472_v57 = vrot.slane %v1766_v33, 4  ;;  %v1816_v29 = vsel %vm1407_vm1, 0.0, %v1815_v41 }
 0x3d8   : > { %4458 = vst.msk [vmem:[#allocation3 + $0x28] sm:$0xf] %vm2879_vm2, %v4426_v38  ;;  %v1818_v40 = vsel %vm1407_vm1, 0.0, %v1817_v60  ;;  %v1820_v45 = vsel %vm1407_vm1, 0.0, %v1819_v5  ;;  %v2478_v39 = vsel %vm1407_vm1, %v1769_v61, %v1758_v28  ;;  %v2471_v23 = vperm.slane %v2467_v27, %v11708_v62 }
 0x3d9   : > { %v1822_v12 = vsel %vm1407_vm1, 0.0, %v1821_v24  ;;  %v2473_v55 = vsel %vm1407_vm1, %v2472_v57, %v1764_v59  ;;  %v2483_v53 = vrot.slane %v1770_v17, 4  ;;  %v2505_v43 = vsel %vm1407_vm1, %v1817_v60, %v1798_v32 }
 0x3da   : > { %v2477_v22 = vperm.slane %v2473_v55, %v11708_v62  ;;  %v2510_v63 = vrot.slane %v1818_v40, 4  ;;  %v2516_v6 = vsel %vm1407_vm1, %v1821_v24, %v1810_v3  ;;  %v2482_v4 = vperm.slane %v2478_v39, %v11708_v62 }
 0x3db   : > { %v2484_v25 = vsel %vm1407_vm1, %v2483_v53, %v1768_v15  ;;  %v2509_v31 = vperm.slane %v2505_v43, %v11708_v62  ;;  %v2521_v58 = vrot.slane %v1822_v12, 4  ;;  %v10090_v50 = vunpack.i.h.bf16 %v10088_v1 }
 0x3dc   : > { %v2488_v34 = vperm.slane %v2484_v25, %v11708_v62  ;;  %v2489_v26 = vrot.slane %v2477_v22, 4  ;;  %v2511_v56 = vsel %vm1407_vm1, %v2510_v63, %v1816_v29  ;;  %v2520_v32 = vperm.slane %v2516_v6, %v11708_v62 }
 0x3dd   : > { %v2515_v21 = vperm.slane %v2511_v56, %v11708_v62  ;;  %v2522_v19 = vsel %vm1407_vm1, %v2521_v58, %v1820_v45  ;;  %v10089_v9 = vunpack.i.l.bf16 %v10088_v1  ;;  %v3350_v14 = vrot.slane %v10090_v50, 4 }
 0x3de   : > { %v2490_v51 = vsel %vm1407_vm1, %v2489_v26, %v2471_v23  ;;  %v2495_v49 = vrot.slane %v2488_v34, 4  ;;  %v2526_v18 = vperm.slane %v2522_v19, %v11708_v62  ;;  %v3355_v54 = vperm.slane %v10090_v50, %v11708_v62 }
 0x3df   : > { %v2494_v16 = vperm.slane %v2490_v51, %v11953_v35  ;;  %v2527_v36 = vrot.slane %v2515_v21, 4  ;;  %v3298_v28 = vrot.slane %v10089_v9, 4  ;;  %v3351_v11 = vsel %vm1407_vm1, 0.0, %v3350_v14 }
 0x3e0   : > { %v2496_v13 = vsel %vm1407_vm1, %v2495_v49, %v2482_v4  ;;  %v2533_v61 = vrot.slane %v2526_v18, 4  ;;  %v3303_v20 = vperm.slane %v10089_v9, %v11708_v62  ;;  %v3359_v33 = vperm.slane %v3351_v11, %v11708_v62 }
 0x3e1   : > { %v2500_v3 = vperm.slane %v2496_v13, %v11953_v35  ;;  %v2503_v42 = vrot.slane %v2494_v16, 4  ;;  %v2528_v59 = vsel %vm1407_vm1, %v2527_v36, %v2509_v31  ;;  %v3360_v10 = vrot.slane %v3355_v54, 4 }
 0x3e2   : > { %v2532_v0 = vperm.slane %v2528_v59, %v11953_v35  ;;  %v2534_v30 = vsel %vm1407_vm1, %v2533_v61, %v2520_v32  ;;  %v3363_v7 = vsel %vm1407_vm1, %v3355_v54, %v3362_v37  ;;  %v3372_v27 = vrot.slane %v3359_v33, 4  ;;  %v13196_v54 = vpop.permute.xlu2 %10102 }
 0x3e3   : > { %v2501_v41 = vrot.slane %v2500_v3, 4  ;;  %v2504_v38 = vsel %vm1407_vm1, %v2500_v3, %v2503_v42  ;;  %v2538_v17 = vperm.slane %v2534_v30, %v11953_v35  ;;  %v3371_v60 = vperm.slane %v3363_v7, %v11953_v35 }
 0x3e4   : > { %v2541_v5 = vrot.slane %v2532_v0, 4  ;;  %v2869_v15 = vpack.c.bf16 %v2504_v38, %v2504_v38  ;;  %v3361_v24 = vsel %vm1407_vm1, %v3360_v10, %v12437_v46  ;;  %v3375_v37 = vsel %vm1407_vm1, %v3359_v33, %v3374_v8 }
 0x3e5   : > { %v2502_v57 = vsel %vm1407_vm1, %v2501_v41, %v2494_v16  ;;  %v2539_v29 = vrot.slane %v2538_v17, 4  ;;  %v3367_v40 = vperm.slane %v3361_v24, %v11953_v35  ;;  %v3373_v12 = vsel %vm1407_vm1, %v3372_v27, %v12440_v44 }
 0x3e6   : > { %v2542_v45 = vsel %vm1407_vm1, %v2538_v17, %v2541_v5  ;;  %v2853_v39 = vpack.c.bf16 %v2502_v57, %v2502_v57  ;;  %2902 = vst.msk [vmem:[#allocation2 + $0x58] sm:$0xf] %vm2879_vm2, %v2869_v15  ;;  %v3383_v46 = vperm.slane %v3375_v37, %v11953_v35  ;;  %v3379_v53 = vperm.slane %v3373_v12, %v11953_v35 }
 0x3e7   : > { %v2540_v23 = vsel %vm1407_vm1, %v2539_v29, %v2532_v0  ;;  %v2870_v55 = vpack.c.bf16 %v2542_v45, %v2542_v45  ;;  %v3384_v1 = vrot.slane %v3367_v40, 4  ;;  %v3386_v8 = vrot.slane %v3371_v60, 4 }
 0x3e8   : > { %v2854_v22 = vpack.c.bf16 %v2540_v23, %v2540_v23  ;;  %2886 = vst.msk [vmem:[#allocation2 + $0x18] sm:$0xf] %vm2879_vm2, %v2853_v39  ;;  %v3390_v43 = vrot.slane %v3383_v46, 4  ;;  %v3299_v63 = vsel %vm1407_vm1, 0.0, %v3298_v28  ;;  %v3388_v44 = vrot.slane %v3379_v53, 4 }
 0x3e9   : > { %2903 = vst.msk [vmem:[#allocation2 + $0x5c] sm:$0xf] %vm2879_vm2, %v2870_v55  ;;  %v3385_v6 = vsel %vm1407_vm1, 0.0, %v3384_v1  ;;  %v3307_v4 = vperm.slane %v3299_v63, %v11708_v62  ;;  %v3308_v25 = vrot.slane %v3303_v20, 4  ;;  %v3387_v31 = vsel %vm1407_vm1, 0.0, %v3386_v8 }
 0x3ea   : > { %2887 = vst.msk [vmem:[#allocation2 + $0x1c] sm:$0xf] %vm2879_vm2, %v2854_v22  ;;  %v3391_v58 = vsel %vm1407_vm1, 0.0, %v3390_v43  ;;  %v4074_v34 = vsel %vm1407_vm1, %v3386_v8, %v3367_v40  ;;  %v4085_v26 = vsel %vm1407_vm1, %v3390_v43, %v3379_v53  ;;  %v3389_v56 = vsel %vm1407_vm1, 0.0, %v3388_v44 }
 0x3eb   : > { %v4078_v50 = vperm.slane %v4074_v34, %v11708_v62  ;;  %v4079_v21 = vrot.slane %v3387_v31, 4  ;;  %v4089_v32 = vperm.slane %v4085_v26, %v11708_v62  ;;  %v4090_v19 = vrot.slane %v3391_v58, 4  ;;  %v15490_v34 = vld [vmem:[#allocation50_spill] sm:$0xff] }
 0x3ec   : > { %v3309_v9 = vsel %vm1407_vm1, %v3308_v25, %v12406_v48  ;;  %v3311_v51 = vsel %vm1407_vm1, %v3303_v20, %v3310_v2  ;;  %v3320_v49 = vrot.slane %v3307_v4, 4  ;;  %v3323_v36 = vsel %vm1407_vm1, %v3307_v4, %v3322_v47 }
 0x3ed   : > { %v4080_v18 = vsel %vm1407_vm1, %v4079_v21, %v3385_v6  ;;  %v3315_v14 = vperm.slane %v3309_v9, %v11953_v35  ;;  %v3319_v16 = vperm.slane %v3311_v51, %v11953_v35  ;;  %v4091_v13 = vsel %vm1407_vm1, %v4090_v19, %v3389_v56 }
 0x3ee   : > { %v4084_v28 = vperm.slane %v4080_v18, %v11708_v62  ;;  %v3321_v48 = vsel %vm1407_vm1, %v3320_v49, %v12410_v52  ;;  %v3331_v2 = vperm.slane %v3323_v36, %v11953_v35  ;;  %v4095_v61 = vperm.slane %v4091_v13, %v11708_v62  ;;  %v15492_v49 = vld [vmem:[#allocation52_spill] sm:$0xff] }
 0x3ef   : > { %v3327_v11 = vperm.slane %v3321_v48, %v11953_v35  ;;  %v3332_v20 = vrot.slane %v3315_v14, 4  ;;  %v3334_v3 = vrot.slane %v3319_v16, 4  ;;  %v10105_v47 = vunpack.i.h.bf16 %v13196_v54 }
 0x3f0   : > { %v4096_v42 = vrot.slane %v4084_v28, 4  ;;  %v3338_v59 = vrot.slane %v3331_v2, 4  ;;  %v10104_v33 = vunpack.i.l.bf16 %v13196_v54  ;;  %v4102_v0 = vrot.slane %v4095_v61, 4 }
 0x3f1   : > { %v3333_v30 = vsel %vm1407_vm1, 0.0, %v3332_v20  ;;  %v3335_v10 = vsel %vm1407_vm1, 0.0, %v3334_v3  ;;  %v3336_v52 = vrot.slane %v3327_v11, 4  ;;  %v4036_v38 = vsel %vm1407_vm1, %v3334_v3, %v3315_v14 }
 0x3f2   : > { %v4097_v7 = vsel %vm1407_vm1, %v4096_v42, %v4078_v50  ;;  %v3339_v41 = vsel %vm1407_vm1, 0.0, %v3338_v59  ;;  %v4041_v17 = vrot.slane %v3335_v10, 4  ;;  %v4103_v5 = vsel %vm1407_vm1, %v4102_v0, %v4089_v32 }
 0x3f3   : > { %v4101_v60 = vperm.slane %v4097_v7, %v11953_v35  ;;  %v3337_v15 = vsel %vm1407_vm1, 0.0, %v3336_v52  ;;  %v4040_v24 = vperm.slane %v4036_v38, %v11708_v62  ;;  %v4107_v27 = vperm.slane %v4103_v5, %v11953_v35 }
 0x3f4   : > { %v4042_v57 = vsel %vm1407_vm1, %v4041_v17, %v3333_v30  ;;  %v4047_v29 = vsel %vm1407_vm1, %v3338_v59, %v3327_v11  ;;  %v4052_v40 = vrot.slane %v3339_v41, 4  ;;  %v3662_v12 = vrot.slane %v10105_v47, 4 }
 0x3f5   : > { %v4110_v37 = vrot.slane %v4101_v60, 4  ;;  %v4046_v45 = vperm.slane %v4042_v57, %v11708_v62  ;;  %v4051_v39 = vperm.slane %v4047_v29, %v11708_v62  ;;  %v4108_v46 = vrot.slane %v4107_v27, 4 }
 0x3f6   : > { %v4053_v23 = vsel %vm1407_vm1, %v4052_v40, %v3337_v15  ;;  %v3667_v55 = vperm.slane %v10105_v47, %v11708_v62  ;;  %v3610_v53 = vrot.slane %v10104_v33, 4  ;;  %v3663_v43 = vsel %vm1407_vm1, 0.0, %v3662_v12 }
 0x3f7   : > { %v4111_v1 = vsel %vm1407_vm1, %v4107_v27, %v4110_v37  ;;  %v4057_v22 = vperm.slane %v4053_v23, %v11708_v62  ;;  %v4058_v8 = vrot.slane %v4046_v45, 4  ;;  %v4109_v63 = vsel %vm1407_vm1, %v4108_v46, %v4101_v60  ;;  %v15495_v37 = vld [vmem:[#allocation45_spill] sm:$0xff] }
 0x3f8   : > { %v4439_v6 = vpack.c.bf16 %v4111_v1, %v4111_v1  ;;  %v3671_v44 = vperm.slane %v3663_v43, %v11708_v62  ;;  %v3672_v4 = vrot.slane %v3667_v55, 4  ;;  %v4423_v25 = vpack.c.bf16 %v4109_v63, %v4109_v63 }
 0x3f9   : > { %v4059_v31 = vsel %vm1407_vm1, %v4058_v8, %v4040_v24  ;;  %v4064_v58 = vrot.slane %v4057_v22, 4  ;;  %v15491_v26 = vrot.slane %v15490_v34, 4  ;;  %v15493_v18 = vrot.slane %v15492_v49, 4 }
 0x3fa   : > { %4471 = vst.msk [vmem:[#allocation3 + $0x5c] sm:$0xf] %vm2879_vm2, %v4439_v6  ;;  %v4063_v50 = vperm.slane %v4059_v31, %v11953_v35  ;;  %v3673_v21 = vsel %vm1407_vm1, %v3672_v4, %v15490_v34  ;;  %v3684_v19 = vrot.slane %v3671_v44, 4  ;;  %v3611_v16 = vsel %vm1407_vm1, 0.0, %v3610_v53 }
 0x3fb   : > { %v3675_v56 = vsel %vm1407_vm1, %v3667_v55, %v15491_v26  ;;  %4455 = vst.msk [vmem:[#allocation3 + $0x1c] sm:$0xf] %vm2879_vm2, %v4423_v25  ;;  %v4065_v9 = vsel %vm1407_vm1, %v4064_v58, %v4051_v39  ;;  %v3679_v51 = vperm.slane %v3673_v21, %v11953_v35  ;;  %v3687_v14 = vsel %vm1407_vm1, %v3671_v44, %v15493_v18 }
 0x3fc   : > { %v3683_v32 = vperm.slane %v3675_v56, %v11953_v35  ;;  %v4069_v36 = vperm.slane %v4065_v9, %v11953_v35  ;;  %v4072_v54 = vrot.slane %v4063_v50, 4  ;;  %v3685_v28 = vsel %vm1407_vm1, %v3684_v19, %v15492_v49 }
 0x3fd   : > { %v3695_v13 = vperm.slane %v3687_v14, %v11953_v35  ;;  %v3691_v48 = vperm.slane %v3685_v28, %v11953_v35  ;;  %v3696_v2 = vrot.slane %v3679_v51, 4  ;;  %v3615_v11 = vperm.slane %v10104_v33, %v11708_v62  ;;  %v15494_v33 = vld [vmem:[#allocation47_spill] sm:$0xff] }
 0x3fe   : > { %v3698_v61 = vrot.slane %v3683_v32, 4  ;;  %v4070_v20 = vrot.slane %v4069_v36, 4  ;;  %v4073_v3 = vsel %vm1407_vm1, %v4069_v36, %v4072_v54  ;;  %v3619_v59 = vperm.slane %v3611_v16, %v11708_v62 }
 0x3ff   : > { %v3702_v42 = vrot.slane %v3695_v13, 4  ;;  %v4438_v47 = vpack.c.bf16 %v4073_v3, %v4073_v3  ;;  %v3697_v0 = vsel %vm1407_vm1, 0.0, %v3696_v2  ;;  %v3700_v10 = vrot.slane %v3691_v48, 4 }
 0x400   : > { %v3699_v30 = vsel %vm1407_vm1, 0.0, %v3698_v61  ;;  %v4071_v52 = vsel %vm1407_vm1, %v4070_v20, %v4063_v50  ;;  %v4302_v41 = vsel %vm1407_vm1, %v3698_v61, %v3679_v51  ;;  %v3634_v17 = vrot.slane %v15494_v33, 4 }
 0x401   : > { %v3703_v7 = vsel %vm1407_vm1, 0.0, %v3702_v42  ;;  %v4307_v38 = vrot.slane %v3699_v30, 4  ;;  %v4422_v60 = vpack.c.bf16 %v4071_v52, %v4071_v52  ;;  %4470 = vst.msk [vmem:[#allocation3 + $0x58] sm:$0xf] %vm2879_vm2, %v4438_v47  ;;  %v3701_v5 = vsel %vm1407_vm1, 0.0, %v3700_v10 }
 0x402   : > { %v4306_v15 = vperm.slane %v4302_v41, %v11708_v62  ;;  %v4313_v27 = vsel %vm1407_vm1, %v3702_v42, %v3691_v48  ;;  %v4318_v57 = vrot.slane %v3703_v7, 4  ;;  %v3620_v29 = vrot.slane %v3615_v11, 4 }
 0x403   : > { %v4308_v24 = vsel %vm1407_vm1, %v4307_v38, %v3697_v0  ;;  %4454 = vst.msk [vmem:[#allocation3 + $0x18] sm:$0xf] %vm2879_vm2, %v4422_v60  ;;  %v15496_v45 = vrot.slane %v15495_v37, 4  ;;  %v3632_v12 = vrot.slane %v3619_v59, 4  ;;  %v3635_v46 = vsel %vm1407_vm1, %v3619_v59, %v3634_v17 }
 0x404   : > { %v4312_v40 = vperm.slane %v4308_v24, %v11708_v62  ;;  %v4319_v23 = vsel %vm1407_vm1, %v4318_v57, %v3701_v5  ;;  %v3621_v55 = vsel %vm1407_vm1, %v3620_v29, %v15495_v37  ;;  %v3643_v1 = vperm.slane %v3635_v46, %v11953_v35 }
 0x405   : > { %v3623_v39 = vsel %vm1407_vm1, %v3615_v11, %v15496_v45  ;;  %v4323_v22 = vperm.slane %v4319_v23, %v11708_v62  ;;  %v3627_v43 = vperm.slane %v3621_v55, %v11953_v35  ;;  %v3633_v63 = vsel %vm1407_vm1, %v3632_v12, %v15494_v33 }
 0x406   : > { %v3631_v53 = vperm.slane %v3623_v39, %v11953_v35  ;;  %v4324_v8 = vrot.slane %v4312_v40, 4  ;;  %v3639_v6 = vperm.slane %v3633_v63, %v11953_v35  ;;  %v3650_v4 = vrot.slane %v3643_v1, 4 }
 0x407   : > { %v4317_v25 = vperm.slane %v4313_v27, %v11708_v62  ;;  %v4330_v58 = vrot.slane %v4323_v22, 4  ;;  %v3644_v34 = vrot.slane %v3627_v43, 4 }
 0x408   : > { %v3646_v44 = vrot.slane %v3631_v53, 4  ;;  %v4325_v31 = vsel %vm1407_vm1, %v4324_v8, %v4306_v15  ;;  %v3648_v50 = vrot.slane %v3639_v6, 4  ;;  %v3651_v21 = vsel %vm1407_vm1, 0.0, %v3650_v4 }
 0x409   : > { %v4329_v26 = vperm.slane %v4325_v31, %v11953_v35  ;;  %v4331_v32 = vsel %vm1407_vm1, %v4330_v58, %v4317_v25  ;;  %v3645_v19 = vsel %vm1407_vm1, 0.0, %v3644_v34  ;;  %v4280_v36 = vrot.slane %v3651_v21, 4 }
 0x40a   : > { %v3647_v56 = vsel %vm1407_vm1, 0.0, %v3646_v44  ;;  %v4335_v51 = vperm.slane %v4331_v32, %v11953_v35  ;;  %v3649_v18 = vsel %vm1407_vm1, 0.0, %v3648_v50  ;;  %v4264_v14 = vsel %vm1407_vm1, %v3646_v44, %v3627_v43 }
 0x40b   : > { %v4269_v9 = vrot.slane %v3647_v56, 4  ;;  %v4338_v49 = vrot.slane %v4329_v26, 4  ;;  %v4275_v2 = vsel %vm1407_vm1, %v3650_v4, %v3639_v6  ;;  %v4281_v61 = vsel %vm1407_vm1, %v4280_v36, %v3649_v18 }
 0x40c   : > { %v4336_v54 = vrot.slane %v4335_v51, 4  ;;  %v4268_v20 = vperm.slane %v4264_v14, %v11708_v62  ;;  %v4285_v3 = vperm.slane %v4281_v61, %v11708_v62  ;;  %v4279_v47 = vperm.slane %v4275_v2, %v11708_v62 }
 0x40d   : > { %v4270_v16 = vsel %vm1407_vm1, %v4269_v9, %v3645_v19  ;;  %v4339_v28 = vsel %vm1407_vm1, %v4335_v51, %v4338_v49 }
 0x40e   : > { %v4274_v13 = vperm.slane %v4270_v16, %v11708_v62  ;;  %v4445_v48 = vpack.c.bf16 %v4339_v28, %v4339_v28  ;;  %v4337_v11 = vsel %vm1407_vm1, %v4336_v54, %v4329_v26  ;;  %v4292_v30 = vrot.slane %v4285_v3, 4 }
 0x40f   : > { %v4429_v59 = vpack.c.bf16 %v4337_v11, %v4337_v11 }
 0x410   : > { %v4286_v42 = vrot.slane %v4274_v13, 4  ;;  %4477 = vst.msk [vmem:[#allocation3 + $0x74] sm:$0xf] %vm2879_vm2, %v4445_v48  ;;  %v4293_v52 = vsel %vm1407_vm1, %v4292_v30, %v4279_v47 }
 0x411   : > { %4461 = vst.msk [vmem:[#allocation3 + $0x34] sm:$0xf] %vm2879_vm2, %v4429_v59  ;;  %v4297_v7 = vperm.slane %v4293_v52, %v11953_v35 }
 0x412   : > { %v4287_v0 = vsel %vm1407_vm1, %v4286_v42, %v4268_v20 }
 0x413   : > { %v4291_v10 = vperm.slane %v4287_v0, %v11953_v35  ;;  %v4298_v38 = vrot.slane %v4297_v7, 4 }
 0x415   : > { %v4300_v41 = vrot.slane %v4291_v10, 4  ;;  %v4299_v60 = vsel %vm1407_vm1, %v4298_v38, %v4291_v10 }
 0x416   : > { %v4428_v5 = vpack.c.bf16 %v4299_v60, %v4299_v60 }
 0x417   : > { %v4301_v33 = vsel %vm1407_vm1, %v4297_v7, %v4300_v41 }
 0x418   : > { %v4444_v17 = vpack.c.bf16 %v4301_v33, %v4301_v33  ;;  %4460 = vst.msk [vmem:[#allocation3 + $0x30] sm:$0xf] %vm2879_vm2, %v4428_v5 }
 0x41a   : > { %4476 = vst.msk [vmem:[#allocation3 + $0x70] sm:$0xf] %vm2879_vm2, %v4444_v17 }
 0x41b PF: > { %v9793_v62 = vld [vmem:[%s11126_s7 + $0x10] sm:$0xff]   ;;  %v9792_v15 = vld [vmem:[%s11126_s7 + $0x8] sm:$0xff]   ;;  %v9750_v35 = vld [vmem:[%s11126_s7] sm:$0xff]   ;;  %v10815_v12 = vmov 128.0   ;;  %s10816_s2 = smov 64   ;;  %s15500_s16 = sld [smem:[#allocation92_spill]] }
 0x41c   : > { %v13311_v24 = vunpack.c.l.bf16 %v9793_v62  ;;  %v13313_v27 = vunpack.c.l.bf16 %v9792_v15  ;;  %v13315_v57 = vunpack.c.l.bf16 %v9750_v35  ;;  %v13320_v29 = vunpack.c.h.bf16 %v9793_v62  ;;  %v9794_v45 = vld [vmem:[%s11126_s7 + $0x18] sm:$0xff]   ;;  %v9579_v20 = vld [vmem:[#allocation9 + $0x30] sm:$0xff]  ;;  %v9578_v3 = vld [vmem:[#allocation9 + $0x28] sm:$0xff]  ;;  %s15511_s9 = sld [smem:[#allocation96_spill]]  ;;  %s8678_s30 = sshll.u32 %s11162_s24, 4  ;;  %s8679_s30 = int_to_ptr.vmem [resolvable:$true] %s8678_s30 }
 0x41d   : > { %v13322_v40 = vunpack.c.h.bf16 %v9792_v15  ;;  %v13324_v37 = vunpack.c.h.bf16 %v9750_v35  ;;  %v13330_v39 = vunpack.c.l.bf16 %v9794_v45  ;;  %10189 = vrcp.f32 %v10815_v12  ;;  %v9580_v11 = vld [vmem:[#allocation9 + $0x38] sm:$0xff]  ;;  %v9577_v42 = vld [vmem:[#allocation9 + $0x20] sm:$0xff]  ;;  %v9575_v47 = vld [vmem:[#allocation9 + $0x10] sm:$0xff]  ;;  %s15548_s18 = sld [smem:[#allocation98_spill]]  ;;  %s8664_s4 = scalar_lea.sflag [#allocation6], %s608_s13 }
 0x41e   : > { %4504 = vadd.xlane.f32.xlu2 %v13311_v24  ;;  %4500 = vadd.xlane.f32.xlu1 %v13313_v27  ;;  %v13351_v19 = vunpack.c.h.bf16 %v9794_v45  ;;  %v9576_v59 = vld [vmem:[#allocation9 + $0x18] sm:$0xff]  ;;  %v9574_v0 = vld [vmem:[#allocation9 + $0x8] sm:$0xff]  ;;  %v9573_v7 = vld [vmem:[#allocation9] sm:$0xff]  ;;  %s15553_s14 = sld [smem:[#allocation31_spill]] }
 0x41f   : > { %4496 = vadd.xlane.f32.xlu0 %v13315_v57  ;;  %4753 = vmatpush.bf16.msra.mxu0 %v9580_v11  ;;  %s15554_s7 = sld [smem:[#allocation32_spill]] }
 0x420   : > { %s15557_s17 = sld [smem:[#allocation99_spill]] }
 0x423   : > { %v10190_v46 = vpop.eup %10189  ;;  %4754 = vmatpush.bf16.msra.mxu0 %v9579_v20 }
 0x424   : > { %v4513_v23 = vmul.f32 128.0, %v10190_v46  ;;  %vm4517_vm3 = vweird.f32 %v10190_v46  ;;  %s9551_s12 = sshll.u32 %s15553_s14, 3 }
 0x425   : > { %s9552_s5 = sshll.u32 %s15554_s7, 4 }
 0x426   : > { %4506 = vadd.xlane.f32.xlu2 %v13320_v29  ;;  %4502 = vadd.xlane.f32.xlu1 %v13322_v40  ;;  %v4514_v55 = vsub.f32 1.0, %v4513_v23  ;;  %s8675_s21 = sadd.s32 %s9552_s5, %s9551_s12 }
 0x427   : > { %4498 = vadd.xlane.f32.xlu0 %v13324_v37  ;;  %4755 = vmatpush.bf16.msra.mxu0 %v9578_v3  ;;  %s9553_s25 = sshll.u32 %s8675_s21, 2 }
 0x428   : > { %v4515_v53 = vmul.f32 %v10190_v46, %v4514_v55  ;;  %s8677_s29 = scalar_lea.hbm %s15557_s17, %s9553_s25 }
 0x42a   : > { %v4516_v1 = vadd.f32 %v10190_v46, %v4515_v53 }
 0x42b   : > { %4756 = vmatpush.bf16.msra.mxu0 %v9577_v42 }
 0x42c   : > { %v13333_v22 = vsel %vm4517_vm3, %v10190_v46, %v4516_v1 }
 0x42e   : > { %4508 = vadd.xlane.f32.xlu2 %v13330_v39 }
 0x42f   : > { %4757 = vmatpush.bf16.msra.mxu0 %v9576_v59 }
 0x433   : > { %4758 = vmatpush.bf16.msra.mxu0 %v9575_v47 }
 0x437   : > { %4759 = vmatpush.bf16.msra.mxu0 %v9574_v0 }
 0x43b   : > { %4760 = vmatpush.bf16.msra.mxu0 %v9573_v7 }
 0x491   : > { %v4505_v8 = vpop.xlane.xlu2 %4504  ;;  %v4501_v43 = vpop.xlane.xlu1 %4500 }
 0x492   : > { %v4497_v63 = vpop.xlane.xlu0 %4496  ;;  %v4523_v50 = vmul.f32 %v13333_v22, %v4505_v8  ;;  %v4521_v21 = vmul.f32 %v13333_v22, %v4501_v43 }
 0x493   : > { %v4519_v6 = vmul.f32 %v13333_v22, %v4497_v63 }
 0x494   : > { %v13358_v49 = vsub.f32 %v13311_v24, %v4523_v50  ;;  %v13361_v18 = vsub.f32 %v13313_v27, %v4521_v21 }
 0x495   : > { %v13337_v44 = vsub.f32 %v13315_v57, %v4519_v6 }
 0x496   : > { %v4539_v28 = vmul.f32 %v13358_v49, %v13358_v49  ;;  %v4537_v13 = vmul.f32 %v13361_v18, %v13361_v18 }
 0x497   : > { %v4535_v4 = vmul.f32 %v13337_v44, %v13337_v44 }
 0x499   : > { %4543 = vadd.xlane.f32.xlu0 %v4535_v4  ;;  %v4507_v25 = vpop.xlane.xlu2 %4506  ;;  %v4503_v31 = vpop.xlane.xlu1 %4502 }
 0x49a   : > { %v4522_v58 = vmul.f32 %v13333_v22, %v4503_v31  ;;  %v4499_v34 = vpop.xlane.xlu0 %4498  ;;  %v4524_v54 = vmul.f32 %v13333_v22, %v4507_v25 }
 0x49b   : > { %v4520_v26 = vmul.f32 %v13333_v22, %v4499_v34 }
 0x49c   : > { %v13344_v56 = vsub.f32 %v13322_v40, %v4522_v58  ;;  %v13376_v2 = vsub.f32 %v13320_v29, %v4524_v54 }
 0x49d   : > { %v13349_v32 = vsub.f32 %v13324_v37, %v4520_v26 }
 0x49e   : > { %v4538_v9 = vmul.f32 %v13344_v56, %v13344_v56  ;;  %v4540_v61 = vmul.f32 %v13376_v2, %v13376_v2 }
 0x49f   : > { %v4536_v51 = vmul.f32 %v13349_v32, %v13349_v32 }
 0x4a0   : > { %4549 = vadd.xlane.f32.xlu2 %v4538_v9 }
 0x4a1   : > { %4510 = vadd.xlane.f32.xlu0 %v13351_v19  ;;  %4545 = vadd.xlane.f32.xlu1 %v4536_v51  ;;  %v4509_v14 = vpop.xlane.xlu2 %4508 }
 0x4a2   : > { %v4525_v16 = vmul.f32 %v13333_v22, %v4509_v14 }
 0x4a4   : > { %v13366_v36 = vsub.f32 %v13330_v39, %v4525_v16 }
 0x4a6   : > { %v4541_v48 = vmul.f32 %v13366_v36, %v13366_v36 }
 0x4a8   : > { %4555 = vadd.xlane.f32.xlu2 %v4541_v48 }
 0x4a9   : > { %4551 = vadd.xlane.f32.xlu0 %v4539_v28  ;;  %4547 = vadd.xlane.f32.xlu1 %v4537_v13 }
 0x4b1   : > { %4553 = vadd.xlane.f32.xlu1 %v4540_v61  ;;  %v15497_v61 = vld [vmem:[#allocation38_spill] sm:$0xff] }
 0x4b2   : > { %v13405_v11 = vperm.slane %v15497_v61, 0 }
 0x50c   : > { %v4544_v30 = vpop.xlane.xlu0 %4543 }
 0x50d   : > { %v4559_v10 = vmul.f32 %v4544_v30, %v13333_v22 }
 0x50f   : > { %v4567_v52 = vadd.f32 1e-05, %v4559_v10  ;;  %v15498_v10 = vld [vmem:[#allocation39_spill] sm:$0xff] }
 0x511   : > { %10191 = vrsqrt.f32 %v4567_v52  ;;  %vm4581_vm5 = vweird.f32 %v4567_v52 }
 0x513   : > { %v4550_v41 = vpop.xlane.xlu2 %4549 }
 0x514   : > { %v4562_v38 = vmul.f32 %v4550_v41, %v13333_v22  ;;  %v4546_v33 = vpop.xlane.xlu1 %4545  ;;  %v4511_v17 = vpop.xlane.xlu0 %4510 }
 0x515   : > { %v4560_v60 = vmul.f32 %v4546_v33, %v13333_v22  ;;  %v4526_v5 = vmul.f32 %v13333_v22, %v4511_v17 }
 0x516   : > { %v13384_v62 = vadd.f32 1e-05, %v4562_v38 }
 0x517   : > { %v10192_v15 = vpop.eup %10191  ;;  %v4568_v35 = vadd.f32 1e-05, %v4560_v60  ;;  %v13387_v45 = vsub.f32 %v13351_v19, %v4526_v5 }
 0x518   : > { %v4576_v12 = vmul.f32 %v10192_v15, %v4567_v52  ;;  %10193 = vrsqrt.f32 %v13384_v62  ;;  %vm4582_vm4 = vweird.f32 %v10192_v15  ;;  %v13410_v52 = vperm.slane %v15498_v10, 0 }
 0x519   : > { %10195 = vrsqrt.f32 %v4568_v35  ;;  %v4542_v46 = vmul.f32 %v13387_v45, %v13387_v45  ;;  %vm4583_vm6 = vmor %vm4581_vm5, %vm4582_vm4  ;;  %vm4591_vm8 = vweird.f32 %v4568_v35  ;;  %vm4611_vm12 = vweird.f32 %v13384_v62 }
 0x51a   : > { %v4577_v23 = vmul.f32 %v10192_v15, %v4576_v12 }
 0x51b   : > { %4557 = vadd.xlane.f32.xlu0 %v4542_v46 }
 0x51c   : > { %v4578_v55 = vmul.f32 0.5, %v4577_v23  ;;  %v4548_v53 = vpop.xlane.xlu1 %4547  ;;  %v4552_v1 = vpop.xlane.xlu0 %4551 }
 0x51d   : > { %v4561_v8 = vmul.f32 %v4548_v53, %v13333_v22  ;;  %v4563_v25 = vmul.f32 %v4552_v1, %v13333_v22 }
 0x51e   : > { %v13393_v43 = vpop.eup %10193  ;;  %v4579_v63 = vsub.f32 1.5, %v4578_v55 }
 0x51f   : > { %v10196_v6 = vpop.eup %10195  ;;  %v4569_v4 = vadd.f32 1e-05, %v4561_v8  ;;  %v4606_v58 = vmul.f32 %v13393_v43, %v13384_v62  ;;  %v13398_v50 = vadd.f32 1e-05, %v4563_v25  ;;  %vm4612_vm13 = vweird.f32 %v13393_v43 }
 0x520   : > { %v4580_v31 = vmul.f32 %v10192_v15, %v4579_v63  ;;  %v4586_v34 = vmul.f32 %v10196_v6, %v4568_v35  ;;  %vm4592_vm7 = vweird.f32 %v10196_v6  ;;  %vm4613_vm15 = vmor %vm4611_vm12, %vm4612_vm13  ;;  %vm5683_vm12 = vcmask 523264  }
 0x521   : > { %10197 = vrsqrt.f32 %v4569_v4  ;;  %v4607_v21 = vmul.f32 %v13393_v43, %v4606_v58  ;;  %vm4593_vm9 = vmor %vm4591_vm8, %vm4592_vm7  ;;  %vm4601_vm10 = vweird.f32 %v4569_v4  ;;  %vm4621_vm2 = vweird.f32 %v13398_v50 }
 0x522   : > { %v4587_v26 = vmul.f32 %v10196_v6, %v4586_v34  ;;  %v4584_v14 = vsel %vm4583_vm6, %v10192_v15, %v4580_v31  ;;  %10199 = vrsqrt.f32 %v13398_v50  ;;  %vm4823_vm13 = vcmask 1047556  }
 0x523   : > { %v4655_v48 = vmul.f32 %v4584_v14, %v13337_v44  ;;  %v4608_v20 = vmul.f32 0.5, %v4607_v21 }
 0x524   : > { %v4588_v9 = vmul.f32 0.5, %v4587_v26  ;;  %v4554_v51 = vpop.xlane.xlu1 %4553 }
 0x525   : > { %v4564_v16 = vmul.f32 %v4554_v51, %v13333_v22  ;;  %v4666_v30 = vmul.f32 %v13405_v11, %v4655_v48  ;;  %v4609_v7 = vsub.f32 1.5, %v4608_v20  ;;  %v4556_v48 = vpop.xlane.xlu2 %4555 }
 0x526   : > { %v4589_v54 = vsub.f32 1.5, %v4588_v9  ;;  %v4565_v61 = vmul.f32 %v4556_v48, %v13333_v22 }
 0x527   : > { %v10198_v28 = vpop.eup %10197  ;;  %v4572_v13 = vadd.f32 1e-05, %v4564_v16  ;;  %v4610_v5 = vmul.f32 %v13393_v43, %v4609_v7 }
 0x528   : > { %v4590_v3 = vmul.f32 %v10196_v6, %v4589_v54  ;;  %v4596_v42 = vmul.f32 %v10198_v28, %v4569_v4  ;;  %vm4602_vm11 = vweird.f32 %v10198_v28  ;;  %v10200_v41 = vpop.eup %10199  ;;  %v4573_v20 = vadd.f32 1e-05, %v4565_v61  ;;  %v9585_v61 = vld [vmem:[#allocation2 + $0x20] sm:$0xff] }
 0x529   : > { %10201 = vrsqrt.f32 %v4572_v13  ;;  %vm4603_vm14 = vmor %vm4601_vm10, %vm4602_vm11  ;;  %v4616_v35 = vmul.f32 %v10200_v41, %v13398_v50  ;;  %v4614_v53 = vsel %vm4613_vm15, %v13393_v43, %v4610_v5  ;;  %vm4631_vm0 = vweird.f32 %v4572_v13 }
 0x52a   : > { %v4597_v59 = vmul.f32 %v10198_v28, %v4596_v42  ;;  %v4594_v47 = vsel %vm4593_vm9, %v10196_v6, %v4590_v3  ;;  %v4658_v63 = vmul.f32 %v4614_v53, %v13344_v56  ;;  %vm4622_vm3 = vweird.f32 %v10200_v41 }
 0x52b   : > { %v4656_v0 = vmul.f32 %v4594_v47, %v13349_v32  ;;  %v4677_v32 = vadd.f32 %v13410_v52, %v4666_v30  ;;  %v4617_v62 = vmul.f32 %v10200_v41, %v4616_v35  ;;  %vm4623_vm5 = vmor %vm4621_vm2, %vm4622_vm3  ;;  %10203 = vrsqrt.f32 %v4573_v20 }
 0x52c   : > { %v4598_v44 = vmul.f32 0.5, %v4597_v59  ;;  %v4669_v31 = vmul.f32 %v13405_v11, %v4658_v63  ;;  %vm4641_vm6 = vweird.f32 %v4573_v20  ;;  %v9596_v63 = vld [vmem:[#allocation2 + $0x78] sm:$0xff] }
 0x52d   : > { %v4667_v38 = vmul.f32 %v13405_v11, %v4656_v0  ;;  %v4618_v6 = vmul.f32 0.5, %v4617_v62 }
 0x52e   : > { %v4599_v33 = vsub.f32 1.5, %v4598_v44 }
 0x52f   : > { %v10202_v17 = vpop.eup %10201  ;;  %v4678_v60 = vadd.f32 %v13410_v52, %v4667_v38  ;;  %v4619_v58 = vsub.f32 1.5, %v4618_v6  ;;  %v5843_v6 = vsel %vm5683_vm12, %v9596_v63, 0 }
 0x530   : > { %v4600_v15 = vmul.f32 %v10198_v28, %v4599_v33  ;;  %v4626_v12 = vmul.f32 %v10202_v17, %v4572_v13  ;;  %vm4632_vm1 = vweird.f32 %v10202_v17  ;;  %5845 = vmatpush.bf16.xpose.msra.mxu2 %v5843_v6 }
 0x531   : > { %v4685_v46 = vpack.c.bf16 %v4678_v60, %v4677_v32  ;;  %vm4633_vm4 = vmor %vm4631_vm0, %vm4632_vm1  ;;  %v4620_v26 = vmul.f32 %v10200_v41, %v4619_v58  ;;  %v10204_v3 = vpop.eup %10203 }
 0x532   : > { %v4627_v23 = vmul.f32 %v10202_v17, %v4626_v12  ;;  %v4604_v55 = vsel %vm4603_vm14, %v10198_v28, %v4600_v15  ;;  %v4636_v42 = vmul.f32 %v10204_v3, %v4573_v20  ;;  %vm4642_vm7 = vweird.f32 %v10204_v3 }
 0x533   : > { %4761 = vmatmul.bf16.vlgmr.msra.gmra.mxu0 %v4685_v46  ;;  %v4657_v1 = vmul.f32 %v4604_v55, %v13361_v18  ;;  %v4680_v18 = vadd.f32 %v13410_v52, %v4669_v31  ;;  %v4624_v9 = vsel %vm4623_vm5, %v10200_v41, %v4620_v26  ;;  %vm4643_vm8 = vmor %vm4641_vm6, %vm4642_vm7  ;;  %v5709_v20 = vsel %vm5683_vm12, %v9585_v61, 0 }
 0x534   : > { %v4628_v8 = vmul.f32 0.5, %v4627_v23  ;;  %v4659_v14 = vmul.f32 %v4624_v9, %v13358_v49 }
 0x535   : > { %v4668_v4 = vmul.f32 %v13405_v11, %v4657_v1 }
 0x536   : > { %v4629_v25 = vsub.f32 1.5, %v4628_v8  ;;  %v4670_v54 = vmul.f32 %v13405_v11, %v4659_v14 }
 0x537   : > { %v4679_v34 = vadd.f32 %v13410_v52, %v4668_v4  ;;  %v9595_v4 = vld [vmem:[#allocation2 + $0x70] sm:$0xff] }
 0x538   : > { %v4630_v43 = vmul.f32 %v10202_v17, %v4629_v25  ;;  %v4681_v28 = vadd.f32 %v13410_v52, %v4670_v54  ;;  %v9587_v25 = vld [vmem:[#allocation2 + $0x30] sm:$0xff]  ;;  %v5840_v58 = vsel %vm5683_vm12, %v9595_v4, 0 }
 0x539   : > { %v4686_v56 = vpack.c.bf16 %v4680_v18, %v4679_v34  ;;  %v5715_v34 = vsel %vm5683_vm12, %v9587_v25, 0  ;;  %5846 = vmatpush.bf16.xpose.msra.mxu2 %v5840_v58 }
 0x53a   : > { %v4634_v21 = vsel %vm4633_vm4, %v10202_v17, %v4630_v43 }
 0x53b   : > { %v4660_v51 = vmul.f32 %v4634_v21, %v13376_v2  ;;  %v4637_v2 = vmul.f32 %v10204_v3, %v4636_v42  ;;  %v9586_v21 = vld [vmem:[#allocation2 + $0x28] sm:$0xff]  ;;  %v10817_v42 = vmov 1983009808  }
 0x53c   : > { %v5712_v14 = vsel %vm5683_vm12, %v9586_v21, 0 }
 0x53d   : > { %v4671_v16 = vmul.f32 %v13405_v11, %v4660_v51  ;;  %v4638_v0 = vmul.f32 0.5, %v4637_v2  ;;  %v4826_v2 = vunpack.c.l.s4 %v10817_v42 }
 0x53f   : > { %v4682_v50 = vadd.f32 %v13410_v52, %v4671_v16  ;;  %v4639_v30 = vsub.f32 1.5, %v4638_v0  ;;  %v9593_v16 = vld [vmem:[#allocation2 + $0x60] sm:$0xff]  ;;  %v9584_v0 = vld [vmem:[#allocation2 + $0x18] sm:$0xff] }
 0x541   : > { %v4687_v13 = vpack.c.bf16 %v4682_v50, %v4681_v28  ;;  %v4640_v7 = vmul.f32 %v10204_v3, %v4639_v30  ;;  %v5834_v50 = vsel %vm5683_vm12, %v9593_v16, 0 }
 0x543   : > { %4766 = vmatmul.bf16.gmra.mxu0 %v4686_v56  ;;  %v4644_v33 = vsel %vm4643_vm8, %v10204_v3, %v4640_v7  ;;  %v9594_v56 = vld [vmem:[#allocation2 + $0x68] sm:$0xff]  ;;  %v9592_v3 = vld [vmem:[#allocation2 + $0x58] sm:$0xff]  ;;  %v5706_v7 = vsel %vm5683_vm12, %v9584_v0, 0 }
 0x544   : > { %v4661_v32 = vmul.f32 %v4644_v33, %v13366_v36  ;;  %v5837_v51 = vsel %vm5683_vm12, %v9594_v56, 0 }
 0x545   : > { %5847 = vmatpush.bf16.xpose.msra.mxu2 %v5837_v51 }
 0x546   : > { %v4672_v35 = vmul.f32 %v13405_v11, %v4661_v32 }
 0x548   : > { %v4683_v46 = vadd.f32 %v13410_v52, %v4672_v35 }
 0x54d   : > { %5848 = vmatpush.bf16.xpose.msra.mxu2 %v5834_v50 }
 0x553   : > { %4771 = vmatmul.bf16.gmra.mxu0 %v4687_v13 }
 0x58e   : > { %v4558_v59 = vpop.xlane.xlu0 %4557 }
 0x58f   : > { %v4566_v49 = vmul.f32 %v4558_v59, %v13333_v22  ;;  %v5831_v59 = vsel %vm5683_vm12, %v9592_v3, 0 }
 0x590   : > { %5849 = vmatpush.bf16.xpose.msra.mxu2 %v5831_v59 }
 0x591   : > { %v4574_v47 = vadd.f32 1e-05, %v4566_v49  ;;  %v13462_v49 = vunpack.c.0.s8 %v4826_v2 }
 0x593   : > { %10205 = vrsqrt.f32 %v4574_v47  ;;  %vm4651_vm9 = vweird.f32 %v4574_v47 }
 0x599   : > { %v10206_v10 = vpop.eup %10205 }
 0x59a   : > { %v4646_v44 = vmul.f32 %v10206_v10, %v4574_v47  ;;  %vm4652_vm10 = vweird.f32 %v10206_v10 }
 0x59b   : > { %vm4653_vm11 = vmor %vm4651_vm9, %vm4652_vm10 }
 0x59c   : > { %v4647_v41 = vmul.f32 %v10206_v10, %v4646_v44 }
 0x59e   : > { %v4648_v38 = vmul.f32 0.5, %v4647_v41 }
 0x5a0   : > { %v4649_v17 = vsub.f32 1.5, %v4648_v38 }
 0x5a2   : > { %v4650_v60 = vmul.f32 %v10206_v10, %v4649_v17 }
 0x5a4   : > { %v4654_v5 = vsel %vm4653_vm11, %v10206_v10, %v4650_v60 }
 0x5a5   : > { %v4662_v15 = vmul.f32 %v4654_v5, %v13387_v45 }
 0x5a7   : > { %v4673_v12 = vmul.f32 %v13405_v11, %v4662_v15  ;;  %v9588_v11 = vld [vmem:[#allocation2 + $0x38] sm:$0xff]  ;;  %v10818_v15 = vmov 1934713408  }
 0x5a8   : > { %v4848_v35 = vunpack.c.l.s4 %v10818_v15 }
 0x5a9   : > { %v4684_v23 = vadd.f32 %v13410_v52, %v4673_v12  ;;  %v5718_v52 = vsel %vm5683_vm12, %v9588_v11, 0  ;;  %v9591_v11 = vld [vmem:[#allocation2 + $0x50] sm:$0xff] }
 0x5aa   : > { %5720 = vmatpush.bf16.xpose.msra.mxu1 %v5718_v52  ;;  %v13487_v25 = vunpack.c.0.s8 %v4848_v35  ;;  %v5828_v56 = vsel %vm5683_vm12, %v9591_v11, 0 }
 0x5ab   : > { %v4688_v55 = vpack.c.bf16 %v4684_v23, %v4683_v46  ;;  %5850 = vmatpush.bf16.xpose.msra.mxu2 %v5828_v56 }
 0x5ad   : > { %4776 = vmatmul.bf16.gmra.mxu0 %v4688_v55 }
 0x5b0   : > { %v4762_v62 = vpop.f32.mrf.mxu0 }
 0x5b1   : > { %v4782_v1 = vmul.f32 0.125, %v4762_v62 }
 0x5b2   : > { %5721 = vmatpush.bf16.xpose.msra.mxu1 %v5715_v34 }
 0x5b3   : > { %v4822_v30 = vrot.slane %v4782_v1, 4  ;;  %v13466_v44 = vperm.slane %v4782_v1, %v13462_v49 }
 0x5b5   : > { %v4824_v38 = vsel %vm4823_vm13, 0.0, %v4822_v30  ;;  %v4845_v12 = vrot.slane %v13466_v44, 4 }
 0x5b6   : > { %v13477_v46 = vperm.slane %v4824_v38, %v13462_v49 }
 0x5b8   : > { %v4764_v53 = vpop.f32.mrf.mxu0 }
 0x5b9   : > { %v13441_v8 = vmul.f32 0.125, %v4764_v53 }
 0x5ba   : > { %5722 = vmatpush.bf16.xpose.msra.mxu1 %v5712_v14 }
 0x5bb   : > { %v10145_v36 = vpack.i.bf16 %v13441_v8, %v4782_v1  ;;  %v4875_v33 = vrot.slane %v13441_v8, 4 }
 0x5bd   : > { %10146 = vrot.lane.b32.xlu1 %v10145_v36, %s10816_s2  ;;  %v4876_v1 = vsel %vm4823_vm13, 0.0, %v4875_v33  ;;  %v13485_v36 = vperm.slane %v13441_v8, %v13462_v49 }
 0x5be   : > { %v13510_v38 = vperm.slane %v4876_v1, %v13462_v49 }
 0x5bf   : > { %v4897_v11 = vrot.slane %v13485_v36, 4 }
 0x5c0   : > { %v4767_v45 = vpop.f32.mrf.mxu0 }
 0x5c1   : > { %v4784_v43 = vmul.f32 0.125, %v4767_v45 }
 0x5c2   : > { %5723 = vmatpush.bf16.xpose.msra.mxu1 %v5709_v20 }
 0x5c3   : > { %v4927_v47 = vrot.slane %v4784_v43, 4  ;;  %v4932_v32 = vperm.slane %v4784_v43, %v13462_v49 }
 0x5c5   : > { %v4928_v41 = vsel %vm4823_vm13, 0.0, %v4927_v47  ;;  %v4949_v6 = vrot.slane %v4932_v32, 4 }
 0x5c6   : > { %v4936_v60 = vperm.slane %v4928_v41, %v13462_v49 }
 0x5c8   : > { %v4769_v31 = vpop.f32.mrf.mxu0  ;;  %v4961_v52 = vrot.slane %v4936_v60, 4 }
 0x5c9   : > { %v4785_v18 = vmul.f32 0.125, %v4769_v31 }
 0x5ca   : > { %5724 = vmatpush.bf16.xpose.msra.mxu1 %v5706_v7 }
 0x5cb   : > { %v10150_v26 = vpack.i.bf16 %v4785_v18, %v4784_v43  ;;  %v4979_v10 = vrot.slane %v4785_v18, 4  ;;  %v4984_v5 = vperm.slane %v4785_v18, %v13462_v49 }
 0x5cd   : > { %10151 = vrot.lane.b32.xlu2 %v10150_v26, %s10816_s2  ;;  %v4980_v17 = vsel %vm4823_vm13, 0.0, %v4979_v10  ;;  %v5001_v4 = vrot.slane %v4984_v5, 4 }
 0x5ce   : > { %v4988_v23 = vperm.slane %v4980_v17, %v13462_v49 }
 0x5d0   : > { %v4772_v9 = vpop.f32.mrf.mxu0  ;;  %v5013_v18 = vrot.slane %v4988_v23, 4 }
 0x5d1   : > { %v13453_v28 = vmul.f32 0.125, %v4772_v9 }
 0x5d3   : > { %v5031_v55 = vrot.slane %v13453_v28, 4 }
 0x5d5   : > { %v5032_v26 = vsel %vm4823_vm13, 0.0, %v5031_v55 }
 0x5d6   : > { %v13520_v15 = vperm.slane %v5032_v26, %v13462_v49 }
 0x5d8   : > { %v4774_v54 = vpop.f32.mrf.mxu0  ;;  %v5065_v26 = vrot.slane %v13520_v15, 4 }
 0x5d9   : > { %v13455_v13 = vmul.f32 0.125, %v4774_v54 }
 0x5db   : > { %v10155_v48 = vpack.i.bf16 %v13455_v13, %v13453_v28  ;;  %v5083_v62 = vrot.slane %v13455_v13, 4 }
 0x5dd   : > { %10156 = vrot.lane.b32.xlu0 %v10155_v48, %s10816_s2  ;;  %v5084_v8 = vsel %vm4823_vm13, 0.0, %v5083_v62  ;;  %v13526_v62 = vperm.slane %v13455_v13, %v13462_v49 }
 0x627   : > { %v10152_v53 = vpop.permute.xlu2 %10151 }
 0x628   : > { %v10154_v45 = vunpack.i.h.bf16 %v10152_v53  ;;  %v10153_v63 = vunpack.i.l.bf16 %v10152_v53 }
 0x62a   : > { %v4989_v31 = vrot.slane %v10154_v45, 4  ;;  %v4994_v58 = vperm.slane %v10154_v45, %v13462_v49  ;;  %v4937_v34 = vrot.slane %v10153_v63, 4  ;;  %v4942_v43 = vperm.slane %v10153_v63, %v13462_v49 }
 0x62c   : > { %v4990_v21 = vsel %vm4823_vm13, 0.0, %v4989_v31  ;;  %v4999_v9 = vrot.slane %v4994_v58, 4  ;;  %v4938_v51 = vsel %vm4823_vm13, 0.0, %v4937_v34  ;;  %v4947_v14 = vrot.slane %v4942_v43, 4  ;;  %v4777_v31 = vpop.f32.mrf.mxu0 }
 0x62d   : > { %v4998_v16 = vperm.slane %v4990_v21, %v13462_v49  ;;  %v4946_v54 = vperm.slane %v4938_v51, %v13462_v49  ;;  %v4950_v50 = vsel %vm4823_vm13, %v4942_v43, %v4949_v6  ;;  %v5002_v48 = vsel %vm4823_vm13, %v4994_v58, %v5001_v4 }
 0x62e   : > { %v4948_v61 = vsel %vm4823_vm13, %v4947_v14, %v4932_v32  ;;  %v4958_v20 = vperm.slane %v4950_v50, %v13487_v25  ;;  %v5000_v3 = vsel %vm4823_vm13, %v4999_v9, %v4984_v5  ;;  %v5010_v42 = vperm.slane %v5002_v48, %v13487_v25 }
 0x62f   : > { %v5011_v2 = vrot.slane %v4998_v16, 4  ;;  %v4954_v59 = vperm.slane %v4948_v61, %v13487_v25  ;;  %v4959_v47 = vrot.slane %v4946_v54, 4  ;;  %v4962_v0 = vsel %vm4823_vm13, %v4946_v54, %v4961_v52 }
 0x630   : > { %v4970_v30 = vperm.slane %v4962_v0, %v13487_v25  ;;  %v4973_v10 = vrot.slane %v4958_v20, 4  ;;  %v5006_v7 = vperm.slane %v5000_v3, %v13487_v25  ;;  %v5014_v41 = vsel %vm4823_vm13, %v4998_v16, %v5013_v18  ;;  %v10147_v18 = vpop.permute.xlu1 %10146 }
 0x631   : > { %v4960_v33 = vsel %vm4823_vm13, %v4959_v47, %v4936_v60  ;;  %v5012_v17 = vsel %vm4823_vm13, %v5011_v2, %v4988_v23  ;;  %v5022_v32 = vperm.slane %v5014_v41, %v13487_v25  ;;  %v13517_v5 = vperm.slane %v13453_v28, %v13462_v49 }
 0x632   : > { %v4966_v35 = vperm.slane %v4960_v33, %v13487_v25  ;;  %v5018_v55 = vperm.slane %v5012_v17, %v13487_v25  ;;  %v13529_v60 = vperm.slane %v5084_v8, %v13462_v49  ;;  %v4971_v23 = vrot.slane %v4954_v59, 4 }
 0x633   : > { %v4974_v53 = vsel %vm4823_vm13, 0.0, %v4973_v10  ;;  %v4857_v28 = vrot.slane %v13477_v46, 4  ;;  %v4977_v1 = vrot.slane %v4970_v30, 4  ;;  %v5023_v45 = vrot.slane %v5006_v7, 4 }
 0x634   : > { %v5025_v63 = vrot.slane %v5010_v42, 4  ;;  %v4909_v6 = vrot.slane %v13510_v38, 4  ;;  %v4975_v52 = vrot.slane %v4966_v35, 4  ;;  %v5029_v4 = vrot.slane %v5022_v32, 4 }
 0x635   : > { %v5053_v13 = vrot.slane %v13517_v5, 4  ;;  %v5027_v58 = vrot.slane %v5018_v55, 4  ;;  %v13537_v34 = vsel %vm4823_vm13, %v4973_v10, %v4954_v59  ;;  %v5320_v43 = vrot.slane %v4974_v53, 4 }
 0x636   : > { %v5105_v8 = vrot.slane %v13526_v62, 4  ;;  %v5117_v56 = vrot.slane %v13529_v60, 4  ;;  %v4972_v21 = vsel %vm4823_vm13, 0.0, %v4971_v23  ;;  %v13544_v9 = vsel %vm4823_vm13, 0.0, %v4977_v1 }
 0x637   : > { %v5024_v51 = vsel %vm4823_vm13, 0.0, %v5023_v45  ;;  %v5026_v14 = vsel %vm4823_vm13, 0.0, %v5025_v63  ;;  %v13548_v16 = vmul.f32 0.125, %v4777_v31  ;;  %v13551_v54 = vsel %vm4823_vm13, 0.0, %v4975_v52 }
 0x638   : > { %v13554_v50 = vsel %vm4823_vm13, 0.0, %v5029_v4  ;;  %v5319_v48 = vperm.slane %v13537_v34, %v13462_v49  ;;  %v10149_v61 = vunpack.i.h.bf16 %v10147_v18  ;;  %v13559_v20 = vsel %vm4823_vm13, 0.0, %v5027_v58 }
 0x639   : > { %v5321_v3 = vsel %vm4823_vm13, %v5320_v43, %v4972_v21  ;;  %v13563_v42 = vsel %vm4823_vm13, %v5025_v63, %v5006_v7  ;;  %v10148_v2 = vunpack.i.l.bf16 %v10147_v18  ;;  %v13566_v59 = vsel %vm4823_vm13, %v4977_v1, %v4966_v35 }
 0x63a   : > { %v5331_v47 = vrot.slane %v13544_v9, 4  ;;  %v5358_v0 = vrot.slane %v5026_v14, 4  ;;  %v4885_v30 = vrot.slane %v10149_v61, 4  ;;  %v13570_v10 = vsel %vm4823_vm13, %v5029_v4, %v5018_v55 }
 0x63b   : > { %v4890_v41 = vperm.slane %v10149_v61, %v13462_v49  ;;  %v4833_v33 = vrot.slane %v10148_v2, 4  ;;  %v4838_v17 = vperm.slane %v10148_v2, %v13462_v49  ;;  %v5325_v32 = vperm.slane %v5321_v3, %v13462_v49 }
 0x63c   : > { %v5369_v35 = vrot.slane %v13554_v50, 4  ;;  %v4886_v23 = vsel %vm4823_vm13, 0.0, %v4885_v30  ;;  %v5359_v63 = vsel %vm4823_vm13, %v5358_v0, %v5024_v51  ;;  %v15499_v34 = vperm.slane %v13563_v42, %v13462_v49 }
 0x63d   : > { %v4894_v53 = vperm.slane %v4886_v23, %v13462_v49  ;;  %v4895_v1 = vrot.slane %v4890_v41, 4  ;;  %v4834_v55 = vsel %vm4823_vm13, 0.0, %v4833_v33  ;;  %v4843_v45 = vrot.slane %v4838_v17, 4  ;;  %v4779_v33 = vpop.f32.mrf.mxu0 }
 0x63e   : > { %v4842_v52 = vperm.slane %v4834_v55, %v13462_v49  ;;  %v4846_v4 = vsel %vm4823_vm13, %v4838_v17, %v4845_v12  ;;  %v4898_v31 = vsel %vm4823_vm13, %v4890_v41, %v4897_v11  ;;  %v5368_v50 = vperm.slane %v13570_v10, %v13462_v49 }
 0x63f   : > { %v4907_v58 = vrot.slane %v4894_v53, 4  ;;  %v4844_v43 = vsel %vm4823_vm13, %v4843_v45, %v13466_v44  ;;  %v4854_v18 = vperm.slane %v4846_v4, %v13487_v25  ;;  %v4896_v21 = vsel %vm4823_vm13, %v4895_v1, %v13485_v36 }
 0x640   : > { %v4850_v14 = vperm.slane %v4844_v43, %v13487_v25  ;;  %v4855_v51 = vrot.slane %v4842_v52, 4  ;;  %v4858_v61 = vsel %vm4823_vm13, %v4842_v52, %v4857_v28  ;;  %v4902_v3 = vperm.slane %v4896_v21, %v13487_v25 }
 0x641   : > { %v4866_v12 = vperm.slane %v4858_v61, %v13487_v25  ;;  %v4869_v2 = vrot.slane %v4854_v18, 4  ;;  %v4906_v11 = vperm.slane %v4898_v31, %v13487_v25  ;;  %v4908_v44 = vsel %vm4823_vm13, %v4907_v58, %v13510_v38 }
 0x642   : > { %v4856_v0 = vsel %vm4823_vm13, %v4855_v51, %v13477_v46  ;;  %v4867_v30 = vrot.slane %v4850_v14, 4  ;;  %v4910_v36 = vsel %vm4823_vm13, %v4894_v53, %v4909_v6  ;;  %v4914_v41 = vperm.slane %v4908_v44, %v13487_v25 }
 0x643   : > { %v5363_v28 = vperm.slane %v5359_v63, %v13462_v49  ;;  %v4862_v17 = vperm.slane %v4856_v0, %v13487_v25  ;;  %v4873_v23 = vrot.slane %v4866_v12, 4  ;;  %v4918_v1 = vperm.slane %v4910_v36, %v13487_v25  ;;  %v9583_v12 = vld [vmem:[#allocation2 + $0x10] sm:$0xff]  ;;  %v9582_v0 = vld [vmem:[#allocation2 + $0x8] sm:$0xff] }
 0x644   : > { %v4870_v55 = vsel %vm4823_vm13, 0.0, %v4869_v2  ;;  %v4919_v45 = vrot.slane %v4902_v3, 4  ;;  %v4921_v38 = vrot.slane %v4906_v11, 4  ;;  %v4923_v52 = vrot.slane %v4914_v41, 4  ;;  %v9590_v11 = vld [vmem:[#allocation2 + $0x48] sm:$0xff] }
 0x645   : > { %v4871_v4 = vrot.slane %v4862_v17, 4  ;;  %v4925_v46 = vrot.slane %v4918_v1, 4  ;;  %v5239_v31 = vsel %vm4823_vm13, %v4869_v2, %v4850_v14  ;;  %v13608_v6 = vmul.f32 0.125, %v4779_v33 }
 0x646   : > { %v13610_v53 = vrot.slane %v5325_v32, 4  ;;  %v4868_v63 = vsel %vm4823_vm13, 0.0, %v4867_v30  ;;  %v4874_v58 = vsel %vm4823_vm13, 0.0, %v4873_v23  ;;  %v4922_v43 = vsel %vm4823_vm13, 0.0, %v4921_v38  ;;  %v9589_v30 = vld [vmem:[#allocation2 + $0x40] sm:$0xff] }
 0x647   : > { %v13615_v18 = vrot.slane %v5363_v28, 4  ;;  %v4920_v21 = vsel %vm4823_vm13, 0.0, %v4919_v45  ;;  %v4926_v51 = vsel %vm4823_vm13, 0.0, %v4925_v46  ;;  %v5244_v61 = vrot.slane %v4870_v55, 4  ;;  %v9581_v45 = vld [vmem:[#allocation2] sm:$0xff] }
 0x648   : > { %v4872_v14 = vsel %vm4823_vm13, 0.0, %v4871_v4  ;;  %v4924_v32 = vsel %vm4823_vm13, 0.0, %v4923_v52  ;;  %v5243_v2 = vperm.slane %v5239_v31, %v13462_v49  ;;  %v5282_v44 = vrot.slane %v4922_v43, 4 }
 0x649   : > { %v5245_v36 = vsel %vm4823_vm13, %v5244_v61, %v4868_v63  ;;  %v5250_v33 = vsel %vm4823_vm13, %v4873_v23, %v4862_v17  ;;  %v5255_v28 = vrot.slane %v4874_v58, 4  ;;  %v5277_v1 = vsel %vm4823_vm13, %v4921_v38, %v4902_v3 }
 0x64a   : > { %v5249_v55 = vperm.slane %v5245_v36, %v13462_v49  ;;  %v5283_v7 = vsel %vm4823_vm13, %v5282_v44, %v4920_v21  ;;  %v5293_v4 = vrot.slane %v4926_v51, 4  ;;  %v10160_v52 = vpack.i.bf16 %v13608_v6, %v13548_v16 }
 0x64b   : > { %v5287_v31 = vperm.slane %v5283_v7, %v13462_v49  ;;  %v5288_v43 = vsel %vm4823_vm13, %v4925_v46, %v4914_v41  ;;  %v5703_v63 = vsel %vm5683_vm12, %v9583_v12, 0  ;;  %v5825_v17 = vsel %vm5683_vm12, %v9590_v11, 0 }
 0x64c   : > { %v5261_v23 = vrot.slane %v5249_v55, 4  ;;  %v5281_v3 = vperm.slane %v5277_v1, %v13462_v49  ;;  %10161 = vrot.lane.b32.xlu2 %v10160_v52, %s10816_s2  ;;  %5725 = vmatpush.bf16.xpose.msra.mxu1 %v5703_v63  ;;  %v5700_v38 = vsel %vm5683_vm12, %v9582_v0, 0  ;;  %v5822_v58 = vsel %vm5683_vm12, %v9589_v30, 0 }
 0x64d   : > { %v5299_v21 = vrot.slane %v5287_v31, 4  ;;  %5851 = vmatpush.bf16.xpose.msra.mxu2 %v5825_v17  ;;  %v13638_v7 = vsel %vm5683_vm12, %v9581_v45, 0  ;;  %v5254_v41 = vperm.slane %v5250_v33, %v13462_v49  ;;  %v5256_v46 = vsel %vm4823_vm13, %v5255_v28, %v4872_v14 }
 0x64e   : > { %v5260_v51 = vperm.slane %v5256_v46, %v13462_v49  ;;  %v5262_v61 = vsel %vm4823_vm13, %v5261_v23, %v5243_v2  ;;  %v5292_v12 = vperm.slane %v5288_v43, %v13462_v49  ;;  %v5294_v11 = vsel %vm4823_vm13, %v5293_v4, %v4924_v32 }
 0x64f   : > { %v10157_v44 = vpop.permute.xlu0 %10156  ;;  %v13647_v0 = vperm.slane %v5262_v61, %v13487_v25  ;;  %v5298_v30 = vperm.slane %v5294_v11, %v13462_v49  ;;  %v5300_v36 = vsel %vm4823_vm13, %v5299_v21, %v5281_v3  ;;  %v5330_v2 = vperm.slane %v13566_v59, %v13462_v49 }
 0x650   : > { %v10159_v1 = vunpack.i.h.bf16 %v10157_v44  ;;  %v5267_v33 = vrot.slane %v5260_v51, 4  ;;  %v13652_v14 = vperm.slane %v5300_v36, %v13487_v25  ;;  %v10158_v28 = vunpack.i.l.bf16 %v10157_v44 }
 0x651   : > { %v5275_v45 = vrot.slane %v13647_v0, 4  ;;  %v5305_v32 = vrot.slane %v5298_v30, 4  ;;  %v13673_v61 = vsel %vm4823_vm13, %v5331_v47, %v13551_v54 }
 0x652   : > { %v5093_v55 = vrot.slane %v10159_v1, 4  ;;  %v5098_v4 = vperm.slane %v10159_v1, %v13462_v49  ;;  %v5268_v52 = vsel %vm4823_vm13, %v5267_v33, %v5254_v41  ;;  %v5313_v31 = vrot.slane %v13652_v14, 4 }
 0x653   : > { %v5041_v43 = vrot.slane %v10158_v28, 4  ;;  %v5046_v63 = vperm.slane %v10158_v28, %v13462_v49  ;;  %v5272_v17 = vperm.slane %v5268_v52, %v13487_v25  ;;  %v5306_v23 = vsel %vm4823_vm13, %v5305_v32, %v5292_v12 }
 0x654   : > { %v5094_v3 = vsel %vm4823_vm13, 0.0, %v5093_v55  ;;  %v5103_v21 = vrot.slane %v5098_v4, 4  ;;  %5726 = vmatpush.bf16.xpose.msra.mxu1 %v5700_v38  ;;  %v5310_v46 = vperm.slane %v5306_v23, %v13487_v25  ;;  %v5106_v41 = vsel %vm4823_vm13, %v5098_v4, %v5105_v8 }
 0x655   : > { %v5102_v51 = vperm.slane %v5094_v3, %v13462_v49  ;;  %5852 = vmatpush.bf16.xpose.msra.mxu2 %v5822_v58  ;;  %v5276_v12 = vsel %vm4823_vm13, %v5272_v17, %v5275_v45  ;;  %v5114_v11 = vperm.slane %v5106_v41, %v13487_v25  ;;  %v5042_v44 = vsel %vm4823_vm13, 0.0, %v5041_v43 }
 0x656   : > { %v5104_v38 = vsel %vm4823_vm13, %v5103_v21, %v13526_v62  ;;  %v5314_v30 = vsel %vm4823_vm13, %v5310_v46, %v5313_v31  ;;  %v5551_v36 = vpack.c.bf16 %v5276_v12, %v5276_v12  ;;  %v5051_v58 = vrot.slane %v5046_v63, 4 }
 0x657   : > { %v5110_v8 = vperm.slane %v5104_v38, %v13487_v25  ;;  %v5115_v1 = vrot.slane %v5102_v51, 4  ;;  %v5552_v9 = vpack.c.bf16 %v5314_v30, %v5314_v30  ;;  %v5118_v54 = vsel %vm4823_vm13, %v5102_v51, %v5117_v56 }
 0x658   : > { %v5129_v47 = vrot.slane %v5114_v11, 4  ;;  %v5757_v33 = vunpack.c.l.b16 %v5551_v36  ;;  %v5126_v28 = vperm.slane %v5118_v54, %v13487_v25  ;;  %v5050_v23 = vperm.slane %v5042_v44, %v13462_v49 }
 0x659   : > { %v5116_v62 = vsel %vm4823_vm13, %v5115_v1, %v13529_v60  ;;  %v5127_v45 = vrot.slane %v5110_v8, 4  ;;  %v5758_v32 = vunpack.c.l.b16 %v5552_v9  ;;  %v5052_v60 = vsel %vm4823_vm13, %v5051_v58, %v13517_v5 }
 0x65a   : > { %v5122_v55 = vperm.slane %v5116_v62, %v13487_v25  ;;  %v5130_v4 = vsel %vm4823_vm13, 0.0, %v5129_v47  ;;  %v13691_v52 = vsel %vm4823_vm13, %v5129_v47, %v5110_v8  ;;  %v5133_v56 = vrot.slane %v5126_v28, 4 }
 0x65b   : > { %v5128_v31 = vsel %vm4823_vm13, 0.0, %v5127_v45  ;;  %v5434_v43 = vrot.slane %v5130_v4, 4  ;;  %v5765_v3 = vpack.c.b16 %v5758_v32, %v5757_v33  ;;  %v5054_v51 = vsel %vm4823_vm13, %v5046_v63, %v5053_v13 }
 0x65c   : > { %v5131_v21 = vrot.slane %v5122_v55, 4  ;;  %5727 = vmatpush.bf16.xpose.msra.mxu1 %v13638_v7  ;;  %v13702_v41 = vsel %vm4823_vm13, 0.0, %v5133_v56  ;;  %v5433_v12 = vperm.slane %v13691_v52, %v13462_v49  ;;  %v5058_v11 = vperm.slane %v5052_v60, %v13487_v25 }
 0x65d   : > { %v5435_v38 = vsel %vm4823_vm13, %v5434_v43, %v5128_v31  ;;  %9066 = vmatmul.msk.bf16.vlgmr.msra.gmra.mxu2 %vm5683_vm12, %v5765_v3  ;;  %v13712_v13 = vsel %vm4823_vm13, %v5133_v56, %v5122_v55  ;;  %v5062_v7 = vperm.slane %v5054_v51, %v13487_v25  ;;  %v5063_v63 = vrot.slane %v5050_v23, 4 }
 0x65e   : > { %v5132_v44 = vsel %vm4823_vm13, 0.0, %v5131_v21  ;;  %v5439_v5 = vperm.slane %v5435_v38, %v13462_v49  ;;  %v5066_v30 = vsel %vm4823_vm13, %v5050_v23, %v5065_v26  ;;  %v5075_v36 = vrot.slane %v5058_v11, 4 }
 0x65f   : > { %v5273_v8 = vrot.slane %v5272_v17, 4  ;;  %v5445_v1 = vrot.slane %v13702_v41, 4  ;;  %v5074_v9 = vperm.slane %v5066_v30, %v13487_v25  ;;  %v5077_v54 = vrot.slane %v5062_v7, 4 }
 0x660   : > { %v5311_v47 = vrot.slane %v5310_v46, 4  ;;  %v5451_v58 = vrot.slane %v5439_v5, 4  ;;  %v5064_v33 = vsel %vm4823_vm13, %v5063_v63, %v13520_v15  ;;  %v5076_v62 = vsel %vm4823_vm13, 0.0, %v5075_v36 }
 0x661   : > { %v5274_v28 = vsel %vm4823_vm13, %v5273_v8, %v13647_v0  ;;  %v5070_v45 = vperm.slane %v5064_v33, %v13487_v25  ;;  %v5078_v26 = vsel %vm4823_vm13, 0.0, %v5077_v54  ;;  %v5081_v17 = vrot.slane %v5074_v9, 4 }
 0x662   : > { %v5391_v32 = vsel %vm4823_vm13, %v5077_v54, %v5058_v11  ;;  %v5396_v55 = vrot.slane %v5078_v26, 4  ;;  %v5312_v46 = vsel %vm4823_vm13, %v5311_v47, %v13652_v14  ;;  %v5543_v4 = vpack.c.bf16 %v5274_v28, %v5274_v28 }
 0x663   : > { %v5336_v15 = vperm.slane %v13673_v61, %v13462_v49  ;;  %v5079_v31 = vrot.slane %v5070_v45, 4  ;;  %v5082_v56 = vsel %vm4823_vm13, 0.0, %v5081_v17  ;;  %v5395_v0 = vperm.slane %v5391_v32, %v13462_v49 }
 0x664   : > { %v5544_v43 = vpack.c.bf16 %v5312_v46, %v5312_v46  ;;  %v5397_v23 = vsel %vm4823_vm13, %v5396_v55, %v5076_v62  ;;  %v5407_v3 = vrot.slane %v5082_v56, 4  ;;  %v5631_v21 = vunpack.c.l.b16 %v5543_v4 }
 0x665   : > { %v5338_v14 = vsel %vm4823_vm13, %v13610_v53, %v5319_v48  ;;  %v5080_v60 = vsel %vm4823_vm13, 0.0, %v5079_v31  ;;  %v5401_v61 = vperm.slane %v5397_v23, %v13462_v49  ;;  %v5402_v38 = vsel %vm4823_vm13, %v5081_v17, %v5070_v45 }
 0x666   : > { %v5632_v51 = vunpack.c.l.b16 %v5544_v43  ;;  %v5342_v41 = vperm.slane %v5338_v14, %v13487_v25  ;;  %v5343_v11 = vrot.slane %v5336_v15, 4  ;;  %v5370_v5 = vsel %vm4823_vm13, %v5369_v35, %v13559_v20 }
 0x667   : > { %v5376_v48 = vsel %vm4823_vm13, %v13615_v18, %v15499_v34  ;;  %v5413_v53 = vrot.slane %v5401_v61, 4  ;;  %v5374_v30 = vperm.slane %v5370_v5, %v13462_v49  ;;  %v5408_v42 = vsel %vm4823_vm13, %v5407_v3, %v5080_v60 }
 0x668   : > { %v5639_v7 = vpack.c.b16 %v5632_v51, %v5631_v21  ;;  %v5351_v63 = vrot.slane %v5342_v41, 4  ;;  %v5344_v36 = vsel %vm4823_vm13, %v5343_v11, %v5330_v2  ;;  %v5380_v20 = vperm.slane %v5376_v48, %v13487_v25 }
 0x669   : > { %v5348_v35 = vperm.slane %v5344_v36, %v13487_v25  ;;  %v5381_v18 = vrot.slane %v5374_v30, 4  ;;  %v5412_v8 = vperm.slane %v5408_v42, %v13462_v49  ;;  %v5414_v9 = vsel %vm4823_vm13, %v5413_v53, %v5395_v0 }
 0x66a   : > { %9030 = vmatmul.msk.bf16.vlgmr.msra.gmra.mxu1 %vm5683_vm12, %v5639_v7  ;;  %v5389_v54 = vrot.slane %v5380_v20, 4  ;;  %v5406_v59 = vperm.slane %v5402_v38, %v13462_v49  ;;  %v5418_v2 = vperm.slane %v5414_v9, %v13487_v25  ;;  %v5446_v10 = vsel %vm4823_vm13, %v5445_v1, %v5132_v44 }
 0x66b   : > { %v5352_v47 = vsel %vm4823_vm13, %v5348_v35, %v5351_v63  ;;  %v5382_v33 = vsel %vm4823_vm13, %v5381_v18, %v5368_v50  ;;  %v5349_v62 = vrot.slane %v5348_v35, 4  ;;  %v5419_v28 = vrot.slane %v5412_v8, 4 }
 0x66c   : > { %v5386_v45 = vperm.slane %v5382_v33, %v13487_v25  ;;  %v5553_v26 = vpack.c.bf16 %v5352_v47, %v5352_v47  ;;  %v5444_v17 = vperm.slane %v13712_v13, %v13462_v49  ;;  %v5450_v32 = vperm.slane %v5446_v10, %v13462_v49 }
 0x66d   : > { %v5350_v55 = vsel %vm4823_vm13, %v5349_v62, %v5342_v41  ;;  %v5420_v46 = vsel %vm4823_vm13, %v5419_v28, %v5406_v59  ;;  %v5427_v4 = vrot.slane %v5418_v2, 4  ;;  %v5452_v44 = vsel %vm4823_vm13, %v5451_v58, %v5433_v12 }
 0x66e   : > { %v5390_v1 = vsel %vm4823_vm13, %v5386_v45, %v5389_v54  ;;  %v5759_v15 = vunpack.c.l.b16 %v5553_v26  ;;  %v5387_v31 = vrot.slane %v5386_v45, 4  ;;  %v5545_v56 = vpack.c.bf16 %v5350_v55, %v5350_v55 }
 0x66f   : > { %v5554_v0 = vpack.c.bf16 %v5390_v1, %v5390_v1  ;;  %v5424_v13 = vperm.slane %v5420_v46, %v13487_v25  ;;  %v5456_v43 = vperm.slane %v5452_v44, %v13487_v25  ;;  %v5457_v23 = vrot.slane %v5450_v32, 4 }
 0x670   : > { %v5388_v3 = vsel %vm4823_vm13, %v5387_v31, %v5380_v20  ;;  %v5633_v21 = vunpack.c.l.b16 %v5545_v56  ;;  %v5135_v9 = vrot.slane %v13548_v16, 4  ;;  %v5187_v54 = vrot.slane %v13608_v6, 4 }
 0x671   : > { %v5760_v14 = vunpack.c.l.b16 %v5554_v0  ;;  %v5546_v60 = vpack.c.bf16 %v5388_v3, %v5388_v3  ;;  %v5428_v52 = vsel %vm4823_vm13, %v5424_v13, %v5427_v4  ;;  %v5458_v12 = vsel %vm4823_vm13, %v5457_v23, %v5444_v17 }
 0x672   : > { %v5462_v58 = vperm.slane %v5458_v12, %v13487_v25  ;;  %v5465_v61 = vrot.slane %v5456_v43, 4  ;;  %v5555_v51 = vpack.c.bf16 %v5428_v52, %v5428_v52  ;;  %v5425_v41 = vrot.slane %v5424_v13, 4 }
 0x673   : > { %v5766_v38 = vpack.c.b16 %v5760_v14, %v5759_v15  ;;  %v5634_v11 = vunpack.c.l.b16 %v5546_v60  ;;  %v5136_v59 = vsel %vm4823_vm13, 0.0, %v5135_v9  ;;  %v5140_v10 = vperm.slane %v13548_v16, %v13462_v49 }
 0x674   : > { %v5466_v5 = vsel %vm4823_vm13, %v5462_v58, %v5465_v61  ;;  %v5426_v34 = vsel %vm4823_vm13, %v5425_v41, %v5418_v2  ;;  %v5463_v48 = vrot.slane %v5462_v58, 4  ;;  %v5761_v63 = vunpack.c.l.b16 %v5555_v51 }
 0x675   : > { %9067 = vmatmul.msk.bf16.gmra.mxu2 %vm5683_vm12, %v5766_v38  ;;  %v5640_v53 = vpack.c.b16 %v5634_v11, %v5633_v21  ;;  %v5556_v7 = vpack.c.bf16 %v5466_v5, %v5466_v5  ;;  %v5547_v30 = vpack.c.bf16 %v5426_v34, %v5426_v34  ;;  %v5188_v2 = vsel %vm4823_vm13, 0.0, %v5187_v54 }
 0x676   : > { %v5464_v36 = vsel %vm4823_vm13, %v5463_v48, %v5456_v43  ;;  %v5144_v47 = vperm.slane %v5136_v59, %v13462_v49  ;;  %v5192_v33 = vperm.slane %v13608_v6, %v13462_v49  ;;  %v5196_v62 = vperm.slane %v5188_v2, %v13462_v49 }
 0x677   : > { %v5762_v50 = vunpack.c.l.b16 %v5556_v7  ;;  %v5548_v20 = vpack.c.bf16 %v5464_v36, %v5464_v36  ;;  %v5635_v42 = vunpack.c.l.b16 %v5547_v30  ;;  %v5157_v4 = vrot.slane %v5140_v10, 4 }
 0x678   : > { %v5169_v44 = vrot.slane %v5144_v47, 4  ;;  %v5209_v1 = vrot.slane %v5192_v33, 4  ;;  %v5221_v16 = vrot.slane %v5196_v62, 4 }
 0x679   : > { %v5767_v35 = vpack.c.b16 %v5762_v50, %v5761_v63  ;;  %v5636_v18 = vunpack.c.l.b16 %v5548_v20 }
 0x67a   : > { %9031 = vmatmul.msk.bf16.gmra.mxu1 %vm5683_vm12, %v5640_v53 }
 0x67b   : > { %v5641_v8 = vpack.c.b16 %v5636_v18, %v5635_v42 }
 0x685   : > { %9068 = vmatmul.msk.bf16.gmra.mxu2 %vm5683_vm12, %v5767_v35 }
 0x68a   : > { %9032 = vmatmul.msk.bf16.gmra.mxu1 %vm5683_vm12, %v5641_v8 }
 0x6a6   : > { %v10162_v28 = vpop.permute.xlu2 %10161 }
 0x6a7   : > { %v10164_v45 = vunpack.i.h.bf16 %v10162_v28  ;;  %v10163_v26 = vunpack.i.l.bf16 %v10162_v28 }
 0x6a9   : > { %v5197_v17 = vrot.slane %v10164_v45, 4  ;;  %v5202_v32 = vperm.slane %v10164_v45, %v13462_v49  ;;  %v5145_v55 = vrot.slane %v10163_v26, 4  ;;  %v5150_v46 = vperm.slane %v10163_v26, %v13462_v49 }
 0x6ab   : > { %v5198_v15 = vsel %vm4823_vm13, 0.0, %v5197_v17  ;;  %v5207_v31 = vrot.slane %v5202_v32, 4  ;;  %v5146_v6 = vsel %vm4823_vm13, 0.0, %v5145_v55  ;;  %v5155_v56 = vrot.slane %v5150_v46, 4 }
 0x6ac   : > { %v5206_v0 = vperm.slane %v5198_v15, %v13462_v49  ;;  %v5154_v13 = vperm.slane %v5146_v6, %v13462_v49  ;;  %v5158_v43 = vsel %vm4823_vm13, %v5150_v46, %v5157_v4  ;;  %v5210_v23 = vsel %vm4823_vm13, %v5202_v32, %v5209_v1 }
 0x6ad   : > { %v5156_v3 = vsel %vm4823_vm13, %v5155_v56, %v5140_v10  ;;  %v5166_v21 = vperm.slane %v5158_v43, %v13487_v25  ;;  %v5208_v14 = vsel %vm4823_vm13, %v5207_v31, %v5192_v33  ;;  %v5218_v60 = vperm.slane %v5210_v23, %v13487_v25 }
 0x6ae   : > { %v5219_v52 = vrot.slane %v5206_v0, 4  ;;  %v5162_v12 = vperm.slane %v5156_v3, %v13487_v25  ;;  %v5167_v58 = vrot.slane %v5154_v13, 4  ;;  %v5170_v61 = vsel %vm4823_vm13, %v5154_v13, %v5169_v44 }
 0x6af   : > { %v5178_v51 = vperm.slane %v5170_v61, %v13487_v25  ;;  %v5181_v41 = vrot.slane %v5166_v21, 4  ;;  %v5214_v38 = vperm.slane %v5208_v14, %v13487_v25  ;;  %v5222_v11 = vsel %vm4823_vm13, %v5206_v0, %v5221_v16 }
 0x6b0   : > { %v5168_v5 = vsel %vm4823_vm13, %v5167_v58, %v5144_v47  ;;  %v5179_v34 = vrot.slane %v5162_v12, 4  ;;  %v5220_v48 = vsel %vm4823_vm13, %v5219_v52, %v5196_v62  ;;  %v5230_v53 = vperm.slane %v5222_v11, %v13487_v25 }
 0x6b1   : > { %v5174_v7 = vperm.slane %v5168_v5, %v13487_v25  ;;  %v5185_v63 = vrot.slane %v5178_v51, 4  ;;  %v5226_v30 = vperm.slane %v5220_v48, %v13487_v25  ;;  %v5182_v36 = vsel %vm4823_vm13, 0.0, %v5181_v41 }
 0x6b2   : > { %v5231_v50 = vrot.slane %v5214_v38, 4  ;;  %v5233_v20 = vrot.slane %v5218_v60, 4  ;;  %v5237_v42 = vrot.slane %v5230_v53, 4  ;;  %v5180_v9 = vsel %vm4823_vm13, 0.0, %v5179_v34 }
 0x6b3   : > { %v5183_v35 = vrot.slane %v5174_v7, 4  ;;  %v5186_v18 = vsel %vm4823_vm13, 0.0, %v5185_v63  ;;  %v5235_v8 = vrot.slane %v5226_v30, 4  ;;  %v5472_v47 = vrot.slane %v5182_v36, 4 }
 0x6b4   : > { %v5234_v54 = vsel %vm4823_vm13, 0.0, %v5233_v20  ;;  %v5238_v59 = vsel %vm4823_vm13, 0.0, %v5237_v42  ;;  %v5232_v10 = vsel %vm4823_vm13, 0.0, %v5231_v50  ;;  %v5483_v62 = vrot.slane %v5186_v18, 4 }
 0x6b5   : > { %v5184_v2 = vsel %vm4823_vm13, 0.0, %v5183_v35  ;;  %v5236_v33 = vsel %vm4823_vm13, 0.0, %v5235_v8  ;;  %v5510_v28 = vrot.slane %v5234_v54, 4  ;;  %v5467_v45 = vsel %vm4823_vm13, %v5181_v41, %v5162_v12 }
 0x6b6   : > { %v5473_v26 = vsel %vm4823_vm13, %v5472_v47, %v5180_v9  ;;  %v5478_v17 = vsel %vm4823_vm13, %v5185_v63, %v5174_v7  ;;  %v5521_v32 = vrot.slane %v5238_v59, 4  ;;  %v5505_v46 = vsel %vm4823_vm13, %v5233_v20, %v5214_v38 }
 0x6b7   : > { %v5477_v55 = vperm.slane %v5473_v26, %v13462_v49  ;;  %v5511_v4 = vsel %vm4823_vm13, %v5510_v28, %v5232_v10  ;;  %v5484_v44 = vsel %vm4823_vm13, %v5483_v62, %v5184_v2  ;;  %v5516_v16 = vsel %vm4823_vm13, %v5237_v42, %v5226_v30 }
 0x6b8   : > { %v5515_v1 = vperm.slane %v5511_v4, %v13462_v49  ;;  %v5488_v15 = vperm.slane %v5484_v44, %v13462_v49  ;;  %v5522_v31 = vsel %vm4823_vm13, %v5521_v32, %v5236_v33  ;;  %v5471_v6 = vperm.slane %v5467_v45, %v13462_v49 }
 0x6b9   : > { %v5489_v56 = vrot.slane %v5477_v55, 4  ;;  %v5526_v0 = vperm.slane %v5522_v31, %v13462_v49  ;;  %v5509_v13 = vperm.slane %v5505_v46, %v13462_v49  ;;  %v5482_v23 = vperm.slane %v5478_v17, %v13462_v49 }
 0x6ba   : > { %v5527_v43 = vrot.slane %v5515_v1, 4  ;;  %v5495_v3 = vrot.slane %v5488_v15, 4  ;;  %v5520_v14 = vperm.slane %v5516_v16, %v13462_v49 }
 0x6bb   : > { %v5490_v21 = vsel %vm4823_vm13, %v5489_v56, %v5471_v6  ;;  %v5533_v60 = vrot.slane %v5526_v0, 4 }
 0x6bc   : > { %v5494_v52 = vperm.slane %v5490_v21, %v13487_v25  ;;  %v5496_v12 = vsel %vm4823_vm13, %v5495_v3, %v5482_v23  ;;  %v5528_v58 = vsel %vm4823_vm13, %v5527_v43, %v5509_v13 }
 0x6bd   : > { %v5500_v61 = vperm.slane %v5496_v12, %v13487_v25  ;;  %v5532_v51 = vperm.slane %v5528_v58, %v13487_v25  ;;  %v5534_v41 = vsel %vm4823_vm13, %v5533_v60, %v5520_v14 }
 0x6be   : > { %v5503_v38 = vrot.slane %v5494_v52, 4  ;;  %v5538_v11 = vperm.slane %v5534_v41, %v13487_v25 }
 0x6bf   : > { %v5541_v5 = vrot.slane %v5532_v51, 4  ;;  %v5501_v34 = vrot.slane %v5500_v61, 4 }
 0x6c0   : > { %v5504_v48 = vsel %vm4823_vm13, %v5500_v61, %v5503_v38  ;;  %v5539_v53 = vrot.slane %v5538_v11, 4 }
 0x6c1   : > { %v5542_v7 = vsel %vm4823_vm13, %v5538_v11, %v5541_v5  ;;  %v5557_v63 = vpack.c.bf16 %v5504_v48, %v5504_v48  ;;  %v5502_v30 = vsel %vm4823_vm13, %v5501_v34, %v5494_v52  ;;  %v9612_v34 = vld [vmem:[#allocation3 + $0x78] sm:$0xff] }
 0x6c2   : > { %v5558_v36 = vpack.c.bf16 %v5542_v7, %v5542_v7  ;;  %v5540_v50 = vsel %vm4823_vm13, %v5539_v53, %v5532_v51  ;;  %v5549_v20 = vpack.c.bf16 %v5502_v30, %v5502_v30  ;;  %6207 = vmatpush.bf16.msrb.mxu0 %v9612_v34  ;;  %v9599_v34 = vld [vmem:[#allocation3 + $0x10] sm:$0xff] }
 0x6c3   : > { %v5763_v42 = vunpack.c.l.b16 %v5557_v63  ;;  %v5550_v35 = vpack.c.bf16 %v5540_v50, %v5540_v50 }
 0x6c4   : > { %v5764_v18 = vunpack.c.l.b16 %v5558_v36  ;;  %v5637_v8 = vunpack.c.l.b16 %v5549_v20 }
 0x6c5   : > { %v5638_v9 = vunpack.c.l.b16 %v5550_v35 }
 0x6c6   : > { %v5768_v54 = vpack.c.b16 %v5764_v18, %v5763_v42 }
 0x6c7   : > { %v5642_v59 = vpack.c.b16 %v5638_v9, %v5637_v8 }
 0x6c8   : > { %9069 = vmatmul.msk.bf16.gmra.mxu2 %vm5683_vm12, %v5768_v54 }
 0x6c9   : > { %9033 = vmatmul.msk.bf16.gmra.mxu1 %vm5683_vm12, %v5642_v59 }
 0x6e0   : > { %v5854_v2 = vpop.f32.mrf.mxu2 }
 0x6e1   : > { %5890 = vmax.xlane.f32.xlu2 %v5854_v2 }
 0x6e7   : > { %v5729_v10 = vpop.f32.mrf.mxu1 }
 0x6e8   : > { %5874 = vmax.xlane.f32.xlu1 %v5729_v10  ;;  %v5856_v47 = vpop.f32.mrf.mxu2 }
 0x6ef   : > { %v5731_v33 = vpop.f32.mrf.mxu1 }
 0x6f0   : > { %5876 = vmax.xlane.f32.xlu0 %v5731_v33  ;;  %5892 = vmax.xlane.f32.xlu1 %v5856_v47 }
 0x6f7   : > { %v5734_v62 = vpop.f32.mrf.mxu1 }
 0x6f8   : > { %5878 = vmax.xlane.f32.xlu0 %v5734_v62  ;;  %v5859_v28 = vpop.f32.mrf.mxu2 }
 0x6f9   : > { %5894 = vmax.xlane.f32.xlu1 %v5859_v28 }
 0x6ff   : > { %v5736_v45 = vpop.f32.mrf.mxu1 }
 0x700   : > { %5880 = vmax.xlane.f32.xlu2 %v5736_v45  ;;  %v5861_v26 = vpop.f32.mrf.mxu2 }
 0x701   : > { %5896 = vmax.xlane.f32.xlu0 %v5861_v26 }
 0x707   : > { %v13865_v17 = vpop.f32.mrf.mxu1 }
 0x708   : > { %5882 = vmax.xlane.f32.xlu2 %v13865_v17  ;;  %v13868_v32 = vpop.f32.mrf.mxu2 }
 0x709   : > { %5898 = vmax.xlane.f32.xlu0 %v13868_v32 }
 0x70f   : > { %v13871_v55 = vpop.f32.mrf.mxu1 }
 0x710   : > { %5884 = vmax.xlane.f32.xlu1 %v13871_v55  ;;  %v13874_v46 = vpop.f32.mrf.mxu2 }
 0x711   : > { %5900 = vmax.xlane.f32.xlu2 %v13874_v46 }
 0x746   : > { %v13877_v4 = vpop.f32.mrf.mxu1 }
 0x747   : > { %5886 = vmax.xlane.f32.xlu1 %v13877_v4 }
 0x74b   : > { %v13883_v1 = vpop.f32.mrf.mxu2 }
 0x74e   : > { %v13880_v44 = vpop.f32.mrf.mxu1 }
 0x74f   : > { %5888 = vmax.xlane.f32.xlu0 %v13880_v44 }
 0x753   : > { %v13891_v51 = vpop.f32.mrf.mxu2 }
 0x754   : > { %v5891_v0 = vpop.xlane.xlu2 %5890 }
 0x755   : > { %v5914_v14 = vsub.f32 %v5854_v2, %v5891_v0  ;;  %v9608_v0 = vld [vmem:[#allocation3 + $0x58] sm:$0xff] }
 0x757   : > { %5902 = vmax.xlane.f32.xlu0 %v13883_v1  ;;  %v5938_v60 = vmul.f32 1.442695, %v5914_v14  ;;  %v9601_v14 = vld [vmem:[#allocation3 + $0x20] sm:$0xff] }
 0x75b   : > { %v5875_v16 = vpop.xlane.xlu1 %5874 }
 0x75c   : > { %v5906_v15 = vsub.f32 %v5729_v10, %v5875_v16 }
 0x75e   : > { %v5922_v31 = vmul.f32 1.442695, %v5906_v15  ;;  %v9611_v15 = vld [vmem:[#allocation3 + $0x70] sm:$0xff] }
 0x75f   : > { %6208 = vmatpush.bf16.msrb.mxu0 %v9611_v15 }
 0x760   : > { %10207 = vpow2.f32 %v5922_v31  ;;  %v9609_v31 = vld [vmem:[#allocation3 + $0x60] sm:$0xff] }
 0x763   : > { %v5877_v6 = vpop.xlane.xlu0 %5876  ;;  %v5893_v56 = vpop.xlane.xlu1 %5892 }
 0x764   : > { %v5907_v13 = vsub.f32 %v5731_v33, %v5877_v6  ;;  %v5915_v43 = vsub.f32 %v5856_v47, %v5893_v56  ;;  %v9604_v6 = vld [vmem:[#allocation3 + $0x38] sm:$0xff]  ;;  %v9603_v56 = vld [vmem:[#allocation3 + $0x30] sm:$0xff] }
 0x765   : > { %6106 = vmatpush.bf16.msra.mxu3 %v9604_v6 }
 0x766   : > { %v13886_v23 = vpop.eup %10207  ;;  %v5924_v3 = vmul.f32 1.442695, %v5907_v13  ;;  %v5940_v21 = vmul.f32 1.442695, %v5915_v43  ;;  %v9602_v13 = vld [vmem:[#allocation3 + $0x28] sm:$0xff]  ;;  %v9607_v43 = vld [vmem:[#allocation3 + $0x50] sm:$0xff] }
 0x767   : > { %5954 = vadd.xlane.f32.xlu2 %v13886_v23 }
 0x768   : > { %10209 = vpow2.f32 %v5924_v3 }
 0x769   : > { %10211 = vpow2.f32 %v5940_v21  ;;  %6107 = vmatpush.bf16.msra.mxu3 %v9603_v56 }
 0x76a   : > { %10213 = vpow2.f32 %v5938_v60 }
 0x76b   : > { %v5879_v52 = vpop.xlane.xlu0 %5878 }
 0x76c   : > { %v5908_v12 = vsub.f32 %v5734_v62, %v5879_v52  ;;  %v5895_v58 = vpop.xlane.xlu1 %5894 }
 0x76d   : > { %v5916_v38 = vsub.f32 %v5859_v28, %v5895_v58  ;;  %6108 = vmatpush.bf16.msra.mxu3 %v9602_v13 }
 0x76e   : > { %v13889_v61 = vpop.eup %10209  ;;  %v5926_v41 = vmul.f32 1.442695, %v5908_v12 }
 0x76f   : > { %v13893_v11 = vpop.eup %10211  ;;  %5904 = vmax.xlane.f32.xlu2 %v13891_v51  ;;  %5956 = vadd.xlane.f32.xlu1 %v13889_v61  ;;  %v5942_v5 = vmul.f32 1.442695, %v5916_v38  ;;  %v9600_v38 = vld [vmem:[#allocation3 + $0x18] sm:$0xff] }
 0x770   : > { %10215 = vpow2.f32 %v5926_v41  ;;  %5972 = vadd.xlane.f32.xlu0 %v13893_v11  ;;  %v13898_v7 = vpop.eup %10213 }
 0x771   : > { %10217 = vpow2.f32 %v5942_v5  ;;  %6109 = vmatpush.bf16.msra.mxu3 %v9601_v14  ;;  %v9606_v5 = vld [vmem:[#allocation3 + $0x48] sm:$0xff] }
 0x773   : > { %v5881_v48 = vpop.xlane.xlu2 %5880 }
 0x774   : > { %v5909_v53 = vsub.f32 %v5736_v45, %v5881_v48  ;;  %v5897_v63 = vpop.xlane.xlu0 %5896 }
 0x775   : > { %v5917_v50 = vsub.f32 %v5861_v26, %v5897_v63  ;;  %6110 = vmatpush.bf16.msra.mxu3 %v9600_v38 }
 0x776   : > { %v13900_v30 = vpop.eup %10215  ;;  %v5928_v36 = vmul.f32 1.442695, %v5909_v53  ;;  %v9598_v53 = vld [vmem:[#allocation3 + $0x8] sm:$0xff] }
 0x777   : > { %5958 = vadd.xlane.f32.xlu2 %v13900_v30  ;;  %5970 = vadd.xlane.f32.xlu1 %v13898_v7  ;;  %v13904_v20 = vpop.eup %10217  ;;  %v5944_v42 = vmul.f32 1.442695, %v5917_v50  ;;  %v9605_v50 = vld [vmem:[#allocation3 + $0x40] sm:$0xff] }
 0x778   : > { %10219 = vpow2.f32 %v5928_v36  ;;  %5974 = vadd.xlane.f32.xlu0 %v13904_v20 }
 0x779   : > { %10221 = vpow2.f32 %v5944_v42  ;;  %6111 = vmatpush.bf16.msra.mxu3 %v9599_v34 }
 0x77b   : > { %v5883_v35 = vpop.xlane.xlu2 %5882 }
 0x77c   : > { %v5910_v18 = vsub.f32 %v13865_v17, %v5883_v35  ;;  %v5899_v8 = vpop.xlane.xlu0 %5898 }
 0x77d   : > { %v5918_v59 = vsub.f32 %v13868_v32, %v5899_v8  ;;  %6112 = vmatpush.bf16.msra.mxu3 %v9598_v53 }
 0x77e   : > { %v13908_v9 = vpop.eup %10219  ;;  %v5930_v54 = vmul.f32 1.442695, %v5910_v18 }
 0x77f   : > { %5960 = vadd.xlane.f32.xlu1 %v13908_v9  ;;  %v13912_v2 = vpop.eup %10221  ;;  %v5946_v10 = vmul.f32 1.442695, %v5918_v59 }
 0x780   : > { %10223 = vpow2.f32 %v5930_v54  ;;  %5976 = vadd.xlane.f32.xlu2 %v13912_v2 }
 0x781   : > { %10225 = vpow2.f32 %v5946_v10 }
 0x783   : > { %v5885_v47 = vpop.xlane.xlu1 %5884 }
 0x784   : > { %v5911_v33 = vsub.f32 %v13871_v55, %v5885_v47  ;;  %v5901_v62 = vpop.xlane.xlu2 %5900 }
 0x785   : > { %v5919_v26 = vsub.f32 %v13874_v46, %v5901_v62  ;;  %v9610_v46 = vld [vmem:[#allocation3 + $0x68] sm:$0xff] }
 0x786   : > { %v13916_v28 = vpop.eup %10223  ;;  %v5932_v45 = vmul.f32 1.442695, %v5911_v33  ;;  %6209 = vmatpush.bf16.msrb.mxu0 %v9610_v46 }
 0x787   : > { %5962 = vadd.xlane.f32.xlu1 %v13916_v28  ;;  %v13920_v17 = vpop.eup %10225  ;;  %v5948_v32 = vmul.f32 1.442695, %v5919_v26 }
 0x788   : > { %10227 = vpow2.f32 %v5932_v45  ;;  %5978 = vadd.xlane.f32.xlu2 %v13920_v17 }
 0x789   : > { %10229 = vpow2.f32 %v5948_v32 }
 0x78a   : > { %6210 = vmatpush.bf16.msrb.mxu0 %v9609_v31 }
 0x78e   : > { %v13923_v16 = vpop.eup %10227  ;;  %6211 = vmatpush.bf16.msrb.mxu0 %v9608_v0 }
 0x78f   : > { %5964 = vadd.xlane.f32.xlu0 %v13923_v16  ;;  %v13926_v55 = vpop.eup %10229 }
 0x790   : > { %5980 = vadd.xlane.f32.xlu1 %v13926_v55 }
 0x792   : > { %6212 = vmatpush.bf16.msrb.mxu0 %v9607_v43 }
 0x796   : > { %6213 = vmatpush.bf16.msrb.mxu0 %v9606_v5 }
 0x79a   : > { %6214 = vmatpush.bf16.msrb.mxu0 %v9605_v50 }
 0x7ba   : > { %v5887_v3 = vpop.xlane.xlu1 %5886 }
 0x7bb   : > { %v5912_v21 = vsub.f32 %v13877_v4, %v5887_v3 }
 0x7bd   : > { %v5934_v60 = vmul.f32 1.442695, %v5912_v21 }
 0x7bf   : > { %10231 = vpow2.f32 %v5934_v60 }
 0x7c2   : > { %v5889_v52 = vpop.xlane.xlu0 %5888 }
 0x7c3   : > { %v5913_v12 = vsub.f32 %v13880_v44, %v5889_v52  ;;  %v9597_v44 = vld [vmem:[#allocation3] sm:$0xff] }
 0x7c4   : > { %6113 = vmatpush.bf16.msra.mxu3 %v9597_v44 }
 0x7c5   : > { %v13931_v58 = vpop.eup %10231  ;;  %v5936_v41 = vmul.f32 1.442695, %v5913_v12 }
 0x7c6   : > { %5966 = vadd.xlane.f32.xlu0 %v13931_v58 }
 0x7c7   : > { %10233 = vpow2.f32 %v5936_v41 }
 0x7ca   : > { %v5903_v4 = vpop.xlane.xlu0 %5902 }
 0x7cb   : > { %v5920_v48 = vsub.f32 %v13883_v1, %v5903_v4 }
 0x7cd   : > { %v13935_v63 = vpop.eup %10233  ;;  %v5950_v36 = vmul.f32 1.442695, %v5920_v48 }
 0x7ce   : > { %5968 = vadd.xlane.f32.xlu2 %v13935_v63 }
 0x7cf   : > { %10235 = vpow2.f32 %v5950_v36 }
 0x7d5   : > { %v13938_v42 = vpop.eup %10235 }
 0x7d6   : > { %5982 = vadd.xlane.f32.xlu1 %v13938_v42 }
 0x7da   : > { %v5955_v35 = vpop.xlane.xlu2 %5954 }
 0x7db   : > { %10237 = vrcp.f32 %v5955_v35 }
 0x7e1   : > { %v10238_v8 = vpop.eup %10237 }
 0x7e2   : > { %v5905_v1 = vpop.xlane.xlu2 %5904  ;;  %v5957_v18 = vpop.xlane.xlu1 %5956  ;;  %v6002_v47 = vmul.f32 %v10238_v8, %v13886_v23 }
 0x7e3   : > { %v5921_v54 = vsub.f32 %v13891_v51, %v5905_v1  ;;  %10239 = vrcp.f32 %v5957_v18  ;;  %v5973_v59 = vpop.xlane.xlu0 %5972 }
 0x7e4   : > { %10241 = vrcp.f32 %v5973_v59  ;;  %v6018_v32 = vpack.c.bf16 %v6002_v47, %v6002_v47 }
 0x7e5   : > { %v5952_v10 = vmul.f32 1.442695, %v5921_v54 }
 0x7e6   : > { %v6042_v51 = vunpack.c.l.b16 %v6018_v32 }
 0x7e7   : > { %10243 = vpow2.f32 %v5952_v10 }
 0x7e9   : > { %v10240_v33 = vpop.eup %10239 }
 0x7ea   : > { %v5959_v62 = vpop.xlane.xlu2 %5958  ;;  %v5971_v45 = vpop.xlane.xlu1 %5970  ;;  %v6003_v26 = vmul.f32 %v10240_v33, %v13889_v61 }
 0x7eb   : > { %v10242_v15 = vpop.eup %10241  ;;  %10245 = vrcp.f32 %v5971_v45  ;;  %v5975_v3 = vpop.xlane.xlu0 %5974 }
 0x7ec   : > { %v6019_v46 = vpack.c.bf16 %v6003_v26, %v6003_v26  ;;  %10247 = vrcp.f32 %v5959_v62  ;;  %v6011_v56 = vmul.f32 %v10242_v15, %v13893_v11 }
 0x7ed   : > { %v13944_v31 = vpop.eup %10243 }
 0x7ee   : > { %5984 = vadd.xlane.f32.xlu0 %v13944_v31  ;;  %v6043_v6 = vunpack.c.l.b16 %v6019_v46  ;;  %v6027_v21 = vpack.c.bf16 %v6011_v56, %v6011_v56 }
 0x7f0   : > { %v6050_v23 = vpack.c.b16 %v6043_v6, %v6042_v51  ;;  %v6144_v41 = vunpack.c.l.b16 %v6027_v21 }
 0x7f1   : > { %v10246_v0 = vpop.eup %10245 }
 0x7f2   : > { %6114 = vmatmul.bf16.vlgmr.msra.gmra.mxu3 %v6050_v23  ;;  %v5961_v13 = vpop.xlane.xlu1 %5960  ;;  %v10248_v43 = vpop.eup %10247  ;;  %v6010_v61 = vmul.f32 %v10246_v0, %v13898_v7 }
 0x7f3   : > { %10249 = vrcp.f32 %v5961_v13  ;;  %v5977_v14 = vpop.xlane.xlu2 %5976  ;;  %v6004_v52 = vmul.f32 %v10248_v43, %v13900_v30 }
 0x7f4   : > { %10251 = vrcp.f32 %v5977_v14  ;;  %v6026_v60 = vpack.c.bf16 %v6010_v61, %v6010_v61 }
 0x7f5   : > { %10253 = vrcp.f32 %v5975_v3  ;;  %v6020_v4 = vpack.c.bf16 %v6004_v52, %v6004_v52 }
 0x7f6   : > { %v6143_v12 = vunpack.c.l.b16 %v6026_v60 }
 0x7f7   : > { %v6044_v44 = vunpack.c.l.b16 %v6020_v4 }
 0x7f8   : > { %v6151_v11 = vpack.c.b16 %v6144_v41, %v6143_v12 }
 0x7f9   : > { %v10250_v38 = vpop.eup %10249 }
 0x7fa   : > { %v5963_v5 = vpop.xlane.xlu1 %5962  ;;  %v6005_v34 = vmul.f32 %v10250_v38, %v13908_v9  ;;  %v10252_v48 = vpop.eup %10251  ;;  %6215 = vmatmul.bf16.vlgmr.msrb.gmra.mxu0 %v6151_v11 }
 0x7fb   : > { %v10254_v53 = vpop.eup %10253  ;;  %10255 = vrcp.f32 %v5963_v5  ;;  %v6013_v7 = vmul.f32 %v10252_v48, %v13912_v2  ;;  %v5979_v54 = vpop.xlane.xlu2 %5978 }
 0x7fc   : > { %v6021_v36 = vpack.c.bf16 %v6005_v34, %v6005_v34  ;;  %v6012_v35 = vmul.f32 %v10254_v53, %v13904_v20 }
 0x7fd   : > { %v6029_v1 = vpack.c.bf16 %v6013_v7, %v6013_v7 }
 0x7fe   : > { %v6045_v50 = vunpack.c.l.b16 %v6021_v36  ;;  %v6028_v9 = vpack.c.bf16 %v6012_v35, %v6012_v35 }
 0x7ff   : > { %v6146_v10 = vunpack.c.l.b16 %v6029_v1 }
 0x800   : > { %v6051_v30 = vpack.c.b16 %v6045_v50, %v6044_v44  ;;  %v6145_v33 = vunpack.c.l.b16 %v6028_v9 }
 0x801   : > { %v10256_v8 = vpop.eup %10255 }
 0x802   : > { %6119 = vmatmul.bf16.gmra.mxu3 %v6051_v30  ;;  %v5965_v18 = vpop.xlane.xlu0 %5964  ;;  %v6006_v47 = vmul.f32 %v10256_v8, %v13916_v28  ;;  %v6152_v62 = vpack.c.b16 %v6146_v10, %v6145_v33 }
 0x803   : > { %10257 = vrcp.f32 %v5965_v18  ;;  %v5981_v59 = vpop.xlane.xlu1 %5980 }
 0x804   : > { %10259 = vrcp.f32 %v5981_v59  ;;  %v6022_v20 = vpack.c.bf16 %v6006_v47, %v6006_v47 }
 0x805   : > { %10261 = vrcp.f32 %v5979_v54 }
 0x806   : > { %v6046_v51 = vunpack.c.l.b16 %v6022_v20 }
 0x809   : > { %v10258_v2 = vpop.eup %10257 }
 0x80a   : > { %v6007_v45 = vmul.f32 %v10258_v2, %v13923_v16  ;;  %v10260_v26 = vpop.eup %10259  ;;  %6220 = vmatmul.bf16.gmra.mxu0 %v6152_v62 }
 0x80b   : > { %v10262_v32 = vpop.eup %10261  ;;  %v6015_v46 = vmul.f32 %v10260_v26, %v13926_v55 }
 0x80c   : > { %v6023_v15 = vpack.c.bf16 %v6007_v45, %v6007_v45  ;;  %v6014_v56 = vmul.f32 %v10262_v32, %v13920_v17 }
 0x80d   : > { %v6031_v0 = vpack.c.bf16 %v6015_v46, %v6015_v46 }
 0x80e   : > { %v6047_v6 = vunpack.c.l.b16 %v6023_v15  ;;  %v6030_v28 = vpack.c.bf16 %v6014_v56, %v6014_v56 }
 0x80f   : > { %v6148_v13 = vunpack.c.l.b16 %v6031_v0 }
 0x810   : > { %v6052_v23 = vpack.c.b16 %v6047_v6, %v6046_v51  ;;  %v6147_v43 = vunpack.c.l.b16 %v6030_v28 }
 0x812   : > { %6124 = vmatmul.bf16.gmra.mxu3 %v6052_v23  ;;  %v6153_v3 = vpack.c.b16 %v6148_v13, %v6147_v43 }
 0x81a   : > { %6225 = vmatmul.bf16.gmra.mxu0 %v6153_v3 }
 0x839   : > { %v5967_v16 = vpop.xlane.xlu0 %5966 }
 0x83a   : > { %10263 = vrcp.f32 %v5967_v16 }
 0x840   : > { %v10264_v21 = vpop.eup %10263 }
 0x841   : > { %v5969_v61 = vpop.xlane.xlu2 %5968  ;;  %v6008_v14 = vmul.f32 %v10264_v21, %v13931_v58 }
 0x842   : > { %10265 = vrcp.f32 %v5969_v61 }
 0x843   : > { %v6024_v52 = vpack.c.bf16 %v6008_v14, %v6008_v14 }
 0x845   : > { %v6048_v12 = vunpack.c.l.b16 %v6024_v52 }
 0x848   : > { %v10266_v55 = vpop.eup %10265 }
 0x849   : > { %v6009_v60 = vmul.f32 %v10266_v55, %v13935_v63  ;;  %v5983_v11 = vpop.xlane.xlu1 %5982 }
 0x84a   : > { %10267 = vrcp.f32 %v5983_v11 }
 0x84b   : > { %v6025_v17 = vpack.c.bf16 %v6009_v60, %v6009_v60 }
 0x84d   : > { %v6049_v41 = vunpack.c.l.b16 %v6025_v17 }
 0x84f   : > { %v6053_v38 = vpack.c.b16 %v6049_v41, %v6048_v12 }
 0x850   : > { %v10268_v34 = vpop.eup %10267 }
 0x851   : > { %6129 = vmatmul.bf16.gmra.mxu3 %v6053_v38  ;;  %v6016_v4 = vmul.f32 %v10268_v34, %v13938_v42 }
 0x853   : > { %v6032_v58 = vpack.c.bf16 %v6016_v4, %v6016_v4 }
 0x855   : > { %v6149_v7 = vunpack.c.l.b16 %v6032_v58 }
 0x861   : > { %v5985_v5 = vpop.xlane.xlu0 %5984 }
 0x862   : > { %10269 = vrcp.f32 %v5985_v5 }
 0x868   : > { %v10270_v48 = vpop.eup %10269 }
 0x869   : > { %v6017_v53 = vmul.f32 %v10270_v48, %v13944_v31 }
 0x86b   : > { %v6033_v36 = vpack.c.bf16 %v6017_v53, %v6017_v53 }
 0x86d   : > { %v6150_v63 = vunpack.c.l.b16 %v6033_v36 }
 0x86f   : > { %v6154_v44 = vpack.c.b16 %v6150_v63, %v6149_v7 }
 0x871   : > { %6230 = vmatmul.bf16.gmra.mxu0 %v6154_v44 }
 0x875   : > { %v6115_v50 = vpop.f32.mrf.mxu3 }
 0x876   : > { %v6236_v35 = vrot.slane %v6115_v50, 4  ;;  %v6241_v30 = vperm.slane %v6115_v50, %v13462_v49 }
 0x877   : > { %v6216_v8 = vpop.f32.mrf.mxu0 }
 0x878   : > { %v6237_v1 = vsel %vm4823_vm13, 0.0, %v6236_v35  ;;  %v6258_v18 = vrot.slane %v6241_v30, 4  ;;  %v6246_v42 = vrot.slane %v6216_v8, 4  ;;  %v6251_v9 = vperm.slane %v6216_v8, %v13462_v49 }
 0x879   : > { %v6245_v54 = vperm.slane %v6237_v1, %v13462_v49 }
 0x87a   : > { %v6247_v59 = vsel %vm4823_vm13, 0.0, %v6246_v42  ;;  %v6256_v10 = vrot.slane %v6251_v9, 4  ;;  %v6259_v47 = vsel %vm4823_vm13, %v6251_v9, %v6258_v18 }
 0x87b   : > { %v6270_v31 = vrot.slane %v6245_v54, 4  ;;  %v6255_v33 = vperm.slane %v6247_v59, %v13462_v49  ;;  %v6267_v2 = vperm.slane %v6259_v47, %v13487_v25 }
 0x87c   : > { %v6257_v62 = vsel %vm4823_vm13, %v6256_v10, %v6241_v30 }
 0x87d   : > { %v6117_v45 = vpop.f32.mrf.mxu3  ;;  %v6263_v20 = vperm.slane %v6257_v62, %v13487_v25  ;;  %v6268_v26 = vrot.slane %v6255_v33, 4  ;;  %v6271_v32 = vsel %vm4823_vm13, %v6255_v33, %v6270_v31  ;;  %v6282_v15 = vrot.slane %v6267_v2, 4 }
 0x87e   : > { %v6279_v46 = vperm.slane %v6271_v32, %v13487_v25  ;;  %v6288_v51 = vrot.slane %v6117_v45, 4  ;;  %v6293_v6 = vperm.slane %v6117_v45, %v13462_v49 }
 0x87f   : > { %v6269_v56 = vsel %vm4823_vm13, %v6268_v26, %v6245_v54  ;;  %v6280_v23 = vrot.slane %v6263_v20, 4  ;;  %v6283_v0 = vsel %vm4823_vm13, 0.0, %v6282_v15  ;;  %v6218_v28 = vpop.f32.mrf.mxu0  ;;  %v13978_v3 = vsel %vm4823_vm13, %v6282_v15, %v6263_v20 }
 0x880   : > { %v6275_v13 = vperm.slane %v6269_v56, %v13487_v25  ;;  %v6286_v43 = vrot.slane %v6279_v46, 4  ;;  %v6657_v16 = vrot.slane %v6283_v0, 4  ;;  %v6289_v21 = vsel %vm4823_vm13, 0.0, %v6288_v51 }
 0x881   : > { %v6281_v61 = vsel %vm4823_vm13, 0.0, %v6280_v23  ;;  %v6310_v14 = vrot.slane %v6293_v6, 4  ;;  %v6298_v55 = vrot.slane %v6218_v28, 4  ;;  %v6297_v38 = vperm.slane %v6289_v21, %v13462_v49 }
 0x882   : > { %v6284_v60 = vrot.slane %v6275_v13, 4  ;;  %v6287_v52 = vsel %vm4823_vm13, 0.0, %v6286_v43  ;;  %v6658_v17 = vsel %vm4823_vm13, %v6657_v16, %v6281_v61  ;;  %v13985_v12 = vsel %vm4823_vm13, %v6286_v43, %v6275_v13 }
 0x883   : > { %v6668_v41 = vrot.slane %v6287_v52, 4  ;;  %v6299_v11 = vsel %vm4823_vm13, 0.0, %v6298_v55  ;;  %v6656_v34 = vperm.slane %v13978_v3, %v13462_v49  ;;  %v6303_v4 = vperm.slane %v6218_v28, %v13462_v49 }
 0x884   : > { %v6285_v5 = vsel %vm4823_vm13, 0.0, %v6284_v60  ;;  %v6307_v48 = vperm.slane %v6299_v11, %v13462_v49  ;;  %v6662_v58 = vperm.slane %v6658_v17, %v13462_v49  ;;  %v6322_v36 = vrot.slane %v6297_v38, 4 }
 0x885   : > { %v6120_v53 = vpop.f32.mrf.mxu3  ;;  %v6667_v63 = vperm.slane %v13985_v12, %v13462_v49  ;;  %v6308_v44 = vrot.slane %v6303_v4, 4  ;;  %v6311_v50 = vsel %vm4823_vm13, %v6303_v4, %v6310_v14  ;;  %v14003_v42 = vsel %vm4823_vm13, %v6668_v41, %v6285_v5 }
 0x886   : > { %v6340_v7 = vrot.slane %v6120_v53, 4  ;;  %v6320_v35 = vrot.slane %v6307_v48, 4  ;;  %v6345_v30 = vperm.slane %v6120_v53, %v13462_v49  ;;  %v6319_v1 = vperm.slane %v6311_v50, %v13487_v25 }
 0x887   : > { %v6323_v18 = vsel %vm4823_vm13, %v6307_v48, %v6322_v36  ;;  %v6221_v54 = vpop.f32.mrf.mxu0  ;;  %v6309_v9 = vsel %vm4823_vm13, %v6308_v44, %v6293_v6  ;;  %v14021_v56 = vrot.slane %v6662_v58, 4  ;;  %v6673_v13 = vperm.slane %v14003_v42, %v13462_v49 }
 0x888   : > { %v6341_v8 = vsel %vm4823_vm13, 0.0, %v6340_v7  ;;  %v6321_v31 = vsel %vm4823_vm13, %v6320_v35, %v6297_v38  ;;  %v6331_v59 = vperm.slane %v6323_v18, %v13487_v25  ;;  %v6315_v47 = vperm.slane %v6309_v9, %v13487_v25 }
 0x889   : > { %v6349_v10 = vperm.slane %v6341_v8, %v13462_v49  ;;  %v14011_v33 = vperm.slane %v6321_v31, %v13487_v25  ;;  %v6334_v2 = vrot.slane %v6319_v1, 4  ;;  %v6350_v62 = vrot.slane %v6221_v54, 4 }
 0x88a   : > { %v14013_v45 = vrot.slane %v6331_v59, 4  ;;  %v6362_v20 = vrot.slane %v6345_v30, 4  ;;  %v6355_v32 = vperm.slane %v6221_v54, %v13462_v49  ;;  %v6332_v15 = vrot.slane %v6315_v47, 4 }
 0x88b   : > { %v6374_v26 = vrot.slane %v6349_v10, 4  ;;  %v6335_v46 = vsel %vm4823_vm13, 0.0, %v6334_v2  ;;  %v6336_v51 = vrot.slane %v14011_v33, 4  ;;  %v14019_v6 = vsel %vm4823_vm13, %v6334_v2, %v6315_v47 }
 0x88c   : > { %v14025_v23 = vsel %vm4823_vm13, 0.0, %v14013_v45  ;;  %v6351_v0 = vsel %vm4823_vm13, 0.0, %v6350_v62  ;;  %v6333_v43 = vsel %vm4823_vm13, 0.0, %v6332_v15  ;;  %v6694_v16 = vperm.slane %v14019_v6, %v13462_v49 }
 0x88d   : > { %v6122_v28 = vpop.f32.mrf.mxu3  ;;  %v6695_v61 = vrot.slane %v6335_v46, 4  ;;  %v6359_v21 = vperm.slane %v6351_v0, %v13462_v49  ;;  %v14035_v14 = vsel %vm4823_vm13, 0.0, %v6336_v51  ;;  %v6360_v55 = vrot.slane %v6355_v32, 4 }
 0x88e   : > { %v6363_v60 = vsel %vm4823_vm13, %v6355_v32, %v6362_v20  ;;  %v6392_v52 = vrot.slane %v6122_v28, 4  ;;  %v6706_v17 = vrot.slane %v14025_v23, 4  ;;  %v6397_v58 = vperm.slane %v6122_v28, %v13462_v49 }
 0x88f   : > { %v6371_v41 = vperm.slane %v6363_v60, %v13487_v25  ;;  %v6372_v38 = vrot.slane %v6359_v21, 4  ;;  %v6375_v11 = vsel %vm4823_vm13, %v6359_v21, %v6374_v26  ;;  %v6223_v5 = vpop.f32.mrf.mxu0  ;;  %v6361_v4 = vsel %vm4823_vm13, %v6360_v55, %v6345_v30 }
 0x890   : > { %v6383_v48 = vperm.slane %v6375_v11, %v13487_v25  ;;  %v6393_v53 = vsel %vm4823_vm13, 0.0, %v6392_v52  ;;  %v6367_v36 = vperm.slane %v6361_v4, %v13487_v25  ;;  %v14049_v35 = vsel %vm4823_vm13, %v6695_v61, %v6333_v43 }
 0x891   : > { %v6373_v7 = vsel %vm4823_vm13, %v6372_v38, %v6349_v10  ;;  %v6386_v44 = vrot.slane %v6371_v41, 4  ;;  %v6401_v50 = vperm.slane %v6393_v53, %v13462_v49  ;;  %v6402_v30 = vrot.slane %v6223_v5, 4 }
 0x892   : > { %v6379_v1 = vperm.slane %v6373_v7, %v13487_v25  ;;  %v6390_v18 = vrot.slane %v6383_v48, 4  ;;  %v6384_v8 = vrot.slane %v6367_v36, 4  ;;  %v6414_v31 = vrot.slane %v6397_v58, 4 }
 0x893   : > { %v6387_v54 = vsel %vm4823_vm13, 0.0, %v6386_v44  ;;  %v14054_v9 = vsel %vm4823_vm13, %v6386_v44, %v6367_v36  ;;  %v6426_v2 = vrot.slane %v6401_v50, 4  ;;  %v6700_v20 = vperm.slane %v14049_v35, %v13462_v49 }
 0x894   : > { %v6388_v59 = vrot.slane %v6379_v1, 4  ;;  %v14057_v10 = vsel %vm4823_vm13, 0.0, %v6390_v18  ;;  %v6733_v47 = vrot.slane %v6387_v54, 4  ;;  %v6385_v26 = vsel %vm4823_vm13, 0.0, %v6384_v8 }
 0x895   : > { %v6125_v62 = vpop.f32.mrf.mxu3  ;;  %v6732_v32 = vperm.slane %v14054_v9, %v13462_v49  ;;  %v6403_v15 = vsel %vm4823_vm13, 0.0, %v6402_v30  ;;  %v14067_v51 = vsel %vm4823_vm13, %v6390_v18, %v6379_v1  ;;  %v6407_v0 = vperm.slane %v6223_v5, %v13462_v49 }
 0x896   : > { %v6734_v46 = vsel %vm4823_vm13, %v6733_v47, %v6385_v26  ;;  %v6411_v28 = vperm.slane %v6403_v15, %v13462_v49  ;;  %v14072_v43 = vsel %vm4823_vm13, 0.0, %v6388_v59  ;;  %v6744_v61 = vrot.slane %v14057_v10, 4 }
 0x897   : > { %v6444_v21 = vrot.slane %v6125_v62, 4  ;;  %v6449_v55 = vperm.slane %v6125_v62, %v13462_v49  ;;  %v6412_v60 = vrot.slane %v6407_v0, 4  ;;  %v6415_v52 = vsel %vm4823_vm13, %v6407_v0, %v6414_v31  ;;  %v6226_v53 = vpop.f32.mrf.mxu0 }
 0x898   : > { %v6424_v41 = vrot.slane %v6411_v28, 4  ;;  %v6427_v38 = vsel %vm4823_vm13, %v6411_v28, %v6426_v2  ;;  %v6738_v11 = vperm.slane %v6734_v46, %v13462_v49  ;;  %v6423_v5 = vperm.slane %v6415_v52, %v13487_v25 }
 0x899   : > { %v6435_v4 = vperm.slane %v6427_v38, %v13487_v25  ;;  %v6445_v48 = vsel %vm4823_vm13, 0.0, %v6444_v21  ;;  %v6413_v36 = vsel %vm4823_vm13, %v6412_v60, %v6397_v58  ;;  %v6675_v1 = vsel %vm4823_vm13, %v14021_v56, %v6656_v34 }
 0x89a   : > { %v6425_v7 = vsel %vm4823_vm13, %v6424_v41, %v6401_v50  ;;  %v6453_v44 = vperm.slane %v6445_v48, %v13462_v49  ;;  %v6419_v18 = vperm.slane %v6413_v36, %v13487_v25  ;;  %v6438_v8 = vrot.slane %v6423_v5, 4 }
 0x89b   : > { %v14092_v30 = vperm.slane %v6425_v7, %v13487_v25  ;;  %v14094_v54 = vrot.slane %v6435_v4, 4  ;;  %v6466_v31 = vrot.slane %v6449_v55, 4  ;;  %v6454_v59 = vrot.slane %v6226_v53, 4 }
 0x89c   : > { %v6478_v58 = vrot.slane %v6453_v44, 4  ;;  %v6459_v50 = vperm.slane %v6226_v53, %v13462_v49  ;;  %v6436_v47 = vrot.slane %v6419_v18, 4  ;;  %v6439_v2 = vsel %vm4823_vm13, 0.0, %v6438_v8 }
 0x89d   : > { %v6440_v3 = vrot.slane %v14092_v30, 4  ;;  %v14101_v34 = vsel %vm4823_vm13, 0.0, %v14094_v54  ;;  %v14103_v56 = vrot.slane %v6738_v11, 4  ;;  %v6771_v62 = vrot.slane %v6439_v2, 4  ;;  %v9619_v2 = vld [vmem:[#allocation13 + $0x30] sm:$0xff] }
 0x89e   : > { %v6455_v26 = vsel %vm4823_vm13, 0.0, %v6454_v59  ;;  %v14107_v15 = vperm.slane %v6675_v1, %v13487_v25  ;;  %v6437_v46 = vsel %vm4823_vm13, 0.0, %v6436_v47  ;;  %v14111_v0 = vsel %vm4823_vm13, %v6438_v8, %v6419_v18 }
 0x89f   : > { %v6782_v28 = vrot.slane %v14101_v34, 4  ;;  %v6463_v21 = vperm.slane %v6455_v26, %v13462_v49  ;;  %v14116_v60 = vsel %vm4823_vm13, 0.0, %v6440_v3  ;;  %v6464_v52 = vrot.slane %v6459_v50, 4 }
 0x8a0   : > { %v6467_v41 = vsel %vm4823_vm13, %v6459_v50, %v6466_v31  ;;  %v6680_v38 = vrot.slane %v6673_v13, 4  ;;  %v14123_v11 = vsel %vm4823_vm13, %v6771_v62, %v6437_v46  ;;  %v6770_v53 = vperm.slane %v14111_v0, %v13462_v49  ;;  %v9620_v13 = vld [vmem:[#allocation13 + $0x38] sm:$0xff] }
 0x8a1   : > { %v6475_v5 = vperm.slane %v6467_v41, %v13487_v25  ;;  %v6476_v4 = vrot.slane %v6463_v21, 4  ;;  %v6479_v48 = vsel %vm4823_vm13, %v6463_v21, %v6478_v58  ;;  %v6465_v36 = vsel %vm4823_vm13, %v6464_v52, %v6449_v55  ;;  %7068 = vmatpush.bf16.msrb.mxu3 %v9620_v13  ;;  %v6127_v21 = vpop.f32.mrf.mxu3 }
 0x8a2   : > { %v6487_v7 = vperm.slane %v6479_v48, %v13487_v25  ;;  %v6681_v42 = vsel %vm4823_vm13, %v6680_v38, %v6667_v63  ;;  %v6471_v1 = vperm.slane %v6465_v36, %v13487_v25  ;;  %v6776_v58 = vperm.slane %v14123_v11, %v13462_v49 }
 0x8a3   : > { %v6477_v18 = vsel %vm4823_vm13, %v6476_v4, %v6453_v44  ;;  %v6490_v8 = vrot.slane %v6475_v5, 4  ;;  %v14138_v31 = vperm.slane %v6681_v42, %v13487_v25  ;;  %v6688_v50 = vrot.slane %v14107_v15, 4 }
 0x8a4   : > { %v6483_v55 = vperm.slane %v6477_v18, %v13487_v25  ;;  %v6494_v59 = vrot.slane %v6487_v7, 4  ;;  %v6488_v12 = vrot.slane %v6471_v1, 4  ;;  %v6707_v44 = vsel %vm4823_vm13, %v6706_v17, %v14035_v14  ;;  %v6228_v17 = vpop.f32.mrf.mxu0 }
 0x8a5   : > { %v6491_v63 = vsel %vm4823_vm13, 0.0, %v6490_v8  ;;  %v14146_v47 = vsel %vm4823_vm13, %v6490_v8, %v6471_v1  ;;  %v6701_v46 = vsel %vm4823_vm13, %v14013_v45, %v14011_v33  ;;  %v6686_v14 = vrot.slane %v14138_v31, 4  ;;  %7069 = vmatpush.bf16.msrb.mxu3 %v9619_v2  ;;  %v9618_v45 = vld [vmem:[#allocation13 + $0x28] sm:$0xff]  ;;  %v9617_v2 = vld [vmem:[#allocation13 + $0x20] sm:$0xff] }
 0x8a6   : > { %v6492_v3 = vrot.slane %v6483_v55, 4  ;;  %v14153_v62 = vsel %vm4823_vm13, 0.0, %v6494_v59  ;;  %v6809_v26 = vrot.slane %v6491_v63, 4  ;;  %v6489_v52 = vsel %vm4823_vm13, 0.0, %v6488_v12 }
 0x8a7   : > { %v6808_v41 = vperm.slane %v14146_v47, %v13462_v49  ;;  %v14162_v23 = vsel %vm4823_vm13, %v6494_v59, %v6483_v55  ;;  %v6820_v5 = vrot.slane %v14153_v62, 4  ;;  %v6689_v4 = vsel %vm4823_vm13, %v14138_v31, %v6688_v50 }
 0x8a8   : > { %v6810_v38 = vsel %vm4823_vm13, %v6809_v26, %v6489_v52  ;;  %v6711_v33 = vperm.slane %v6707_v44, %v13462_v49  ;;  %v14171_v48 = vsel %vm4823_vm13, 0.0, %v6492_v3  ;;  %v6712_v36 = vrot.slane %v6700_v20, 4 }
 0x8a9   : > { %v6496_v7 = vrot.slane %v6127_v21, 4  ;;  %v6501_v42 = vperm.slane %v6127_v21, %v13462_v49  ;;  %v6705_v13 = vperm.slane %v6701_v46, %v13462_v49  ;;  %v6506_v18 = vrot.slane %v6228_v17, 4  ;;  %7070 = vmatpush.bf16.msrb.mxu3 %v9618_v45 }
 0x8aa   : > { %v6718_v1 = vrot.slane %v6711_v33, 4  ;;  %v6511_v8 = vperm.slane %v6228_v17, %v13462_v49  ;;  %v6814_v55 = vperm.slane %v6810_v38, %v13462_v49  ;;  %v6713_v59 = vsel %vm4823_vm13, %v6712_v36, %v6694_v16 }
 0x8ab   : > { %v6497_v50 = vsel %vm4823_vm13, 0.0, %v6496_v7  ;;  %v6518_v35 = vrot.slane %v6501_v42, 4  ;;  %v14186_v20 = vperm.slane %v6713_v59, %v13487_v25  ;;  %v6507_v44 = vsel %vm4823_vm13, 0.0, %v6506_v18 }
 0x8ac   : > { %v6719_v12 = vsel %vm4823_vm13, %v6718_v1, %v6705_v13  ;;  %v6505_v63 = vperm.slane %v6497_v50, %v13462_v49  ;;  %v6515_v6 = vperm.slane %v6507_v44, %v13462_v49  ;;  %v6516_v16 = vrot.slane %v6511_v8, 4 }
 0x8ad   : > { %v14192_v3 = vperm.slane %v6719_v12, %v13487_v25  ;;  %v6519_v26 = vsel %vm4823_vm13, %v6511_v8, %v6518_v35  ;;  %v6726_v46 = vrot.slane %v14186_v20, 4  ;;  %v6745_v17 = vsel %vm4823_vm13, %v6744_v61, %v14072_v43  ;;  %7071 = vmatpush.bf16.msrb.mxu3 %v9617_v2 }
 0x8ae   : > { %v6530_v21 = vrot.slane %v6505_v63, 4  ;;  %v6527_v52 = vperm.slane %v6519_v26, %v13487_v25  ;;  %v6517_v38 = vsel %vm4823_vm13, %v6516_v16, %v6501_v42  ;;  %v6528_v33 = vrot.slane %v6515_v6, 4 }
 0x8af   : > { %v6743_v45 = vperm.slane %v14067_v51, %v13462_v49  ;;  %v6749_v36 = vperm.slane %v6745_v17, %v13462_v49  ;;  %v6727_v7 = vsel %vm4823_vm13, %v14192_v3, %v6726_v46  ;;  %v6523_v13 = vperm.slane %v6517_v38, %v13487_v25 }
 0x8b0   : > { %v6531_v1 = vsel %vm4823_vm13, %v6515_v6, %v6530_v21  ;;  %v6542_v18 = vrot.slane %v6527_v52, 4  ;;  %v10165_v10 = vpack.i.bf16 %v6727_v7, %v6689_v4  ;;  %v6529_v43 = vsel %vm4823_vm13, %v6528_v33, %v6505_v63 }
 0x8b1   : > { %v6539_v61 = vperm.slane %v6531_v1, %v13487_v25  ;;  %v6751_v51 = vsel %vm4823_vm13, %v14103_v56, %v6732_v32  ;;  %v6535_v42 = vperm.slane %v6529_v43, %v13487_v25  ;;  %v6540_v8 = vrot.slane %v6523_v13, 4 }
 0x8b2   : > { %v6543_v59 = vsel %vm4823_vm13, 0.0, %v6542_v18  ;;  %v6842_v50 = vsel %vm4823_vm13, %v6542_v18, %v6523_v13  ;;  %v6826_v35 = vrot.slane %v6814_v55, 4  ;;  %10166 = vrot.lane.b32.xlu2 %v10165_v10, %s10816_s2  ;;  %v6755_v63 = vperm.slane %v6751_v51, %v13487_v25  ;;  %v9616_v13 = vld [vmem:[#allocation13 + $0x18] sm:$0xff] }
 0x8b3   : > { %v6546_v4 = vrot.slane %v6539_v61, 4  ;;  %v6847_v12 = vrot.slane %v6543_v59, 4  ;;  %v6541_v44 = vsel %vm4823_vm13, 0.0, %v6540_v8  ;;  %v6544_v9 = vrot.slane %v6535_v42, 4  ;;  %7072 = vmatpush.bf16.msrb.mxu3 %v9616_v13 }
 0x8b4   : > { %v6756_v2 = vrot.slane %v6749_v36, 4  ;;  %v6777_v32 = vsel %vm4823_vm13, %v14094_v54, %v14092_v30  ;;  %v6724_v56 = vrot.slane %v14192_v3, 4  ;;  %v6846_v55 = vperm.slane %v6842_v50, %v13462_v49 }
 0x8b5   : > { %v6547_v6 = vsel %vm4823_vm13, 0.0, %v6546_v4  ;;  %v6848_v16 = vsel %vm4823_vm13, %v6847_v12, %v6541_v44  ;;  %v6764_v21 = vrot.slane %v6755_v63, 4  ;;  %v6781_v52 = vperm.slane %v6777_v32, %v13462_v49 }
 0x8b6   : > { %v6858_v26 = vrot.slane %v6547_v6, 4  ;;  %v6757_v46 = vsel %vm4823_vm13, %v6756_v2, %v6743_v45  ;;  %v6545_v17 = vsel %vm4823_vm13, 0.0, %v6544_v9  ;;  %v6852_v38 = vperm.slane %v6848_v16, %v13462_v49  ;;  %v9615_v16 = vld [vmem:[#allocation13 + $0x10] sm:$0xff] }
 0x8b7   : > { %v6783_v30 = vsel %vm4823_vm13, %v6782_v28, %v14116_v60  ;;  %v6788_v54 = vrot.slane %v6776_v58, 4  ;;  %v6821_v33 = vsel %vm4823_vm13, %v6820_v5, %v14171_v48  ;;  %v6827_v45 = vsel %vm4823_vm13, %v6826_v35, %v6808_v41  ;;  %7073 = vmatpush.bf16.msrb.mxu3 %v9615_v16 }
 0x8b8   : > { %v6787_v3 = vperm.slane %v6783_v30, %v13462_v49  ;;  %v6853_v34 = vsel %vm4823_vm13, %v6546_v4, %v6535_v42  ;;  %v6761_v28 = vperm.slane %v6757_v46, %v13487_v25  ;;  %v6819_v11 = vperm.slane %v14162_v23, %v13462_v49 }
 0x8b9   : > { %v6789_v60 = vsel %vm4823_vm13, %v6788_v54, %v6770_v53  ;;  %v6825_v58 = vperm.slane %v6821_v33, %v13462_v49  ;;  %v6831_v47 = vperm.slane %v6827_v45, %v13487_v25  ;;  %v6859_v41 = vsel %vm4823_vm13, %v6858_v26, %v6545_v17 }
 0x8ba   : > { %v6793_v62 = vperm.slane %v6789_v60, %v13487_v25  ;;  %v6794_v5 = vrot.slane %v6787_v3, 4  ;;  %v6857_v36 = vperm.slane %v6853_v34, %v13462_v49  ;;  %v6863_v7 = vperm.slane %v6859_v41, %v13462_v49 }
 0x8bb   : > { %v6832_v48 = vrot.slane %v6825_v58, 4  ;;  %v6864_v0 = vrot.slane %v6852_v38, 4  ;;  %v14269_v23 = vsel %vm4823_vm13, %v6686_v14, %v14107_v15  ;;  %v14273_v18 = vsel %vm4823_vm13, %v6724_v56, %v14186_v20 }
 0x8bc   : > { %v6795_v53 = vsel %vm4823_vm13, %v6794_v5, %v6781_v52  ;;  %v6802_v1 = vrot.slane %v6793_v62, 4  ;;  %v6870_v51 = vrot.slane %v6863_v7, 4  ;;  %v6840_v8 = vrot.slane %v6831_v47, 4 }
 0x8bd   : > { %v6799_v10 = vperm.slane %v6795_v53, %v13487_v25  ;;  %v6833_v43 = vsel %vm4823_vm13, %v6832_v48, %v6819_v11  ;;  %v6865_v61 = vsel %vm4823_vm13, %v6864_v0, %v6846_v55  ;;  %v6762_v59 = vrot.slane %v6761_v28, 4 }
 0x8be   : > { %v6837_v42 = vperm.slane %v6833_v43, %v13487_v25  ;;  %v6869_v31 = vperm.slane %v6865_v61, %v13487_v25  ;;  %v6765_v15 = vsel %vm4823_vm13, %v6761_v28, %v6764_v21  ;;  %v6871_v20 = vsel %vm4823_vm13, %v6870_v51, %v6857_v36  ;;  %v9613_v21 = vld [vmem:[#allocation13] sm:$0xff] }
 0x8bf   : > { %v6803_v14 = vsel %vm4823_vm13, %v6799_v10, %v6802_v1  ;;  %v6800_v50 = vrot.slane %v6799_v10, 4  ;;  %v6875_v4 = vperm.slane %v6871_v20, %v13487_v25  ;;  %v14285_v44 = vsel %vm4823_vm13, %v6762_v59, %v6755_v63  ;;  %v9614_v63 = vld [vmem:[#allocation13 + $0x8] sm:$0xff] }
 0x8c0   : > { %v10170_v35 = vpack.i.bf16 %v6803_v14, %v6765_v15  ;;  %v6878_v12 = vrot.slane %v6869_v31, 4  ;;  %v6838_v2 = vrot.slane %v6837_v42, 4  ;;  %v6841_v32 = vsel %vm4823_vm13, %v6837_v42, %v6840_v8  ;;  %7074 = vmatpush.bf16.msrb.mxu3 %v9614_v63 }
 0x8c1   : > { %v14288_v9 = vsel %vm4823_vm13, %v6800_v50, %v6793_v62  ;;  %v6876_v6 = vrot.slane %v6875_v4, 4 }
 0x8c2   : > { %10171 = vrot.lane.b32.xlu1 %v10170_v35, %s10816_s2  ;;  %v6879_v56 = vsel %vm4823_vm13, %v6875_v4, %v6878_v12  ;;  %v14294_v26 = vsel %vm4823_vm13, %v6838_v2, %v6831_v47 }
 0x8c3   : > { %v10175_v55 = vpack.i.bf16 %v6879_v56, %v6841_v32  ;;  %v14297_v46 = vsel %vm4823_vm13, %v6876_v6, %v6869_v31 }
 0x8c4   : > { %7075 = vmatpush.bf16.msrb.mxu3 %v9613_v21 }
 0x8c5   : > { %10176 = vrot.lane.b32.xlu0 %v10175_v55, %s10816_s2 }
 0x8d4   : > { %v6130_v52 = vpop.f32.mrf.mxu3 }
 0x8d5   : > { %v6548_v17 = vrot.slane %v6130_v52, 4  ;;  %v6553_v30 = vperm.slane %v6130_v52, %v13462_v49 }
 0x8d7   : > { %v6549_v38 = vsel %vm4823_vm13, 0.0, %v6548_v17  ;;  %v6570_v45 = vrot.slane %v6553_v30, 4 }
 0x8d8   : > { %v6557_v3 = vperm.slane %v6549_v38, %v13462_v49 }
 0x8da   : > { %v6582_v5 = vrot.slane %v6557_v3, 4 }
 0x8dc   : > { %v6132_v54 = vpop.f32.mrf.mxu3 }
 0x8dd   : > { %v6600_v34 = vrot.slane %v6132_v54, 4  ;;  %v6605_v1 = vperm.slane %v6132_v54, %v13462_v49 }
 0x8df   : > { %v6601_v48 = vsel %vm4823_vm13, 0.0, %v6600_v34  ;;  %v6622_v35 = vrot.slane %v6605_v1, 4 }
 0x8e0   : > { %v6609_v8 = vperm.slane %v6601_v48, %v13462_v49 }
 0x8e2   : > { %v6634_v16 = vrot.slane %v6609_v8, 4 }
 0x8ee   : > { %v6231_v33 = vpop.f32.mrf.mxu0 }
 0x8ef   : > { %v6558_v28 = vrot.slane %v6231_v33, 4  ;;  %v6563_v60 = vperm.slane %v6231_v33, %v13462_v49 }
 0x8f1   : > { %v6559_v11 = vsel %vm4823_vm13, 0.0, %v6558_v28  ;;  %v6568_v58 = vrot.slane %v6563_v60, 4  ;;  %v6571_v62 = vsel %vm4823_vm13, %v6563_v60, %v6570_v45 }
 0x8f2   : > { %v6567_v47 = vperm.slane %v6559_v11, %v13462_v49  ;;  %v6579_v41 = vperm.slane %v6571_v62, %v13487_v25 }
 0x8f3   : > { %v6569_v36 = vsel %vm4823_vm13, %v6568_v58, %v6553_v30 }
 0x8f4   : > { %v6575_v7 = vperm.slane %v6569_v36, %v13487_v25  ;;  %v6580_v0 = vrot.slane %v6567_v47, 4  ;;  %v6583_v13 = vsel %vm4823_vm13, %v6567_v47, %v6582_v5  ;;  %v6594_v53 = vrot.slane %v6579_v41, 4 }
 0x8f5   : > { %v6591_v10 = vperm.slane %v6583_v13, %v13487_v25 }
 0x8f6   : > { %v6581_v43 = vsel %vm4823_vm13, %v6580_v0, %v6557_v3  ;;  %v6592_v61 = vrot.slane %v6575_v7, 4  ;;  %v6595_v51 = vsel %vm4823_vm13, 0.0, %v6594_v53  ;;  %v6233_v42 = vpop.f32.mrf.mxu0  ;;  %v6880_v54 = vsel %vm4823_vm13, %v6594_v53, %v6575_v7 }
 0x8f7   : > { %v6587_v31 = vperm.slane %v6581_v43, %v13487_v25  ;;  %v6598_v59 = vrot.slane %v6591_v10, 4  ;;  %v6885_v15 = vrot.slane %v6595_v51, 4  ;;  %v6610_v20 = vrot.slane %v6233_v42, 4 }
 0x8f8   : > { %v6593_v14 = vsel %vm4823_vm13, 0.0, %v6592_v61  ;;  %v6615_v50 = vperm.slane %v6233_v42, %v13462_v49  ;;  %v6884_v5 = vperm.slane %v6880_v54, %v13462_v49 }
 0x8f9   : > { %v6596_v4 = vrot.slane %v6587_v31, 4  ;;  %v6599_v12 = vsel %vm4823_vm13, 0.0, %v6598_v59  ;;  %v6886_v2 = vsel %vm4823_vm13, %v6885_v15, %v6593_v14  ;;  %v6611_v6 = vsel %vm4823_vm13, 0.0, %v6610_v20 }
 0x8fa   : > { %v6890_v32 = vperm.slane %v6886_v2, %v13462_v49  ;;  %v6896_v56 = vrot.slane %v6599_v12, 4  ;;  %v6620_v55 = vrot.slane %v6615_v50, 4  ;;  %v6619_v21 = vperm.slane %v6611_v6, %v13462_v49 }
 0x8fb   : > { %v6597_v63 = vsel %vm4823_vm13, 0.0, %v6596_v4  ;;  %v6623_v52 = vsel %vm4823_vm13, %v6615_v50, %v6622_v35  ;;  %v6891_v36 = vsel %vm4823_vm13, %v6598_v59, %v6587_v31 }
 0x8fc   : > { %v6621_v17 = vsel %vm4823_vm13, %v6620_v55, %v6605_v1  ;;  %v6631_v38 = vperm.slane %v6623_v52, %v13487_v25  ;;  %v6897_v30 = vsel %vm4823_vm13, %v6896_v56, %v6597_v63  ;;  %v6632_v33 = vrot.slane %v6619_v21, 4 }
 0x8fd   : > { %v6627_v3 = vperm.slane %v6621_v17, %v13487_v25  ;;  %v6635_v45 = vsel %vm4823_vm13, %v6619_v21, %v6634_v16  ;;  %v6902_v34 = vrot.slane %v6890_v32, 4  ;;  %v6901_v11 = vperm.slane %v6897_v30, %v13462_v49 }
 0x8fe   : > { %v6643_v28 = vperm.slane %v6635_v45, %v13487_v25  ;;  %v6646_v60 = vrot.slane %v6631_v38, 4  ;;  %v6633_v58 = vsel %vm4823_vm13, %v6632_v33, %v6609_v8  ;;  %v6895_v31 = vperm.slane %v6891_v36, %v13462_v49 }
 0x8ff   : > { %v6644_v62 = vrot.slane %v6627_v3, 4  ;;  %v6639_v47 = vperm.slane %v6633_v58, %v13487_v25  ;;  %v6903_v1 = vsel %vm4823_vm13, %v6902_v34, %v6884_v5  ;;  %v6908_v10 = vrot.slane %v6901_v11, 4 }
 0x900   : > { %v6647_v41 = vsel %vm4823_vm13, 0.0, %v6646_v60  ;;  %v6650_v48 = vrot.slane %v6643_v28, 4  ;;  %v6918_v43 = vsel %vm4823_vm13, %v6646_v60, %v6627_v3  ;;  %v6907_v15 = vperm.slane %v6903_v1, %v13487_v25 }
 0x901   : > { %v6645_v7 = vsel %vm4823_vm13, 0.0, %v6644_v62  ;;  %v6923_v0 = vrot.slane %v6647_v41, 4  ;;  %v6648_v13 = vrot.slane %v6639_v47, 4  ;;  %v6922_v20 = vperm.slane %v6918_v43, %v13462_v49  ;;  %v10185_v43 = vld [vmem:[%s15500_s16] ss:$0 sm:$0xff]  ;;  %s8680_s16 = sshll.u32 %s8677_s29, 4  ;;  %s8681_s16 = int_to_ptr.hbm [resolvable:$true] %s8680_s16 }
 0x902   : > { %v6651_v53 = vsel %vm4823_vm13, 0.0, %v6650_v48  ;;  %v6929_v59 = vsel %vm4823_vm13, %v6650_v48, %v6639_v47  ;;  %v6909_v35 = vsel %vm4823_vm13, %v6908_v10, %v6895_v31  ;;  %v6916_v6 = vrot.slane %v6907_v15, 4  ;;  %s10665_s6 = sshra.s32 %s8681_s16, 4  ;;  %s10666_s6 = int_to_ptr.hbm [resolvable:$true] %s10665_s6 }
 0x903   : > { %v6924_v61 = vsel %vm4823_vm13, %v6923_v0, %v6645_v7  ;;  %v6934_v51 = vrot.slane %v6651_v53, 4  ;;  %v6649_v42 = vsel %vm4823_vm13, 0.0, %v6648_v13  ;;  %v6933_v12 = vperm.slane %v6929_v59, %v13462_v49  ;;  %p10672_p9 = scmp.lt.s32.totalorder %s10666_s6, %s15557_s17 }
 0x904   : > { %v6928_v8 = vperm.slane %v6924_v61, %v13462_v49  ;;  %v6913_v56 = vperm.slane %v6909_v35, %v13487_v25 }
 0x905   : > { %v6935_v14 = vsel %vm4823_vm13, %v6934_v51, %v6649_v42 }
 0x906   : > { %v6940_v50 = vrot.slane %v6928_v8, 4  ;;  %v6939_v4 = vperm.slane %v6935_v14, %v13462_v49  ;;  %v6917_v52 = vsel %vm4823_vm13, %v6913_v56, %v6916_v6  ;;  %v6914_v34 = vrot.slane %v6913_v56, 4 }
 0x908   : > { %v6941_v2 = vsel %vm4823_vm13, %v6940_v50, %v6922_v20  ;;  %v6946_v32 = vrot.slane %v6939_v4, 4 }
 0x909   : > { %v6945_v55 = vperm.slane %v6941_v2, %v13487_v25 }
 0x90a   : > { %v6947_v16 = vsel %vm4823_vm13, %v6946_v32, %v6933_v12 }
 0x90b   : > { %v6951_v63 = vperm.slane %v6947_v16, %v13487_v25  ;;  %v6954_v21 = vrot.slane %v6945_v55, 4  ;;  %v6915_v25 = vsel %vm4823_vm13, %v6914_v34, %v6907_v15 }
 0x90c   : > { %v10167_v38 = vpop.permute.xlu2 %10166 }
 0x90d   : > { %v6955_v17 = vsel %vm4823_vm13, %v6951_v63, %v6954_v21  ;;  %v10169_v49 = vunpack.i.h.bf16 %v10167_v38  ;;  %v10168_v54 = vunpack.i.l.bf16 %v10167_v38  ;;  %v6952_v28 = vrot.slane %v6951_v63, 4 }
 0x90e   : > { %v10180_v30 = vpack.i.bf16 %v6955_v17, %v6917_v52 }
 0x90f   : > { %v6988_v3 = vsel %vm5683_vm12, %v14269_v23, %v10168_v54  ;;  %v6989_v33 = vsel %vm5683_vm12, %v14273_v18, %v10169_v49  ;;  %v6953_v60 = vsel %vm4823_vm13, %v6952_v28, %v6945_v55 }
 0x910   : > { %10181 = vrot.lane.b32.xlu2 %v10180_v30, %s10816_s2  ;;  %v6996_v45 = vpack.c.bf16 %v6989_v33, %v6988_v3 }
 0x912   : > { %7076 = vmatmul.bf16.vlgmr.msrb.gmra.mxu3 %v6996_v45 }
 0x934   : > { %v10172_v11 = vpop.permute.xlu1 %10171 }
 0x935   : > { %v10174_v58 = vunpack.i.h.bf16 %v10172_v11  ;;  %v10173_v62 = vunpack.i.l.bf16 %v10172_v11 }
 0x937   : > { %v6990_v5 = vsel %vm5683_vm12, %v14285_v44, %v10173_v62  ;;  %v6991_v23 = vsel %vm5683_vm12, %v14288_v9, %v10174_v58  ;;  %v10177_v47 = vpop.permute.xlu0 %10176 }
 0x938   : > { %v6997_v41 = vpack.c.bf16 %v6991_v23, %v6990_v5  ;;  %v10179_v18 = vunpack.i.h.bf16 %v10177_v47  ;;  %v10178_v48 = vunpack.i.l.bf16 %v10177_v47 }
 0x93a   : > { %7081 = vmatmul.bf16.gmra.mxu3 %v6997_v41  ;;  %v6992_v36 = vsel %vm5683_vm12, %v14294_v26, %v10178_v48  ;;  %v6993_v7 = vsel %vm5683_vm12, %v14297_v46, %v10179_v18  ;;  %v9392_v48 = vld [vmem:[#allocation18 + $0x1c0] sm:$0xf] }
 0x93b   : > { %v6998_v0 = vpack.c.bf16 %v6993_v7, %v6992_v36  ;;  %v9681_v36 = vld [vmem:[#allocation18 + $0x1dc] sm:$0xf0]  ;;  %v9677_v7 = vld [vmem:[#allocation18 + $0x1c4] sm:$0xf] }
 0x94a   : > { %7086 = vmatmul.bf16.gmra.mxu3 %v6998_v0  ;;  %v9393_v0 = vor.u32 %v9681_v36, %v9392_v48  ;;  %v9306_v48 = vld [vmem:[#allocation18 + $0x128] sm:$0xf0] }
 0x94c   : > { %7695 = vmatpush.bf16.msrb.mxu1 %v9393_v0  ;;  %v9264_v0 = vld [vmem:[#allocation18 + $0xc0] sm:$0xf] }
 0x96a   : > { %v10182_v13 = vpop.permute.xlu2 %10181 }
 0x96b   : > { %v10184_v53 = vunpack.i.h.bf16 %v10182_v13  ;;  %v10183_v1 = vunpack.i.l.bf16 %v10182_v13  ;;  %v9394_v13 = vld [vmem:[#allocation18 + $0x1e0] sm:$0xf0] }
 0x96d   : > { %v6994_v44 = vsel %vm5683_vm12, %v6915_v25, %v10183_v1  ;;  %v6995_v9 = vsel %vm5683_vm12, %v6953_v60, %v10184_v53  ;;  %v9400_v53 = vld [vmem:[#allocation18 + $0x1c8] sm:$0xf] }
 0x96e   : > { %v6999_v10 = vpack.c.bf16 %v6995_v9, %v6994_v44  ;;  %v9682_v1 = vld [vmem:[#allocation18 + $0x1e4] sm:$0xf0]  ;;  %v9397_v44 = vor.u32 %v9677_v7, %v9394_v13  ;;  %v9649_v13 = vld [vmem:[#allocation18 + $0xdc] sm:$0xf0] }
 0x96f   : > { %v9401_v9 = vor.u32 %v9682_v1, %v9400_v53  ;;  %v9645_v53 = vld [vmem:[#allocation18 + $0xc4] sm:$0xf]  ;;  %v9265_v1 = vor.u32 %v9649_v13, %v9264_v0 }
 0x970   : > { %7091 = vmatmul.bf16.gmra.mxu3 %v6999_v10  ;;  %v9678_v10 = vld [vmem:[#allocation18 + $0x1cc] sm:$0xf]  ;;  %7724 = vmatpush.bf16.msrb.mxu2 %v9397_v44  ;;  %v9266_v44 = vld [vmem:[#allocation18 + $0xe0] sm:$0xf0] }
 0x971   : > { %7753 = vmatpush.bf16.msra.mxu0 %v9401_v9  ;;  %v9272_v9 = vld [vmem:[#allocation18 + $0xc8] sm:$0xf]  ;;  %v9170_v0 = vld [vmem:[#allocation18 + $0x20] sm:$0xf0] }
 0x995   : > { %v7077_v61 = vpop.f32.mrf.mxu3 }
 0x996   : > { %v7078_v26 = vadd.f32 %v10185_v43, %v7077_v61 }
 0x998   : > { %v14383_v51 = vadd.f32 %v13315_v57, %v7078_v26  ;;  %v9360_v26 = vld [vmem:[#allocation18 + $0x180] sm:$0xf] }
 0x99a   : > { %15501 = vst [vmem:[#allocation38_spill] sm:$0xff] %v14383_v51  ;;  %7107 = vadd.xlane.f32.xlu0 %v14383_v51 }
 0x99d   : > { %v7079_v46 = vpop.f32.mrf.mxu3 }
 0x99e   : > { %v7080_v42 = vadd.f32 %v10185_v43, %v7079_v46  ;;  %v9673_v46 = vld [vmem:[#allocation18 + $0x19c] sm:$0xf0] }
 0x9a0   : > { %v14387_v8 = vadd.f32 %v13324_v37, %v7080_v42  ;;  %v9669_v42 = vld [vmem:[#allocation18 + $0x184] sm:$0xf] }
 0x9a2   : > { %15502 = vst [vmem:[#allocation39_spill] sm:$0xff] %v14387_v8  ;;  %7109 = vadd.xlane.f32.xlu1 %v14387_v8 }
 0x9bd   : > { %v7082_v31 = vpop.f32.mrf.mxu3 }
 0x9be   : > { %v7083_v59 = vadd.f32 %v10185_v43, %v7082_v31  ;;  %v9361_v31 = vor.u32 %v9673_v46, %v9360_v26  ;;  %v9269_v26 = vor.u32 %v9645_v53, %v9266_v44  ;;  %v9176_v44 = vld [vmem:[#allocation18 + $0x8] sm:$0xf] }
 0x9c0   : > { %v14391_v15 = vadd.f32 %v13313_v27, %v7083_v59  ;;  %v9362_v59 = vld [vmem:[#allocation18 + $0x1a0] sm:$0xf0]  ;;  %7696 = vmatpush.bf16.msrb.mxu1 %v9361_v31  ;;  %v9274_v31 = vld [vmem:[#allocation18 + $0xe8] sm:$0xf0] }
 0x9c2   : > { %15503 = vst [vmem:[#allocation60_spill] sm:$0xff] %v14391_v15  ;;  %7111 = vadd.xlane.f32.xlu2 %v14391_v15 }
 0x9c5   : > { %v7084_v14 = vpop.f32.mrf.mxu3 }
 0x9c6   : > { %v7085_v20 = vadd.f32 %v10185_v43, %v7084_v14  ;;  %v9368_v14 = vld [vmem:[#allocation18 + $0x188] sm:$0xf] }
 0x9c8   : > { %v14395_v57 = vadd.f32 %v13322_v40, %v7085_v20  ;;  %v9674_v20 = vld [vmem:[#allocation18 + $0x1a4] sm:$0xf0] }
 0x9ca   : > { %15504 = vst [vmem:[#allocation61_spill] sm:$0xff] %v14395_v57  ;;  %7113 = vadd.xlane.f32.xlu0 %v14395_v57 }
 0x9cd   : > { %v7087_v50 = vpop.f32.mrf.mxu3 }
 0x9ce   : > { %v7088_v35 = vadd.f32 %v10185_v43, %v7087_v50  ;;  %v9365_v50 = vor.u32 %v9669_v42, %v9362_v59  ;;  %v9646_v42 = vld [vmem:[#allocation18 + $0xcc] sm:$0xf]  ;;  %v9232_v59 = vld [vmem:[#allocation18 + $0x80] sm:$0xf] }
 0x9d0   : > { %v14399_v37 = vadd.f32 %v13311_v24, %v7088_v35  ;;  %v9369_v35 = vor.u32 %v9674_v20, %v9368_v14  ;;  %7725 = vmatpush.bf16.msrb.mxu2 %v9365_v50  ;;  %v9277_v50 = vor.u32 %v9646_v42, %v9274_v31 }
 0x9d2   : > { %15505 = vst [vmem:[#allocation62_spill] sm:$0xff] %v14399_v37  ;;  %7115 = vadd.xlane.f32.xlu1 %v14399_v37  ;;  %7754 = vmatpush.bf16.msra.mxu0 %v9369_v35  ;;  %v9641_v35 = vld [vmem:[#allocation18 + $0x9c] sm:$0xf0] }
 0x9d5   : > { %v7089_v4 = vpop.f32.mrf.mxu3 }
 0x9d6   : > { %v7090_v12 = vadd.f32 %v10185_v43, %v7089_v4  ;;  %v9670_v4 = vld [vmem:[#allocation18 + $0x18c] sm:$0xf] }
 0x9d8   : > { %v14403_v27 = vadd.f32 %v13320_v29, %v7090_v12  ;;  %v9370_v12 = vld [vmem:[#allocation18 + $0x1a8] sm:$0xf0] }
 0x9da   : > { %15506 = vst [vmem:[#allocation63_spill] sm:$0xff] %v14403_v27  ;;  %7117 = vadd.xlane.f32.xlu2 %v14403_v27 }
 0x9f3   : > { %v7092_v2 = vpop.f32.mrf.mxu3 }
 0x9f4   : > { %v7093_v32 = vadd.f32 %v10185_v43, %v7092_v2  ;;  %v9373_v2 = vor.u32 %v9670_v4, %v9370_v12  ;;  %v9637_v4 = vld [vmem:[#allocation18 + $0x84] sm:$0xf] }
 0x9f5   : > { %v9234_v12 = vld [vmem:[#allocation18 + $0xa0] sm:$0xf0] }
 0x9f6   : > { %v14407_v40 = vadd.f32 %v13330_v39, %v7093_v32  ;;  %v9328_v32 = vld [vmem:[#allocation18 + $0x140] sm:$0xf] }
 0x9f8   : > { %15507 = vst [vmem:[#allocation64_spill] sm:$0xff] %v14407_v40  ;;  %7119 = vadd.xlane.f32.xlu2 %v14407_v40 }
 0x9fb   : > { %v7094_v29 = vpop.f32.mrf.mxu3 }
 0x9fc   : > { %v7095_v63 = vadd.f32 %v10185_v43, %v7094_v29  ;;  %v9402_v43 = vld [vmem:[#allocation18 + $0x1e8] sm:$0xf0] }
 0x9fd   : > { %v9405_v61 = vor.u32 %v9678_v10, %v9402_v43  ;;  %v9650_v10 = vld [vmem:[#allocation18 + $0xe4] sm:$0xf0] }
 0x9fe   : > { %v14421_v52 = vadd.f32 %v13351_v19, %v7095_v63  ;;  %v9336_v63 = vld [vmem:[#allocation18 + $0x148] sm:$0xf]  ;;  %v9273_v46 = vor.u32 %v9650_v10, %v9272_v9  ;;  %v9622_v10 = vld [vmem:[#allocation18 + $0xc] sm:$0xf] }
 0x9ff   : > { %7782 = vmatpush.bf16.msra.mxu3 %v9405_v61  ;;  %v9626_v9 = vld [vmem:[#allocation18 + $0x24] sm:$0xf0] }
 0xa00   : > { %15508 = vst [vmem:[#allocation65_spill] sm:$0xff] %v14421_v52  ;;  %v9177_v31 = vor.u32 %v9626_v9, %v9176_v44  ;;  %v9410_v44 = vld [vmem:[#allocation18 + $0x1f0] sm:$0xf0] }
 0xa03   : > { %7783 = vmatpush.bf16.msra.mxu3 %v9373_v2  ;;  %v9233_v2 = vor.u32 %v9641_v35, %v9232_v59 }
 0xa0d   : > { %v7108_v56 = vpop.xlane.xlu0 %7107 }
 0xa0e   : > { %v7123_v24 = vmul.f32 %v7108_v56, %v13333_v22  ;;  %v9665_v56 = vld [vmem:[#allocation18 + $0x15c] sm:$0xf0] }
 0xa0f   : > { %v9329_v29 = vor.u32 %v9665_v56, %v9328_v32  ;;  %v9240_v32 = vld [vmem:[#allocation18 + $0x88] sm:$0xf] }
 0xa10   : > { %v14412_v6 = vsub.f32 %v14383_v51, %v7123_v24  ;;  %v9661_v24 = vld [vmem:[#allocation18 + $0x144] sm:$0xf]  ;;  %v9642_v56 = vld [vmem:[#allocation18 + $0xa4] sm:$0xf0] }
 0xa11   : > { %7697 = vmatpush.bf16.msrb.mxu1 %v9329_v29 }
 0xa12   : > { %v7139_v55 = vmul.f32 %v14412_v6, %v14412_v6 }
 0xa14   : > { %7147 = vadd.xlane.f32.xlu0 %v7139_v55 }
 0xa15   : > { %v7110_v16 = vpop.xlane.xlu1 %7109 }
 0xa16   : > { %v7124_v21 = vmul.f32 %v7110_v16, %v13333_v22  ;;  %v9330_v16 = vld [vmem:[#allocation18 + $0x160] sm:$0xf0] }
 0xa18   : > { %v14418_v39 = vsub.f32 %v14387_v8, %v7124_v21  ;;  %v9666_v21 = vld [vmem:[#allocation18 + $0x164] sm:$0xf0]  ;;  %v14726_v8 = vld [vmem:[#allocation19 + $0xf0] sm:$0xff] }
 0xa1a   : > { %v7140_v17 = vmul.f32 %v14418_v39, %v14418_v39 }
 0xa1c   : > { %7121 = vadd.xlane.f32.xlu0 %v14421_v52  ;;  %7149 = vadd.xlane.f32.xlu1 %v7140_v17 }
 0xa35   : > { %v7112_v38 = vpop.xlane.xlu2 %7111 }
 0xa36   : > { %v7125_v30 = vmul.f32 %v7112_v38, %v13333_v22  ;;  %v9333_v38 = vor.u32 %v9661_v24, %v9330_v16  ;;  %v9638_v24 = vld [vmem:[#allocation18 + $0x8c] sm:$0xf] }
 0xa38   : > { %v14428_v49 = vsub.f32 %v14391_v15, %v7125_v30  ;;  %v9337_v30 = vor.u32 %v9666_v21, %v9336_v63  ;;  %7726 = vmatpush.bf16.msrb.mxu2 %v9333_v38  ;;  %v9237_v63 = vor.u32 %v9637_v4, %v9234_v12  ;;  %v9242_v21 = vld [vmem:[#allocation18 + $0xa8] sm:$0xf0] }
 0xa3a   : > { %v7141_v54 = vmul.f32 %v14428_v49, %v14428_v49  ;;  %7755 = vmatpush.bf16.msra.mxu0 %v9337_v30  ;;  %v9241_v30 = vor.u32 %v9642_v56, %v9240_v32 }
 0xa3c   : > { %7151 = vadd.xlane.f32.xlu1 %v7141_v54  ;;  %v9662_v54 = vld [vmem:[#allocation18 + $0x14c] sm:$0xf] }
 0xa3d   : > { %v7114_v3 = vpop.xlane.xlu0 %7113 }
 0xa3e   : > { %v7126_v19 = vmul.f32 %v7114_v3, %v13333_v22  ;;  %v9338_v3 = vld [vmem:[#allocation18 + $0x168] sm:$0xf0] }
 0xa40   : > { %v14434_v33 = vsub.f32 %v14395_v57, %v7126_v19  ;;  %v9341_v19 = vor.u32 %v9662_v54, %v9338_v3  ;;  %v9245_v54 = vor.u32 %v9638_v24, %v9242_v21  ;;  %v9633_v3 = vld [vmem:[#allocation18 + $0x5c] sm:$0xf0]  ;;  %v14484_v24 = vld [vmem:[#allocation16] ss:$0 sm:$0xff] }
 0xa42   : > { %v7142_v45 = vmul.f32 %v14434_v33, %v14434_v33  ;;  %7784 = vmatpush.bf16.msra.mxu3 %v9341_v19  ;;  %v9629_v19 = vld [vmem:[#allocation18 + $0x44] sm:$0xf] }
 0xa44   : > { %7153 = vadd.xlane.f32.xlu2 %v7142_v45 }
 0xa45   : > { %v7116_v34 = vpop.xlane.xlu1 %7115 }
 0xa46   : > { %v7127_v25 = vmul.f32 %v7116_v34, %v13333_v22  ;;  %v9296_v34 = vld [vmem:[#allocation18 + $0x100] sm:$0xf] }
 0xa48   : > { %v14440_v28 = vsub.f32 %v14399_v37, %v7127_v25  ;;  %v9657_v25 = vld [vmem:[#allocation18 + $0x11c] sm:$0xf0] }
 0xa4a   : > { %v7143_v60 = vmul.f32 %v14440_v28, %v14440_v28 }
 0xa4c   : > { %7155 = vadd.xlane.f32.xlu0 %v7143_v60  ;;  %v9297_v60 = vor.u32 %v9657_v25, %v9296_v34  ;;  %v9202_v34 = vld [vmem:[#allocation18 + $0x60] sm:$0xf0] }
 0xa4d   : > { %v7118_v11 = vpop.xlane.xlu2 %7117 }
 0xa4e   : > { %v7128_v58 = vmul.f32 %v7118_v11, %v13333_v22  ;;  %v9653_v11 = vld [vmem:[#allocation18 + $0x104] sm:$0xf]  ;;  %7698 = vmatpush.bf16.msrb.mxu1 %v9297_v60  ;;  %v9208_v60 = vld [vmem:[#allocation18 + $0x48] sm:$0xf] }
 0xa50   : > { %v14446_v62 = vsub.f32 %v14403_v27, %v7128_v58  ;;  %v9298_v58 = vld [vmem:[#allocation18 + $0x120] sm:$0xf0] }
 0xa52   : > { %v7144_v5 = vmul.f32 %v14446_v62, %v14446_v62  ;;  %7699 = vmatpush.bf16.msrb.mxu1 %v9265_v1 }
 0xa54   : > { %7157 = vadd.xlane.f32.xlu1 %v7144_v5  ;;  %v9304_v5 = vld [vmem:[#allocation18 + $0x108] sm:$0xf] }
 0xa56   : > { %7700 = vmatpush.bf16.msrb.mxu1 %v9233_v2  ;;  %v14480_v2 = vld [vmem:[#allocation15] ss:$0 sm:$0xff] }
 0xa6b   : > { %v7120_v23 = vpop.xlane.xlu2 %7119 }
 0xa6c   : > { %v7129_v47 = vmul.f32 %v7120_v23, %v13333_v22  ;;  %v9301_v23 = vor.u32 %v9653_v11, %v9298_v58  ;;  %v9634_v11 = vld [vmem:[#allocation18 + $0x64] sm:$0xf0] }
 0xa6d   : > { %v9209_v53 = vor.u32 %v9634_v11, %v9208_v60 }
 0xa6e   : > { %v14452_v41 = vsub.f32 %v14407_v40, %v7129_v47  ;;  %v9658_v47 = vld [vmem:[#allocation18 + $0x124] sm:$0xf0]  ;;  %7727 = vmatpush.bf16.msrb.mxu2 %v9301_v23  ;;  %v9630_v23 = vld [vmem:[#allocation18 + $0x4c] sm:$0xf] }
 0xa6f   : > { %v9305_v36 = vor.u32 %v9658_v47, %v9304_v5  ;;  %v9210_v47 = vld [vmem:[#allocation18 + $0x68] sm:$0xf0] }
 0xa70   : > { %v7145_v18 = vmul.f32 %v14452_v41, %v14452_v41  ;;  %v9213_v1 = vor.u32 %v9630_v23, %v9210_v47 }
 0xa71   : > { %7756 = vmatpush.bf16.msra.mxu0 %v9305_v36  ;;  %v9625_v36 = vld [vmem:[#allocation18 + $0x1c] sm:$0xf0] }
 0xa72   : > { %7159 = vadd.xlane.f32.xlu2 %v7145_v18  ;;  %v9654_v18 = vld [vmem:[#allocation18 + $0x10c] sm:$0xf]  ;;  %7728 = vmatpush.bf16.msrb.mxu2 %v9269_v26 }
 0xa73   : > { %v9309_v7 = vor.u32 %v9654_v18, %v9306_v48  ;;  %v9168_v18 = vld [vmem:[#allocation18] sm:$0xf]  ;;  %v9205_v48 = vor.u32 %v9629_v19, %v9202_v34 }
 0xa74   : > { %v9169_v26 = vor.u32 %v9625_v36, %v9168_v18 }
 0xa75   : > { %7785 = vmatpush.bf16.msra.mxu3 %v9309_v7  ;;  %7757 = vmatpush.bf16.msra.mxu0 %v9273_v46  ;;  %v9621_v7 = vld [vmem:[#allocation18 + $0x4] sm:$0xf] }
 0xa76   : > { %7729 = vmatpush.bf16.msrb.mxu2 %v9237_v63  ;;  %v9173_v42 = vor.u32 %v9621_v7, %v9170_v0 }
 0xa79   : > { %7786 = vmatpush.bf16.msra.mxu3 %v9277_v50  ;;  %7758 = vmatpush.bf16.msra.mxu0 %v9241_v30 }
 0xa7a   : > { %7730 = vmatpush.bf16.msrb.mxu2 %v9205_v48 }
 0xa7d   : > { %7787 = vmatpush.bf16.msra.mxu3 %v9245_v54  ;;  %7759 = vmatpush.bf16.msra.mxu0 %v9209_v53 }
 0xa7e   : > { %7731 = vmatpush.bf16.msrb.mxu2 %v9173_v42 }
 0xa81   : > { %7788 = vmatpush.bf16.msra.mxu3 %v9213_v1  ;;  %7760 = vmatpush.bf16.msra.mxu0 %v9177_v31  ;;  %v9679_v1 = vld [vmem:[#allocation18 + $0x1d4] sm:$0xf] }
 0xa87   : > { %v7148_v55 = vpop.xlane.xlu0 %7147 }
 0xa88   : > { %v7163_v17 = vmul.f32 %v7148_v55, %v13333_v22 }
 0xa8a   : > { %v14457_v45 = vadd.f32 1e-05, %v7163_v17  ;;  %v9200_v17 = vld [vmem:[#allocation18 + $0x40] sm:$0xf] }
 0xa8b   : > { %v9201_v5 = vor.u32 %v9633_v3, %v9200_v17 }
 0xa8c   : > { %10271 = vrsqrt.f32 %v14457_v45  ;;  %vm7185_vm15 = vweird.f32 %v14457_v45 }
 0xa8d   : > { %7701 = vmatpush.bf16.msrb.mxu1 %v9201_v5 }
 0xa8f   : > { %v7122_v43 = vpop.xlane.xlu0 %7121  ;;  %v7150_v61 = vpop.xlane.xlu1 %7149 }
 0xa90   : > { %v7130_v14 = vmul.f32 %v7122_v43, %v13333_v22  ;;  %v7164_v20 = vmul.f32 %v7150_v61, %v13333_v22  ;;  %v9178_v43 = vld [vmem:[#allocation18 + $0x28] sm:$0xf0] }
 0xa91   : > { %7702 = vmatpush.bf16.msrb.mxu1 %v9169_v26 }
 0xa92   : > { %v14462_v55 = vpop.eup %10271  ;;  %v14465_v29 = vsub.f32 %v14421_v52, %v7130_v14  ;;  %v14467_v16 = vadd.f32 1e-05, %v7164_v20  ;;  %v9181_v20 = vor.u32 %v9622_v10, %v9178_v43  ;;  %v9413_v10 = vor.u32 %v9679_v1, %v9410_v44  ;;  %v14740_v52 = vld [vmem:[#allocation19 + $0x98] sm:$0xff] }
 0xa93   : > { %v7180_v38 = vmul.f32 %v14462_v55, %v14457_v45  ;;  %vm7186_vm14 = vweird.f32 %v14462_v55 }
 0xa94   : > { %10273 = vrsqrt.f32 %v14467_v16  ;;  %v7146_v25 = vmul.f32 %v14465_v29, %v14465_v29  ;;  %vm7187_vm0 = vmor %vm7185_vm15, %vm7186_vm14  ;;  %7789 = vmatpush.bf16.msra.mxu3 %v9181_v20  ;;  %vm7195_vm2 = vweird.f32 %v14467_v16  ;;  %7840 = vmatpush.bf16.msra.mxu2 %v9413_v10 }
 0xa95   : > { %v7181_v58 = vmul.f32 %v14462_v55, %v7180_v38 }
 0xa96   : > { %7161 = vadd.xlane.f32.xlu0 %v7146_v25 }
 0xa97   : > { %v7182_v13 = vmul.f32 0.5, %v7181_v58 }
 0xa99   : > { %v7183_v61 = vsub.f32 1.5, %v7182_v13 }
 0xa9a   : > { %v10274_v46 = vpop.eup %10273 }
 0xa9b   : > { %v7184_v59 = vmul.f32 %v14462_v55, %v7183_v61  ;;  %v7190_v14 = vmul.f32 %v10274_v46, %v14467_v16  ;;  %vm7196_vm1 = vweird.f32 %v10274_v46 }
 0xa9c   : > { %vm7197_vm3 = vmor %vm7195_vm2, %vm7196_vm1 }
 0xa9d   : > { %v7191_v50 = vmul.f32 %v10274_v46, %v7190_v14  ;;  %v7188_v35 = vsel %vm7187_vm0, %v14462_v55, %v7184_v59 }
 0xa9e   : > { %v7259_v32 = vmul.f32 %v7188_v35, %v14412_v6 }
 0xa9f   : > { %v7192_v4 = vmul.f32 0.5, %v7191_v50 }
 0xaa0   : > { %v7270_v63 = vmul.f32 %v14480_v2, %v7259_v32 }
 0xaa1   : > { %v7193_v12 = vsub.f32 1.5, %v7192_v4 }
 0xaa2   : > { %v7281_v17 = vadd.f32 %v14484_v24, %v7270_v63 }
 0xaa3   : > { %v7194_v56 = vmul.f32 %v10274_v46, %v7193_v12 }
 0xaa5   : > { %v7198_v45 = vsel %vm7197_vm3, %v10274_v46, %v7194_v56 }
 0xaa6   : > { %v7260_v55 = vmul.f32 %v7198_v45, %v14418_v39 }
 0xaa8   : > { %v7271_v21 = vmul.f32 %v14480_v2, %v7260_v55 }
 0xaaa   : > { %v7282_v38 = vadd.f32 %v14484_v24, %v7271_v21 }
 0xaac   : > { %v14491_v30 = vpack.c.bf16 %v7282_v38, %v7281_v17 }
 0xaae   : > { %7703 = vmatmul.bf16.vlgmr.msrb.gmra.mxu1 %v14491_v30  ;;  %7732 = vmatmul.bf16.vlgmr.msrb.gmra.mxu2 %v14491_v30 }
 0xaaf   : > { %v7152_v6 = vpop.xlane.xlu1 %7151  ;;  %7761 = vmatmul.bf16.vlgmr.msra.gmra.mxu0 %v14491_v30  ;;  %7790 = vmatmul.bf16.vlgmr.msra.gmra.mxu3 %v14491_v30 }
 0xab0   : > { %v7165_v16 = vmul.f32 %v7152_v6, %v13333_v22 }
 0xab2   : > { %v7173_v39 = vadd.f32 1e-05, %v7165_v16 }
 0xab4   : > { %10275 = vrsqrt.f32 %v7173_v39  ;;  %vm7205_vm5 = vweird.f32 %v7173_v39 }
 0xab7   : > { %v7154_v54 = vpop.xlane.xlu2 %7153 }
 0xab8   : > { %v7166_v3 = vmul.f32 %v7154_v54, %v13333_v22 }
 0xaba   : > { %v10276_v19 = vpop.eup %10275  ;;  %v7174_v34 = vadd.f32 1e-05, %v7166_v3 }
 0xabb   : > { %v7200_v25 = vmul.f32 %v10276_v19, %v7173_v39  ;;  %vm7206_vm4 = vweird.f32 %v10276_v19 }
 0xabc   : > { %10277 = vrsqrt.f32 %v7174_v34  ;;  %vm7207_vm6 = vmor %vm7205_vm5, %vm7206_vm4  ;;  %vm7215_vm8 = vweird.f32 %v7174_v34 }
 0xabd   : > { %v7201_v60 = vmul.f32 %v10276_v19, %v7200_v25 }
 0xabf   : > { %v7202_v11 = vmul.f32 0.5, %v7201_v60  ;;  %v7156_v58 = vpop.xlane.xlu0 %7155 }
 0xac0   : > { %v7167_v5 = vmul.f32 %v7156_v58, %v13333_v22  ;;  %v9408_v58 = vld [vmem:[#allocation18 + $0x1d0] sm:$0xf] }
 0xac1   : > { %v7203_v23 = vsub.f32 1.5, %v7202_v11  ;;  %v9378_v11 = vld [vmem:[#allocation18 + $0x1b0] sm:$0xf0] }
 0xac2   : > { %v10278_v47 = vpop.eup %10277  ;;  %v7175_v18 = vadd.f32 1e-05, %v7167_v5  ;;  %v9683_v5 = vld [vmem:[#allocation18 + $0x1ec] sm:$0xf0] }
 0xac3   : > { %v7204_v48 = vmul.f32 %v10276_v19, %v7203_v23  ;;  %v7210_v36 = vmul.f32 %v10278_v47, %v7174_v34  ;;  %vm7216_vm7 = vweird.f32 %v10278_v47  ;;  %v9663_v23 = vld [vmem:[#allocation18 + $0x154] sm:$0xf] }
 0xac4   : > { %10279 = vrsqrt.f32 %v7175_v18  ;;  %vm7217_vm9 = vmor %vm7215_vm8, %vm7216_vm7  ;;  %vm7225_vm11 = vweird.f32 %v7175_v18 }
 0xac5   : > { %v7211_v7 = vmul.f32 %v10278_v47, %v7210_v36  ;;  %v7208_v0 = vsel %vm7207_vm6, %v10276_v19, %v7204_v48  ;;  %v9680_v48 = vld [vmem:[#allocation18 + $0x1dc] sm:$0xf] }
 0xac6   : > { %v7261_v26 = vmul.f32 %v7208_v0, %v14428_v49  ;;  %v9418_v36 = vld [vmem:[#allocation18 + $0x1f8] sm:$0xf0] }
 0xac7   : > { %v7212_v13 = vmul.f32 0.5, %v7211_v7  ;;  %v7158_v53 = vpop.xlane.xlu1 %7157  ;;  %v9421_v0 = vor.u32 %v9680_v48, %v9418_v36  ;;  %v9280_v48 = vld [vmem:[#allocation18 + $0xd0] sm:$0xf] }
 0xac8   : > { %v7168_v9 = vmul.f32 %v7158_v53, %v13333_v22  ;;  %v7272_v20 = vmul.f32 %v14480_v2, %v7261_v26  ;;  %v9675_v26 = vld [vmem:[#allocation18 + $0x1ac] sm:$0xf0] }
 0xac9   : > { %v7213_v43 = vsub.f32 1.5, %v7212_v13  ;;  %7898 = vmatpush.bf16.msrb.mxu3 %v9421_v0  ;;  %v9651_v36 = vld [vmem:[#allocation18 + $0xec] sm:$0xf0] }
 0xaca   : > { %v10280_v61 = vpop.eup %10279  ;;  %v7176_v46 = vadd.f32 1e-05, %v7168_v9  ;;  %v7283_v49 = vadd.f32 %v14484_v24, %v7272_v20 }
 0xacb   : > { %v7214_v42 = vmul.f32 %v10278_v47, %v7213_v43  ;;  %v7220_v31 = vmul.f32 %v10280_v61, %v7175_v18  ;;  %vm7226_vm10 = vweird.f32 %v10280_v61  ;;  %v9409_v18 = vor.u32 %v9683_v5, %v9408_v58  ;;  %v9352_v5 = vld [vmem:[#allocation18 + $0x158] sm:$0xf] }
 0xacc   : > { %10281 = vrsqrt.f32 %v7176_v46  ;;  %vm7227_vm12 = vmor %vm7225_vm11, %vm7226_vm10  ;;  %vm7235_vm14 = vweird.f32 %v7176_v46 }
 0xacd   : > { %v7218_v59 = vsel %vm7217_vm9, %v10278_v47, %v7214_v42  ;;  %v7221_v14 = vmul.f32 %v10280_v61, %v7220_v31  ;;  %v9346_v47 = vld [vmem:[#allocation18 + $0x170] sm:$0xf0]  ;;  %7811 = vmatpush.bf16.msra.mxu1 %v9409_v18  ;;  %v9668_v18 = vld [vmem:[#allocation18 + $0x174] sm:$0xf0] }
 0xace   : > { %v7262_v50 = vmul.f32 %v7218_v59, %v14434_v33  ;;  %v9349_v7 = vor.u32 %v9663_v23, %v9346_v47  ;;  %v9314_v31 = vld [vmem:[#allocation18 + $0x130] sm:$0xf0]  ;;  %v9672_v59 = vld [vmem:[#allocation18 + $0x19c] sm:$0xf]  ;;  %v9353_v0 = vor.u32 %v9668_v18, %v9352_v5 }
 0xacf   : > { %v7222_v35 = vmul.f32 0.5, %v7221_v14  ;;  %v9386_v14 = vld [vmem:[#allocation18 + $0x1b8] sm:$0xf0] }
 0xad0   : > { %v7273_v4 = vmul.f32 %v14480_v2, %v7262_v50  ;;  %v9389_v50 = vor.u32 %v9672_v59, %v9386_v14  ;;  %v9248_v59 = vld [vmem:[#allocation18 + $0x90] sm:$0xf] }
 0xad1   : > { %v7223_v12 = vsub.f32 1.5, %v7222_v35  ;;  %v9344_v35 = vld [vmem:[#allocation18 + $0x150] sm:$0xf] }
 0xad2   : > { %v10282_v32 = vpop.eup %10281  ;;  %v7284_v56 = vadd.f32 %v14484_v24, %v7273_v4  ;;  %v9667_v4 = vld [vmem:[#allocation18 + $0x16c] sm:$0xf0]  ;;  %7899 = vmatpush.bf16.msrb.mxu3 %v9389_v50 }
 0xad3   : > { %v7224_v45 = vmul.f32 %v10280_v61, %v7223_v12  ;;  %v7230_v63 = vmul.f32 %v10282_v32, %v7176_v46  ;;  %vm7236_vm13 = vweird.f32 %v10282_v32  ;;  %v9655_v46 = vld [vmem:[#allocation18 + $0x114] sm:$0xf]  ;;  %v9416_v12 = vld [vmem:[#allocation18 + $0x1d8] sm:$0xf]  ;;  %v9643_v14 = vld [vmem:[#allocation18 + $0xac] sm:$0xf0] }
 0xad4   : > { %v14507_v55 = vpack.c.bf16 %v7284_v56, %v7283_v49  ;;  %vm7237_vm15 = vmor %vm7235_vm14, %vm7236_vm13  ;;  %v9317_v20 = vor.u32 %v9655_v46, %v9314_v31  ;;  %v9345_v49 = vor.u32 %v9667_v4, %v9344_v35  ;;  %v9684_v56 = vld [vmem:[#allocation18 + $0x1f4] sm:$0xf0]  ;;  %v9258_v4 = vld [vmem:[#allocation18 + $0xb8] sm:$0xf0] }
 0xad5   : > { %v7231_v21 = vmul.f32 %v10282_v32, %v7230_v63  ;;  %v7228_v33 = vsel %vm7227_vm12, %v10280_v61, %v7224_v45  ;;  %v9376_v61 = vld [vmem:[#allocation18 + $0x190] sm:$0xf]  ;;  %v9647_v45 = vld [vmem:[#allocation18 + $0xd4] sm:$0xf]  ;;  %v9660_v46 = vld [vmem:[#allocation18 + $0x134] sm:$0xf0] }
 0xad6   : > { %7708 = vmatmul.bf16.gmra.mxu1 %v14507_v55  ;;  %7737 = vmatmul.bf16.gmra.mxu2 %v14507_v55  ;;  %v7263_v6 = vmul.f32 %v7228_v33, %v14440_v28  ;;  %v9671_v28 = vld [vmem:[#allocation18 + $0x194] sm:$0xf]  ;;  %v9377_v42 = vor.u32 %v9675_v26, %v9376_v61  ;;  %v9417_v33 = vor.u32 %v9684_v56, %v9416_v12  ;;  %v9320_v26 = vld [vmem:[#allocation18 + $0x118] sm:$0xf] }
 0xad7   : > { %v7232_v17 = vmul.f32 0.5, %v7231_v21  ;;  %7766 = vmatmul.bf16.gmra.mxu0 %v14507_v55  ;;  %7795 = vmatmul.bf16.gmra.mxu3 %v14507_v55  ;;  %v9282_v63 = vld [vmem:[#allocation18 + $0xf0] sm:$0xf0]  ;;  %v9281_v61 = vor.u32 %v9651_v36, %v9280_v48  ;;  %v9321_v35 = vor.u32 %v9660_v46, %v9320_v26  ;;  %v9288_v56 = vld [vmem:[#allocation18 + $0xd8] sm:$0xf] }
 0xad8   : > { %v7274_v54 = vmul.f32 %v14480_v2, %v7263_v6  ;;  %7812 = vmatpush.bf16.msra.mxu1 %v9377_v42  ;;  %v9354_v6 = vld [vmem:[#allocation18 + $0x178] sm:$0xf0]  ;;  %7869 = vmatpush.bf16.msrb.mxu0 %v9417_v33  ;;  %v9623_v12 = vld [vmem:[#allocation18 + $0x14] sm:$0xf]  ;;  %v9192_v26 = vld [vmem:[#allocation18 + $0x18] sm:$0xf] }
 0xad9   : > { %v7233_v38 = vsub.f32 1.5, %v7232_v17  ;;  %v9285_v17 = vor.u32 %v9647_v45, %v9282_v63  ;;  %v9652_v45 = vld [vmem:[#allocation18 + $0xf4] sm:$0xf0]  ;;  %v9249_v63 = vor.u32 %v9643_v14, %v9248_v59 }
 0xada   : > { %v7285_v34 = vadd.f32 %v14484_v24, %v7274_v54  ;;  %v9659_v54 = vld [vmem:[#allocation18 + $0x12c] sm:$0xf0] }
 0xadb   : > { %v7234_v16 = vmul.f32 %v10282_v32, %v7233_v38  ;;  %v9664_v38 = vld [vmem:[#allocation18 + $0x15c] sm:$0xf] }
 0xadc   : > { %7813 = vmatpush.bf16.msra.mxu1 %v9345_v49 }
 0xadd   : > { %v7238_v39 = vsel %vm7237_vm15, %v10282_v32, %v7234_v16  ;;  %v9312_v16 = vld [vmem:[#allocation18 + $0x110] sm:$0xf] }
 0xade   : > { %v7264_v3 = vmul.f32 %v7238_v39, %v14446_v62  ;;  %v9381_v62 = vor.u32 %v9671_v28, %v9378_v11  ;;  %v9357_v39 = vor.u32 %v9664_v38, %v9354_v6  ;;  %v9639_v28 = vld [vmem:[#allocation18 + $0x94] sm:$0xf]  ;;  %v9313_v58 = vor.u32 %v9659_v54, %v9312_v16  ;;  %v9635_v38 = vld [vmem:[#allocation18 + $0x6c] sm:$0xf0]  ;;  %v9632_v16 = vld [vmem:[#allocation18 + $0x5c] sm:$0xf] }
 0xadf   : > { %v9250_v11 = vld [vmem:[#allocation18 + $0xb0] sm:$0xf0] }
 0xae0   : > { %v7275_v19 = vmul.f32 %v14480_v2, %v7264_v3  ;;  %7841 = vmatpush.bf16.msra.mxu2 %v9381_v62  ;;  %v9384_v3 = vld [vmem:[#allocation18 + $0x198] sm:$0xf]  ;;  %v9322_v62 = vld [vmem:[#allocation18 + $0x138] sm:$0xf0]  ;;  %7900 = vmatpush.bf16.msrb.mxu3 %v9357_v39  ;;  %v9253_v23 = vor.u32 %v9639_v28, %v9250_v11 }
 0xae1   : > { %7814 = vmatpush.bf16.msra.mxu1 %v9313_v58  ;;  %v9226_v39 = vld [vmem:[#allocation18 + $0x78] sm:$0xf0]  ;;  %v9256_v28 = vld [vmem:[#allocation18 + $0x98] sm:$0xf] }
 0xae2   : > { %v7286_v25 = vadd.f32 %v14484_v24, %v7275_v19  ;;  %v9676_v19 = vld [vmem:[#allocation18 + $0x1b4] sm:$0xf0]  ;;  %v9229_v58 = vor.u32 %v9632_v16, %v9226_v39  ;;  %v9690_v16 = vld [vmem:[#allocation19 + $0x28] sm:$0xff] }
 0xae3   : > { %v9644_v11 = vld [vmem:[#allocation18 + $0xb4] sm:$0xf0] }
 0xae4   : > { %v14519_v60 = vpack.c.bf16 %v7286_v25, %v7285_v34  ;;  %7842 = vmatpush.bf16.msra.mxu2 %v9349_v7  ;;  %v9385_v25 = vor.u32 %v9676_v19, %v9384_v3  ;;  %v9631_v7 = vld [vmem:[#allocation18 + $0x54] sm:$0xf]  ;;  %v9289_v3 = vor.u32 %v9652_v45, %v9288_v56  ;;  %v9257_v48 = vor.u32 %v9644_v11, %v9256_v28 }
 0xae5   : > { %v7160_v13 = vpop.xlane.xlu2 %7159  ;;  %7815 = vmatpush.bf16.msra.mxu1 %v9281_v61 }
 0xae6   : > { %7713 = vmatmul.bf16.gmra.mxu1 %v14519_v60  ;;  %7742 = vmatmul.bf16.gmra.mxu2 %v14519_v60  ;;  %v7169_v53 = vmul.f32 %v7160_v13, %v13333_v22  ;;  %v9218_v13 = vld [vmem:[#allocation18 + $0x70] sm:$0xf0] }
 0xae7   : > { %7771 = vmatmul.bf16.gmra.mxu0 %v14519_v60  ;;  %7800 = vmatmul.bf16.gmra.mxu3 %v14519_v60  ;;  %v9221_v42 = vor.u32 %v9631_v7, %v9218_v13  ;;  %v9636_v7 = vld [vmem:[#allocation18 + $0x74] sm:$0xf0] }
 0xae8   : > { %v14526_v1 = vadd.f32 1e-05, %v7169_v53  ;;  %7843 = vmatpush.bf16.msra.mxu2 %v9317_v20  ;;  %7870 = vmatpush.bf16.msrb.mxu0 %v9385_v25  ;;  %v9648_v53 = vld [vmem:[#allocation18 + $0xdc] sm:$0xf] }
 0xae9   : > { %v9640_v20 = vld [vmem:[#allocation18 + $0x9c] sm:$0xf]  ;;  %7816 = vmatpush.bf16.msra.mxu1 %v9249_v63  ;;  %v9691_v63 = vld [vmem:[#allocation19 + $0x30] sm:$0xff] }
 0xaea   : > { %10283 = vrsqrt.f32 %v14526_v1  ;;  %vm7245_vm1 = vweird.f32 %v14526_v1 }
 0xaec   : > { %7844 = vmatpush.bf16.msra.mxu2 %v9285_v17  ;;  %7871 = vmatpush.bf16.msrb.mxu0 %v9353_v0  ;;  %v9216_v17 = vld [vmem:[#allocation18 + $0x50] sm:$0xf] }
 0xaf0   : > { %v14529_v44 = vpop.eup %10283  ;;  %7845 = vmatpush.bf16.msra.mxu2 %v9253_v23  ;;  %7872 = vmatpush.bf16.msrb.mxu0 %v9321_v35  ;;  %v9624_v23 = vld [vmem:[#allocation18 + $0x1c] sm:$0xf] }
 0xaf1   : > { %v7240_v9 = vmul.f32 %v14529_v44, %v14526_v1  ;;  %vm7246_vm0 = vweird.f32 %v14529_v44  ;;  %v9217_v1 = vor.u32 %v9635_v38, %v9216_v17 }
 0xaf2   : > { %vm14547_vm2 = vmor %vm7245_vm1, %vm7246_vm0 }
 0xaf3   : > { %v7241_v10 = vmul.f32 %v14529_v44, %v7240_v9  ;;  %v9290_v9 = vld [vmem:[#allocation18 + $0xf8] sm:$0xf0]  ;;  %7817 = vmatpush.bf16.msra.mxu1 %v9217_v1 }
 0xaf4   : > { %v9293_v31 = vor.u32 %v9648_v53, %v9290_v9  ;;  %7846 = vmatpush.bf16.msra.mxu2 %v9221_v42  ;;  %7873 = vmatpush.bf16.msrb.mxu0 %v9289_v3 }
 0xaf5   : > { %v14534_v43 = vmul.f32 0.5, %v7241_v10 }
 0xaf7   : > { %v7243_v10 = vsub.f32 1.5, %v14534_v43 }
 0xaf8   : > { %7874 = vmatpush.bf16.msrb.mxu0 %v9257_v48 }
 0xaf9   : > { %v7244_v49 = vmul.f32 %v14529_v44, %v7243_v10 }
 0xafb   : > { %v7248_v19 = vsel %vm14547_vm2, %v14529_v44, %v7244_v49  ;;  %v9224_v44 = vld [vmem:[#allocation18 + $0x58] sm:$0xf] }
 0xafc   : > { %v7265_v18 = vmul.f32 %v7248_v19, %v14452_v41  ;;  %v9225_v61 = vor.u32 %v9636_v7, %v9224_v44  ;;  %v14629_v7 = vld [vmem:[#allocation19 + $0xb0] sm:$0xff] }
 0xafe   : > { %v7276_v9 = vmul.f32 %v14480_v2, %v7265_v18  ;;  %7875 = vmatpush.bf16.msrb.mxu0 %v9225_v61  ;;  %v9697_v18 = vld [vmem:[#allocation19 + $0x60] sm:$0xff]  ;;  %v14640_v61 = vld [vmem:[#allocation19 + $0xa8] sm:$0xff] }
 0xb00   : > { %v7287_v46 = vadd.f32 %v14484_v24, %v7276_v9 }
 0xb09   : > { %v7162_v32 = vpop.xlane.xlu0 %7161 }
 0xb0a   : > { %v7170_v21 = vmul.f32 %v7162_v32, %v13333_v22  ;;  %v9656_v22 = vld [vmem:[#allocation18 + $0x11c] sm:$0xf]  ;;  %v9186_v32 = vld [vmem:[#allocation18 + $0x30] sm:$0xf0] }
 0xb0b   : > { %v9325_v47 = vor.u32 %v9656_v22, %v9322_v62  ;;  %v9189_v33 = vor.u32 %v9623_v12, %v9186_v32  ;;  %v9184_v22 = vld [vmem:[#allocation18 + $0x10] sm:$0xf] }
 0xb0c   : > { %v14537_v34 = vadd.f32 1e-05, %v7170_v21  ;;  %v9261_v21 = vor.u32 %v9640_v20, %v9258_v4  ;;  %v9627_v62 = vld [vmem:[#allocation18 + $0x2c] sm:$0xf0] }
 0xb0d   : > { %7901 = vmatpush.bf16.msrb.mxu3 %v9325_v47  ;;  %7847 = vmatpush.bf16.msra.mxu2 %v9189_v33  ;;  %v9194_v47 = vld [vmem:[#allocation18 + $0x38] sm:$0xf0]  ;;  %v9185_v0 = vor.u32 %v9627_v62, %v9184_v22  ;;  %v9698_v33 = vld [vmem:[#allocation19 + $0x68] sm:$0xff] }
 0xb0e   : > { %10285 = vrsqrt.f32 %v14537_v34  ;;  %vm7255_vm4 = vweird.f32 %v14537_v34  ;;  %v9197_v13 = vor.u32 %v9624_v23, %v9194_v47 }
 0xb0f   : > { %7818 = vmatpush.bf16.msra.mxu1 %v9185_v0 }
 0xb11   : > { %7902 = vmatpush.bf16.msrb.mxu3 %v9293_v31 }
 0xb14   : > { %v10286_v50 = vpop.eup %10285 }
 0xb15   : > { %v7250_v43 = vmul.f32 %v10286_v50, %v14537_v34  ;;  %7903 = vmatpush.bf16.msrb.mxu3 %v9261_v21  ;;  %vm7256_vm3 = vweird.f32 %v10286_v50  ;;  %v9628_v34 = vld [vmem:[#allocation18 + $0x34] sm:$0xf0] }
 0xb16   : > { %vm7257_vm5 = vmor %vm7255_vm4, %vm7256_vm3  ;;  %v9193_v59 = vor.u32 %v9628_v34, %v9192_v26 }
 0xb17   : > { %v7251_v6 = vmul.f32 %v10286_v50, %v7250_v43  ;;  %v9699_v43 = vld [vmem:[#allocation19 + $0x70] sm:$0xff] }
 0xb18   : > { %7876 = vmatpush.bf16.msrb.mxu0 %v9193_v59 }
 0xb19   : > { %v7252_v25 = vmul.f32 0.5, %v7251_v6  ;;  %7904 = vmatpush.bf16.msrb.mxu3 %v9229_v58 }
 0xb1b   : > { %v7253_v5 = vsub.f32 1.5, %v7252_v25  ;;  %v7357_v25 = vld [vmem:[%s15511_s9] sm:$0xff]  ;;  %s10667_s9 = scalar_lea.hbm %s10666_s6, 32 }
 0xb1c   : > { %v14608_v11 = vperm.slane %v7357_v25, 0  ;;  %v14632_v0 = vperm.slane %v7357_v25, 2  ;;  %v14638_v9 = vperm.slane %v7357_v25, 4  ;;  %v14644_v26 = vperm.slane %v7357_v25, 6  ;;  %p10668_p0 = scmp.ne.s32.totalorder %s10666_s6, %s10667_s9 }
 0xb1d   : > { %v7254_v36 = vmul.f32 %v10286_v50, %v7253_v5  ;;  %7905 = vmatpush.bf16.msrb.mxu3 %v9197_v13  ;;  %v14617_v5 = vld [vmem:[#allocation19 + $0xb8] sm:$0xff]  ;;  %v14634_v13 = vperm.slane %v7357_v25, 1 }
 0xb1e   : > { %8581 = vmatpush.bf16.msra.mxu0 %v14617_v5  ;;  %p10669_p1 = pnand %p10668_p0, %p11081_p12 }
 0xb1f   : > { %v7258_v53 = vsel %vm7257_vm5, %v10286_v50, %v7254_v36  ;;  %15516 = vst [vmem:[#allocation70_spill] sm:$0xff] %v14634_v13 }
 0xb20   : > { %v7266_v10 = vmul.f32 %v7258_v53, %v14465_v29  ;;  %v9700_v29 = vld [vmem:[#allocation19 + $0x78] sm:$0xff]  ;;  %v14636_v53 = vperm.slane %v7357_v25, 3  ;;  %p10670_p3 = pneg %p10669_p1 }
 0xb21   : > { %8552 = vmatpush.bf16.msrb.mxu2 %v9700_v29 }
 0xb22   : > { %v7277_v41 = vmul.f32 %v14480_v2, %v7266_v10  ;;  %v9692_v2 = vld [vmem:[#allocation19 + $0x38] sm:$0xff]  ;;  %8582 = vmatpush.bf16.msra.mxu0 %v14629_v7  ;;  %15517 = vst [vmem:[#allocation71_spill] sm:$0xff] %v14636_v53  ;;  %v9689_v10 = vld [vmem:[#allocation19 + $0x20] sm:$0xff] }
 0xb23   : > { %8523 = vmatpush.bf16.msrb.mxu1 %v9692_v2 }
 0xb24   : > { %v7288_v42 = vadd.f32 %v14484_v24, %v7277_v41 }
 0xb25   : > { %8553 = vmatpush.bf16.msrb.mxu2 %v9699_v43 }
 0xb26   : > { %v7292_v31 = vpack.c.bf16 %v7288_v42, %v7287_v46  ;;  %v9696_v42 = vld [vmem:[#allocation19 + $0x58] sm:$0xff]  ;;  %8583 = vmatpush.bf16.msra.mxu0 %v14640_v61 }
 0xb27   : > { %8524 = vmatpush.bf16.msrb.mxu1 %v9691_v63 }
 0xb28   : > { %7718 = vmatmul.bf16.gmra.mxu1 %v7292_v31  ;;  %7747 = vmatmul.bf16.gmra.mxu2 %v7292_v31 }
 0xb29   : > { %7776 = vmatmul.bf16.gmra.mxu0 %v7292_v31  ;;  %7805 = vmatmul.bf16.gmra.mxu3 %v7292_v31 }
 0xb2a   : > { %8554 = vmatpush.bf16.msrb.mxu2 %v9698_v33 }
 0xb2b   : > { %v7704_v24 = vpop.f32.mrf.mxu1  ;;  %8525 = vmatpush.bf16.msrb.mxu1 %v9690_v16 }
 0xb2c   : > { %v14647_v34 = vadd.f32 %v7704_v24, %v14608_v11 }
 0xb2e   : > { %8555 = vmatpush.bf16.msrb.mxu2 %v9697_v18 }
 0xb2f   : > { %8526 = vmatpush.bf16.msrb.mxu1 %v9689_v10  ;;  %v14711_v10 = vperm.slane %v7357_v25, 7 }
 0xb31   : > { %v7733_v14 = vpop.f32.mrf.mxu2 }
 0xb32   : > { %v14658_v29 = vadd.f32 %v7733_v14, %v14634_v13  ;;  %8556 = vmatpush.bf16.msrb.mxu2 %v9696_v42  ;;  %v14676_v14 = vld [vmem:[#allocation19 + $0xa0] sm:$0xff] }
 0xb33   : > { %v7706_v20 = vpop.f32.mrf.mxu1  ;;  %8584 = vmatpush.bf16.msra.mxu0 %v14676_v14 }
 0xb34   : > { %v14664_v24 = vadd.f32 %v7706_v20, %v14608_v11 }
 0xb37   : > { %8585 = vmatpush.bf16.msra.mxu0 %v14740_v52 }
 0xb38   : > { %7819 = vmatmul.bf16.vlgmr.msra.gmra.mxu1 %v14491_v30  ;;  %7848 = vmatmul.bf16.vlgmr.msra.gmra.mxu2 %v14491_v30 }
 0xb39   : > { %7877 = vmatmul.bf16.vlgmr.msrb.gmra.mxu0 %v14491_v30  ;;  %7906 = vmatmul.bf16.vlgmr.msrb.gmra.mxu3 %v14491_v30  ;;  %v7762_v30 = vpop.f32.mrf.mxu0  ;;  %v7735_v35 = vpop.f32.mrf.mxu2 }
 0xb3a   : > { %v14655_v59 = vadd.f32 %v7762_v30, %v14632_v0  ;;  %v14670_v33 = vadd.f32 %v7735_v35, %v14634_v13 }
 0xb41   : > { %v7764_v50 = vpop.f32.mrf.mxu0 }
 0xb42   : > { %v14667_v63 = vadd.f32 %v7764_v50, %v14632_v0 }
 0xb48   : > { %7824 = vmatmul.bf16.gmra.mxu1 %v14507_v55  ;;  %7853 = vmatmul.bf16.gmra.mxu2 %v14507_v55 }
 0xb49   : > { %7882 = vmatmul.bf16.gmra.mxu0 %v14507_v55  ;;  %7911 = vmatmul.bf16.gmra.mxu3 %v14507_v55  ;;  %v7791_v55 = vpop.f32.mrf.mxu3 }
 0xb4a   : > { %v14661_v2 = vadd.f32 %v7791_v55, %v14636_v53 }
 0xb4c   : > { %15520 = vst [vmem:[#allocation74_spill] sm:$0xff] %v14661_v2 }
 0xb51   : > { %v14573_v4 = vpop.f32.mrf.mxu3 }
 0xb52   : > { %v14680_v55 = vadd.f32 %v14573_v4, %v14636_v53 }
 0xb53   : > { %v14575_v12 = vpop.f32.mrf.mxu1 }
 0xb54   : > { %v14577_v32 = vpop.f32.mrf.mxu0  ;;  %15521 = vst [vmem:[#allocation75_spill] sm:$0xff] %v14680_v55  ;;  %v14684_v20 = vadd.f32 %v14575_v12, %v14608_v11 }
 0xb55   : > { %v14688_v50 = vadd.f32 %v14577_v32, %v14632_v0 }
 0xb58   : > { %7829 = vmatmul.bf16.gmra.mxu1 %v14519_v60  ;;  %7858 = vmatmul.bf16.gmra.mxu2 %v14519_v60 }
 0xb59   : > { %7887 = vmatmul.bf16.gmra.mxu0 %v14519_v60  ;;  %7916 = vmatmul.bf16.gmra.mxu3 %v14519_v60  ;;  %v14579_v49 = vpop.f32.mrf.mxu2 }
 0xb5a   : > { %v14581_v60 = vpop.f32.mrf.mxu3 }
 0xb5b   : > { %v14583_v56 = vpop.f32.mrf.mxu1  ;;  %v14697_v18 = vadd.f32 %v14581_v60, %v14636_v53 }
 0xb5c   : > { %v14585_v45 = vpop.f32.mrf.mxu0  ;;  %v14705_v12 = vadd.f32 %v14583_v56, %v14608_v11 }
 0xb5d   : > { %v14709_v32 = vadd.f32 %v14585_v45, %v14632_v0  ;;  %v9695_v45 = vld [vmem:[#allocation19 + $0x50] sm:$0xff] }
 0xb5e   : > { %8557 = vmatpush.bf16.msrb.mxu2 %v9695_v45  ;;  %v14761_v45 = vld [vmem:[#allocation19 + $0x90] sm:$0xff] }
 0xb5f   : > { %8586 = vmatpush.bf16.msra.mxu0 %v14761_v45 }
 0xb61   : > { %v14587_v21 = vpop.f32.mrf.mxu2 }
 0xb62   : > { %v14589_v17 = vpop.f32.mrf.mxu3  ;;  %v14715_v60 = vadd.f32 %v14587_v21, %v14634_v13 }
 0xb63   : > { %v14591_v38 = vpop.f32.mrf.mxu1  ;;  %v14719_v42 = vadd.f32 %v14589_v17, %v14636_v53 }
 0xb64   : > { %v14593_v6 = vpop.f32.mrf.mxu0 }
 0xb68   : > { %7834 = vmatmul.bf16.gmra.mxu1 %v7292_v31  ;;  %7863 = vmatmul.bf16.gmra.mxu2 %v7292_v31 }
 0xb69   : > { %7892 = vmatmul.bf16.gmra.mxu0 %v7292_v31  ;;  %7921 = vmatmul.bf16.gmra.mxu3 %v7292_v31  ;;  %v14595_v39 = vpop.f32.mrf.mxu2  ;;  %v14651_v31 = vld [vmem:[#allocation19 + $0xf8] sm:$0xff] }
 0xb6a   : > { %v14597_v54 = vpop.f32.mrf.mxu3  ;;  %9822 = vmatpush.bf16.msra.mxu3 %v14651_v31  ;;  %v14734_v21 = vadd.f32 %v14595_v39, %v14634_v13 }
 0xb6b   : > { %v14599_v3 = vpop.f32.mrf.mxu1  ;;  %v14738_v17 = vadd.f32 %v14597_v54, %v14636_v53 }
 0xb6c   : > { %v14601_v19 = vpop.f32.mrf.mxu0  ;;  %15522 = vst [vmem:[#allocation76_spill] sm:$0xff] %v14734_v21 }
 0xb6d   : > { %15523 = vst [vmem:[#allocation77_spill] sm:$0xff] %v14738_v17  ;;  %v14750_v39 = vadd.f32 %v14601_v19, %v14632_v0  ;;  %v9687_v19 = vld [vmem:[#allocation19 + $0x10] sm:$0xff] }
 0xb6e   : > { %9823 = vmatpush.bf16.msra.mxu3 %v14726_v8 }
 0xb6f   : > { %15524 = vst [vmem:[#allocation78_spill] sm:$0xff] %v14750_v39  ;;  %v14879_v39 = vld [vmem:[#allocation19 + $0xc8] sm:$0xff] }
 0xb71   : > { %v14606_v28 = vpop.f32.mrf.mxu2 }
 0xb72   : > { %v14610_v1 = vpop.f32.mrf.mxu3 }
 0xba5   : > { %v7719_v58 = vpop.f32.mrf.mxu1 }
 0xba6   : > { %v14613_v22 = vadd.f32 %v7719_v58, %v14608_v11  ;;  %v14615_v62 = vpop.f32.mrf.mxu0  ;;  %v14693_v58 = vadd.f32 %v14579_v49, %v14634_v13 }
 0xba8   : > { %15512 = vst [vmem:[#allocation66_spill] sm:$0xff] %v14613_v22 }
 0xbab   : > { %v14619_v23 = vpop.f32.mrf.mxu2 }
 0xbac   : > { %15513 = vst [vmem:[#allocation67_spill] sm:$0xff] %v14619_v23  ;;  %v14621_v47 = vpop.f32.mrf.mxu3  ;;  %v14778_v23 = vld [vmem:[#allocation19 + $0x88] sm:$0xff] }
 0xbad   : > { %15514 = vst [vmem:[#allocation68_spill] sm:$0xff] %v14621_v47  ;;  %v7721_v48 = vpop.f32.mrf.mxu1  ;;  %8587 = vmatpush.bf16.msra.mxu0 %v14778_v23 }
 0xbae   : > { %v14625_v36 = vadd.f32 %v7721_v48, %v14608_v11  ;;  %v14627_v44 = vpop.f32.mrf.mxu0  ;;  %v14700_v48 = vperm.slane %v7357_v25, 5  ;;  %v14730_v25 = vadd.f32 %v14593_v6, %v14632_v0 }
 0xbb0   : > { %15515 = vst [vmem:[#allocation69_spill] sm:$0xff] %v14625_v36 }
 0xbb3   : > { %v14642_v41 = vpop.f32.mrf.mxu2 }
 0xbb4   : > { %15518 = vst [vmem:[#allocation72_spill] sm:$0xff] %v14642_v41  ;;  %v14649_v46 = vpop.f32.mrf.mxu3 }
 0xbb5   : > { %15519 = vst [vmem:[#allocation73_spill] sm:$0xff] %v14649_v46  ;;  %v7820_v43 = vpop.f32.mrf.mxu1 }
 0xbb6   : > { %v14673_v16 = vadd.f32 %v7820_v43, %v14638_v9  ;;  %v7878_v30 = vpop.f32.mrf.mxu0  ;;  %v14723_v43 = vadd.f32 %v14591_v38, %v14608_v11 }
 0xbb7   : > { %v7879_v35 = vadd.f32 %v7878_v30, %v14644_v26  ;;  %v9688_v30 = vld [vmem:[#allocation19 + $0x18] sm:$0xff] }
 0xbb8   : > { %v7959_v4 = vmul.f32 0.044715, %v14673_v16  ;;  %8527 = vmatpush.bf16.msrb.mxu1 %v9688_v30 }
 0xbb9   : > { %v7961_v49 = vmul.f32 0.044715, %v7879_v35 }
 0xbba   : > { %v7991_v56 = vmul.f32 %v7959_v4, %v14673_v16  ;;  %v14744_v4 = vadd.f32 %v14599_v3, %v14608_v11  ;;  %v14757_v3 = vadd.f32 %v14606_v28, %v14634_v13  ;;  %v14770_v28 = vadd.f32 %v14615_v62, %v14632_v0  ;;  %v9686_v62 = vld [vmem:[#allocation19 + $0x8] sm:$0xff] }
 0xbbb   : > { %v7993_v38 = vmul.f32 %v7961_v49, %v7879_v35  ;;  %v7849_v51 = vpop.f32.mrf.mxu2 }
 0xbbc   : > { %v8023_v40 = vmul.f32 %v7991_v56, %v14673_v16  ;;  %v7850_v6 = vadd.f32 %v7849_v51, %v14700_v48  ;;  %v7907_v27 = vpop.f32.mrf.mxu3  ;;  %15525 = vst [vmem:[#allocation79_spill] sm:$0xff] %v14757_v3  ;;  %8528 = vmatpush.bf16.msrb.mxu1 %v9687_v19 }
 0xbbd   : > { %v8025_v54 = vmul.f32 %v7993_v38, %v7879_v35  ;;  %v7908_v49 = vadd.f32 %v7907_v27, %v14711_v10  ;;  %v7822_v37 = vpop.f32.mrf.mxu1  ;;  %v14765_v27 = vadd.f32 %v14610_v1, %v14636_v53  ;;  %15527 = vst [vmem:[#allocation81_spill] sm:$0xff] %v14770_v28 }
 0xbbe   : > { %v8055_v51 = vadd.f32 %v8023_v40, %v14673_v16  ;;  %v7960_v11 = vmul.f32 0.044715, %v7850_v6  ;;  %v7823_v56 = vadd.f32 %v7822_v37, %v14638_v9  ;;  %v7880_v30 = vpop.f32.mrf.mxu0  ;;  %v14774_v37 = vadd.f32 %v14627_v44, %v14632_v0  ;;  %v9694_v0 = vld [vmem:[#allocation19 + $0x48] sm:$0xff] }
 0xbbf   : > { %15526 = vst [vmem:[#allocation80_spill] sm:$0xff] %v14765_v27  ;;  %v8057_v38 = vadd.f32 %v8025_v54, %v7879_v35  ;;  %v7962_v57 = vmul.f32 0.044715, %v7908_v49  ;;  %v7881_v15 = vadd.f32 %v7880_v30, %v14644_v26  ;;  %v7927_v54 = vmul.f32 0.5, %v14673_v16  ;;  %8558 = vmatpush.bf16.msrb.mxu2 %v9694_v0 }
 0xbc0   : > { %v8087_v40 = vmul.f32 0.7978846, %v8055_v51  ;;  %v7992_v46 = vmul.f32 %v7960_v11, %v7850_v6  ;;  %v7963_v47 = vmul.f32 0.044715, %v7823_v56  ;;  %15528 = vst [vmem:[#allocation82_spill] sm:$0xff] %v14774_v37  ;;  %v14780_v51 = vmul.f32 0.5, %v7879_v35  ;;  %8529 = vmatpush.bf16.msrb.mxu1 %v9686_v62 }
 0xbc1   : > { %v8089_v41 = vmul.f32 0.7978846, %v8057_v38  ;;  %v7994_v55 = vmul.f32 %v7962_v57, %v7908_v49  ;;  %v7965_v1 = vmul.f32 0.044715, %v7881_v15  ;;  %v14782_v38 = vld [vmem:[#allocation19 + $0xe8] sm:$0xff]  ;;  %v14784_v57 = vmul.f32 0.5, %v7850_v6 }
 0xbc2   : > { %10287 = vtanh.f32 %v8087_v40  ;;  %v8024_v30 = vmul.f32 %v7992_v46, %v7850_v6  ;;  %v7995_v53 = vmul.f32 %v7963_v47, %v7823_v56  ;;  %v14787_v47 = vmul.f32 0.5, %v7908_v49  ;;  %9824 = vmatpush.bf16.msra.mxu3 %v14782_v38 }
 0xbc3   : > { %10289 = vtanh.f32 %v8089_v41  ;;  %v8026_v11 = vmul.f32 %v7994_v55, %v7908_v49  ;;  %v7997_v19 = vmul.f32 %v7965_v1, %v7881_v15  ;;  %v7851_v44 = vpop.f32.mrf.mxu2  ;;  %v14791_v36 = vmul.f32 0.5, %v7823_v56 }
 0xbc4   : > { %v8056_v13 = vadd.f32 %v8024_v30, %v7850_v6  ;;  %v8027_v2 = vmul.f32 %v7995_v53, %v7823_v56  ;;  %v7852_v16 = vadd.f32 %v7851_v44, %v14700_v48  ;;  %v7909_v46 = vpop.f32.mrf.mxu3  ;;  %v9685_v30 = vld [vmem:[#allocation19] sm:$0xff]  ;;  %v14794_v44 = vmul.f32 0.5, %v7881_v15 }
 0xbc5   : > { %v8058_v40 = vadd.f32 %v8026_v11, %v7908_v49  ;;  %v8029_v35 = vmul.f32 %v7997_v19, %v7881_v15  ;;  %v7910_v41 = vadd.f32 %v7909_v46, %v14711_v10  ;;  %v7825_v55 = vpop.f32.mrf.mxu1  ;;  %v14796_v19 = vld [vmem:[#allocation19 + $0x80] sm:$0xff]  ;;  %8530 = vmatpush.bf16.msrb.mxu1 %v9685_v30 }
 0xbc6   : > { %v8088_v1 = vmul.f32 0.7978846, %v8056_v13  ;;  %v8059_v37 = vadd.f32 %v8027_v2, %v7823_v56  ;;  %v7964_v6 = vmul.f32 0.044715, %v7852_v16  ;;  %v7883_v53 = vpop.f32.mrf.mxu0  ;;  %v14799_v13 = vadd.f32 %v7825_v55, %v14638_v9  ;;  %8588 = vmatpush.bf16.msra.mxu0 %v14796_v19  ;;  %v9693_v30 = vld [vmem:[#allocation19 + $0x40] sm:$0xff] }
 0xbc7   : > { %v8090_v62 = vmul.f32 0.7978846, %v8058_v40  ;;  %v8061_v49 = vadd.f32 %v8029_v35, %v7881_v15  ;;  %v7966_v11 = vmul.f32 0.044715, %v7910_v41  ;;  %v14805_v55 = vadd.f32 %v7883_v53, %v14644_v26  ;;  %8559 = vmatpush.bf16.msrb.mxu2 %v9693_v30 }
 0xbc8   : > { %v10288_v46 = vpop.eup %10287  ;;  %10291 = vtanh.f32 %v8088_v1  ;;  %v8091_v0 = vmul.f32 0.7978846, %v8059_v37  ;;  %v7996_v22 = vmul.f32 %v7964_v6, %v7852_v16  ;;  %v7967_v35 = vmul.f32 0.044715, %v14799_v13 }
 0xbc9   : > { %v10290_v2 = vpop.eup %10289  ;;  %v8151_v56 = vadd.f32 1.0, %v10288_v46  ;;  %10293 = vtanh.f32 %v8090_v62  ;;  %v8093_v28 = vmul.f32 0.7978846, %v8061_v49  ;;  %v7998_v27 = vmul.f32 %v7966_v11, %v7910_v41  ;;  %9814 = vmatpush.bf16.msra.mxu1 %v14617_v5  ;;  %v14807_v62 = vld [vmem:[#allocation19 + $0xe0] sm:$0xff] }
 0xbca   : > { %v8153_v40 = vadd.f32 1.0, %v10290_v2  ;;  %10295 = vtanh.f32 %v8091_v0  ;;  %v8028_v15 = vmul.f32 %v7996_v22, %v7852_v16  ;;  %v14809_v49 = vmul.f32 0.5, %v7852_v16  ;;  %9825 = vmatpush.bf16.msra.mxu3 %v14807_v62  ;;  %v14820_v2 = vld [vmem:[#allocation19 + $0xd8] sm:$0xff] }
 0xbcb   : > { %v8183_v37 = vmul.f32 %v8151_v56, %v7927_v54  ;;  %10297 = vtanh.f32 %v8093_v28  ;;  %v8030_v1 = vmul.f32 %v7998_v27, %v7910_v41  ;;  %v7854_v6 = vpop.f32.mrf.mxu2  ;;  %v14811_v11 = vmul.f32 0.5, %v7910_v41  ;;  %8610 = vmatpush.bf16.msra.mxu2 %v14651_v31 }
 0xbcc   : > { %v8060_v5 = vadd.f32 %v8028_v15, %v7852_v16  ;;  %v14814_v22 = vadd.f32 %v7854_v6, %v14700_v48  ;;  %v7912_v46 = vpop.f32.mrf.mxu3  ;;  %v7999_v28 = vmul.f32 %v7967_v35, %v14799_v13  ;;  %v7969_v27 = vmul.f32 0.044715, %v14805_v55 }
 0xbcd   : > { %v8062_v0 = vadd.f32 %v8030_v1, %v7910_v41  ;;  %v7913_v54 = vadd.f32 %v7912_v46, %v14711_v10  ;;  %v7827_v53 = vpop.f32.mrf.mxu1  ;;  %v8185_v56 = vmul.f32 %v8153_v40, %v14780_v51  ;;  %v14825_v41 = vmul.f32 %v8183_v37, %v14647_v34  ;;  %9815 = vmatpush.bf16.msra.mxu1 %v14629_v7 }
 0xbce   : > { %v10292_v16 = vpop.eup %10291  ;;  %v8092_v15 = vmul.f32 0.7978846, %v8060_v5  ;;  %v7968_v6 = vmul.f32 0.044715, %v14814_v22  ;;  %v7885_v17 = vpop.f32.mrf.mxu0  ;;  %v8001_v46 = vmul.f32 %v7969_v27, %v14805_v55  ;;  %v14831_v3 = vadd.f32 %v7827_v53, %v14638_v9  ;;  %9826 = vmatpush.bf16.msra.mxu3 %v14820_v2 }
 0xbcf   : > { %v10294_v35 = vpop.eup %10293  ;;  %v8152_v1 = vadd.f32 1.0, %v10292_v16  ;;  %v8094_v30 = vmul.f32 0.7978846, %v8062_v0  ;;  %v7970_v21 = vmul.f32 0.044715, %v7913_v54  ;;  %v14835_v31 = vmul.f32 %v7999_v28, %v14799_v13  ;;  %v14840_v0 = vld [vmem:[#allocation19 + $0xd0] sm:$0xff]  ;;  %8611 = vmatpush.bf16.msra.mxu2 %v14726_v8 }
 0xbd0   : > { %v10296_v51 = vpop.eup %10295  ;;  %v8154_v40 = vadd.f32 1.0, %v10294_v35  ;;  %10299 = vtanh.f32 %v8092_v15  ;;  %v8000_v5 = vmul.f32 %v7968_v6, %v14814_v22  ;;  %v14837_v7 = vmul.f32 0.5, %v7913_v54 }
 0xbd1   : > { %v10298_v34 = vpop.eup %10297  ;;  %v8155_v37 = vadd.f32 1.0, %v10296_v51  ;;  %10301 = vtanh.f32 %v8094_v30  ;;  %v8184_v27 = vmul.f32 %v8152_v1, %v14784_v57  ;;  %v14844_v16 = vmul.f32 %v8001_v46, %v14805_v55  ;;  %9816 = vmatpush.bf16.msra.mxu1 %v14640_v61 }
 0xbd2   : > { %v8157_v53 = vadd.f32 1.0, %v10298_v34  ;;  %v8002_v15 = vmul.f32 %v7970_v21, %v7913_v54  ;;  %v14849_v28 = vmul.f32 %v8154_v40, %v14787_v47  ;;  %v7971_v35 = vmul.f32 0.044715, %v14831_v3  ;;  %9827 = vmatpush.bf16.msra.mxu3 %v14840_v0 }
 0xbd3   : > { %v8187_v6 = vmul.f32 %v8155_v37, %v14791_v36  ;;  %v14854_v30 = vadd.f32 %v7885_v17, %v14644_v26  ;;  %v7856_v57 = vpop.f32.mrf.mxu2  ;;  %v14858_v46 = vmul.f32 %v8000_v5, %v14814_v22  ;;  %v8217_v17 = vmul.f32 %v8185_v56, %v14655_v59  ;;  %8612 = vmatpush.bf16.msra.mxu2 %v14782_v38 }
 0xbd4   : > { %15529 = vst [vmem:[#allocation83_spill] sm:$0xff] %v14849_v28  ;;  %v8189_v1 = vmul.f32 %v8157_v53, %v14794_v44  ;;  %v8034_v21 = vmul.f32 %v8002_v15, %v7913_v54  ;;  %v14861_v8 = vadd.f32 %v7856_v57, %v14700_v48  ;;  %v7914_v61 = vpop.f32.mrf.mxu3  ;;  %v8003_v47 = vmul.f32 %v7971_v35, %v14831_v3 }
 0xbd5   : > { %v7973_v36 = vmul.f32 0.044715, %v14854_v30  ;;  %v7915_v51 = vadd.f32 %v7914_v61, %v14711_v10  ;;  %v7830_v40 = vpop.f32.mrf.mxu1  ;;  %v8216_v15 = vmul.f32 %v8184_v27, %v14658_v29  ;;  %9817 = vmatpush.bf16.msra.mxu1 %v14676_v14  ;;  %v8219_v56 = vmul.f32 %v8187_v6, %v14664_v24 }
 0xbd6   : > { %v10300_v44 = vpop.eup %10299  ;;  %v8066_v34 = vadd.f32 %v8034_v21, %v7913_v54  ;;  %v7972_v5 = vmul.f32 0.044715, %v14861_v8  ;;  %v14870_v37 = vadd.f32 %v7830_v40, %v14638_v9  ;;  %v7888_v53 = vpop.f32.mrf.mxu0  ;;  %v8221_v54 = vmul.f32 %v8189_v1, %v14667_v63  ;;  %9828 = vmatpush.bf16.msra.mxu3 %v14879_v39 }
 0xbd7   : > { %v10302_v35 = vpop.eup %10301  ;;  %v8156_v57 = vadd.f32 1.0, %v10300_v44  ;;  %v8005_v59 = vmul.f32 %v7973_v36, %v14854_v30  ;;  %v8035_v40 = vmul.f32 %v8003_v47, %v14831_v3  ;;  %v7974_v28 = vmul.f32 0.044715, %v7915_v51  ;;  %8613 = vmatpush.bf16.msra.mxu2 %v14807_v62 }
 0xbd8   : > { %v8158_v21 = vadd.f32 1.0, %v10302_v35  ;;  %v8098_v61 = vmul.f32 0.7978846, %v8066_v34  ;;  %v8004_v38 = vmul.f32 %v7972_v5, %v14861_v8  ;;  %v7975_v14 = vmul.f32 0.044715, %v14870_v37  ;;  %v14905_v35 = vld [vmem:[#allocation19 + $0xc0] sm:$0xff] }
 0xbd9   : > { %v8188_v29 = vmul.f32 %v8156_v57, %v14809_v49  ;;  %v14885_v27 = vadd.f32 %v7888_v53, %v14644_v26  ;;  %v14888_v24 = vmul.f32 %v8005_v59, %v14854_v30  ;;  %v14890_v63 = vmul.f32 0.5, %v7915_v51  ;;  %9818 = vmatpush.bf16.msra.mxu1 %v14740_v52 }
 0xbda   : > { %10303 = vtanh.f32 %v8098_v61  ;;  %v8006_v6 = vmul.f32 %v7974_v28, %v7915_v51  ;;  %v8007_v49 = vmul.f32 %v7975_v14, %v14870_v37  ;;  %v8247_v47 = vpack.c.bf16 %v8219_v56, %v14825_v41  ;;  %9829 = vmatpush.bf16.msra.mxu3 %v14905_v35 }
 0xbdb   : > { %v7977_v1 = vmul.f32 0.044715, %v14885_v27  ;;  %v8249_v36 = vpack.c.bf16 %v8221_v54, %v8217_v17  ;;  %v7859_v44 = vpop.f32.mrf.mxu2  ;;  %v14899_v34 = vmul.f32 %v8158_v21, %v14811_v11  ;;  %v8220_v62 = vmul.f32 %v8188_v29, %v14670_v33  ;;  %8614 = vmatpush.bf16.msra.mxu2 %v14820_v2 }
 0xbdc   : > { %v8038_v5 = vmul.f32 %v8006_v6, %v7915_v51  ;;  %v14902_v28 = vadd.f32 %v7859_v44, %v14700_v48  ;;  %v7917_v53 = vpop.f32.mrf.mxu3  ;;  %v14908_v57 = vmul.f32 %v8004_v38, %v14861_v8  ;;  %v14911_v41 = vmul.f32 %v8007_v49, %v14870_v37  ;;  %8531 = vmatmul.bf16.vlgmr.msrb.gmra.mxu1 %v8247_v47 }
 0xbdd   : > { %8589 = vmatmul.bf16.vlgmr.msra.gmra.mxu0 %v8249_v36  ;;  %v14914_v52 = vadd.f32 %v7917_v53, %v14711_v10  ;;  %v7832_v11 = vpop.f32.mrf.mxu1  ;;  %v14917_v17 = vmul.f32 0.5, %v14799_v13  ;;  %v8248_v21 = vpack.c.bf16 %v8220_v62, %v8216_v15  ;;  %v8009_v61 = vmul.f32 %v7977_v1, %v14885_v27  ;;  %9819 = vmatpush.bf16.msra.mxu1 %v14761_v45 }
 0xbde   : > { %v8070_v59 = vadd.f32 %v8038_v5, %v7915_v51  ;;  %v7976_v33 = vmul.f32 0.044715, %v14902_v28  ;;  %v14921_v56 = vadd.f32 %v7832_v11, %v14638_v9  ;;  %v7890_v54 = vpop.f32.mrf.mxu0  ;;  %v8063_v51 = vadd.f32 %v14835_v31, %v14799_v13 }
 0xbdf   : > { %v7978_v29 = vmul.f32 0.044715, %v14914_v52  ;;  %v14928_v38 = vadd.f32 %v7890_v54, %v14644_v26  ;;  %8560 = vmatmul.bf16.vlgmr.msrb.gmra.mxu2 %v8248_v21  ;;  %v8067_v2 = vadd.f32 %v8035_v40, %v14831_v3  ;;  %v7939_v45 = vmul.f32 0.5, %v14831_v3 }
 0xbe0   : > { %v10304_v14 = vpop.eup %10303  ;;  %v8102_v6 = vmul.f32 0.7978846, %v8070_v59  ;;  %v8008_v15 = vmul.f32 %v7976_v33, %v14902_v28  ;;  %v7979_v49 = vmul.f32 0.044715, %v14921_v56  ;;  %v8095_v44 = vmul.f32 0.7978846, %v8063_v51  ;;  %8615 = vmatpush.bf16.msra.mxu2 %v14840_v0 }
 0xbe1   : > { %v8162_v1 = vadd.f32 1.0, %v10304_v14  ;;  %v8010_v47 = vmul.f32 %v7978_v29, %v14914_v52  ;;  %v7981_v36 = vmul.f32 0.044715, %v14928_v38  ;;  %v8099_v31 = vmul.f32 0.7978846, %v8067_v2  ;;  %9820 = vmatpush.bf16.msra.mxu1 %v14778_v23 }
 0xbe2   : > { %10305 = vtanh.f32 %v8102_v6  ;;  %v8011_v13 = vmul.f32 %v7979_v49, %v14921_v56  ;;  %v14942_v5 = vmul.f32 %v8009_v61, %v14885_v27  ;;  %v14945_v53 = vmul.f32 %v8008_v15, %v14902_v28 }
 0xbe3   : > { %v8013_v40 = vmul.f32 %v7981_v36, %v14928_v38  ;;  %v7861_v62 = vpop.f32.mrf.mxu2  ;;  %10307 = vtanh.f32 %v8095_v44  ;;  %v14950_v11 = vmul.f32 %v8162_v1, %v14837_v7  ;;  %v14953_v3 = vmul.f32 %v8010_v47, %v14914_v52 }
 0xbe4   : > { %v14956_v0 = vadd.f32 %v7861_v62, %v14700_v48  ;;  %v7919_v59 = vpop.f32.mrf.mxu3  ;;  %10309 = vtanh.f32 %v8099_v31  ;;  %v14959_v33 = vmul.f32 %v8011_v13, %v14921_v56  ;;  %v14965_v23 = vmul.f32 0.5, %v14805_v55  ;;  %8616 = vmatpush.bf16.msra.mxu2 %v14879_v39 }
 0xbe5   : > { %v14962_v54 = vadd.f32 %v7919_v59, %v14711_v10  ;;  %v7835_v21 = vpop.f32.mrf.mxu1  ;;  %v8065_v7 = vadd.f32 %v14844_v16, %v14805_v55  ;;  %v14970_v61 = vmul.f32 %v8013_v40, %v14928_v38  ;;  %v8069_v6 = vadd.f32 %v14888_v24, %v14854_v30  ;;  %9821 = vmatpush.bf16.msra.mxu1 %v14796_v19 }
 0xbe6   : > { %v7980_v29 = vmul.f32 0.044715, %v14956_v0  ;;  %v14974_v51 = vadd.f32 %v7835_v21, %v14638_v9  ;;  %v7893_v14 = vpop.f32.mrf.mxu0  ;;  %v14982_v55 = vmul.f32 0.5, %v14854_v30  ;;  %v14988_v24 = vmul.f32 0.5, %v14814_v22 }
 0xbe7   : > { %v7982_v15 = vmul.f32 0.044715, %v14962_v54  ;;  %v7894_v49 = vadd.f32 %v7893_v14, %v14644_v26  ;;  %v8097_v16 = vmul.f32 0.7978846, %v8065_v7  ;;  %v8101_v36 = vmul.f32 0.7978846, %v8069_v6 }
 0xbe8   : > { %v10306_v2 = vpop.eup %10305  ;;  %v8012_v1 = vmul.f32 %v7980_v29, %v14956_v0  ;;  %v7983_v47 = vmul.f32 0.044715, %v14974_v51  ;;  %v14991_v31 = vmul.f32 0.5, %v14861_v8  ;;  %v8064_v30 = vadd.f32 %v14858_v46, %v14814_v22  ;;  %8617 = vmatpush.bf16.msra.mxu2 %v14905_v35 }
 0xbe9   : > { %v10308_v39 = vpop.eup %10307  ;;  %v8166_v44 = vadd.f32 1.0, %v10306_v2  ;;  %v7985_v13 = vmul.f32 0.044715, %v7894_v49  ;;  %v8014_v19 = vmul.f32 %v7982_v15, %v14962_v54  ;;  %v14996_v62 = vmul.f32 0.5, %v7894_v49 }
 0xbea   : > { %v10310_v40 = vpop.eup %10309  ;;  %v8159_v59 = vadd.f32 1.0, %v10308_v39  ;;  %10311 = vtanh.f32 %v8097_v16  ;;  %v15000_v21 = vmul.f32 %v8012_v1, %v14956_v0  ;;  %v8015_v7 = vmul.f32 %v7983_v47, %v14974_v51 }
 0xbeb   : > { %v8017_v29 = vmul.f32 %v7985_v13, %v7894_v49  ;;  %v8163_v14 = vadd.f32 1.0, %v10310_v40  ;;  %v7864_v6 = vpop.f32.mrf.mxu2  ;;  %v8198_v2 = vmul.f32 %v8166_v44, %v14890_v63  ;;  %10313 = vtanh.f32 %v8101_v36 }
 0xbec   : > { %v8191_v22 = vmul.f32 %v8159_v59, %v14917_v17  ;;  %v15006_v46 = vadd.f32 %v7864_v6, %v14700_v48  ;;  %v7922_v15 = vpop.f32.mrf.mxu3  ;;  %v8068_v47 = vadd.f32 %v14908_v57, %v14861_v8  ;;  %v8096_v44 = vmul.f32 0.7978846, %v8064_v30 }
 0xbed   : > { %v8049_v16 = vmul.f32 %v8017_v29, %v7894_v49  ;;  %v8195_v39 = vmul.f32 %v8163_v14, %v7939_v45  ;;  %v15009_v35 = vadd.f32 %v7922_v15, %v14711_v10  ;;  %v7837_v1 = vpop.f32.mrf.mxu1 }
 0xbee   : > { %v8223_v13 = vmul.f32 %v8191_v22, %v14684_v20  ;;  %v7984_v63 = vmul.f32 0.044715, %v15006_v46  ;;  %v15016_v17 = vadd.f32 %v7837_v1, %v14638_v9  ;;  %v7895_v36 = vpop.f32.mrf.mxu0  ;;  %v8100_v20 = vmul.f32 0.7978846, %v8068_v47 }
 0xbef   : > { %v8081_v40 = vadd.f32 %v8049_v16, %v7894_v49  ;;  %v8227_v59 = vmul.f32 %v8195_v39, %v14705_v12  ;;  %v7986_v45 = vmul.f32 0.044715, %v15009_v35  ;;  %v7896_v29 = vadd.f32 %v7895_v36, %v14644_v26 }
 0xbf0   : > { %v10312_v14 = vpop.eup %10311  ;;  %v8016_v6 = vmul.f32 %v7984_v63, %v15006_v46  ;;  %v7987_v8 = vmul.f32 0.044715, %v15016_v17  ;;  %10315 = vtanh.f32 %v8096_v44  ;;  %v15025_v49 = vmul.f32 %v8014_v19, %v14962_v54 }
 0xbf1   : > { %v8113_v57 = vmul.f32 0.7978846, %v8081_v40  ;;  %v8251_v22 = vpack.c.bf16 %v8227_v59, %v8223_v13  ;;  %v8161_v9 = vadd.f32 1.0, %v10312_v14  ;;  %v8018_v15 = vmul.f32 %v7986_v45, %v15009_v35  ;;  %v10314_v30 = vpop.eup %10313 }
 0xbf2   : > { %v15028_v12 = vmul.f32 %v8015_v7, %v14974_v51  ;;  %v8019_v26 = vmul.f32 %v7987_v8, %v15016_v17  ;;  %v7989_v16 = vmul.f32 0.044715, %v7896_v29  ;;  %v8165_v39 = vadd.f32 1.0, %v10314_v30 }
 0xbf3   : > { %10317 = vtanh.f32 %v8113_v57  ;;  %8536 = vmatmul.bf16.gmra.mxu1 %v8251_v22  ;;  %v8193_v1 = vmul.f32 %v8161_v9, %v14965_v23  ;;  %v15033_v47 = vmul.f32 %v8016_v6, %v15006_v46  ;;  %v7866_v13 = vpop.f32.mrf.mxu2  ;;  %v15036_v63 = vmul.f32 %v8018_v15, %v15009_v35 }
 0xbf4   : > { %v15038_v19 = vmul.f32 0.5, %v7896_v29  ;;  %v8021_v36 = vmul.f32 %v7989_v16, %v7896_v29  ;;  %10319 = vtanh.f32 %v8100_v20  ;;  %v7924_v7 = vpop.f32.mrf.mxu3  ;;  %v8197_v44 = vmul.f32 %v8165_v39, %v14982_v55 }
 0xbf5   : > { %v8226_v40 = vmul.f32 %v14950_v11, %v14697_v18  ;;  %v8230_v59 = vmul.f32 %v8198_v2, %v14719_v42  ;;  %v15045_v23 = vadd.f32 %v7866_v13, %v14700_v48  ;;  %v8225_v14 = vmul.f32 %v8193_v1, %v14688_v50 }
 0xbf6   : > { %v10316_v45 = vpop.eup %10315  ;;  %v15049_v6 = vmul.f32 %v8019_v26, %v15016_v17  ;;  %v8053_v8 = vmul.f32 %v8021_v36, %v7896_v29  ;;  %v15052_v20 = vadd.f32 %v7924_v7, %v14711_v10  ;;  %v8229_v55 = vmul.f32 %v8197_v44, %v14709_v32 }
 0xbf7   : > { %v8160_v57 = vadd.f32 1.0, %v10316_v45  ;;  %v8254_v22 = vpack.c.bf16 %v8230_v59, %v8226_v40  ;;  %v7988_v18 = vmul.f32 0.044715, %v15045_v23  ;;  %v8071_v11 = vadd.f32 %v14911_v41, %v14870_v37 }
 0xbf8   : > { %v8085_v42 = vadd.f32 %v8053_v8, %v7896_v29  ;;  %v7990_v48 = vmul.f32 0.044715, %v15052_v20  ;;  %v8075_v50 = vadd.f32 %v14959_v33, %v14921_v56  ;;  %v8253_v9 = vpack.c.bf16 %v8229_v55, %v8225_v14 }
 0xbf9   : > { %v10318_v2 = vpop.eup %10317  ;;  %v8192_v10 = vmul.f32 %v8160_v57, %v14988_v24  ;;  %8623 = vmatmul.bf16.vlgmr.msra.gmra.mxu3 %v8254_v22  ;;  %v8020_v32 = vmul.f32 %v7988_v18, %v15045_v23  ;;  %v7943_v15 = vmul.f32 0.5, %v14870_v37  ;;  %v8103_v39 = vmul.f32 0.7978846, %v8071_v11 }
 0xbfa   : > { %v10320_v30 = vpop.eup %10319  ;;  %v8177_v26 = vadd.f32 1.0, %v10318_v2  ;;  %v8117_v29 = vmul.f32 0.7978846, %v8085_v42  ;;  %v8022_v16 = vmul.f32 %v7990_v48, %v15052_v20  ;;  %8594 = vmatmul.bf16.gmra.mxu0 %v8253_v9  ;;  %v7947_v1 = vmul.f32 0.5, %v14921_v56 }
 0xbfb   : > { %v8164_v41 = vadd.f32 1.0, %v10320_v30  ;;  %v8107_v33 = vmul.f32 0.7978846, %v8075_v50  ;;  %v15067_v13 = vmul.f32 0.5, %v14885_v27  ;;  %v8224_v37 = vmul.f32 %v8192_v10, %v14693_v58 }
 0xbfc   : > { %v15070_v24 = vmul.f32 %v8177_v26, %v14996_v62  ;;  %10321 = vtanh.f32 %v8117_v29  ;;  %v8052_v36 = vmul.f32 %v8020_v32, %v15045_v23  ;;  %v8073_v44 = vadd.f32 %v14942_v5, %v14885_v27 }
 0xbfd   : > { %v8196_v7 = vmul.f32 %v8164_v41, %v14991_v31  ;;  %10323 = vtanh.f32 %v8103_v39  ;;  %v8077_v56 = vadd.f32 %v14970_v61, %v14928_v38  ;;  %v15080_v40 = vmul.f32 %v8022_v16, %v15052_v20 }
 0xbfe   : > { %10325 = vtanh.f32 %v8107_v33  ;;  %v7949_v62 = vmul.f32 0.5, %v14928_v38  ;;  %v8072_v58 = vadd.f32 %v14945_v53, %v14902_v28  ;;  %v8105_v45 = vmul.f32 0.7978846, %v8073_v44 }
 0xbff   : > { %v8228_v59 = vmul.f32 %v8196_v7, %v14715_v60  ;;  %v8109_v31 = vmul.f32 0.7978846, %v8077_v56  ;;  %v8076_v14 = vadd.f32 %v15000_v21, %v14956_v0  ;;  %v7944_v27 = vmul.f32 0.5, %v14902_v28 }
 0xc00   : > { %v15090_v5 = vmul.f32 0.5, %v14956_v0  ;;  %v8104_v61 = vmul.f32 0.7978846, %v8072_v58  ;;  %v8074_v8 = vadd.f32 %v14953_v3, %v14914_v52  ;;  %10327 = vtanh.f32 %v8105_v45 }
 0xc01   : > { %v8252_v38 = vpack.c.bf16 %v8228_v59, %v8224_v37  ;;  %v8108_v55 = vmul.f32 0.7978846, %v8076_v14  ;;  %v8078_v60 = vadd.f32 %v15025_v49, %v14962_v54  ;;  %10329 = vtanh.f32 %v8109_v31 }
 0xc02   : > { %v10322_v53 = vpop.eup %10321  ;;  %v7946_v57 = vmul.f32 0.5, %v14914_v52  ;;  %v15098_v21 = vmul.f32 0.5, %v14962_v54  ;;  %v8106_v28 = vmul.f32 0.7978846, %v8074_v8  ;;  %10331 = vtanh.f32 %v8104_v61 }
 0xc03   : > { %v10324_v0 = vpop.eup %10323  ;;  %8565 = vmatmul.bf16.gmra.mxu2 %v8252_v38  ;;  %v8110_v22 = vmul.f32 0.7978846, %v8078_v60  ;;  %v7951_v3 = vmul.f32 0.5, %v14974_v51  ;;  %v8079_v18 = vadd.f32 %v15028_v12, %v14974_v51  ;;  %v8181_v48 = vadd.f32 1.0, %v10322_v53 }
 0xc04   : > { %v10326_v42 = vpop.eup %10325  ;;  %v8167_v49 = vadd.f32 1.0, %v10324_v0  ;;  %10333 = vtanh.f32 %v8108_v55  ;;  %v8083_v52 = vadd.f32 %v15049_v6, %v15016_v17  ;;  %v7955_v54 = vmul.f32 0.5, %v15016_v17 }
 0xc05   : > { %v8171_v11 = vadd.f32 1.0, %v10326_v42  ;;  %10335 = vtanh.f32 %v8106_v28  ;;  %v8111_v50 = vmul.f32 0.7978846, %v8079_v18  ;;  %v15107_v10 = vmul.f32 0.5, %v15006_v46 }
 0xc06   : > { %v8199_v2 = vmul.f32 %v8167_v49, %v7943_v15  ;;  %10337 = vtanh.f32 %v8110_v22  ;;  %v8115_v9 = vmul.f32 0.7978846, %v8083_v52  ;;  %v10328_v32 = vpop.eup %10327  ;;  %v8080_v12 = vadd.f32 %v15033_v47, %v15006_v46  ;;  %v15533_v22 = vld [vmem:[#allocation77_spill] sm:$0xff]  ;;  %v15534_v49 = vld [vmem:[#allocation80_spill] sm:$0xff] }
 0xc07   : > { %v8203_v51 = vmul.f32 %v8171_v11, %v7947_v1  ;;  %10339 = vtanh.f32 %v8111_v50  ;;  %v8084_v30 = vadd.f32 %v8052_v36, %v15045_v23  ;;  %v10330_v6 = vpop.eup %10329  ;;  %v8213_v26 = vmul.f32 %v8181_v48, %v15038_v19 }
 0xc08   : > { %v8231_v17 = vmul.f32 %v8199_v2, %v14723_v43  ;;  %v8169_v29 = vadd.f32 1.0, %v10328_v32  ;;  %10341 = vtanh.f32 %v8115_v9  ;;  %v10332_v15 = vpop.eup %10331  ;;  %v8173_v39 = vadd.f32 1.0, %v10330_v6  ;;  %v15536_v9 = vld [vmem:[#allocation66_spill] sm:$0xff] }
 0xc09   : > { %v8235_v16 = vmul.f32 %v8203_v51, %v14744_v4  ;;  %v8112_v41 = vmul.f32 0.7978846, %v8080_v12  ;;  %v8116_v33 = vmul.f32 0.7978846, %v8084_v30  ;;  %v8168_v7 = vadd.f32 1.0, %v10332_v15  ;;  %v15538_v30 = vld [vmem:[#allocation69_spill] sm:$0xff] }
 0xc0a   : > { %v10334_v1 = vpop.eup %10333  ;;  %v8201_v37 = vmul.f32 %v8169_v29, %v15067_v13  ;;  %v7956_v46 = vmul.f32 0.5, %v15045_v23  ;;  %v8082_v47 = vadd.f32 %v15036_v63, %v15009_v35  ;;  %v8205_v43 = vmul.f32 %v8173_v39, %v7949_v62  ;;  %v15530_v13 = vld [vmem:[#allocation78_spill] sm:$0xff]  ;;  %v15531_v62 = vld [vmem:[#allocation76_spill] sm:$0xff]  ;;  %v15540_v15 = vld [vmem:[#allocation83_spill] sm:$0xff] }
 0xc0b   : > { %v10336_v19 = vpop.eup %10335  ;;  %v8255_v36 = vpack.c.bf16 %v8235_v16, %v8231_v17  ;;  %v8172_v44 = vadd.f32 1.0, %v10334_v1  ;;  %10343 = vtanh.f32 %v8112_v41  ;;  %v8200_v58 = vmul.f32 %v8168_v7, %v7944_v27  ;;  %v15532_v27 = vld [vmem:[#allocation79_spill] sm:$0xff]  ;;  %v15539_v29 = vld [vmem:[#allocation74_spill] sm:$0xff]  ;;  %v15544_v7 = vld [vmem:[#allocation72_spill] sm:$0xff] }
 0xc0c   : > { %v10338_v56 = vpop.eup %10337  ;;  %v8233_v4 = vmul.f32 %v8201_v37, %v14730_v25  ;;  %v8170_v59 = vadd.f32 1.0, %v10336_v19  ;;  %10345 = vtanh.f32 %v8116_v33  ;;  %v8237_v31 = vmul.f32 %v8205_v43, %v15530_v13  ;;  %v15541_v39 = vld [vmem:[#allocation70_spill] sm:$0xff]  ;;  %v15543_v1 = vld [vmem:[#allocation75_spill] sm:$0xff] }
 0xc0d   : > { %v10340_v45 = vpop.eup %10339  ;;  %8541 = vmatmul.bf16.gmra.mxu1 %v8255_v36  ;;  %v8204_v23 = vmul.f32 %v8172_v44, %v15090_v5  ;;  %v8174_v14 = vadd.f32 1.0, %v10338_v56  ;;  %v8086_v63 = vadd.f32 %v15080_v40, %v15052_v20  ;;  %v8232_v8 = vmul.f32 %v8200_v58, %v15531_v62 }
 0xc0e   : > { %v10342_v61 = vpop.eup %10341  ;;  %v8202_v38 = vmul.f32 %v8170_v59, %v7946_v57  ;;  %v8175_v55 = vadd.f32 1.0, %v10340_v45  ;;  %v8114_v60 = vmul.f32 0.7978846, %v8082_v47  ;;  %v8257_v25 = vpack.c.bf16 %v8237_v31, %v8233_v4  ;;  %v15535_v57 = vld [vmem:[#allocation81_spill] sm:$0xff] }
 0xc0f   : > { %v8236_v53 = vmul.f32 %v8204_v23, %v15532_v27  ;;  %v8206_v28 = vmul.f32 %v8174_v14, %v15098_v21  ;;  %v8179_v0 = vadd.f32 1.0, %v10342_v61  ;;  %v8118_v5 = vmul.f32 0.7978846, %v8086_v63  ;;  %v15537_v21 = vld [vmem:[#allocation82_spill] sm:$0xff]  ;;  %v15546_v23 = vld [vmem:[#allocation68_spill] sm:$0xff]  ;;  %v15547_v63 = vld [vmem:[#allocation73_spill] sm:$0xff] }
 0xc10   : > { %v8234_v18 = vmul.f32 %v8202_v38, %v15533_v22  ;;  %v8207_v42 = vmul.f32 %v8175_v55, %v7951_v3  ;;  %10347 = vtanh.f32 %v8114_v60  ;;  %8599 = vmatmul.bf16.gmra.mxu0 %v8257_v25  ;;  %v8241_v50 = vmul.f32 %v15070_v24, %v15535_v57 }
 0xc11   : > { %v10344_v48 = vpop.eup %10343  ;;  %v8256_v40 = vpack.c.bf16 %v8236_v53, %v8232_v8  ;;  %v8238_v52 = vmul.f32 %v8206_v28, %v15534_v49  ;;  %v8211_v11 = vmul.f32 %v8179_v0, %v7955_v54  ;;  %10349 = vtanh.f32 %v8118_v5  ;;  %v15542_v54 = vld [vmem:[#allocation67_spill] sm:$0xff] }
 0xc12   : > { %v10346_v2 = vpop.eup %10345  ;;  %v8239_v32 = vmul.f32 %v8207_v42, %v15536_v9  ;;  %v8176_v51 = vadd.f32 1.0, %v10344_v48  ;;  %v8245_v12 = vmul.f32 %v8213_v26, %v15537_v21  ;;  %v8218_v16 = vmul.f32 %v15540_v15, %v15539_v29  ;;  %v15550_v29 = vld [vmem:[#allocation61_spill] sm:$0xff] }
 0xc13   : > { %8570 = vmatmul.bf16.gmra.mxu2 %v8256_v40  ;;  %v8258_v3 = vpack.c.bf16 %v8238_v52, %v8234_v18  ;;  %v8243_v6 = vmul.f32 %v8211_v11, %v15538_v30  ;;  %v8180_v17 = vadd.f32 1.0, %v10346_v2  ;;  %v7749_v41 = vadd.f32 %v15542_v54, %v15541_v39 }
 0xc14   : > { %v8208_v24 = vmul.f32 %v8176_v51, %v15107_v10  ;;  %v8261_v33 = vpack.c.bf16 %v8245_v12, %v8241_v50  ;;  %v8222_v37 = vmul.f32 %v14899_v34, %v15543_v1  ;;  %v7751_v26 = vadd.f32 %v15544_v7, %v15541_v39  ;;  %v15545_v34 = vld [vmem:[#allocation71_spill] sm:$0xff] }
 0xc15   : > { %8628 = vmatmul.bf16.gmra.mxu3 %v8258_v3  ;;  %v8259_v47 = vpack.c.bf16 %v8243_v6, %v8239_v32  ;;  %v8212_v19 = vmul.f32 %v8180_v17, %v7956_v46  ;;  %v7954_v4 = vmul.f32 0.5, %v15009_v35  ;;  %v7958_v10 = vmul.f32 0.5, %v15052_v20  ;;  %v15152_v35 = vld [vmem:[%s15548_s18] ss:$0 sm:$0xff]  ;;  %v15549_v6 = vld [vmem:[#allocation60_spill] sm:$0xff]  ;;  %s10671_s18 = scalar_lea.hbm %s15557_s17, 128 }
 0xc16   : > { %v10348_v36 = vpop.eup %10347  ;;  %v8240_v43 = vmul.f32 %v8208_v24, %v7749_v41  ;;  %v8250_v44 = vpack.c.bf16 %v8222_v37, %v8218_v16  ;;  %v7807_v14 = vadd.f32 %v15546_v23, %v15545_v34  ;;  %v7809_v61 = vadd.f32 %v15547_v63, %v15545_v34  ;;  %p10673_p11 = scmp.lt.s32.totalorder %s10671_s18, %s10667_s9 }
 0xc17   : > { %v8244_v56 = vmul.f32 %v8212_v19, %v7751_v26  ;;  %v8178_v58 = vadd.f32 1.0, %v10348_v36  ;;  %v10350_v59 = vpop.eup %10349 }
 0xc18   : > { %v8182_v13 = vadd.f32 1.0, %v10350_v59  ;;  %p10674_p2 = por %p10673_p11, %p10672_p9 }
 0xc19   : > { %v8260_v45 = vpack.c.bf16 %v8244_v56, %v8240_v43  ;;  %v8210_v31 = vmul.f32 %v8178_v58, %v7954_v4  ;;  %v15551_v58 = vld [vmem:[#allocation62_spill] sm:$0xff] }
 0xc1a   : > { %v8214_v46 = vmul.f32 %v8182_v13, %v7958_v10  ;;  %p10675_p4 = pnand %p10674_p2, %p10670_p3 }
 0xc1b   : > { %v8242_v62 = vmul.f32 %v8210_v31, %v7807_v14 }
 0xc1c   : > { %v8246_v8 = vmul.f32 %v8214_v46, %v7809_v61 }
 0xc1d   : > { %8546 = vmatmul.bf16.gmra.mxu1 %v8259_v47 }
 0xc1e   : > { %v8262_v38 = vpack.c.bf16 %v8246_v8, %v8242_v62 }
 0xc23   : > { %8575 = vmatmul.bf16.gmra.mxu2 %v8260_v45  ;;  %v15552_v45 = vld [vmem:[#allocation63_spill] sm:$0xff] }
 0xc25   : > { %8633 = vmatmul.bf16.gmra.mxu3 %v8262_v38 }
 0xc2d   : > { %8604 = vmatmul.bf16.vlgmr.msra.gmra.mxu1 %v8261_v33 }
 0xc33   : > { %8618 = vmatmul.bf16.vlgmr.msra.gmra.mxu2 %v8250_v44 }
 0xc59   : > { %v8532_v20 = vpop.f32.mrf.mxu1 }
 0xc5a   : > { %v8533_v55 = vadd.f32 %v15152_v35, %v8532_v20  ;;  %v8590_v53 = vpop.f32.mrf.mxu0 }
 0xc61   : > { %v15155_v27 = vpop.f32.mrf.mxu1 }
 0xc62   : > { %v8561_v60 = vpop.f32.mrf.mxu2  ;;  %v15157_v0 = vpop.f32.mrf.mxu0 }
 0xc63   : > { %v8562_v25 = vadd.f32 %v8561_v60, %v8533_v55 }
 0xc65   : > { %v15161_v48 = vadd.f32 %v8590_v53, %v8562_v25 }
 0xc6a   : > { %v15159_v22 = vpop.f32.mrf.mxu2 }
 0xc70   : > { %v8537_v28 = vpop.f32.mrf.mxu1 }
 0xc71   : > { %v8538_v49 = vadd.f32 %v15152_v35, %v8537_v28  ;;  %v8535_v28 = vadd.f32 %v15152_v35, %v15155_v27 }
 0xc77   : > { %v8595_v42 = vpop.f32.mrf.mxu0 }
 0xc78   : > { %v8539_v18 = vpop.f32.mrf.mxu1 }
 0xc79   : > { %v8540_v50 = vadd.f32 %v15152_v35, %v8539_v18  ;;  %v15555_v18 = vld [vmem:[#allocation64_spill] sm:$0xff] }
 0xc7c   : > { %v8624_v5 = vpop.f32.mrf.mxu3 }
 0xc7f   : > { %v8597_v57 = vpop.f32.mrf.mxu0 }
 0xc84   : > { %v8626_v32 = vpop.f32.mrf.mxu3 }
 0xc86   : > { %v8566_v40 = vpop.f32.mrf.mxu2 }
 0xc87   : > { %v8567_v52 = vadd.f32 %v8566_v40, %v8538_v49  ;;  %v8564_v49 = vadd.f32 %v15159_v22, %v8535_v28 }
 0xc89   : > { %v8596_v2 = vadd.f32 %v8595_v42, %v8567_v52 }
 0xc8a   : > { %v8542_v11 = vpop.f32.mrf.mxu1 }
 0xc8b   : > { %v8625_v21 = vadd.f32 %v8624_v5, %v8596_v2  ;;  %v8543_v54 = vadd.f32 %v15152_v35, %v8542_v11  ;;  %v15556_v5 = vld [vmem:[#allocation65_spill] sm:$0xff]  ;;  %v15560_v2 = vld [vmem:[#allocation39_spill] sm:$0xff] }
 0xc8d   : > { %v8641_v17 = vadd.f32 %v8625_v21, %v15549_v6  ;;  %v8600_v16 = vpop.f32.mrf.mxu0 }
 0xc8e   : > { %v8568_v9 = vpop.f32.mrf.mxu2 }
 0xc8f   : > { %v8569_v51 = vadd.f32 %v8568_v9, %v8540_v50  ;;  %v15559_v50 = vld [vmem:[#allocation38_spill] sm:$0xff] }
 0xc91   : > { %v8598_v12 = vadd.f32 %v8597_v57, %v8569_v51  ;;  %v8593_v57 = vadd.f32 %v15157_v0, %v8564_v49 }
 0xc92   : > { %v8544_v3 = vpop.f32.mrf.mxu1 }
 0xc93   : > { %v8627_v30 = vadd.f32 %v8626_v32, %v8598_v12  ;;  %v8545_v37 = vadd.f32 %v15152_v35, %v8544_v3 }
 0xc95   : > { %v8642_v15 = vadd.f32 %v8627_v30, %v15550_v29  ;;  %v8602_v19 = vpop.f32.mrf.mxu0 }
 0xc96   : > { %v8571_v39 = vpop.f32.mrf.mxu2 }
 0xc97   : > { %v9773_v41 = vpack.c.bf16 %v8642_v15, %v8641_v17  ;;  %v8572_v33 = vadd.f32 %v8571_v39, %v8543_v54 }
 0xc98   : > { %v8629_v24 = vpop.f32.mrf.mxu3 }
 0xc99   : > { %9795 = vst [vmem:[%s11162_s24 + $0x8] sm:$0xff] %v9773_v41   ;;  %v8601_v7 = vadd.f32 %v8600_v16, %v8572_v33 }
 0xc9a   : > { %v8547_v1 = vpop.f32.mrf.mxu1 }
 0xc9b   : > { %v8630_v43 = vadd.f32 %v8629_v24, %v8601_v7  ;;  %v8548_v14 = vadd.f32 %v15152_v35, %v8547_v1 }
 0xc9d   : > { %v8643_v59 = vadd.f32 %v8630_v43, %v15551_v58 }
 0xc9e   : > { %v8573_v26 = vpop.f32.mrf.mxu2 }
 0xc9f   : > { %v8574_v47 = vadd.f32 %v8573_v26, %v8545_v37 }
 0xca0   : > { %v8631_v36 = vpop.f32.mrf.mxu3 }
 0xca1   : > { %v8603_v44 = vadd.f32 %v8602_v19, %v8574_v47 }
 0xca2   : > { %v8549_v56 = vpop.f32.mrf.mxu1 }
 0xca3   : > { %v8632_v4 = vadd.f32 %v8631_v36, %v8603_v44  ;;  %v8550_v46 = vadd.f32 %v15152_v35, %v8549_v56 }
 0xca5   : > { %v8644_v10 = vadd.f32 %v8632_v4, %v15552_v45 }
 0xca6   : > { %v8576_v13 = vpop.f32.mrf.mxu2 }
 0xca7   : > { %v9778_v31 = vpack.c.bf16 %v8644_v10, %v8643_v59  ;;  %v8577_v63 = vadd.f32 %v8576_v13, %v8548_v14 }
 0xca8   : > { %v8634_v34 = vpop.f32.mrf.mxu3 }
 0xca9   : > { %9796 = vst [vmem:[%s11162_s24 + $0x10] sm:$0xff] %v9778_v31  }
 0xcaa   : > { %v8605_v23 = vpop.f32.mrf.mxu1 }
 0xcab   : > { %v8606_v62 = vadd.f32 %v8605_v23, %v8577_v63 }
 0xcad   : > { %v8635_v20 = vadd.f32 %v8634_v34, %v8606_v62 }
 0xcae   : > { %v8578_v61 = vpop.f32.mrf.mxu2 }
 0xcaf   : > { %v8579_v8 = vadd.f32 %v8578_v61, %v8550_v46  ;;  %v8645_v42 = vadd.f32 %v8635_v20, %v15555_v18 }
 0xcb0   : > { %v8636_v60 = vpop.f32.mrf.mxu3 }
 0xcb2   : > { %v8607_v38 = vpop.f32.mrf.mxu1 }
 0xcb3   : > { %v8608_v55 = vadd.f32 %v8607_v38, %v8579_v8 }
 0xcb5   : > { %v8637_v25 = vadd.f32 %v8636_v60, %v8608_v55 }
 0xcb6   : > { %v8619_v53 = vpop.f32.mrf.mxu2 }
 0xcb7   : > { %v8646_v40 = vadd.f32 %v8637_v25, %v15556_v5  ;;  %v8620_v11 = vadd.f32 %v8619_v53, %v15161_v48 }
 0xcb9   : > { %v9783_v52 = vpack.c.bf16 %v8646_v40, %v8645_v42  ;;  %v8639_v22 = vadd.f32 %v8620_v11, %v15559_v50 }
 0xcbb   : > { %9797 = vst [vmem:[%s11162_s24 + $0x18] sm:$0xff] %v9783_v52  }
 0xcbe   : > { %v8621_v35 = vpop.f32.mrf.mxu2 }
 0xcbf   : > { %v8622_v27 = vadd.f32 %v8621_v35, %v8593_v57 }
 0xcc1   : > { %v8640_v9 = vadd.f32 %v8622_v27, %v15560_v2 }
 0xcc3   : > { %v9768_v32 = vpack.c.bf16 %v8640_v9, %v8639_v22 }
 0xcc5   : > { %9769 = vst [vmem:[%s11162_s24] sm:$0xff] %v9768_v32  }
 0xcc6   : > { %10678 = shalt.err (!%p10675_p4)
}
 0xcc7   : > { %s10819_s13 = smov 4  }
 0xcc8   : > { %9866 = dma.vmem_to_hbm [thread:$0]  (%p11081_p12), %s8679_s30, 512, %s8681_s16, %s8664_s4, %s10816_s2, %s10816_s2, %s10819_s13  }
 0xcc9 PF: > { %s15561_s24 = sld [smem:[#allocation30_spill]]  ;;  %p9921_p5 = scmp.ge.s32.totalorder %s10797_s28, 2 }
 0xccb   : > { %p9901_p6 = pnand %p9921_p5, %p11085_p7 }
 0xccd   : > { %p9902_p8 = pneg %p9901_p6 }
 0xccf   : > { %s8695_s5 = sand.u32 1, %s15561_s24  }
 0xcd0   : > { %s8696_s21 = scalar_lea.sflag [#allocation6], %s8695_s5 }
 0xcd1   : > { %10752 = dma.done.wait (%p9902_p8), %s8696_s21, 512  }
 0xcd2   : > { %10754 = vsyncadd (%p9902_p8), %s8696_s21, 4294966784  ;;  %s38_s28 = sadd.s32 1, %s10797_s28   ;;  %s15563_s2 = sld [smem:[#allocation34_spill]] }
 0xcd3   : > { %p35_p10 = scmp.ge.s32.totalorder %s38_s28, 6   ;;  %s15564_s3 = sld [smem:[#allocation35_spill]] }
 0xcd4   : > { %s15565_s18 = smov %s10761_s19  ;;  %s15566_s19 = smov %s10765_s20 }
 0xcd5   : > { %s15567_s20 = smov %s11098_s1  ;;  %s15568_s21 = smov %s10773_s22 }
 0xcd6   : > { %s15569_s22 = smov %s10777_s23  ;;  %s15570_s23 = smov %s11095_s8 }
 0xcd7   : > { %s15571_s24 = smov %s10789_s26  ;;  %s15572_s25 = smov %s10793_s27 }
 0xcd8   : > { %s15573_s26 = smov %s15563_s2  ;;  %37 = sbr.rel (!%p35_p10) target bundleno = 32 (0x20), region = 174 }
 0xcd9   : > { %s15574_s27 = smov %s15564_s3 }
 0xcdd   :  { %8702 = vsyncpa [#allocation5], 1 }
 0xcde   :  { %8704 = vsyncpa [#allocation5 + $0x1], 1 }
 0xcdf   :  { %8705 = vsyncpa [#allocation8], 1 }
 0xce0   :  { %8707 = vsyncpa [#allocation8 + $0x1], 1 }
 0xce1   :  { %8708 = vsyncpa [#allocation11], 1 }
 0xce2   :  { %8709 = vsyncpa [#allocation14], 1 }
 0xce3   :  { %8710 = vsyncpa [#allocation17], 1 }
 0xce4   :  { %8711 = vsyncpa [#allocation20], 1 }
 0xce5   :  { %8712 = vsyncpa [#allocation6], 1 }
 0xce6   :  { %8714 = vsyncpa [#allocation6 + $0x1], 1 }

</bundles_post_ra>
